<compile_context>
chip_gen: v5e
topology: v5e:2x2
jax: 0.10.0
libtpu: 0.0.40
codegen_flags: <defaults>
</compile_context>

<pallas_src>
import functools

import jax
import jax.numpy as jnp
from jax import lax
from jax.experimental import pallas as pl
from jax.experimental.pallas import tpu as pltpu

LANE = 128  # channel dims are padded to a multiple of the TPU lane width


def _round_up(n, m):
    return ((n + m - 1) // m) * m


def _pad_axis(a, size, axis):
    if a.shape[axis] == size:
        return a
    widths = [(0, 0)] * a.ndim
    widths[axis] = (0, size - a.shape[axis])
    return jnp.pad(a, widths)


@functools.lru_cache(maxsize=None)
def _vmem_limit_bytes():
    """Per-core VMEM budget (v7x has 64 MiB/TC vs 128 MiB on v5e/v6e)."""
    cap = 64 << 20
    try:
        cap = int(pltpu.get_tpu_info().vmem_capacity_bytes)
    except Exception:  # query unavailable -> conservative default
        pass
    return max(min(cap - (8 << 20), 96 << 20), 16 << 20)


@functools.lru_cache(maxsize=None)
def _single_buffer_supported():
    """True iff pipeline_mode=pl.Buffered(1) works on this JAX/libtpu combo."""
    if not hasattr(pl, "Buffered"):
        return False
    try:
        def k(x_ref, o_ref):
            o_ref[...] = x_ref[...] + 1.0
        f = pl.pallas_call(
            k, grid=(2,),
            in_specs=[pl.BlockSpec((8, 128), lambda i: (0, 0),
                                   pipeline_mode=pl.Buffered(1))],
            out_specs=pl.BlockSpec((8, 128), lambda i: (0, 0)),
            out_shape=jax.ShapeDtypeStruct((8, 128), jnp.float32))
        jax.block_until_ready(f(jnp.zeros((8, 128), jnp.float32)))
        return True
    except Exception:
        return False


def _estimate_vmem_bytes(th, wd, cinp, coutp, sz):
    p = sz // 2
    wpad = _round_up(wd + 2 * p, 8)
    nw = 1 if _single_buffer_supported() else 2
    f32, bf16 = 4, 2
    return (2 * th * wd * cinp * f32                      # input tile (double buf)
            + 4 * p * wd * cinp * f32                     # top/bottom halo tiles
            + nw * (sz * sz + 1) * cinp * coutp * bf16    # conv + proj weights
            + 6 * th * wd * coutp * f32                   # residual + 2 outputs
            + (th + 2 * p) * wpad * cinp * bf16           # padded-window scratch
            + th * wd * coutp * f32)                      # f32 accumulator spill


def _choose_row_tile(h, wd, cinp, coutp, sz, vmem_limit):
    """Largest legal row tile whose estimated footprint fits ~60% of the budget."""
    p = sz // 2
    legal = [t for t in range(1, h + 1)
             if h % t == 0 and (p == 0 or (t >= p and t % p == 0))]
    budget = int(0.6 * vmem_limit)
    for t in sorted(legal, reverse=True):
        if _estimate_vmem_bytes(t, wd, cinp, coutp, sz) <= budget:
            return t
    return min(legal)


# ----------------------------- Pallas kernels ------------------------------ #

def _style_linear_kernel(s_ref, w_ref, b_ref, o_ref):
    o_ref[...] = (jnp.dot(s_ref[...], w_ref[...],
                          preferred_element_type=jnp.float32)
                  + b_ref[...]).astype(o_ref.dtype)


def style_linear(style, w, b):
    """style: (N, S), w: (S, C), b: (C,) -> (N, C).  Tiny; single VMEM block."""
    n = style.shape[0]
    c = w.shape[1]
    return pl.pallas_call(
        _style_linear_kernel,
        out_shape=jax.ShapeDtypeStruct((n, c), jnp.float32),
        in_specs=[pl.BlockSpec(memory_space=pltpu.MemorySpace.VMEM)] * 3,
        out_specs=pl.BlockSpec(memory_space=pltpu.MemorySpace.VMEM),
    )(style, w, b.reshape(1, c))


def _fused_conv_kernel(*refs, sz, apply_relu, has_feat, has_res, has_proj):
    """One grid step: BN(+style feat) -> ReLU -> conv(sz) (+bias, +residual) for a
    (1, row_tile, W, Cout) output tile; optionally also the fused 1x1 projection."""
    p = sz // 2
    it = iter(refs)
    x_ref = next(it)                                 # (1, TH, W, Cin) raw input rows
    top_ref = next(it) if p > 0 else None            # (1, p, W, Cin) rows above tile
    bot_ref = next(it) if p > 0 else None            # (1, p, W, Cin) rows below tile
    scale_ref = next(it)                             # (1, Cin)  folded BN scale
    shift_ref = next(it)                             # (1, Cin)  folded BN shift
    w_ref = next(it)                                 # (sz*sz*Cin, Cout) bf16
    b_ref = next(it)                                 # (1, Cout) f32
    feat_ref = next(it) if has_feat else None        # (1, 1, Cin)
    res_ref = next(it) if has_res else None          # (1, TH, W, Cout)
    pw_ref = next(it) if has_proj else None          # (Cin, Cout) bf16 (BN folded)
    pb_ref = next(it) if has_proj else None          # (1, Cout)
    o_ref = next(it)                                 # (1, TH, W, Cout)
    po_ref = next(it) if has_proj else None          # (1, TH, W, Cout)
    pad_ref = next(it)                               # (TH+2p, Wpad, Cin) bf16 scratch

    _, th, wd, cin = x_ref.shape
    cout = o_ref.shape[-1]
    j = pl.program_id(1)
    last_j = pl.num_programs(1) - 1

    # BN folded to scale/shift; the pre-BN style-feature add folds into the shift:
    #   bn(x + f) = x*scale + (shift + f*scale)
    scale = scale_ref[...].reshape(1, 1, cin)
    shift = shift_ref[...].reshape(1, 1, cin)
    if has_feat:
        shift = shift + feat_ref[...].reshape(1, 1, cin) * scale

    def pre(rows):                                   # BN(+feat) -> ReLU in f32
        v = rows * scale + shift
        if apply_relu:
            v = jnp.maximum(v, 0.0)
        return v.astype(pad_ref.dtype)               # store as bf16 MXU operand

    if p > 0:
        # left/right zero columns every step (covers the halo-row corners too);
        # top/bottom zero rows only at the true image border -- interior tiles
        # get those rows from the neighbouring-tile halo blocks instead.
        zcol = jnp.zeros((th + 2 * p, p, cin), pad_ref.dtype)
        pad_ref[:, :p, :] = zcol
        pad_ref[:, wd + p:wd + 2 * p, :] = zcol
        zrow = jnp.zeros((p, pad_ref.shape[1], cin), pad_ref.dtype)

        @pl.when(j == 0)
        def _():
            pad_ref[:p, :, :] = zrow

        @pl.when(j == last_j)
        def _():
            pad_ref[th + p:, :, :] = zrow

        @pl.when(j > 0)
        def _():
            pad_ref[:p, p:p + wd, :] = pre(top_ref[0])

        @pl.when(j < last_j)
        def _():
            pad_ref[th + p:, p:p + wd, :] = pre(bot_ref[0])

    pad_ref[p:p + th, p:p + wd, :] = pre(x_ref[0])

    # ---- conv = sz*sz per-tap MXU matmuls accumulated in f32 (no im2col) --- #
    acc = jnp.dot(pad_ref[0:th, 0:wd, :].reshape(th * wd, cin),
                  w_ref[0:cin, :], preferred_element_type=jnp.float32)
    for tap in range(1, sz * sz):
        kh, kw = divmod(tap, sz)
        acc = acc + jnp.dot(
            pad_ref[kh:kh + th, kw:kw + wd, :].reshape(th * wd, cin),
            w_ref[tap * cin:(tap + 1) * cin, :],
            preferred_element_type=jnp.float32)
    out = (acc + b_ref[...]).reshape(1, th, wd, cout)
    if has_res:
        out = out + res_ref[...]
    o_ref[...] = out.astype(o_ref.dtype)

    # ---- fused 1x1 projection path (its BN already folded into pw/pb) ------ #
    if has_proj:
        xr = x_ref[0].reshape(th * wd, cin).astype(pw_ref.dtype)
        pout = jnp.dot(xr, pw_ref[...],
                       preferred_element_type=jnp.float32) + pb_ref[...]
        po_ref[...] = pout.reshape(1, th, wd, cout).astype(po_ref.dtype)


def fused_block(x, scale, shift, w, b, *, sz, row_tile=None, feat=None,
                residual=None, proj_w=None, proj_b=None, apply_relu=True,
                alias_residual=False):
    """Fused BN(+feat) -> ReLU -> conv(sz) + bias (+residual) [+ fused 1x1 proj]."""
    n, h, wd, cinp = x.shape
    kdim, coutp = w.shape
    p = sz // 2
    assert kdim == sz * sz * cinp, (kdim, sz, cinp)

    vmem_limit = _vmem_limit_bytes()
    th = row_tile if row_tile is not None else _choose_row_tile(
        h, wd, cinp, coutp, sz, vmem_limit)
    if h % th != 0 or (p > 0 and (th < p or th % p != 0)):
        raise ValueError(f"row_tile {th} must divide H={h} and be a multiple of {p}")
    grid = (n, h // th)

    has_feat = feat is not None
    has_res = residual is not None
    has_proj = proj_w is not None

    if _single_buffer_supported():
        def inv_spec(shape):   # grid-invariant operand: single VMEM buffer
            return pl.BlockSpec(shape, lambda b_, j: (0, 0),
                                pipeline_mode=pl.Buffered(1))
    else:
        def inv_spec(shape):
            return pl.BlockSpec(shape, lambda b_, j: (0, 0))

    # row-tiled input + p-row halo blocks from the neighbouring tiles (clamped)
    in_specs = [pl.BlockSpec((1, th, wd, cinp), lambda b_, j: (b_, j, 0, 0))]
    operands = [x]
    if p > 0:
        r = th // p
        nb = h // p
        in_specs.append(pl.BlockSpec(
            (1, p, wd, cinp), lambda b_, j: (b_, jnp.maximum(j * r - 1, 0), 0, 0)))
        in_specs.append(pl.BlockSpec(
            (1, p, wd, cinp), lambda b_, j: (b_, jnp.minimum(j * r + r, nb - 1), 0, 0)))
        operands += [x, x]

    in_specs += [inv_spec((1, cinp)), inv_spec((1, cinp)),
                 inv_spec((kdim, coutp)), inv_spec((1, coutp))]
    operands += [scale.reshape(1, cinp), shift.reshape(1, cinp), w,
                 b.reshape(1, coutp)]

    if has_feat:
        in_specs.append(pl.BlockSpec((1, 1, cinp), lambda b_, j: (b_, 0, 0)))
        operands.append(feat.reshape(n, 1, cinp))

    io_aliases = {}
    if has_res:
        if alias_residual:
            # Safe: residual and output use identical (b, j) block indices and each
            # tile is visited exactly once -> no read-after-write hazard.
            io_aliases = {len(operands): 0}
        in_specs.append(pl.BlockSpec((1, th, wd, coutp), lambda b_, j: (b_, j, 0, 0)))
        operands.append(residual)

    if has_proj:
        in_specs += [inv_spec((cinp, coutp)), inv_spec((1, coutp))]
        operands += [proj_w, proj_b.reshape(1, coutp)]

    out_spec = pl.BlockSpec((1, th, wd, coutp), lambda b_, j: (b_, j, 0, 0))
    out_shape = jax.ShapeDtypeStruct((n, h, wd, coutp), x.dtype)
    out_specs = (out_spec, out_spec) if has_proj else out_spec
    out_shapes = (out_shape, out_shape) if has_proj else out_shape

    wpad = _round_up(wd + 2 * p, 8)        # sublane-aligned padded-window scratch
    kernel = functools.partial(_fused_conv_kernel, sz=sz, apply_relu=apply_relu,
                               has_feat=has_feat, has_res=has_res,
                               has_proj=has_proj)
    return pl.pallas_call(
        kernel,
        grid=grid,
        in_specs=in_specs,
        out_specs=out_specs,
        out_shape=out_shapes,
        scratch_shapes=[pltpu.VMEM((th + 2 * p, wpad, cinp), jnp.bfloat16)],
        input_output_aliases=io_aliases,
        compiler_params=pltpu.CompilerParams(
            dimension_semantics=("parallel", "parallel"),
            vmem_limit_bytes=vmem_limit),
    )(*operands)


# ----------------------------- resup forward ------------------------------- #

def resup_forward(params, x, y, style, *, sz, row_tile=None):
    """x: (N,H,W,Cin), y: (N,H,W,Cout), style: (N,S) -> (N,H,W,Cout)."""
    n, h, wd, cin = x.shape
    cout = params['w0'].shape[-1]
    cinp = _round_up(cin, LANE)
    coutp = _round_up(cout, LANE)

    # pad channels to lane width so every matmul / store is lane-dense
    xp = _pad_axis(x, cinp, 3)
    yp = _pad_axis(y, coutp, 3)

    def prep_conv_w(wk):                 # (sz, sz, ci, co) -> (sz*sz*cip, cop) bf16
        cip = _round_up(wk.shape[2], LANE)
        cop = _round_up(wk.shape[3], LANE)
        wk = _pad_axis(_pad_axis(wk, cip, 2), cop, 3)
        return wk.reshape(sz * sz * cip, cop).astype(jnp.bfloat16)

    w0 = prep_conv_w(params['w0'])
    b0 = _pad_axis(params['b0'], coutp, 0)
    s0 = _pad_axis(params['bn0_s'], cinp, 0)
    t0 = _pad_axis(params['bn0_t'], cinp, 0)

    wb = {}
    for i in (1, 2, 3):
        wb[i] = (prep_conv_w(params[f'w{i}']),
                 _pad_axis(params[f'b{i}'], coutp, 0),
                 _pad_axis(params[f'bn{i}_s'], coutp, 0),
                 _pad_axis(params[f'bn{i}_t'], coutp, 0))

    # fold the projection's BatchNorm into its 1x1 weights (no ReLU in between)
    wp_mat = params['wp'].reshape(cin, cout)
    pw = _pad_axis(_pad_axis(params['bnp_s'][:, None] * wp_mat, cinp, 0),
                   coutp, 1).astype(jnp.bfloat16)
    pb = _pad_axis(params['bnp_t'] @ wp_mat + params['bp'], coutp, 0)

    # style features: one small Pallas matmul for all three Linear layers
    w_all = jnp.concatenate(
        [_pad_axis(params[f'fullw{i}'], coutp, 1) for i in (1, 2, 3)], axis=1)
    b_all = jnp.concatenate(
        [_pad_axis(params[f'fullb{i}'], coutp, 0) for i in (1, 2, 3)], axis=0)
    feats = style_linear(style, w_all, b_all).reshape(n, 3, coutp)

    # conv_0(x) (+ y as post-conv residual) and the 1x1 projection, fused (x read once)
    a_plus_y, proj = fused_block(xp, s0, t0, w0, b0, sz=sz, row_tile=row_tile,
                                 residual=yp, proj_w=pw, proj_b=pb)
    # x1 = proj(x) + conv_1(style, conv_0(x) + y)
    w1, b1, s1, t1 = wb[1]
    x1 = fused_block(a_plus_y, s1, t1, w1, b1, sz=sz, row_tile=row_tile,
                     feat=feats[:, 0, :], residual=proj, alias_residual=True)
    # c = conv_2(style, x1)
    w2, b2, s2, t2 = wb[2]
    c = fused_block(x1, s2, t2, w2, b2, sz=sz, row_tile=row_tile,
                    feat=feats[:, 1, :])
    # out = x1 + conv_3(style, c)
    w3, b3, s3, t3 = wb[3]
    out = fused_block(c, s3, t3, w3, b3, sz=sz, row_tile=row_tile,
                      feat=feats[:, 2, :], residual=x1, alias_residual=True)
    return out[..., :cout]


# --------------------------- parameters (synthetic) ------------------------ #

def init_params(key, cin, cout, cstyle, sz):
    ks = iter(jax.random.split(key, 64))

    def nrm(shape, scale=0.1):
        return scale * jax.random.normal(next(ks), shape, jnp.float32)

    def bn_fold(c):
        gamma = 1.0 + 0.1 * jax.random.normal(next(ks), (c,), jnp.float32)
        beta = 0.1 * jax.random.normal(next(ks), (c,), jnp.float32)
        mean = 0.1 * jax.random.normal(next(ks), (c,), jnp.float32)
        var = 0.5 + jax.random.uniform(next(ks), (c,), jnp.float32)
        scale = gamma * lax.rsqrt(var + 1e-5)
        shift = beta - mean * scale
        return scale, shift

    p = {}
    p['bn0_s'], p['bn0_t'] = bn_fold(cin)
    p['w0'] = nrm((sz, sz, cin, cout))
    p['b0'] = nrm((cout,))
    for i in (1, 2, 3):
        p[f'bn{i}_s'], p[f'bn{i}_t'] = bn_fold(cout)
        p[f'w{i}'] = nrm((sz, sz, cout, cout))
        p[f'b{i}'] = nrm((cout,))
        p[f'fullw{i}'] = nrm((cstyle, cout))
        p[f'fullb{i}'] = nrm((cout,))
    p['bnp_s'], p['bnp_t'] = bn_fold(cin)
    p['wp'] = nrm((1, 1, cin, cout))
    p['bp'] = nrm((cout,))
    return p


# ----------------------------- pure-JAX reference -------------------------- #

def resup_reference(params, x, y, style, sz):
    def bn(v, s, t):
        return v * s[None, None, None, :] + t[None, None, None, :]

    def conv(v, w, b, p):
        o = lax.conv_general_dilated(v, w, (1, 1), ((p, p), (p, p)),
                                     dimension_numbers=('NHWC', 'HWIO', 'NHWC'))
        return o + b[None, None, None, :]

    def feat(i):
        return style @ params[f'fullw{i}'] + params[f'fullb{i}']

    p = sz // 2
    a = conv(jax.nn.relu(bn(x, params['bn0_s'], params['bn0_t'])),
             params['w0'], params['b0'], p)
    t1 = a + y + feat(1)[:, None, None, :]
    b1 = conv(jax.nn.relu(bn(t1, params['bn1_s'], params['bn1_t'])),
              params['w1'], params['b1'], p)
    proj = conv(bn(x, params['bnp_s'], params['bnp_t']), params['wp'], params['bp'], 0)
    x1 = proj + b1
    t2 = x1 + feat(2)[:, None, None, :]
    c = conv(jax.nn.relu(bn(t2, params['bn2_s'], params['bn2_t'])),
             params['w2'], params['b2'], p)
    t3 = c + feat(3)[:, None, None, :]
    d = conv(jax.nn.relu(bn(t3, params['bn3_s'], params['bn3_t'])),
             params['w3'], params['b3'], p)
    return x1 + d


# ----------------------------------- main ----------------------------------- #

if __name__ == "__main__":
    N, CIN, COUT, CSTYLE, H, W, SZ = 2, 4, 8, 6, 16, 16, 3
    # Two row tiles per image -> exercises the halo-exchange BlockSpecs; for
    # production shapes pass row_tile=None and the VMEM-budgeted auto-chooser
    # picks the largest tile (bigger M keeps the 256-wide v6e/v7x MXU fed).
    ROW_TILE = 8

    _ = _single_buffer_supported()   # probe pipeline_mode support outside jit
    _ = _vmem_limit_bytes()

    key = jax.random.PRNGKey(0)
    kx, ky, ks, kp = jax.random.split(key, 4)
    x = jax.random.normal(kx, (N, H, W, CIN), jnp.float32)        # NHWC
    y = jax.random.normal(ky, (N, H, W, COUT), jnp.float32)       # NHWC
    style = jax.random.normal(ks, (N, CSTYLE), jnp.float32)
    params = init_params(kp, CIN, COUT, CSTYLE, SZ)

    fwd = jax.jit(functools.partial(resup_forward, sz=SZ, row_tile=ROW_TILE))
    out = jax.block_until_ready(fwd(params, x, y, style))
    ref = jax.block_until_ready(resup_reference(params, x, y, style, SZ))

    assert out.shape == (N, H, W, COUT), out.shape
    max_err = float(jnp.max(jnp.abs(out - ref)))
    # bf16 MXU operands (with f32 accumulation) over 4 chained convs: tolerance
    # widened from the pure-f32 1e-2 to 2e-2.
    assert jnp.allclose(out, ref, atol=2e-2, rtol=2e-2), f"max_err={max_err}"
    print("KERNEL_OK")
</pallas_src>

<mosaic_0001>
module attributes {stable_mosaic.version = 11 : i64} {
  func.func @k(%arg0: i32, %arg1: memref<8x128xf32, #tpu.memory_space<vmem>>, %arg2: memref<8x128xf32, #tpu.memory_space<vmem>>) attributes {dimension_semantics = [#tpu.dimension_semantics<arbitrary>], iteration_bounds = array<i64: 2>, scalar_prefetch = 0 : i64, scratch_operands = 0 : i64, tpu.core_type = #tpu.core_type<tc>, window_params = [{pipeline_mode = #tpu.pipeline_mode<synchronous>, transform_indices = @transform_0, window_bounds = array<i64: 8, 128>}, {pipeline_mode = #tpu.pipeline_mode<synchronous>, transform_indices = @transform_1, window_bounds = array<i64: 8, 128>}]} {
    %c0 = arith.constant 0 : index
    %c0_0 = arith.constant 0 : index
    %0 = vector.load %arg1[%c0, %c0_0] : memref<8x128xf32, #tpu.memory_space<vmem>>, vector<8x128xf32>
    %cst = arith.constant 1.000000e+00 : f32
    %1 = vector.broadcast %cst : f32 to vector<8x128xf32>
    %2 = arith.addf %0, %1 : vector<8x128xf32>
    %c0_1 = arith.constant 0 : index
    %c0_2 = arith.constant 0 : index
    %3 = vector.load %arg2[%c0_1, %c0_2] : memref<8x128xf32, #tpu.memory_space<vmem>>, vector<8x128xf32>
    tpu.vector_store %arg2[%c0_1, %c0_2], %2 {strides = array<i32>} : memref<8x128xf32, #tpu.memory_space<vmem>>, vector<8x128xf32>,
    return
  }
  func.func @transform_0(%arg0: i32) -> (i32, i32) {
    %c0_i32 = arith.constant 0 : i32
    %c0_i32_0 = arith.constant 0 : i32
    %c0_i32_1 = arith.constant 0 : i32
    return %c0_i32, %c0_i32_0 : i32, i32
  }
  func.func @transform_1(%arg0: i32) -> (i32, i32) {
    %c0_i32 = arith.constant 0 : i32
    %c0_i32_0 = arith.constant 0 : i32
    %c0_i32_1 = arith.constant 0 : i32
    return %c0_i32, %c0_i32_0 : i32, i32
  }
}

module attributes {stable_mosaic.version = 11 : i64} {
  func.func @_style_linear_kernel(%arg0: memref<2x6xf32, #tpu.memory_space<vmem>>, %arg1: memref<6x384xf32, #tpu.memory_space<vmem>>, %arg2: memref<1x384xf32, #tpu.memory_space<vmem>>, %arg3: memref<2x384xf32, #tpu.memory_space<vmem>>) attributes {dimension_semantics = [], scalar_prefetch = 0 : i64, scratch_operands = 0 : i64, tpu.core_type = #tpu.core_type<tc>} {
    %c0 = arith.constant 0 : index
    %c0_0 = arith.constant 0 : index
    %0 = vector.load %arg0[%c0, %c0_0] : memref<2x6xf32, #tpu.memory_space<vmem>>, vector<2x6xf32>
    %c0_1 = arith.constant 0 : index
    %c0_2 = arith.constant 0 : index
    %1 = vector.load %arg1[%c0_1, %c0_2] : memref<6x384xf32, #tpu.memory_space<vmem>>, vector<6x384xf32>
    %cst = arith.constant dense<0.000000e+00> : vector<2x384xf32>
    %2 = tpu.matmul %0, %1, %cst {dimension_numbers = #tpu.dot_dimension_numbers<[1], [0], [0], [1], [0, 0, 1, 1], [], []>} : vector<2x6xf32>, vector<6x384xf32>, vector<2x384xf32> -> vector<2x384xf32>
    %c0_3 = arith.constant 0 : index
    %c0_4 = arith.constant 0 : index
    %3 = vector.load %arg2[%c0_3, %c0_4] : memref<1x384xf32, #tpu.memory_space<vmem>>, vector<1x384xf32>
    %4 = vector.broadcast %3 : vector<1x384xf32> to vector<2x384xf32>
    %5 = arith.addf %2, %4 : vector<2x384xf32>
    %c0_5 = arith.constant 0 : index
    %c0_6 = arith.constant 0 : index
    %6 = vector.load %arg3[%c0_5, %c0_6] : memref<2x384xf32, #tpu.memory_space<vmem>>, vector<2x384xf32>
    tpu.vector_store %arg3[%c0_5, %c0_6], %5 {strides = array<i32>} : memref<2x384xf32, #tpu.memory_space<vmem>>, vector<2x384xf32>,
    return
  }
}

module attributes {stable_mosaic.version = 11 : i64} {
  func.func @_fused_conv_kernel(%arg0: i32, %arg1: i32, %arg2: memref<1x8x16x128xf32, #tpu.memory_space<vmem>>, %arg3: memref<1x1x16x128xf32, #tpu.memory_space<vmem>>, %arg4: memref<1x1x16x128xf32, #tpu.memory_space<vmem>>, %arg5: memref<1x128xf32, #tpu.memory_space<vmem>>, %arg6: memref<1x128xf32, #tpu.memory_space<vmem>>, %arg7: memref<1152x128xbf16, #tpu.memory_space<vmem>>, %arg8: memref<1x128xf32, #tpu.memory_space<vmem>>, %arg9: memref<1x8x16x128xf32, #tpu.memory_space<vmem>>, %arg10: memref<128x128xbf16, #tpu.memory_space<vmem>>, %arg11: memref<1x128xf32, #tpu.memory_space<vmem>>, %arg12: memref<1x8x16x128xf32, #tpu.memory_space<vmem>>, %arg13: memref<1x8x16x128xf32, #tpu.memory_space<vmem>>, %arg14: memref<10x24x128xbf16, #tpu.memory_space<vmem>>) attributes {dimension_semantics = [#tpu.dimension_semantics<parallel>, #tpu.dimension_semantics<parallel>], iteration_bounds = array<i64: 2, 2>, scalar_prefetch = 0 : i64, scratch_operands = 1 : i64, tpu.core_type = #tpu.core_type<tc>, window_params = [{transform_indices = @transform_0, window_bounds = array<i64: 1, 8, 16, 128>}, {transform_indices = @transform_1, window_bounds = array<i64: 1, 1, 16, 128>}, {transform_indices = @transform_2, window_bounds = array<i64: 1, 1, 16, 128>}, {pipeline_mode = #tpu.pipeline_mode<synchronous>, transform_indices = @transform_3, window_bounds = array<i64: 1, 128>}, {pipeline_mode = #tpu.pipeline_mode<synchronous>, transform_indices = @transform_4, window_bounds = array<i64: 1, 128>}, {pipeline_mode = #tpu.pipeline_mode<synchronous>, transform_indices = @transform_5, window_bounds = array<i64: 1152, 128>}, {pipeline_mode = #tpu.pipeline_mode<synchronous>, transform_indices = @transform_6, window_bounds = array<i64: 1, 128>}, {transform_indices = @transform_7, window_bounds = array<i64: 1, 8, 16, 128>}, {pipeline_mode = #tpu.pipeline_mode<synchronous>, transform_indices = @transform_8, window_bounds = array<i64: 128, 128>}, {pipeline_mode = #tpu.pipeline_mode<synchronous>, transform_indices = @transform_9, window_bounds = array<i64: 1, 128>}, {transform_indices = @transform_10, window_bounds = array<i64: 1, 8, 16, 128>}, {transform_indices = @transform_11, window_bounds = array<i64: 1, 8, 16, 128>}]} {
    %c0 = arith.constant 0 : index
    %c0_0 = arith.constant 0 : index
    %0 = vector.load %arg5[%c0, %c0_0] : memref<1x128xf32, #tpu.memory_space<vmem>>, vector<1x128xf32>
    %1 = vector.shape_cast %0 : vector<1x128xf32> to vector<1x1x128xf32>
    %c0_1 = arith.constant 0 : index
    %c0_2 = arith.constant 0 : index
    %2 = vector.load %arg6[%c0_1, %c0_2] : memref<1x128xf32, #tpu.memory_space<vmem>>, vector<1x128xf32>
    %3 = vector.shape_cast %2 : vector<1x128xf32> to vector<1x1x128xf32>
    %cst = arith.constant 0.000000e+00 : bf16
    %4 = vector.broadcast %cst : bf16 to vector<10x1x128xbf16>
    %c0_3 = arith.constant 0 : index
    %c0_4 = arith.constant 0 : index
    %c0_5 = arith.constant 0 : index
    %5 = vector.load %arg14[%c0_3, %c0_4, %c0_5] : memref<10x24x128xbf16, #tpu.memory_space<vmem>>, vector<10x1x128xbf16>
    tpu.vector_store %arg14[%c0_3, %c0_4, %c0_5], %4 {strides = array<i32>} : memref<10x24x128xbf16, #tpu.memory_space<vmem>>, vector<10x1x128xbf16>,
    %c0_6 = arith.constant 0 : index
    %c17 = arith.constant 17 : index
    %c0_7 = arith.constant 0 : index
    %6 = vector.load %arg14[%c0_6, %c17, %c0_7] : memref<10x24x128xbf16, #tpu.memory_space<vmem>>, vector<10x1x128xbf16>
    tpu.vector_store %arg14[%c0_6, %c17, %c0_7], %4 {strides = array<i32>} : memref<10x24x128xbf16, #tpu.memory_space<vmem>>, vector<10x1x128xbf16>,
    %cst_8 = arith.constant 0.000000e+00 : bf16
    %7 = vector.broadcast %cst_8 : bf16 to vector<1x24x128xbf16>
    %c0_i32 = arith.constant 0 : i32
    %8 = arith.cmpi eq, %arg1, %c0_i32 : i32
    %9 = arith.extui %8 : i1 to i32
    %c0_i32_9 = arith.constant 0 : i32
    %10 = arith.cmpi ne, %9, %c0_i32_9 : i32
    scf.if %10 {
      %c0_90 = arith.constant 0 : index
      %c0_91 = arith.constant 0 : index
      %c0_92 = arith.constant 0 : index
      %92 = vector.load %arg14[%c0_90, %c0_91, %c0_92] : memref<10x24x128xbf16, #tpu.memory_space<vmem>>, vector<1x24x128xbf16>
      tpu.vector_store %arg14[%c0_90, %c0_91, %c0_92], %7 {strides = array<i32>} : memref<10x24x128xbf16, #tpu.memory_space<vmem>>, vector<1x24x128xbf16>,
    } else {
    }
    %c1_i32 = arith.constant 1 : i32
    %11 = arith.cmpi eq, %arg1, %c1_i32 : i32
    %12 = arith.extui %11 : i1 to i32
    %c0_i32_10 = arith.constant 0 : i32
    %13 = arith.cmpi ne, %12, %c0_i32_10 : i32
    scf.if %13 {
      %c9 = arith.constant 9 : index
      %c0_90 = arith.constant 0 : index
      %c0_91 = arith.constant 0 : index
      %92 = vector.load %arg14[%c9, %c0_90, %c0_91] : memref<10x24x128xbf16, #tpu.memory_space<vmem>>, vector<1x24x128xbf16>
      tpu.vector_store %arg14[%c9, %c0_90, %c0_91], %7 {strides = array<i32>} : memref<10x24x128xbf16, #tpu.memory_space<vmem>>, vector<1x24x128xbf16>,
    } else {
    }
    %c0_i32_11 = arith.constant 0 : i32
    %14 = arith.cmpi sgt, %arg1, %c0_i32_11 : i32
    %15 = arith.extui %14 : i1 to i32
    %c0_i32_12 = arith.constant 0 : i32
    %16 = arith.cmpi ne, %15, %c0_i32_12 : i32
    scf.if %16 {
      %c0_90 = arith.constant 0 : index
      %c0_91 = arith.constant 0 : index
      %c0_92 = arith.constant 0 : index
      %c0_93 = arith.constant 0 : index
      %92 = vector.load %arg3[%c0_90, %c0_91, %c0_92, %c0_93] : memref<1x1x16x128xf32, #tpu.memory_space<vmem>>, vector<1x1x16x128xf32>
      %93 = vector.shape_cast %92 : vector<1x1x16x128xf32> to vector<1x16x128xf32>
      %94 = vector.broadcast %1 : vector<1x1x128xf32> to vector<1x16x128xf32>
      %95 = arith.mulf %93, %94 : vector<1x16x128xf32>
      %96 = vector.broadcast %3 : vector<1x1x128xf32> to vector<1x16x128xf32>
      %97 = arith.addf %95, %96 : vector<1x16x128xf32>
      %cst_94 = arith.constant 0.000000e+00 : f32
      %98 = vector.broadcast %cst_94 : f32 to vector<1x16x128xf32>
      %99 = arith.maximumf %97, %98 : vector<1x16x128xf32>
      %100 = arith.truncf %99 : vector<1x16x128xf32> to vector<1x16x128xbf16>
      %c0_95 = arith.constant 0 : index
      %c1_96 = arith.constant 1 : index
      %c0_97 = arith.constant 0 : index
      %101 = vector.load %arg14[%c0_95, %c1_96, %c0_97] : memref<10x24x128xbf16, #tpu.memory_space<vmem>>, vector<1x16x128xbf16>
      tpu.vector_store %arg14[%c0_95, %c1_96, %c0_97], %100 {strides = array<i32>} : memref<10x24x128xbf16, #tpu.memory_space<vmem>>, vector<1x16x128xbf16>,
    } else {
    }
    %c1_i32_13 = arith.constant 1 : i32
    %17 = arith.cmpi slt, %arg1, %c1_i32_13 : i32
    %18 = arith.extui %17 : i1 to i32
    %c0_i32_14 = arith.constant 0 : i32
    %19 = arith.cmpi ne, %18, %c0_i32_14 : i32
    scf.if %19 {
      %c0_90 = arith.constant 0 : index
      %c0_91 = arith.constant 0 : index
      %c0_92 = arith.constant 0 : index
      %c0_93 = arith.constant 0 : index
      %92 = vector.load %arg4[%c0_90, %c0_91, %c0_92, %c0_93] : memref<1x1x16x128xf32, #tpu.memory_space<vmem>>, vector<1x1x16x128xf32>
      %93 = vector.shape_cast %92 : vector<1x1x16x128xf32> to vector<1x16x128xf32>
      %94 = vector.broadcast %1 : vector<1x1x128xf32> to vector<1x16x128xf32>
      %95 = arith.mulf %93, %94 : vector<1x16x128xf32>
      %96 = vector.broadcast %3 : vector<1x1x128xf32> to vector<1x16x128xf32>
      %97 = arith.addf %95, %96 : vector<1x16x128xf32>
      %cst_94 = arith.constant 0.000000e+00 : f32
      %98 = vector.broadcast %cst_94 : f32 to vector<1x16x128xf32>
      %99 = arith.maximumf %97, %98 : vector<1x16x128xf32>
      %100 = arith.truncf %99 : vector<1x16x128xf32> to vector<1x16x128xbf16>
      %c9 = arith.constant 9 : index
      %c1_95 = arith.constant 1 : index
      %c0_96 = arith.constant 0 : index
      %101 = vector.load %arg14[%c9, %c1_95, %c0_96] : memref<10x24x128xbf16, #tpu.memory_space<vmem>>, vector<1x16x128xbf16>
      tpu.vector_store %arg14[%c9, %c1_95, %c0_96], %100 {strides = array<i32>} : memref<10x24x128xbf16, #tpu.memory_space<vmem>>, vector<1x16x128xbf16>,
    } else {
    }
    %c0_15 = arith.constant 0 : index
    %c0_16 = arith.constant 0 : index
    %c0_17 = arith.constant 0 : index
    %c0_18 = arith.constant 0 : index
    %20 = vector.load %arg2[%c0_15, %c0_16, %c0_17, %c0_18] : memref<1x8x16x128xf32, #tpu.memory_space<vmem>>, vector<1x8x16x128xf32>
    %21 = vector.shape_cast %20 : vector<1x8x16x128xf32> to vector<8x16x128xf32>
    %22 = vector.broadcast %1 : vector<1x1x128xf32> to vector<8x16x128xf32>
    %23 = arith.mulf %21, %22 : vector<8x16x128xf32>
    %24 = vector.broadcast %3 : vector<1x1x128xf32> to vector<8x16x128xf32>
    %25 = arith.addf %23, %24 : vector<8x16x128xf32>
    %cst_19 = arith.constant 0.000000e+00 : f32
    %26 = vector.broadcast %cst_19 : f32 to vector<8x16x128xf32>
    %27 = arith.maximumf %25, %26 : vector<8x16x128xf32>
    %28 = arith.truncf %27 : vector<8x16x128xf32> to vector<8x16x128xbf16>
    %c1 = arith.constant 1 : index
    %c1_20 = arith.constant 1 : index
    %c0_21 = arith.constant 0 : index
    %29 = vector.load %arg14[%c1, %c1_20, %c0_21] : memref<10x24x128xbf16, #tpu.memory_space<vmem>>, vector<8x16x128xbf16>
    tpu.vector_store %arg14[%c1, %c1_20, %c0_21], %28 {strides = array<i32>} : memref<10x24x128xbf16, #tpu.memory_space<vmem>>, vector<8x16x128xbf16>,
    %c0_22 = arith.constant 0 : index
    %c0_23 = arith.constant 0 : index
    %c0_24 = arith.constant 0 : index
    %30 = vector.load %arg14[%c0_22, %c0_23, %c0_24] : memref<10x24x128xbf16, #tpu.memory_space<vmem>>, vector<8x16x128xbf16>
    %31 = vector.shape_cast %30 : vector<8x16x128xbf16> to vector<128x128xbf16>
    %c0_25 = arith.constant 0 : index
    %c0_26 = arith.constant 0 : index
    %32 = vector.load %arg7[%c0_25, %c0_26] : memref<1152x128xbf16, #tpu.memory_space<vmem>>, vector<128x128xbf16>
    %cst_27 = arith.constant dense<0.000000e+00> : vector<128x128xf32>
    %33 = tpu.matmul %31, %32, %cst_27 {dimension_numbers = #tpu.dot_dimension_numbers<[1], [0], [0], [1], [0, 0, 1, 1], [], []>} : vector<128x128xbf16>, vector<128x128xbf16>, vector<128x128xf32> -> vector<128x128xf32>
    %c0_28 = arith.constant 0 : index
    %c1_29 = arith.constant 1 : index
    %c0_30 = arith.constant 0 : index
    %34 = vector.load %arg14[%c0_28, %c1_29, %c0_30] : memref<10x24x128xbf16, #tpu.memory_space<vmem>>, vector<8x16x128xbf16>
    %35 = vector.shape_cast %34 : vector<8x16x128xbf16> to vector<128x128xbf16>
    %c128 = arith.constant 128 : index
    %c0_31 = arith.constant 0 : index
    %36 = vector.load %arg7[%c128, %c0_31] : memref<1152x128xbf16, #tpu.memory_space<vmem>>, vector<128x128xbf16>
    %cst_32 = arith.constant dense<0.000000e+00> : vector<128x128xf32>
    %37 = tpu.matmul %35, %36, %cst_32 {dimension_numbers = #tpu.dot_dimension_numbers<[1], [0], [0], [1], [0, 0, 1, 1], [], []>} : vector<128x128xbf16>, vector<128x128xbf16>, vector<128x128xf32> -> vector<128x128xf32>
    %38 = arith.addf %33, %37 : vector<128x128xf32>
    %c0_33 = arith.constant 0 : index
    %c2 = arith.constant 2 : index
    %c0_34 = arith.constant 0 : index
    %39 = vector.load %arg14[%c0_33, %c2, %c0_34] : memref<10x24x128xbf16, #tpu.memory_space<vmem>>, vector<8x16x128xbf16>
    %40 = vector.shape_cast %39 : vector<8x16x128xbf16> to vector<128x128xbf16>
    %c256 = arith.constant 256 : index
    %c0_35 = arith.constant 0 : index
    %41 = vector.load %arg7[%c256, %c0_35] : memref<1152x128xbf16, #tpu.memory_space<vmem>>, vector<128x128xbf16>
    %cst_36 = arith.constant dense<0.000000e+00> : vector<128x128xf32>
    %42 = tpu.matmul %40, %41, %cst_36 {dimension_numbers = #tpu.dot_dimension_numbers<[1], [0], [0], [1], [0, 0, 1, 1], [], []>} : vector<128x128xbf16>, vector<128x128xbf16>, vector<128x128xf32> -> vector<128x128xf32>
    %43 = arith.addf %38, %42 : vector<128x128xf32>
    %c1_37 = arith.constant 1 : index
    %c0_38 = arith.constant 0 : index
    %c0_39 = arith.constant 0 : index
    %44 = vector.load %arg14[%c1_37, %c0_38, %c0_39] : memref<10x24x128xbf16, #tpu.memory_space<vmem>>, vector<8x16x128xbf16>
    %45 = vector.shape_cast %44 : vector<8x16x128xbf16> to vector<128x128xbf16>
    %c384 = arith.constant 384 : index
    %c0_40 = arith.constant 0 : index
    %46 = vector.load %arg7[%c384, %c0_40] : memref<1152x128xbf16, #tpu.memory_space<vmem>>, vector<128x128xbf16>
    %cst_41 = arith.constant dense<0.000000e+00> : vector<128x128xf32>
    %47 = tpu.matmul %45, %46, %cst_41 {dimension_numbers = #tpu.dot_dimension_numbers<[1], [0], [0], [1], [0, 0, 1, 1], [], []>} : vector<128x128xbf16>, vector<128x128xbf16>, vector<128x128xf32> -> vector<128x128xf32>
    %48 = arith.addf %43, %47 : vector<128x128xf32>
    %c1_42 = arith.constant 1 : index
    %c1_43 = arith.constant 1 : index
    %c0_44 = arith.constant 0 : index
    %49 = vector.load %arg14[%c1_42, %c1_43, %c0_44] : memref<10x24x128xbf16, #tpu.memory_space<vmem>>, vector<8x16x128xbf16>
    %50 = vector.shape_cast %49 : vector<8x16x128xbf16> to vector<128x128xbf16>
    %c512 = arith.constant 512 : index
    %c0_45 = arith.constant 0 : index
    %51 = vector.load %arg7[%c512, %c0_45] : memref<1152x128xbf16, #tpu.memory_space<vmem>>, vector<128x128xbf16>
    %cst_46 = arith.constant dense<0.000000e+00> : vector<128x128xf32>
    %52 = tpu.matmul %50, %51, %cst_46 {dimension_numbers = #tpu.dot_dimension_numbers<[1], [0], [0], [1], [0, 0, 1, 1], [], []>} : vector<128x128xbf16>, vector<128x128xbf16>, vector<128x128xf32> -> vector<128x128xf32>
    %53 = arith.addf %48, %52 : vector<128x128xf32>
    %c1_47 = arith.constant 1 : index
    %c2_48 = arith.constant 2 : index
    %c0_49 = arith.constant 0 : index
    %54 = vector.load %arg14[%c1_47, %c2_48, %c0_49] : memref<10x24x128xbf16, #tpu.memory_space<vmem>>, vector<8x16x128xbf16>
    %55 = vector.shape_cast %54 : vector<8x16x128xbf16> to vector<128x128xbf16>
    %c640 = arith.constant 640 : index
    %c0_50 = arith.constant 0 : index
    %56 = vector.load %arg7[%c640, %c0_50] : memref<1152x128xbf16, #tpu.memory_space<vmem>>, vector<128x128xbf16>
    %cst_51 = arith.constant dense<0.000000e+00> : vector<128x128xf32>
    %57 = tpu.matmul %55, %56, %cst_51 {dimension_numbers = #tpu.dot_dimension_numbers<[1], [0], [0], [1], [0, 0, 1, 1], [], []>} : vector<128x128xbf16>, vector<128x128xbf16>, vector<128x128xf32> -> vector<128x128xf32>
    %58 = arith.addf %53, %57 : vector<128x128xf32>
    %c2_52 = arith.constant 2 : index
    %c0_53 = arith.constant 0 : index
    %c0_54 = arith.constant 0 : index
    %59 = vector.load %arg14[%c2_52, %c0_53, %c0_54] : memref<10x24x128xbf16, #tpu.memory_space<vmem>>, vector<8x16x128xbf16>
    %60 = vector.shape_cast %59 : vector<8x16x128xbf16> to vector<128x128xbf16>
    %c768 = arith.constant 768 : index
    %c0_55 = arith.constant 0 : index
    %61 = vector.load %arg7[%c768, %c0_55] : memref<1152x128xbf16, #tpu.memory_space<vmem>>, vector<128x128xbf16>
    %cst_56 = arith.constant dense<0.000000e+00> : vector<128x128xf32>
    %62 = tpu.matmul %60, %61, %cst_56 {dimension_numbers = #tpu.dot_dimension_numbers<[1], [0], [0], [1], [0, 0, 1, 1], [], []>} : vector<128x128xbf16>, vector<128x128xbf16>, vector<128x128xf32> -> vector<128x128xf32>
    %63 = arith.addf %58, %62 : vector<128x128xf32>
    %c2_57 = arith.constant 2 : index
    %c1_58 = arith.constant 1 : index
    %c0_59 = arith.constant 0 : index
    %64 = vector.load %arg14[%c2_57, %c1_58, %c0_59] : memref<10x24x128xbf16, #tpu.memory_space<vmem>>, vector<8x16x128xbf16>
    %65 = vector.shape_cast %64 : vector<8x16x128xbf16> to vector<128x128xbf16>
    %c896 = arith.constant 896 : index
    %c0_60 = arith.constant 0 : index
    %66 = vector.load %arg7[%c896, %c0_60] : memref<1152x128xbf16, #tpu.memory_space<vmem>>, vector<128x128xbf16>
    %cst_61 = arith.constant dense<0.000000e+00> : vector<128x128xf32>
    %67 = tpu.matmul %65, %66, %cst_61 {dimension_numbers = #tpu.dot_dimension_numbers<[1], [0], [0], [1], [0, 0, 1, 1], [], []>} : vector<128x128xbf16>, vector<128x128xbf16>, vector<128x128xf32> -> vector<128x128xf32>
    %68 = arith.addf %63, %67 : vector<128x128xf32>
    %c2_62 = arith.constant 2 : index
    %c2_63 = arith.constant 2 : index
    %c0_64 = arith.constant 0 : index
    %69 = vector.load %arg14[%c2_62, %c2_63, %c0_64] : memref<10x24x128xbf16, #tpu.memory_space<vmem>>, vector<8x16x128xbf16>
    %70 = vector.shape_cast %69 : vector<8x16x128xbf16> to vector<128x128xbf16>
    %c1024 = arith.constant 1024 : index
    %c0_65 = arith.constant 0 : index
    %71 = vector.load %arg7[%c1024, %c0_65] : memref<1152x128xbf16, #tpu.memory_space<vmem>>, vector<128x128xbf16>
    %cst_66 = arith.constant dense<0.000000e+00> : vector<128x128xf32>
    %72 = tpu.matmul %70, %71, %cst_66 {dimension_numbers = #tpu.dot_dimension_numbers<[1], [0], [0], [1], [0, 0, 1, 1], [], []>} : vector<128x128xbf16>, vector<128x128xbf16>, vector<128x128xf32> -> vector<128x128xf32>
    %73 = arith.addf %68, %72 : vector<128x128xf32>
    %c0_67 = arith.constant 0 : index
    %c0_68 = arith.constant 0 : index
    %74 = vector.load %arg8[%c0_67, %c0_68] : memref<1x128xf32, #tpu.memory_space<vmem>>, vector<1x128xf32>
    %75 = vector.broadcast %74 : vector<1x128xf32> to vector<128x128xf32>
    %76 = arith.addf %73, %75 : vector<128x128xf32>
    %77 = vector.shape_cast %76 : vector<128x128xf32> to vector<1x8x16x128xf32>
    %c0_69 = arith.constant 0 : index
    %c0_70 = arith.constant 0 : index
    %c0_71 = arith.constant 0 : index
    %c0_72 = arith.constant 0 : index
    %78 = vector.load %arg9[%c0_69, %c0_70, %c0_71, %c0_72] : memref<1x8x16x128xf32, #tpu.memory_space<vmem>>, vector<1x8x16x128xf32>
    %79 = arith.addf %77, %78 : vector<1x8x16x128xf32>
    %c0_73 = arith.constant 0 : index
    %c0_74 = arith.constant 0 : index
    %c0_75 = arith.constant 0 : index
    %c0_76 = arith.constant 0 : index
    %80 = vector.load %arg12[%c0_73, %c0_74, %c0_75, %c0_76] : memref<1x8x16x128xf32, #tpu.memory_space<vmem>>, vector<1x8x16x128xf32>
    tpu.vector_store %arg12[%c0_73, %c0_74, %c0_75, %c0_76], %79 {strides = array<i32>} : memref<1x8x16x128xf32, #tpu.memory_space<vmem>>, vector<1x8x16x128xf32>,
    %c0_77 = arith.constant 0 : index
    %c0_78 = arith.constant 0 : index
    %c0_79 = arith.constant 0 : index
    %c0_80 = arith.constant 0 : index
    %81 = vector.load %arg2[%c0_77, %c0_78, %c0_79, %c0_80] : memref<1x8x16x128xf32, #tpu.memory_space<vmem>>, vector<1x8x16x128xf32>
    %82 = vector.shape_cast %81 : vector<1x8x16x128xf32> to vector<8x16x128xf32>
    %83 = vector.shape_cast %82 : vector<8x16x128xf32> to vector<128x128xf32>
    %84 = arith.truncf %83 : vector<128x128xf32> to vector<128x128xbf16>
    %c0_81 = arith.constant 0 : index
    %c0_82 = arith.constant 0 : index
    %85 = vector.load %arg10[%c0_81, %c0_82] : memref<128x128xbf16, #tpu.memory_space<vmem>>, vector<128x128xbf16>
    %cst_83 = arith.constant dense<0.000000e+00> : vector<128x128xf32>
    %86 = tpu.matmul %84, %85, %cst_83 {dimension_numbers = #tpu.dot_dimension_numbers<[1], [0], [0], [1], [0, 0, 1, 1], [], []>} : vector<128x128xbf16>, vector<128x128xbf16>, vector<128x128xf32> -> vector<128x128xf32>
    %c0_84 = arith.constant 0 : index
    %c0_85 = arith.constant 0 : index
    %87 = vector.load %arg11[%c0_84, %c0_85] : memref<1x128xf32, #tpu.memory_space<vmem>>, vector<1x128xf32>
    %88 = vector.broadcast %87 : vector<1x128xf32> to vector<128x128xf32>
    %89 = arith.addf %86, %88 : vector<128x128xf32>
    %90 = vector.shape_cast %89 : vector<128x128xf32> to vector<1x8x16x128xf32>
    %c0_86 = arith.constant 0 : index
    %c0_87 = arith.constant 0 : index
    %c0_88 = arith.constant 0 : index
    %c0_89 = arith.constant 0 : index
    %91 = vector.load %arg13[%c0_86, %c0_87, %c0_88, %c0_89] : memref<1x8x16x128xf32, #tpu.memory_space<vmem>>, vector<1x8x16x128xf32>
    tpu.vector_store %arg13[%c0_86, %c0_87, %c0_88, %c0_89], %90 {strides = array<i32>} : memref<1x8x16x128xf32, #tpu.memory_space<vmem>>, vector<1x8x16x128xf32>,
    return
  }
  func.func @transform_0(%arg0: i32, %arg1: i32) -> (i32, i32, i32, i32) {
    %c0_i32 = arith.constant 0 : i32
    %c0_i32_0 = arith.constant 0 : i32
    %c0_i32_1 = arith.constant 0 : i32
    return %arg0, %arg1, %c0_i32, %c0_i32_0 : i32, i32, i32, i32
  }
  func.func @transform_1(%arg0: i32, %arg1: i32) -> (i32, i32, i32, i32) {
    %c8_i32 = arith.constant 8 : i32
    %0 = arith.muli %arg1, %c8_i32 : i32
    %c1_i32 = arith.constant 1 : i32
    %1 = arith.subi %0, %c1_i32 : i32
    %c0_i32 = arith.constant 0 : i32
    %2 = arith.maxsi %1, %c0_i32 : i32
    %c0_i32_0 = arith.constant 0 : i32
    %c0_i32_1 = arith.constant 0 : i32
    %c0_i32_2 = arith.constant 0 : i32
    return %arg0, %2, %c0_i32_0, %c0_i32_1 : i32, i32, i32, i32
  }
  func.func @transform_2(%arg0: i32, %arg1: i32) -> (i32, i32, i32, i32) {
    %c8_i32 = arith.constant 8 : i32
    %0 = arith.muli %arg1, %c8_i32 : i32
    %c8_i32_0 = arith.constant 8 : i32
    %1 = arith.addi %0, %c8_i32_0 : i32
    %c15_i32 = arith.constant 15 : i32
    %2 = arith.minsi %1, %c15_i32 : i32
    %c0_i32 = arith.constant 0 : i32
    %c0_i32_1 = arith.constant 0 : i32
    %c0_i32_2 = arith.constant 0 : i32
    return %arg0, %2, %c0_i32, %c0_i32_1 : i32, i32, i32, i32
  }
  func.func @transform_3(%arg0: i32, %arg1: i32) -> (i32, i32) {
    %c0_i32 = arith.constant 0 : i32
    %c0_i32_0 = arith.constant 0 : i32
    %c0_i32_1 = arith.constant 0 : i32
    return %c0_i32, %c0_i32_0 : i32, i32
  }
  func.func @transform_4(%arg0: i32, %arg1: i32) -> (i32, i32) {
    %c0_i32 = arith.constant 0 : i32
    %c0_i32_0 = arith.constant 0 : i32
    %c0_i32_1 = arith.constant 0 : i32
    return %c0_i32, %c0_i32_0 : i32, i32
  }
  func.func @transform_5(%arg0: i32, %arg1: i32) -> (i32, i32) {
    %c0_i32 = arith.constant 0 : i32
    %c0_i32_0 = arith.constant 0 : i32
    %c0_i32_1 = arith.constant 0 : i32
    return %c0_i32, %c0_i32_0 : i32, i32
  }
  func.func @transform_6(%arg0: i32, %arg1: i32) -> (i32, i32) {
    %c0_i32 = arith.constant 0 : i32
    %c0_i32_0 = arith.constant 0 : i32
    %c0_i32_1 = arith.constant 0 : i32
    return %c0_i32, %c0_i32_0 : i32, i32
  }
  func.func @transform_7(%arg0: i32, %arg1: i32) -> (i32, i32, i32, i32) {
    %c0_i32 = arith.constant 0 : i32
    %c0_i32_0 = arith.constant 0 : i32
    %c0_i32_1 = arith.constant 0 : i32
    return %arg0, %arg1, %c0_i32, %c0_i32_0 : i32, i32, i32, i32
  }
  func.func @transform_8(%arg0: i32, %arg1: i32) -> (i32, i32) {
    %c0_i32 = arith.constant 0 : i32
    %c0_i32_0 = arith.constant 0 : i32
    %c0_i32_1 = arith.constant 0 : i32
    return %c0_i32, %c0_i32_0 : i32, i32
  }
  func.func @transform_9(%arg0: i32, %arg1: i32) -> (i32, i32) {
    %c0_i32 = arith.constant 0 : i32
    %c0_i32_0 = arith.constant 0 : i32
    %c0_i32_1 = arith.constant 0 : i32
    return %c0_i32, %c0_i32_0 : i32, i32
  }
  func.func @transform_10(%arg0: i32, %arg1: i32) -> (i32, i32, i32, i32) {
    %c0_i32 = arith.constant 0 : i32
    %c0_i32_0 = arith.constant 0 : i32
    %c0_i32_1 = arith.constant 0 : i32
    return %arg0, %arg1, %c0_i32, %c0_i32_0 : i32, i32, i32, i32
  }
  func.func @transform_11(%arg0: i32, %arg1: i32) -> (i32, i32, i32, i32) {
    %c0_i32 = arith.constant 0 : i32
    %c0_i32_0 = arith.constant 0 : i32
    %c0_i32_1 = arith.constant 0 : i32
    return %arg0, %arg1, %c0_i32, %c0_i32_0 : i32, i32, i32, i32
  }
}

module attributes {stable_mosaic.version = 11 : i64} {
  func.func @_fused_conv_kernel(%arg0: i32, %arg1: i32, %arg2: memref<1x8x16x128xf32, #tpu.memory_space<vmem>>, %arg3: memref<1x1x16x128xf32, #tpu.memory_space<vmem>>, %arg4: memref<1x1x16x128xf32, #tpu.memory_space<vmem>>, %arg5: memref<1x128xf32, #tpu.memory_space<vmem>>, %arg6: memref<1x128xf32, #tpu.memory_space<vmem>>, %arg7: memref<1152x128xbf16, #tpu.memory_space<vmem>>, %arg8: memref<1x128xf32, #tpu.memory_space<vmem>>, %arg9: memref<1x1x128xf32, #tpu.memory_space<vmem>>, %arg10: memref<1x8x16x128xf32, #tpu.memory_space<vmem>>, %arg11: memref<10x24x128xbf16, #tpu.memory_space<vmem>>) attributes {dimension_semantics = [#tpu.dimension_semantics<parallel>, #tpu.dimension_semantics<parallel>], iteration_bounds = array<i64: 2, 2>, scalar_prefetch = 0 : i64, scratch_operands = 1 : i64, tpu.core_type = #tpu.core_type<tc>, window_params = [{transform_indices = @transform_0, window_bounds = array<i64: 1, 8, 16, 128>}, {transform_indices = @transform_1, window_bounds = array<i64: 1, 1, 16, 128>}, {transform_indices = @transform_2, window_bounds = array<i64: 1, 1, 16, 128>}, {pipeline_mode = #tpu.pipeline_mode<synchronous>, transform_indices = @transform_3, window_bounds = array<i64: 1, 128>}, {pipeline_mode = #tpu.pipeline_mode<synchronous>, transform_indices = @transform_4, window_bounds = array<i64: 1, 128>}, {pipeline_mode = #tpu.pipeline_mode<synchronous>, transform_indices = @transform_5, window_bounds = array<i64: 1152, 128>}, {pipeline_mode = #tpu.pipeline_mode<synchronous>, transform_indices = @transform_6, window_bounds = array<i64: 1, 128>}, {transform_indices = @transform_7, window_bounds = array<i64: 1, 1, 128>}, {transform_indices = @transform_8, window_bounds = array<i64: 1, 8, 16, 128>}]} {
    %c0 = arith.constant 0 : index
    %c0_0 = arith.constant 0 : index
    %0 = vector.load %arg5[%c0, %c0_0] : memref<1x128xf32, #tpu.memory_space<vmem>>, vector<1x128xf32>
    %1 = vector.shape_cast %0 : vector<1x128xf32> to vector<1x1x128xf32>
    %c0_1 = arith.constant 0 : index
    %c0_2 = arith.constant 0 : index
    %2 = vector.load %arg6[%c0_1, %c0_2] : memref<1x128xf32, #tpu.memory_space<vmem>>, vector<1x128xf32>
    %3 = vector.shape_cast %2 : vector<1x128xf32> to vector<1x1x128xf32>
    %c0_3 = arith.constant 0 : index
    %c0_4 = arith.constant 0 : index
    %c0_5 = arith.constant 0 : index
    %4 = vector.load %arg9[%c0_3, %c0_4, %c0_5] : memref<1x1x128xf32, #tpu.memory_space<vmem>>, vector<1x1x128xf32>
    %5 = arith.mulf %4, %1 : vector<1x1x128xf32>
    %6 = arith.addf %3, %5 : vector<1x1x128xf32>
    %cst = arith.constant 0.000000e+00 : bf16
    %7 = vector.broadcast %cst : bf16 to vector<10x1x128xbf16>
    %c0_6 = arith.constant 0 : index
    %c0_7 = arith.constant 0 : index
    %c0_8 = arith.constant 0 : index
    %8 = vector.load %arg11[%c0_6, %c0_7, %c0_8] : memref<10x24x128xbf16, #tpu.memory_space<vmem>>, vector<10x1x128xbf16>
    tpu.vector_store %arg11[%c0_6, %c0_7, %c0_8], %7 {strides = array<i32>} : memref<10x24x128xbf16, #tpu.memory_space<vmem>>, vector<10x1x128xbf16>,
    %c0_9 = arith.constant 0 : index
    %c17 = arith.constant 17 : index
    %c0_10 = arith.constant 0 : index
    %9 = vector.load %arg11[%c0_9, %c17, %c0_10] : memref<10x24x128xbf16, #tpu.memory_space<vmem>>, vector<10x1x128xbf16>
    tpu.vector_store %arg11[%c0_9, %c17, %c0_10], %7 {strides = array<i32>} : memref<10x24x128xbf16, #tpu.memory_space<vmem>>, vector<10x1x128xbf16>,
    %cst_11 = arith.constant 0.000000e+00 : bf16
    %10 = vector.broadcast %cst_11 : bf16 to vector<1x24x128xbf16>
    %c0_i32 = arith.constant 0 : i32
    %11 = arith.cmpi eq, %arg1, %c0_i32 : i32
    %12 = arith.extui %11 : i1 to i32
    %c0_i32_12 = arith.constant 0 : i32
    %13 = arith.cmpi ne, %12, %c0_i32_12 : i32
    scf.if %13 {
      %c0_76 = arith.constant 0 : index
      %c0_77 = arith.constant 0 : index
      %c0_78 = arith.constant 0 : index
      %82 = vector.load %arg11[%c0_76, %c0_77, %c0_78] : memref<10x24x128xbf16, #tpu.memory_space<vmem>>, vector<1x24x128xbf16>
      tpu.vector_store %arg11[%c0_76, %c0_77, %c0_78], %10 {strides = array<i32>} : memref<10x24x128xbf16, #tpu.memory_space<vmem>>, vector<1x24x128xbf16>,
    } else {
    }
    %c1_i32 = arith.constant 1 : i32
    %14 = arith.cmpi eq, %arg1, %c1_i32 : i32
    %15 = arith.extui %14 : i1 to i32
    %c0_i32_13 = arith.constant 0 : i32
    %16 = arith.cmpi ne, %15, %c0_i32_13 : i32
    scf.if %16 {
      %c9 = arith.constant 9 : index
      %c0_76 = arith.constant 0 : index
      %c0_77 = arith.constant 0 : index
      %82 = vector.load %arg11[%c9, %c0_76, %c0_77] : memref<10x24x128xbf16, #tpu.memory_space<vmem>>, vector<1x24x128xbf16>
      tpu.vector_store %arg11[%c9, %c0_76, %c0_77], %10 {strides = array<i32>} : memref<10x24x128xbf16, #tpu.memory_space<vmem>>, vector<1x24x128xbf16>,
    } else {
    }
    %c0_i32_14 = arith.constant 0 : i32
    %17 = arith.cmpi sgt, %arg1, %c0_i32_14 : i32
    %18 = arith.extui %17 : i1 to i32
    %c0_i32_15 = arith.constant 0 : i32
    %19 = arith.cmpi ne, %18, %c0_i32_15 : i32
    scf.if %19 {
      %c0_76 = arith.constant 0 : index
      %c0_77 = arith.constant 0 : index
      %c0_78 = arith.constant 0 : index
      %c0_79 = arith.constant 0 : index
      %82 = vector.load %arg3[%c0_76, %c0_77, %c0_78, %c0_79] : memref<1x1x16x128xf32, #tpu.memory_space<vmem>>, vector<1x1x16x128xf32>
      %83 = vector.shape_cast %82 : vector<1x1x16x128xf32> to vector<1x16x128xf32>
      %84 = vector.broadcast %1 : vector<1x1x128xf32> to vector<1x16x128xf32>
      %85 = arith.mulf %83, %84 : vector<1x16x128xf32>
      %86 = vector.broadcast %6 : vector<1x1x128xf32> to vector<1x16x128xf32>
      %87 = arith.addf %85, %86 : vector<1x16x128xf32>
      %cst_80 = arith.constant 0.000000e+00 : f32
      %88 = vector.broadcast %cst_80 : f32 to vector<1x16x128xf32>
      %89 = arith.maximumf %87, %88 : vector<1x16x128xf32>
      %90 = arith.truncf %89 : vector<1x16x128xf32> to vector<1x16x128xbf16>
      %c0_81 = arith.constant 0 : index
      %c1_82 = arith.constant 1 : index
      %c0_83 = arith.constant 0 : index
      %91 = vector.load %arg11[%c0_81, %c1_82, %c0_83] : memref<10x24x128xbf16, #tpu.memory_space<vmem>>, vector<1x16x128xbf16>
      tpu.vector_store %arg11[%c0_81, %c1_82, %c0_83], %90 {strides = array<i32>} : memref<10x24x128xbf16, #tpu.memory_space<vmem>>, vector<1x16x128xbf16>,
    } else {
    }
    %c1_i32_16 = arith.constant 1 : i32
    %20 = arith.cmpi slt, %arg1, %c1_i32_16 : i32
    %21 = arith.extui %20 : i1 to i32
    %c0_i32_17 = arith.constant 0 : i32
    %22 = arith.cmpi ne, %21, %c0_i32_17 : i32
    scf.if %22 {
      %c0_76 = arith.constant 0 : index
      %c0_77 = arith.constant 0 : index
      %c0_78 = arith.constant 0 : index
      %c0_79 = arith.constant 0 : index
      %82 = vector.load %arg4[%c0_76, %c0_77, %c0_78, %c0_79] : memref<1x1x16x128xf32, #tpu.memory_space<vmem>>, vector<1x1x16x128xf32>
      %83 = vector.shape_cast %82 : vector<1x1x16x128xf32> to vector<1x16x128xf32>
      %84 = vector.broadcast %1 : vector<1x1x128xf32> to vector<1x16x128xf32>
      %85 = arith.mulf %83, %84 : vector<1x16x128xf32>
      %86 = vector.broadcast %6 : vector<1x1x128xf32> to vector<1x16x128xf32>
      %87 = arith.addf %85, %86 : vector<1x16x128xf32>
      %cst_80 = arith.constant 0.000000e+00 : f32
      %88 = vector.broadcast %cst_80 : f32 to vector<1x16x128xf32>
      %89 = arith.maximumf %87, %88 : vector<1x16x128xf32>
      %90 = arith.truncf %89 : vector<1x16x128xf32> to vector<1x16x128xbf16>
      %c9 = arith.constant 9 : index
      %c1_81 = arith.constant 1 : index
      %c0_82 = arith.constant 0 : index
      %91 = vector.load %arg11[%c9, %c1_81, %c0_82] : memref<10x24x128xbf16, #tpu.memory_space<vmem>>, vector<1x16x128xbf16>
      tpu.vector_store %arg11[%c9, %c1_81, %c0_82], %90 {strides = array<i32>} : memref<10x24x128xbf16, #tpu.memory_space<vmem>>, vector<1x16x128xbf16>,
    } else {
    }
    %c0_18 = arith.constant 0 : index
    %c0_19 = arith.constant 0 : index
    %c0_20 = arith.constant 0 : index
    %c0_21 = arith.constant 0 : index
    %23 = vector.load %arg2[%c0_18, %c0_19, %c0_20, %c0_21] : memref<1x8x16x128xf32, #tpu.memory_space<vmem>>, vector<1x8x16x128xf32>
    %24 = vector.shape_cast %23 : vector<1x8x16x128xf32> to vector<8x16x128xf32>
    %25 = vector.broadcast %1 : vector<1x1x128xf32> to vector<8x16x128xf32>
    %26 = arith.mulf %24, %25 : vector<8x16x128xf32>
    %27 = vector.broadcast %6 : vector<1x1x128xf32> to vector<8x16x128xf32>
    %28 = arith.addf %26, %27 : vector<8x16x128xf32>
    %cst_22 = arith.constant 0.000000e+00 : f32
    %29 = vector.broadcast %cst_22 : f32 to vector<8x16x128xf32>
    %30 = arith.maximumf %28, %29 : vector<8x16x128xf32>
    %31 = arith.truncf %30 : vector<8x16x128xf32> to vector<8x16x128xbf16>
    %c1 = arith.constant 1 : index
    %c1_23 = arith.constant 1 : index
    %c0_24 = arith.constant 0 : index
    %32 = vector.load %arg11[%c1, %c1_23, %c0_24] : memref<10x24x128xbf16, #tpu.memory_space<vmem>>, vector<8x16x128xbf16>
    tpu.vector_store %arg11[%c1, %c1_23, %c0_24], %31 {strides = array<i32>} : memref<10x24x128xbf16, #tpu.memory_space<vmem>>, vector<8x16x128xbf16>,
    %c0_25 = arith.constant 0 : index
    %c0_26 = arith.constant 0 : index
    %c0_27 = arith.constant 0 : index
    %33 = vector.load %arg11[%c0_25, %c0_26, %c0_27] : memref<10x24x128xbf16, #tpu.memory_space<vmem>>, vector<8x16x128xbf16>
    %34 = vector.shape_cast %33 : vector<8x16x128xbf16> to vector<128x128xbf16>
    %c0_28 = arith.constant 0 : index
    %c0_29 = arith.constant 0 : index
    %35 = vector.load %arg7[%c0_28, %c0_29] : memref<1152x128xbf16, #tpu.memory_space<vmem>>, vector<128x128xbf16>
    %cst_30 = arith.constant dense<0.000000e+00> : vector<128x128xf32>
    %36 = tpu.matmul %34, %35, %cst_30 {dimension_numbers = #tpu.dot_dimension_numbers<[1], [0], [0], [1], [0, 0, 1, 1], [], []>} : vector<128x128xbf16>, vector<128x128xbf16>, vector<128x128xf32> -> vector<128x128xf32>
    %c0_31 = arith.constant 0 : index
    %c1_32 = arith.constant 1 : index
    %c0_33 = arith.constant 0 : index
    %37 = vector.load %arg11[%c0_31, %c1_32, %c0_33] : memref<10x24x128xbf16, #tpu.memory_space<vmem>>, vector<8x16x128xbf16>
    %38 = vector.shape_cast %37 : vector<8x16x128xbf16> to vector<128x128xbf16>
    %c128 = arith.constant 128 : index
    %c0_34 = arith.constant 0 : index
    %39 = vector.load %arg7[%c128, %c0_34] : memref<1152x128xbf16, #tpu.memory_space<vmem>>, vector<128x128xbf16>
    %cst_35 = arith.constant dense<0.000000e+00> : vector<128x128xf32>
    %40 = tpu.matmul %38, %39, %cst_35 {dimension_numbers = #tpu.dot_dimension_numbers<[1], [0], [0], [1], [0, 0, 1, 1], [], []>} : vector<128x128xbf16>, vector<128x128xbf16>, vector<128x128xf32> -> vector<128x128xf32>
    %41 = arith.addf %36, %40 : vector<128x128xf32>
    %c0_36 = arith.constant 0 : index
    %c2 = arith.constant 2 : index
    %c0_37 = arith.constant 0 : index
    %42 = vector.load %arg11[%c0_36, %c2, %c0_37] : memref<10x24x128xbf16, #tpu.memory_space<vmem>>, vector<8x16x128xbf16>
    %43 = vector.shape_cast %42 : vector<8x16x128xbf16> to vector<128x128xbf16>
    %c256 = arith.constant 256 : index
    %c0_38 = arith.constant 0 : index
    %44 = vector.load %arg7[%c256, %c0_38] : memref<1152x128xbf16, #tpu.memory_space<vmem>>, vector<128x128xbf16>
    %cst_39 = arith.constant dense<0.000000e+00> : vector<128x128xf32>
    %45 = tpu.matmul %43, %44, %cst_39 {dimension_numbers = #tpu.dot_dimension_numbers<[1], [0], [0], [1], [0, 0, 1, 1], [], []>} : vector<128x128xbf16>, vector<128x128xbf16>, vector<128x128xf32> -> vector<128x128xf32>
    %46 = arith.addf %41, %45 : vector<128x128xf32>
    %c1_40 = arith.constant 1 : index
    %c0_41 = arith.constant 0 : index
    %c0_42 = arith.constant 0 : index
    %47 = vector.load %arg11[%c1_40, %c0_41, %c0_42] : memref<10x24x128xbf16, #tpu.memory_space<vmem>>, vector<8x16x128xbf16>
    %48 = vector.shape_cast %47 : vector<8x16x128xbf16> to vector<128x128xbf16>
    %c384 = arith.constant 384 : index
    %c0_43 = arith.constant 0 : index
    %49 = vector.load %arg7[%c384, %c0_43] : memref<1152x128xbf16, #tpu.memory_space<vmem>>, vector<128x128xbf16>
    %cst_44 = arith.constant dense<0.000000e+00> : vector<128x128xf32>
    %50 = tpu.matmul %48, %49, %cst_44 {dimension_numbers = #tpu.dot_dimension_numbers<[1], [0], [0], [1], [0, 0, 1, 1], [], []>} : vector<128x128xbf16>, vector<128x128xbf16>, vector<128x128xf32> -> vector<128x128xf32>
    %51 = arith.addf %46, %50 : vector<128x128xf32>
    %c1_45 = arith.constant 1 : index
    %c1_46 = arith.constant 1 : index
    %c0_47 = arith.constant 0 : index
    %52 = vector.load %arg11[%c1_45, %c1_46, %c0_47] : memref<10x24x128xbf16, #tpu.memory_space<vmem>>, vector<8x16x128xbf16>
    %53 = vector.shape_cast %52 : vector<8x16x128xbf16> to vector<128x128xbf16>
    %c512 = arith.constant 512 : index
    %c0_48 = arith.constant 0 : index
    %54 = vector.load %arg7[%c512, %c0_48] : memref<1152x128xbf16, #tpu.memory_space<vmem>>, vector<128x128xbf16>
    %cst_49 = arith.constant dense<0.000000e+00> : vector<128x128xf32>
    %55 = tpu.matmul %53, %54, %cst_49 {dimension_numbers = #tpu.dot_dimension_numbers<[1], [0], [0], [1], [0, 0, 1, 1], [], []>} : vector<128x128xbf16>, vector<128x128xbf16>, vector<128x128xf32> -> vector<128x128xf32>
    %56 = arith.addf %51, %55 : vector<128x128xf32>
    %c1_50 = arith.constant 1 : index
    %c2_51 = arith.constant 2 : index
    %c0_52 = arith.constant 0 : index
    %57 = vector.load %arg11[%c1_50, %c2_51, %c0_52] : memref<10x24x128xbf16, #tpu.memory_space<vmem>>, vector<8x16x128xbf16>
    %58 = vector.shape_cast %57 : vector<8x16x128xbf16> to vector<128x128xbf16>
    %c640 = arith.constant 640 : index
    %c0_53 = arith.constant 0 : index
    %59 = vector.load %arg7[%c640, %c0_53] : memref<1152x128xbf16, #tpu.memory_space<vmem>>, vector<128x128xbf16>
    %cst_54 = arith.constant dense<0.000000e+00> : vector<128x128xf32>
    %60 = tpu.matmul %58, %59, %cst_54 {dimension_numbers = #tpu.dot_dimension_numbers<[1], [0], [0], [1], [0, 0, 1, 1], [], []>} : vector<128x128xbf16>, vector<128x128xbf16>, vector<128x128xf32> -> vector<128x128xf32>
    %61 = arith.addf %56, %60 : vector<128x128xf32>
    %c2_55 = arith.constant 2 : index
    %c0_56 = arith.constant 0 : index
    %c0_57 = arith.constant 0 : index
    %62 = vector.load %arg11[%c2_55, %c0_56, %c0_57] : memref<10x24x128xbf16, #tpu.memory_space<vmem>>, vector<8x16x128xbf16>
    %63 = vector.shape_cast %62 : vector<8x16x128xbf16> to vector<128x128xbf16>
    %c768 = arith.constant 768 : index
    %c0_58 = arith.constant 0 : index
    %64 = vector.load %arg7[%c768, %c0_58] : memref<1152x128xbf16, #tpu.memory_space<vmem>>, vector<128x128xbf16>
    %cst_59 = arith.constant dense<0.000000e+00> : vector<128x128xf32>
    %65 = tpu.matmul %63, %64, %cst_59 {dimension_numbers = #tpu.dot_dimension_numbers<[1], [0], [0], [1], [0, 0, 1, 1], [], []>} : vector<128x128xbf16>, vector<128x128xbf16>, vector<128x128xf32> -> vector<128x128xf32>
    %66 = arith.addf %61, %65 : vector<128x128xf32>
    %c2_60 = arith.constant 2 : index
    %c1_61 = arith.constant 1 : index
    %c0_62 = arith.constant 0 : index
    %67 = vector.load %arg11[%c2_60, %c1_61, %c0_62] : memref<10x24x128xbf16, #tpu.memory_space<vmem>>, vector<8x16x128xbf16>
    %68 = vector.shape_cast %67 : vector<8x16x128xbf16> to vector<128x128xbf16>
    %c896 = arith.constant 896 : index
    %c0_63 = arith.constant 0 : index
    %69 = vector.load %arg7[%c896, %c0_63] : memref<1152x128xbf16, #tpu.memory_space<vmem>>, vector<128x128xbf16>
    %cst_64 = arith.constant dense<0.000000e+00> : vector<128x128xf32>
    %70 = tpu.matmul %68, %69, %cst_64 {dimension_numbers = #tpu.dot_dimension_numbers<[1], [0], [0], [1], [0, 0, 1, 1], [], []>} : vector<128x128xbf16>, vector<128x128xbf16>, vector<128x128xf32> -> vector<128x128xf32>
    %71 = arith.addf %66, %70 : vector<128x128xf32>
    %c2_65 = arith.constant 2 : index
    %c2_66 = arith.constant 2 : index
    %c0_67 = arith.constant 0 : index
    %72 = vector.load %arg11[%c2_65, %c2_66, %c0_67] : memref<10x24x128xbf16, #tpu.memory_space<vmem>>, vector<8x16x128xbf16>
    %73 = vector.shape_cast %72 : vector<8x16x128xbf16> to vector<128x128xbf16>
    %c1024 = arith.constant 1024 : index
    %c0_68 = arith.constant 0 : index
    %74 = vector.load %arg7[%c1024, %c0_68] : memref<1152x128xbf16, #tpu.memory_space<vmem>>, vector<128x128xbf16>
    %cst_69 = arith.constant dense<0.000000e+00> : vector<128x128xf32>
    %75 = tpu.matmul %73, %74, %cst_69 {dimension_numbers = #tpu.dot_dimension_numbers<[1], [0], [0], [1], [0, 0, 1, 1], [], []>} : vector<128x128xbf16>, vector<128x128xbf16>, vector<128x128xf32> -> vector<128x128xf32>
    %76 = arith.addf %71, %75 : vector<128x128xf32>
    %c0_70 = arith.constant 0 : index
    %c0_71 = arith.constant 0 : index
    %77 = vector.load %arg8[%c0_70, %c0_71] : memref<1x128xf32, #tpu.memory_space<vmem>>, vector<1x128xf32>
    %78 = vector.broadcast %77 : vector<1x128xf32> to vector<128x128xf32>
    %79 = arith.addf %76, %78 : vector<128x128xf32>
    %80 = vector.shape_cast %79 : vector<128x128xf32> to vector<1x8x16x128xf32>
    %c0_72 = arith.constant 0 : index
    %c0_73 = arith.constant 0 : index
    %c0_74 = arith.constant 0 : index
    %c0_75 = arith.constant 0 : index
    %81 = vector.load %arg10[%c0_72, %c0_73, %c0_74, %c0_75] : memref<1x8x16x128xf32, #tpu.memory_space<vmem>>, vector<1x8x16x128xf32>
    tpu.vector_store %arg10[%c0_72, %c0_73, %c0_74, %c0_75], %80 {strides = array<i32>} : memref<1x8x16x128xf32, #tpu.memory_space<vmem>>, vector<1x8x16x128xf32>,
    return
  }
  func.func @transform_0(%arg0: i32, %arg1: i32) -> (i32, i32, i32, i32) {
    %c0_i32 = arith.constant 0 : i32
    %c0_i32_0 = arith.constant 0 : i32
    %c0_i32_1 = arith.constant 0 : i32
    return %arg0, %arg1, %c0_i32, %c0_i32_0 : i32, i32, i32, i32
  }
  func.func @transform_1(%arg0: i32, %arg1: i32) -> (i32, i32, i32, i32) {
    %c8_i32 = arith.constant 8 : i32
    %0 = arith.muli %arg1, %c8_i32 : i32
    %c1_i32 = arith.constant 1 : i32
    %1 = arith.subi %0, %c1_i32 : i32
    %c0_i32 = arith.constant 0 : i32
    %2 = arith.maxsi %1, %c0_i32 : i32
    %c0_i32_0 = arith.constant 0 : i32
    %c0_i32_1 = arith.constant 0 : i32
    %c0_i32_2 = arith.constant 0 : i32
    return %arg0, %2, %c0_i32_0, %c0_i32_1 : i32, i32, i32, i32
  }
  func.func @transform_2(%arg0: i32, %arg1: i32) -> (i32, i32, i32, i32) {
    %c8_i32 = arith.constant 8 : i32
    %0 = arith.muli %arg1, %c8_i32 : i32
    %c8_i32_0 = arith.constant 8 : i32
    %1 = arith.addi %0, %c8_i32_0 : i32
    %c15_i32 = arith.constant 15 : i32
    %2 = arith.minsi %1, %c15_i32 : i32
    %c0_i32 = arith.constant 0 : i32
    %c0_i32_1 = arith.constant 0 : i32
    %c0_i32_2 = arith.constant 0 : i32
    return %arg0, %2, %c0_i32, %c0_i32_1 : i32, i32, i32, i32
  }
  func.func @transform_3(%arg0: i32, %arg1: i32) -> (i32, i32) {
    %c0_i32 = arith.constant 0 : i32
    %c0_i32_0 = arith.constant 0 : i32
    %c0_i32_1 = arith.constant 0 : i32
    return %c0_i32, %c0_i32_0 : i32, i32
  }
  func.func @transform_4(%arg0: i32, %arg1: i32) -> (i32, i32) {
    %c0_i32 = arith.constant 0 : i32
    %c0_i32_0 = arith.constant 0 : i32
    %c0_i32_1 = arith.constant 0 : i32
    return %c0_i32, %c0_i32_0 : i32, i32
  }
  func.func @transform_5(%arg0: i32, %arg1: i32) -> (i32, i32) {
    %c0_i32 = arith.constant 0 : i32
    %c0_i32_0 = arith.constant 0 : i32
    %c0_i32_1 = arith.constant 0 : i32
    return %c0_i32, %c0_i32_0 : i32, i32
  }
  func.func @transform_6(%arg0: i32, %arg1: i32) -> (i32, i32) {
    %c0_i32 = arith.constant 0 : i32
    %c0_i32_0 = arith.constant 0 : i32
    %c0_i32_1 = arith.constant 0 : i32
    return %c0_i32, %c0_i32_0 : i32, i32
  }
  func.func @transform_7(%arg0: i32, %arg1: i32) -> (i32, i32, i32) {
    %c0_i32 = arith.constant 0 : i32
    %c0_i32_0 = arith.constant 0 : i32
    %c0_i32_1 = arith.constant 0 : i32
    return %arg0, %c0_i32, %c0_i32_0 : i32, i32, i32
  }
  func.func @transform_8(%arg0: i32, %arg1: i32) -> (i32, i32, i32, i32) {
    %c0_i32 = arith.constant 0 : i32
    %c0_i32_0 = arith.constant 0 : i32
    %c0_i32_1 = arith.constant 0 : i32
    return %arg0, %arg1, %c0_i32, %c0_i32_0 : i32, i32, i32, i32
  }
}

module attributes {stable_mosaic.version = 11 : i64} {
  func.func @_fused_conv_kernel(%arg0: i32, %arg1: i32, %arg2: memref<1x8x16x128xf32, #tpu.memory_space<vmem>>, %arg3: memref<1x1x16x128xf32, #tpu.memory_space<vmem>>, %arg4: memref<1x1x16x128xf32, #tpu.memory_space<vmem>>, %arg5: memref<1x128xf32, #tpu.memory_space<vmem>>, %arg6: memref<1x128xf32, #tpu.memory_space<vmem>>, %arg7: memref<1152x128xbf16, #tpu.memory_space<vmem>>, %arg8: memref<1x128xf32, #tpu.memory_space<vmem>>, %arg9: memref<1x1x128xf32, #tpu.memory_space<vmem>>, %arg10: memref<1x8x16x128xf32, #tpu.memory_space<vmem>>, %arg11: memref<1x8x16x128xf32, #tpu.memory_space<vmem>>, %arg12: memref<10x24x128xbf16, #tpu.memory_space<vmem>>) attributes {dimension_semantics = [#tpu.dimension_semantics<parallel>, #tpu.dimension_semantics<parallel>], iteration_bounds = array<i64: 2, 2>, scalar_prefetch = 0 : i64, scratch_operands = 1 : i64, tpu.core_type = #tpu.core_type<tc>, window_params = [{transform_indices = @transform_0, window_bounds = array<i64: 1, 8, 16, 128>}, {transform_indices = @transform_1, window_bounds = array<i64: 1, 1, 16, 128>}, {transform_indices = @transform_2, window_bounds = array<i64: 1, 1, 16, 128>}, {pipeline_mode = #tpu.pipeline_mode<synchronous>, transform_indices = @transform_3, window_bounds = array<i64: 1, 128>}, {pipeline_mode = #tpu.pipeline_mode<synchronous>, transform_indices = @transform_4, window_bounds = array<i64: 1, 128>}, {pipeline_mode = #tpu.pipeline_mode<synchronous>, transform_indices = @transform_5, window_bounds = array<i64: 1152, 128>}, {pipeline_mode = #tpu.pipeline_mode<synchronous>, transform_indices = @transform_6, window_bounds = array<i64: 1, 128>}, {transform_indices = @transform_7, window_bounds = array<i64: 1, 1, 128>}, {transform_indices = @transform_8, window_bounds = array<i64: 1, 8, 16, 128>}, {transform_indices = @transform_9, window_bounds = array<i64: 1, 8, 16, 128>}]} {
    %c0 = arith.constant 0 : index
    %c0_0 = arith.constant 0 : index
    %0 = vector.load %arg5[%c0, %c0_0] : memref<1x128xf32, #tpu.memory_space<vmem>>, vector<1x128xf32>
    %1 = vector.shape_cast %0 : vector<1x128xf32> to vector<1x1x128xf32>
    %c0_1 = arith.constant 0 : index
    %c0_2 = arith.constant 0 : index
    %2 = vector.load %arg6[%c0_1, %c0_2] : memref<1x128xf32, #tpu.memory_space<vmem>>, vector<1x128xf32>
    %3 = vector.shape_cast %2 : vector<1x128xf32> to vector<1x1x128xf32>
    %c0_3 = arith.constant 0 : index
    %c0_4 = arith.constant 0 : index
    %c0_5 = arith.constant 0 : index
    %4 = vector.load %arg9[%c0_3, %c0_4, %c0_5] : memref<1x1x128xf32, #tpu.memory_space<vmem>>, vector<1x1x128xf32>
    %5 = arith.mulf %4, %1 : vector<1x1x128xf32>
    %6 = arith.addf %3, %5 : vector<1x1x128xf32>
    %cst = arith.constant 0.000000e+00 : bf16
    %7 = vector.broadcast %cst : bf16 to vector<10x1x128xbf16>
    %c0_6 = arith.constant 0 : index
    %c0_7 = arith.constant 0 : index
    %c0_8 = arith.constant 0 : index
    %8 = vector.load %arg12[%c0_6, %c0_7, %c0_8] : memref<10x24x128xbf16, #tpu.memory_space<vmem>>, vector<10x1x128xbf16>
    tpu.vector_store %arg12[%c0_6, %c0_7, %c0_8], %7 {strides = array<i32>} : memref<10x24x128xbf16, #tpu.memory_space<vmem>>, vector<10x1x128xbf16>,
    %c0_9 = arith.constant 0 : index
    %c17 = arith.constant 17 : index
    %c0_10 = arith.constant 0 : index
    %9 = vector.load %arg12[%c0_9, %c17, %c0_10] : memref<10x24x128xbf16, #tpu.memory_space<vmem>>, vector<10x1x128xbf16>
    tpu.vector_store %arg12[%c0_9, %c17, %c0_10], %7 {strides = array<i32>} : memref<10x24x128xbf16, #tpu.memory_space<vmem>>, vector<10x1x128xbf16>,
    %cst_11 = arith.constant 0.000000e+00 : bf16
    %10 = vector.broadcast %cst_11 : bf16 to vector<1x24x128xbf16>
    %c0_i32 = arith.constant 0 : i32
    %11 = arith.cmpi eq, %arg1, %c0_i32 : i32
    %12 = arith.extui %11 : i1 to i32
    %c0_i32_12 = arith.constant 0 : i32
    %13 = arith.cmpi ne, %12, %c0_i32_12 : i32
    scf.if %13 {
      %c0_80 = arith.constant 0 : index
      %c0_81 = arith.constant 0 : index
      %c0_82 = arith.constant 0 : index
      %84 = vector.load %arg12[%c0_80, %c0_81, %c0_82] : memref<10x24x128xbf16, #tpu.memory_space<vmem>>, vector<1x24x128xbf16>
      tpu.vector_store %arg12[%c0_80, %c0_81, %c0_82], %10 {strides = array<i32>} : memref<10x24x128xbf16, #tpu.memory_space<vmem>>, vector<1x24x128xbf16>,
    } else {
    }
    %c1_i32 = arith.constant 1 : i32
    %14 = arith.cmpi eq, %arg1, %c1_i32 : i32
    %15 = arith.extui %14 : i1 to i32
    %c0_i32_13 = arith.constant 0 : i32
    %16 = arith.cmpi ne, %15, %c0_i32_13 : i32
    scf.if %16 {
      %c9 = arith.constant 9 : index
      %c0_80 = arith.constant 0 : index
      %c0_81 = arith.constant 0 : index
      %84 = vector.load %arg12[%c9, %c0_80, %c0_81] : memref<10x24x128xbf16, #tpu.memory_space<vmem>>, vector<1x24x128xbf16>
      tpu.vector_store %arg12[%c9, %c0_80, %c0_81], %10 {strides = array<i32>} : memref<10x24x128xbf16, #tpu.memory_space<vmem>>, vector<1x24x128xbf16>,
    } else {
    }
    %c0_i32_14 = arith.constant 0 : i32
    %17 = arith.cmpi sgt, %arg1, %c0_i32_14 : i32
    %18 = arith.extui %17 : i1 to i32
    %c0_i32_15 = arith.constant 0 : i32
    %19 = arith.cmpi ne, %18, %c0_i32_15 : i32
    scf.if %19 {
      %c0_80 = arith.constant 0 : index
      %c0_81 = arith.constant 0 : index
      %c0_82 = arith.constant 0 : index
      %c0_83 = arith.constant 0 : index
      %84 = vector.load %arg3[%c0_80, %c0_81, %c0_82, %c0_83] : memref<1x1x16x128xf32, #tpu.memory_space<vmem>>, vector<1x1x16x128xf32>
      %85 = vector.shape_cast %84 : vector<1x1x16x128xf32> to vector<1x16x128xf32>
      %86 = vector.broadcast %1 : vector<1x1x128xf32> to vector<1x16x128xf32>
      %87 = arith.mulf %85, %86 : vector<1x16x128xf32>
      %88 = vector.broadcast %6 : vector<1x1x128xf32> to vector<1x16x128xf32>
      %89 = arith.addf %87, %88 : vector<1x16x128xf32>
      %cst_84 = arith.constant 0.000000e+00 : f32
      %90 = vector.broadcast %cst_84 : f32 to vector<1x16x128xf32>
      %91 = arith.maximumf %89, %90 : vector<1x16x128xf32>
      %92 = arith.truncf %91 : vector<1x16x128xf32> to vector<1x16x128xbf16>
      %c0_85 = arith.constant 0 : index
      %c1_86 = arith.constant 1 : index
      %c0_87 = arith.constant 0 : index
      %93 = vector.load %arg12[%c0_85, %c1_86, %c0_87] : memref<10x24x128xbf16, #tpu.memory_space<vmem>>, vector<1x16x128xbf16>
      tpu.vector_store %arg12[%c0_85, %c1_86, %c0_87], %92 {strides = array<i32>} : memref<10x24x128xbf16, #tpu.memory_space<vmem>>, vector<1x16x128xbf16>,
    } else {
    }
    %c1_i32_16 = arith.constant 1 : i32
    %20 = arith.cmpi slt, %arg1, %c1_i32_16 : i32
    %21 = arith.extui %20 : i1 to i32
    %c0_i32_17 = arith.constant 0 : i32
    %22 = arith.cmpi ne, %21, %c0_i32_17 : i32
    scf.if %22 {
      %c0_80 = arith.constant 0 : index
      %c0_81 = arith.constant 0 : index
      %c0_82 = arith.constant 0 : index
      %c0_83 = arith.constant 0 : index
      %84 = vector.load %arg4[%c0_80, %c0_81, %c0_82, %c0_83] : memref<1x1x16x128xf32, #tpu.memory_space<vmem>>, vector<1x1x16x128xf32>
      %85 = vector.shape_cast %84 : vector<1x1x16x128xf32> to vector<1x16x128xf32>
      %86 = vector.broadcast %1 : vector<1x1x128xf32> to vector<1x16x128xf32>
      %87 = arith.mulf %85, %86 : vector<1x16x128xf32>
      %88 = vector.broadcast %6 : vector<1x1x128xf32> to vector<1x16x128xf32>
      %89 = arith.addf %87, %88 : vector<1x16x128xf32>
      %cst_84 = arith.constant 0.000000e+00 : f32
      %90 = vector.broadcast %cst_84 : f32 to vector<1x16x128xf32>
      %91 = arith.maximumf %89, %90 : vector<1x16x128xf32>
      %92 = arith.truncf %91 : vector<1x16x128xf32> to vector<1x16x128xbf16>
      %c9 = arith.constant 9 : index
      %c1_85 = arith.constant 1 : index
      %c0_86 = arith.constant 0 : index
      %93 = vector.load %arg12[%c9, %c1_85, %c0_86] : memref<10x24x128xbf16, #tpu.memory_space<vmem>>, vector<1x16x128xbf16>
      tpu.vector_store %arg12[%c9, %c1_85, %c0_86], %92 {strides = array<i32>} : memref<10x24x128xbf16, #tpu.memory_space<vmem>>, vector<1x16x128xbf16>,
    } else {
    }
    %c0_18 = arith.constant 0 : index
    %c0_19 = arith.constant 0 : index
    %c0_20 = arith.constant 0 : index
    %c0_21 = arith.constant 0 : index
    %23 = vector.load %arg2[%c0_18, %c0_19, %c0_20, %c0_21] : memref<1x8x16x128xf32, #tpu.memory_space<vmem>>, vector<1x8x16x128xf32>
    %24 = vector.shape_cast %23 : vector<1x8x16x128xf32> to vector<8x16x128xf32>
    %25 = vector.broadcast %1 : vector<1x1x128xf32> to vector<8x16x128xf32>
    %26 = arith.mulf %24, %25 : vector<8x16x128xf32>
    %27 = vector.broadcast %6 : vector<1x1x128xf32> to vector<8x16x128xf32>
    %28 = arith.addf %26, %27 : vector<8x16x128xf32>
    %cst_22 = arith.constant 0.000000e+00 : f32
    %29 = vector.broadcast %cst_22 : f32 to vector<8x16x128xf32>
    %30 = arith.maximumf %28, %29 : vector<8x16x128xf32>
    %31 = arith.truncf %30 : vector<8x16x128xf32> to vector<8x16x128xbf16>
    %c1 = arith.constant 1 : index
    %c1_23 = arith.constant 1 : index
    %c0_24 = arith.constant 0 : index
    %32 = vector.load %arg12[%c1, %c1_23, %c0_24] : memref<10x24x128xbf16, #tpu.memory_space<vmem>>, vector<8x16x128xbf16>
    tpu.vector_store %arg12[%c1, %c1_23, %c0_24], %31 {strides = array<i32>} : memref<10x24x128xbf16, #tpu.memory_space<vmem>>, vector<8x16x128xbf16>,
    %c0_25 = arith.constant 0 : index
    %c0_26 = arith.constant 0 : index
    %c0_27 = arith.constant 0 : index
    %33 = vector.load %arg12[%c0_25, %c0_26, %c0_27] : memref<10x24x128xbf16, #tpu.memory_space<vmem>>, vector<8x16x128xbf16>
    %34 = vector.shape_cast %33 : vector<8x16x128xbf16> to vector<128x128xbf16>
    %c0_28 = arith.constant 0 : index
    %c0_29 = arith.constant 0 : index
    %35 = vector.load %arg7[%c0_28, %c0_29] : memref<1152x128xbf16, #tpu.memory_space<vmem>>, vector<128x128xbf16>
    %cst_30 = arith.constant dense<0.000000e+00> : vector<128x128xf32>
    %36 = tpu.matmul %34, %35, %cst_30 {dimension_numbers = #tpu.dot_dimension_numbers<[1], [0], [0], [1], [0, 0, 1, 1], [], []>} : vector<128x128xbf16>, vector<128x128xbf16>, vector<128x128xf32> -> vector<128x128xf32>
    %c0_31 = arith.constant 0 : index
    %c1_32 = arith.constant 1 : index
    %c0_33 = arith.constant 0 : index
    %37 = vector.load %arg12[%c0_31, %c1_32, %c0_33] : memref<10x24x128xbf16, #tpu.memory_space<vmem>>, vector<8x16x128xbf16>
    %38 = vector.shape_cast %37 : vector<8x16x128xbf16> to vector<128x128xbf16>
    %c128 = arith.constant 128 : index
    %c0_34 = arith.constant 0 : index
    %39 = vector.load %arg7[%c128, %c0_34] : memref<1152x128xbf16, #tpu.memory_space<vmem>>, vector<128x128xbf16>
    %cst_35 = arith.constant dense<0.000000e+00> : vector<128x128xf32>
    %40 = tpu.matmul %38, %39, %cst_35 {dimension_numbers = #tpu.dot_dimension_numbers<[1], [0], [0], [1], [0, 0, 1, 1], [], []>} : vector<128x128xbf16>, vector<128x128xbf16>, vector<128x128xf32> -> vector<128x128xf32>
    %41 = arith.addf %36, %40 : vector<128x128xf32>
    %c0_36 = arith.constant 0 : index
    %c2 = arith.constant 2 : index
    %c0_37 = arith.constant 0 : index
    %42 = vector.load %arg12[%c0_36, %c2, %c0_37] : memref<10x24x128xbf16, #tpu.memory_space<vmem>>, vector<8x16x128xbf16>
    %43 = vector.shape_cast %42 : vector<8x16x128xbf16> to vector<128x128xbf16>
    %c256 = arith.constant 256 : index
    %c0_38 = arith.constant 0 : index
    %44 = vector.load %arg7[%c256, %c0_38] : memref<1152x128xbf16, #tpu.memory_space<vmem>>, vector<128x128xbf16>
    %cst_39 = arith.constant dense<0.000000e+00> : vector<128x128xf32>
    %45 = tpu.matmul %43, %44, %cst_39 {dimension_numbers = #tpu.dot_dimension_numbers<[1], [0], [0], [1], [0, 0, 1, 1], [], []>} : vector<128x128xbf16>, vector<128x128xbf16>, vector<128x128xf32> -> vector<128x128xf32>
    %46 = arith.addf %41, %45 : vector<128x128xf32>
    %c1_40 = arith.constant 1 : index
    %c0_41 = arith.constant 0 : index
    %c0_42 = arith.constant 0 : index
    %47 = vector.load %arg12[%c1_40, %c0_41, %c0_42] : memref<10x24x128xbf16, #tpu.memory_space<vmem>>, vector<8x16x128xbf16>
    %48 = vector.shape_cast %47 : vector<8x16x128xbf16> to vector<128x128xbf16>
    %c384 = arith.constant 384 : index
    %c0_43 = arith.constant 0 : index
    %49 = vector.load %arg7[%c384, %c0_43] : memref<1152x128xbf16, #tpu.memory_space<vmem>>, vector<128x128xbf16>
    %cst_44 = arith.constant dense<0.000000e+00> : vector<128x128xf32>
    %50 = tpu.matmul %48, %49, %cst_44 {dimension_numbers = #tpu.dot_dimension_numbers<[1], [0], [0], [1], [0, 0, 1, 1], [], []>} : vector<128x128xbf16>, vector<128x128xbf16>, vector<128x128xf32> -> vector<128x128xf32>
    %51 = arith.addf %46, %50 : vector<128x128xf32>
    %c1_45 = arith.constant 1 : index
    %c1_46 = arith.constant 1 : index
    %c0_47 = arith.constant 0 : index
    %52 = vector.load %arg12[%c1_45, %c1_46, %c0_47] : memref<10x24x128xbf16, #tpu.memory_space<vmem>>, vector<8x16x128xbf16>
    %53 = vector.shape_cast %52 : vector<8x16x128xbf16> to vector<128x128xbf16>
    %c512 = arith.constant 512 : index
    %c0_48 = arith.constant 0 : index
    %54 = vector.load %arg7[%c512, %c0_48] : memref<1152x128xbf16, #tpu.memory_space<vmem>>, vector<128x128xbf16>
    %cst_49 = arith.constant dense<0.000000e+00> : vector<128x128xf32>
    %55 = tpu.matmul %53, %54, %cst_49 {dimension_numbers = #tpu.dot_dimension_numbers<[1], [0], [0], [1], [0, 0, 1, 1], [], []>} : vector<128x128xbf16>, vector<128x128xbf16>, vector<128x128xf32> -> vector<128x128xf32>
    %56 = arith.addf %51, %55 : vector<128x128xf32>
    %c1_50 = arith.constant 1 : index
    %c2_51 = arith.constant 2 : index
    %c0_52 = arith.constant 0 : index
    %57 = vector.load %arg12[%c1_50, %c2_51, %c0_52] : memref<10x24x128xbf16, #tpu.memory_space<vmem>>, vector<8x16x128xbf16>
    %58 = vector.shape_cast %57 : vector<8x16x128xbf16> to vector<128x128xbf16>
    %c640 = arith.constant 640 : index
    %c0_53 = arith.constant 0 : index
    %59 = vector.load %arg7[%c640, %c0_53] : memref<1152x128xbf16, #tpu.memory_space<vmem>>, vector<128x128xbf16>
    %cst_54 = arith.constant dense<0.000000e+00> : vector<128x128xf32>
    %60 = tpu.matmul %58, %59, %cst_54 {dimension_numbers = #tpu.dot_dimension_numbers<[1], [0], [0], [1], [0, 0, 1, 1], [], []>} : vector<128x128xbf16>, vector<128x128xbf16>, vector<128x128xf32> -> vector<128x128xf32>
    %61 = arith.addf %56, %60 : vector<128x128xf32>
    %c2_55 = arith.constant 2 : index
    %c0_56 = arith.constant 0 : index
    %c0_57 = arith.constant 0 : index
    %62 = vector.load %arg12[%c2_55, %c0_56, %c0_57] : memref<10x24x128xbf16, #tpu.memory_space<vmem>>, vector<8x16x128xbf16>
    %63 = vector.shape_cast %62 : vector<8x16x128xbf16> to vector<128x128xbf16>
    %c768 = arith.constant 768 : index
    %c0_58 = arith.constant 0 : index
    %64 = vector.load %arg7[%c768, %c0_58] : memref<1152x128xbf16, #tpu.memory_space<vmem>>, vector<128x128xbf16>
    %cst_59 = arith.constant dense<0.000000e+00> : vector<128x128xf32>
    %65 = tpu.matmul %63, %64, %cst_59 {dimension_numbers = #tpu.dot_dimension_numbers<[1], [0], [0], [1], [0, 0, 1, 1], [], []>} : vector<128x128xbf16>, vector<128x128xbf16>, vector<128x128xf32> -> vector<128x128xf32>
    %66 = arith.addf %61, %65 : vector<128x128xf32>
    %c2_60 = arith.constant 2 : index
    %c1_61 = arith.constant 1 : index
    %c0_62 = arith.constant 0 : index
    %67 = vector.load %arg12[%c2_60, %c1_61, %c0_62] : memref<10x24x128xbf16, #tpu.memory_space<vmem>>, vector<8x16x128xbf16>
    %68 = vector.shape_cast %67 : vector<8x16x128xbf16> to vector<128x128xbf16>
    %c896 = arith.constant 896 : index
    %c0_63 = arith.constant 0 : index
    %69 = vector.load %arg7[%c896, %c0_63] : memref<1152x128xbf16, #tpu.memory_space<vmem>>, vector<128x128xbf16>
    %cst_64 = arith.constant dense<0.000000e+00> : vector<128x128xf32>
    %70 = tpu.matmul %68, %69, %cst_64 {dimension_numbers = #tpu.dot_dimension_numbers<[1], [0], [0], [1], [0, 0, 1, 1], [], []>} : vector<128x128xbf16>, vector<128x128xbf16>, vector<128x128xf32> -> vector<128x128xf32>
    %71 = arith.addf %66, %70 : vector<128x128xf32>
    %c2_65 = arith.constant 2 : index
    %c2_66 = arith.constant 2 : index
    %c0_67 = arith.constant 0 : index
    %72 = vector.load %arg12[%c2_65, %c2_66, %c0_67] : memref<10x24x128xbf16, #tpu.memory_space<vmem>>, vector<8x16x128xbf16>
    %73 = vector.shape_cast %72 : vector<8x16x128xbf16> to vector<128x128xbf16>
    %c1024 = arith.constant 1024 : index
    %c0_68 = arith.constant 0 : index
    %74 = vector.load %arg7[%c1024, %c0_68] : memref<1152x128xbf16, #tpu.memory_space<vmem>>, vector<128x128xbf16>
    %cst_69 = arith.constant dense<0.000000e+00> : vector<128x128xf32>
    %75 = tpu.matmul %73, %74, %cst_69 {dimension_numbers = #tpu.dot_dimension_numbers<[1], [0], [0], [1], [0, 0, 1, 1], [], []>} : vector<128x128xbf16>, vector<128x128xbf16>, vector<128x128xf32> -> vector<128x128xf32>
    %76 = arith.addf %71, %75 : vector<128x128xf32>
    %c0_70 = arith.constant 0 : index
    %c0_71 = arith.constant 0 : index
    %77 = vector.load %arg8[%c0_70, %c0_71] : memref<1x128xf32, #tpu.memory_space<vmem>>, vector<1x128xf32>
    %78 = vector.broadcast %77 : vector<1x128xf32> to vector<128x128xf32>
    %79 = arith.addf %76, %78 : vector<128x128xf32>
    %80 = vector.shape_cast %79 : vector<128x128xf32> to vector<1x8x16x128xf32>
    %c0_72 = arith.constant 0 : index
    %c0_73 = arith.constant 0 : index
    %c0_74 = arith.constant 0 : index
    %c0_75 = arith.constant 0 : index
    %81 = vector.load %arg10[%c0_72, %c0_73, %c0_74, %c0_75] : memref<1x8x16x128xf32, #tpu.memory_space<vmem>>, vector<1x8x16x128xf32>
    %82 = arith.addf %80, %81 : vector<1x8x16x128xf32>
    %c0_76 = arith.constant 0 : index
    %c0_77 = arith.constant 0 : index
    %c0_78 = arith.constant 0 : index
    %c0_79 = arith.constant 0 : index
    %83 = vector.load %arg11[%c0_76, %c0_77, %c0_78, %c0_79] : memref<1x8x16x128xf32, #tpu.memory_space<vmem>>, vector<1x8x16x128xf32>
    tpu.vector_store %arg11[%c0_76, %c0_77, %c0_78, %c0_79], %82 {strides = array<i32>} : memref<1x8x16x128xf32, #tpu.memory_space<vmem>>, vector<1x8x16x128xf32>,
    return
  }
  func.func @transform_0(%arg0: i32, %arg1: i32) -> (i32, i32, i32, i32) {
    %c0_i32 = arith.constant 0 : i32
    %c0_i32_0 = arith.constant 0 : i32
    %c0_i32_1 = arith.constant 0 : i32
    return %arg0, %arg1, %c0_i32, %c0_i32_0 : i32, i32, i32, i32
  }
  func.func @transform_1(%arg0: i32, %arg1: i32) -> (i32, i32, i32, i32) {
    %c8_i32 = arith.constant 8 : i32
    %0 = arith.muli %arg1, %c8_i32 : i32
    %c1_i32 = arith.constant 1 : i32
    %1 = arith.subi %0, %c1_i32 : i32
    %c0_i32 = arith.constant 0 : i32
    %2 = arith.maxsi %1, %c0_i32 : i32
    %c0_i32_0 = arith.constant 0 : i32
    %c0_i32_1 = arith.constant 0 : i32
    %c0_i32_2 = arith.constant 0 : i32
    return %arg0, %2, %c0_i32_0, %c0_i32_1 : i32, i32, i32, i32
  }
  func.func @transform_2(%arg0: i32, %arg1: i32) -> (i32, i32, i32, i32) {
    %c8_i32 = arith.constant 8 : i32
    %0 = arith.muli %arg1, %c8_i32 : i32
    %c8_i32_0 = arith.constant 8 : i32
    %1 = arith.addi %0, %c8_i32_0 : i32
    %c15_i32 = arith.constant 15 : i32
    %2 = arith.minsi %1, %c15_i32 : i32
    %c0_i32 = arith.constant 0 : i32
    %c0_i32_1 = arith.constant 0 : i32
    %c0_i32_2 = arith.constant 0 : i32
    return %arg0, %2, %c0_i32, %c0_i32_1 : i32, i32, i32, i32
  }
  func.func @transform_3(%arg0: i32, %arg1: i32) -> (i32, i32) {
    %c0_i32 = arith.constant 0 : i32
    %c0_i32_0 = arith.constant 0 : i32
    %c0_i32_1 = arith.constant 0 : i32
    return %c0_i32, %c0_i32_0 : i32, i32
  }
  func.func @transform_4(%arg0: i32, %arg1: i32) -> (i32, i32) {
    %c0_i32 = arith.constant 0 : i32
    %c0_i32_0 = arith.constant 0 : i32
    %c0_i32_1 = arith.constant 0 : i32
    return %c0_i32, %c0_i32_0 : i32, i32
  }
  func.func @transform_5(%arg0: i32, %arg1: i32) -> (i32, i32) {
    %c0_i32 = arith.constant 0 : i32
    %c0_i32_0 = arith.constant 0 : i32
    %c0_i32_1 = arith.constant 0 : i32
    return %c0_i32, %c0_i32_0 : i32, i32
  }
  func.func @transform_6(%arg0: i32, %arg1: i32) -> (i32, i32) {
    %c0_i32 = arith.constant 0 : i32
    %c0_i32_0 = arith.constant 0 : i32
    %c0_i32_1 = arith.constant 0 : i32
    return %c0_i32, %c0_i32_0 : i32, i32
  }
  func.func @transform_7(%arg0: i32, %arg1: i32) -> (i32, i32, i32) {
    %c0_i32 = arith.constant 0 : i32
    %c0_i32_0 = arith.constant 0 : i32
    %c0_i32_1 = arith.constant 0 : i32
    return %arg0, %c0_i32, %c0_i32_0 : i32, i32, i32
  }
  func.func @transform_8(%arg0: i32, %arg1: i32) -> (i32, i32, i32, i32) {
    %c0_i32 = arith.constant 0 : i32
    %c0_i32_0 = arith.constant 0 : i32
    %c0_i32_1 = arith.constant 0 : i32
    return %arg0, %arg1, %c0_i32, %c0_i32_0 : i32, i32, i32, i32
  }
  func.func @transform_9(%arg0: i32, %arg1: i32) -> (i32, i32, i32, i32) {
    %c0_i32 = arith.constant 0 : i32
    %c0_i32_0 = arith.constant 0 : i32
    %c0_i32_1 = arith.constant 0 : i32
    return %arg0, %arg1, %c0_i32, %c0_i32_0 : i32, i32, i32, i32
  }
}

</mosaic_0001>

<bundles_post_ra>
// kernel: tpu_custom_call.1
= control target key start
LH: loop header
LB: loop body
LE: loop exit
PB: predicated region body
PF: predicated region fallthrough
CT: control target
= control target key end

     0   :  { %6 = vsyncpa [#allocation3], 0  ;;  %s287_s0 = inlined_call_operand.hbm [shape: f32[8,128], index: 0, kind: input, shape index: {}]   ;;  %s288_s1 = inlined_call_operand.hbm [shape: f32[8,128], index: 1, kind: output, shape index: {}]  }
   0x1   :  { %7 = vsyncpa [#allocation4], 0  ;;  %s270_s6 = smov 0  }
   0x2 LB: > { %s149_s7 = sadd.s32 4294967295, %s256_s6   ;;  %p150_p0 = scmp.ge.s32.totalorder %s256_s6, 1  ;;  %s256_s6 = sphi %s270_s6, %s13_s6  }
   0x3   : > { %p60_p1 = scmp.lt.s32.totalorder %s256_s6, 3  ;;  %s72_s10 = sshll.u32 %s287_s0, 4  ;;  %s73_s10 = int_to_ptr.hbm [resolvable:$true] %s72_s10 }
   0x4   : > { %p170_p3 = scmp.eq.s32.totalorder %s149_s7, 0  ;;  %s258_s11 = smov [#allocation2]  }
   0x5   : > { %p61_p2 = pnand %p150_p0, %p60_p1  ;;  %s74_s12 = sshll.u32 %s258_s11, 4  ;;  %s75_s12 = int_to_ptr.vmem [resolvable:$true] %s74_s12 }
   0x7   : > { %p166_p4 = pneg %p61_p2  ;;  %87 = sbr.rel (%p61_p2) target bundleno = 20 (0x14), region = 24 }
   0x9   : > { %p167_p5 = pnand %p170_p3, %p166_p4 }
   0xb   : > { %169 = dma.hbm_to_vmem [thread:$0]  (!%p167_p5), %s73_s10, 128, %s75_s12, [#allocation3]  }
   0xc   : > { %247 = dma.done.wait (%p170_p3), [#allocation3], 128  }
   0xd   : > { %249 = vsyncadd (%p170_p3), [#allocation3], 4294967168  ;;  %s259_s13 = smov [#allocation5]   ;;  %s109_s17 = sshll.u32 %s288_s1, 4  ;;  %v98_v0 = vld [vmem:[#allocation2] sm:$0xff]  ;;  %s110_s17 = int_to_ptr.hbm [resolvable:$true] %s109_s17 }
   0xe   : > { %s107_s14 = sshll.u32 %s259_s13, 4  ;;  %p172_p6 = scmp.eq.s32.totalorder %s149_s7, 1  ;;  %v99_v1 = vadd.f32 1.0, %v98_v0  ;;  %s108_s14 = int_to_ptr.vmem [resolvable:$true] %s107_s14 }
  0x10   : > { %100 = vst [vmem:[#allocation5] sm:$0xff] %v99_v1 }
  0x11   : > { %163 = dma.vmem_to_hbm [thread:$0]  (%p172_p6), %s108_s14, 128, %s110_s17, [#allocation4]  }
  0x12   : > { %251 = dma.done.wait (%p172_p6), [#allocation4], 128  }
  0x13   : > { %253 = vsyncadd (%p172_p6), [#allocation4], 4294967168 }
  0x14 PF: > { %s13_s6 = sadd.s32 1, %s256_s6  }
  0x15   : > { %p10_p7 = scmp.ge.s32.totalorder %s13_s6, 4  }
  0x17   :  { %12 = sbr.rel (!%p10_p7) target bundleno = 2 (0x2), region = 53 }
  0x1c   :  { %123 = vsyncpa [#allocation3], 1 }
  0x1d   :  { %125 = vsyncpa [#allocation3 + $0x1], 1 }
  0x1e   :  { %126 = vsyncpa [#allocation4], 1 }
  0x1f   :  { %128 = vsyncpa [#allocation4 + $0x1], 1 }

// kernel: resup_forward.5
= control target key start
LH: loop header
LB: loop body
LE: loop exit
PB: predicated region body
PF: predicated region fallthrough
CT: control target
= control target key end

     0   :  { %vm30_vm0 = vcmask 1045504   ;;  %vm26_vm1 = vcmask 48128   ;;  %vm105_vm2 = vcmask 1041408   ;;  %vm107_vm3 = vcmask 1043456   ;;  %s159_s1 = inlined_call_operand.vmem [shape: f32[6,384], index: 1, kind: input, shape index: {}]   ;;  %s160_s0 = inlined_call_operand.vmem [shape: f32[2,6], index: 0, kind: input, shape index: {}]   ;;  %s161_s2 = inlined_call_operand.vmem [shape: f32[1,384], index: 2, kind: input, shape index: {}]   ;;  %s162_s3 = inlined_call_operand.vmem [shape: f32[2,384], index: 3, kind: output, shape index: {}]  }
   0x1   :  { %v17_v0 = vld [vmem:[%s159_s1 + $0x10] sm:$0x3f]  ;;  %v14_v1 = vld [vmem:[%s160_s0] sm:$0x3]  ;;  %v16_v2 = vld [vmem:[%s159_s1 + $0x8] sm:$0x3f] }
   0x2   :  { %119 = vmatpush.msk.msra.mxu2 %vm30_vm0, %v17_v0  ;;  %117 = vmatpush.msk.msra.mxu1 %vm30_vm0, %v16_v2  ;;  %v15_v3 = vld [vmem:[%s159_s1] sm:$0x3f] }
   0x3   :  { %120 = vmatmul.msk.f32.vlgmr.msra.gmra.mxu2 %vm26_vm1, %v14_v1  ;;  %118 = vmatmul.msk.f32.vlgmr.msra.gmra.mxu1 %vm26_vm1, %v14_v1  ;;  %v18_v4 = vld [vmem:[%s161_s2] sm:$0x7] }
   0x4   :  { %115 = vmatpush.msk.msra.mxu0 %vm30_vm0, %v15_v3  ;;  %v21_v5 = vperm.slane %v18_v4, 1  ;;  %v20_v7 = vperm.slane %v18_v4, 0  ;;  %v22_v10 = vperm.slane %v18_v4, 2 }
   0x5   :  { %116 = vmatmul.msk.f32.vlgmr.msra.gmra.mxu0 %vm26_vm1, %v14_v1 }
  0x80   :  { %v77_v6 = vpop.f32.mrf.mxu1 }
  0x81   :  { %v78_v8 = vadd.f32 %v77_v6, %v21_v5 }
  0x82   :  { %v57_v9 = vpop.f32.mrf.mxu0 }
  0x83   :  { %v103_v11 = vrot.slane %v78_v8, 6  ;;  %v58_v12 = vadd.f32 %v57_v9, %v20_v7 }
  0x85   :  { %v106_v15 = vsel %vm105_vm2, %v58_v12, %v103_v11 }
  0x86   :  { %v97_v13 = vpop.f32.mrf.mxu2 }
  0x87   :  { %v98_v14 = vadd.f32 %v97_v13, %v22_v10 }
  0x89   :  { %v104_v16 = vrot.slane %v98_v14, 4 }
  0x8b   :  { %v108_v17 = vsel %vm107_vm3, %v106_v15, %v104_v16 }
  0x8c   :  { %110 = vst [vmem:[%s162_s3] sm:$0x3f] %v108_v17 }

// kernel: resup_forward.8
= control target key start
LH: loop header
LB: loop body
LE: loop exit
PB: predicated region body
PF: predicated region fallthrough
CT: control target
= control target key end

     0   :  { %s4282_s27 = smov 0   ;;  %s4284_s28 = smov 0   ;;  %s5378_s0 = inlined_call_operand.vmem [shape: f32[2,16,16,128], index: 0, kind: input, shape index: {}, may-alias: {0,1,2}]   ;;  %s5379_s1 = inlined_call_operand.vmem [shape: f32[2,16,16,128], index: 1, kind: input, shape index: {}, may-alias: {0,1,2}]   ;;  %s5380_s2 = inlined_call_operand.vmem [shape: f32[2,16,16,128], index: 2, kind: input, shape index: {}, may-alias: {0,1,2}]   ;;  %s5381_s3 = inlined_call_operand.vmem [shape: f32[1,128], index: 3, kind: input, shape index: {}]   ;;  %s5382_s4 = inlined_call_operand.vmem [shape: f32[1,128], index: 4, kind: input, shape index: {}]   ;;  %s5383_s5 = inlined_call_operand.vmem [shape: bf16[1152,128], index: 5, kind: input, shape index: {}]   ;;  %s5384_s6 = inlined_call_operand.vmem [shape: f32[1,128], index: 6, kind: input, shape index: {}]   ;;  %s5385_s7 = inlined_call_operand.vmem [shape: f32[2,1,128], index: 7, kind: input, shape index: {}]   ;;  %s5386_s8 = inlined_call_operand.vmem [shape: f32[2,16,16,128], index: 8, kind: output, shape index: {}]  }
   0x1   :  { %s4286_s29 = smov 0   ;;  %s4288_s30 = smov 0  }
   0x2   :  { %s4290_s9 = smov 0  }
   0x3 LB: > { %s27_s10 = sadd.s32 1, %s4225_s29  ;;  %s30_s11 = sadd.s32 1, %s4229_s30  ;;  %s4233_s9 = sphi %s4290_s9, %s18_s9   ;;  %s4229_s30 = sphi %s4288_s30, %s5403_s30   ;;  %s4225_s29 = sphi %s4286_s29, %s5402_s29   ;;  %s4221_s28 = sphi %s4284_s28, %s5401_s28   ;;  %s4217_s27 = sphi %s4282_s27, %s5400_s27  }
   0x4   : > { %p28_p0 = scmp.ge.s32.totalorder %s27_s10, 2  ;;  %p3588_p1 = scmp.ge.s32.totalorder %s4233_s9, 1 }
   0x5   : > { %p356_p2 = scmp.lt.s32.totalorder %s4233_s9, 5 }
   0x6   : > { %s5405_s10 = smov (%p28_p0, %s27_s10), 0  ;;  %s5407_s11 = smov (!%p28_p0, %s30_s11), %s4229_s30 }
   0x7   : > { %p357_p3 = pnand %p3588_p1, %p356_p2  ;;  %p32_p4 = scmp.ge.s32.totalorder %s5407_s11, 2 }
   0x8   : > { %s4315_s12 = sshll.u32 (!%p357_p3), %s4217_s27, 3  ;;  %p430_p5 = scmp.lt.s32.totalorder (!%p357_p3), %s4221_s28, 1 }
   0x9   : > { %s5409_s11 = smov (%p32_p4, %s5407_s11), 0  ;;  %360 = sbr.rel (%p357_p3) target bundleno = 597 (0x255), region = 52 }
   0xa   : > { %p432_p6 = scmp.lt.s32.totalorder (!%p357_p3), %s4315_s12, 15  ;;  %s4319_s13 = sadd.s32 (!%p357_p3), 4294967295, %s4315_s12 }
   0xb   : > { %p442_p7 = scmp.gt.s32.totalorder (!%p357_p3), %s4319_s13, 0  ;;  %p3595_p8 = scmp.lt.s32.totalorder (!%p357_p3), %s4319_s13, 15 }
   0xc   : > { %s458_s20 = sadd.s32 (!%p357_p3), 8, %s4315_s12  ;;  %p3614_p10 = scmp.ne.s32.totalorder (!%p357_p3), %s4217_s27, 0 }
   0xd   : > { %p4353_p9 = scmp.lt.s32.totalorder (!%p357_p3), %s458_s20, 15 }
   0xe   : > { %vm494_vm0 = vcmask 1040384   ;;  %vm495_vm1 = vsmask.f32 256  ;;  %s5411_s28 = smov (!%p430_p5, %s4221_s28), 1  ;;  %v497_v1 = vld [vmem:[#allocation2] sm:$0x1] }
   0xf   : > { %vm4325_vm2 = vmand %vm494_vm0, %vm495_vm1  ;;  %v500_v2 = vld [vmem:[#allocation2 + $0xc] sm:$0x1]  ;;  %s433_s14 = scalar_select %p432_p6, %s4315_s12, 15  ;;  %v503_v5 = vld [vmem:[#allocation2 + $0x18] sm:$0x1] }
  0x10   : > { %v498_v3 = vsel %vm4325_vm2, 0, %v497_v1  ;;  %v501_v4 = vsel %vm4325_vm2, 0, %v500_v2  ;;  %s4335_s15 = sshll.u32 %s5411_s28, 5  ;;  %v504_v6 = vsel %vm4325_vm2, 0, %v503_v5  ;;  %v4344_v7 = vld [vmem:[%s5381_s3] sm:$0x1]  ;;  %s476_s17 = scalar_lea.vmem %s5385_s7, %s5411_s28 }
  0x11   : > { %499 = vst [vmem:[#allocation2] sm:$0x1] %v498_v3  ;;  %s3590_s16 = sshll.u32 %s433_s14, 1  ;;  %v506_v8 = vld [vmem:[#allocation2 + $0x24] sm:$0x1]  ;;  %s5413_s20 = smov (!%p4353_p9, %s458_s20), 15 }
  0x12   : > { %502 = vst [vmem:[#allocation2 + $0xc] sm:$0x1] %v501_v4  ;;  %s4347_s19 = sadd.s32 %s4335_s15, %s3590_s16  ;;  %v507_v9 = vsel %vm4325_vm2, 0, %v506_v8  ;;  %v509_v10 = vld [vmem:[#allocation2 + $0x30] sm:$0x1]  ;;  %s5417_s20 = smov (!%p4353_p9, %s5413_s20), 15 }
  0x13   : > { %505 = vst [vmem:[#allocation2 + $0x18] sm:$0x1] %v504_v6  ;;  %s3592_s21 = sshll.u32 %s4347_s19, 3  ;;  %v490_v11 = vld [vmem:[%s5382_s4] sm:$0x1]  ;;  %v510_v12 = vsel %vm4325_vm2, 0, %v509_v10 }
  0x14   : > { %508 = vst [vmem:[#allocation2 + $0x24] sm:$0x1] %v507_v9  ;;  %s4365_s12 = scalar_lea.vmem %s5378_s0, %s3592_s21  ;;  %v512_v13 = vld [vmem:[#allocation2 + $0x3c] sm:$0x1]  ;;  %v515_v14 = vld [vmem:[#allocation2 + $0x48] sm:$0x1] }
  0x15   : > { %511 = vst [vmem:[#allocation2 + $0x30] sm:$0x1] %v510_v12  ;;  %s443_s18 = scalar_select %p442_p7, %s4319_s13, 0  ;;  %v491_v15 = vld [vmem:[%s476_s17] sm:$0x1]  ;;  %v513_v16 = vsel %vm4325_vm2, 0, %v512_v13 }
  0x16   : > { %v516_v17 = vsel %vm4325_vm2, 0, %v515_v14  ;;  %v492_v18 = vmul.f32 %v491_v15, %v4344_v7  ;;  %514 = vst [vmem:[#allocation2 + $0x3c] sm:$0x1] %v513_v16  ;;  %v518_v19 = vld [vmem:[#allocation2 + $0x54] sm:$0x1]  ;;  %s4394_s13 = scalar_lea.vmem %s5386_s8, %s3592_s21  ;;  %s3607_s24 = sshll.u32 %s5417_s20, 1 }
  0x17   : > { %s5415_s18 = smov (!%p3595_p8, %s443_s18), 15  ;;  %517 = vst [vmem:[#allocation2 + $0x48] sm:$0x1] %v516_v17  ;;  %v519_v20 = vsel %vm4325_vm2, 0, %v518_v19  ;;  %v521_v21 = vld [vmem:[#allocation2 + $0x60] sm:$0x1]  ;;  %s467_s26 = sadd.s32 %s3607_s24, %s4335_s15 }
  0x18   : > { %v4387_v22 = vadd.f32 %v492_v18, %v490_v11  ;;  %520 = vst [vmem:[#allocation2 + $0x54] sm:$0x1] %v519_v20  ;;  %v522_v23 = vsel %vm4325_vm2, 0, %v521_v21  ;;  %v524_v24 = vld [vmem:[#allocation2 + $0x6c] sm:$0x1]  ;;  %s3600_s28 = sshll.u32 %s5415_s18, 1 }
  0x19   : > { %523 = vst [vmem:[#allocation2 + $0x60] sm:$0x1] %v522_v23  ;;  %v525_v25 = vsel %vm4325_vm2, 0, %v524_v24  ;;  %vm527_vm3 = vsmask.f32 7938  ;;  %s450_s22 = sadd.s32 %s3600_s28, %s4335_s15  ;;  %s3609_s20 = sshll.u32 %s467_s26, 3 }
  0x1a   : > { %526 = vst [vmem:[#allocation2 + $0x6c] sm:$0x1] %v525_v25  ;;  %vm4401_vm4 = vmand %vm494_vm0, %vm527_vm3  ;;  %v529_v27 = vld [vmem:[#allocation2 + $0x8] sm:$0x1]  ;;  %s3602_s25 = sshll.u32 %s450_s22, 3  ;;  %s4420_s18 = scalar_lea.vmem %s5380_s2, %s3609_s20 }
  0x1b   : > { %v530_v28 = vsel %vm4401_vm4, 0, %v529_v27  ;;  %v532_v29 = vld [vmem:[#allocation2 + $0x14] sm:$0x1]  ;;  %v535_v30 = vld [vmem:[#allocation2 + $0x20] sm:$0x1]  ;;  %s4411_s16 = scalar_lea.vmem %s5379_s1, %s3602_s25 }
  0x1c   : > { %531 = vst [vmem:[#allocation2 + $0x8] sm:$0x1] %v530_v28  ;;  %v533_v31 = vsel %vm4401_vm4, 0, %v532_v29  ;;  %v536_v32 = vsel %vm4401_vm4, 0, %v535_v30  ;;  %v538_v33 = vld [vmem:[#allocation2 + $0x2c] sm:$0x1] }
  0x1d   : > { %534 = vst [vmem:[#allocation2 + $0x14] sm:$0x1] %v533_v31  ;;  %v541_v34 = vld [vmem:[#allocation2 + $0x38] sm:$0x1]  ;;  %v539_v35 = vsel %vm4401_vm4, 0, %v538_v33 }
  0x1e   : > { %537 = vst [vmem:[#allocation2 + $0x20] sm:$0x1] %v536_v32  ;;  %v542_v36 = vsel %vm4401_vm4, 0, %v541_v34  ;;  %v544_v37 = vld [vmem:[#allocation2 + $0x44] sm:$0x1] }
  0x1f   : > { %540 = vst [vmem:[#allocation2 + $0x2c] sm:$0x1] %v539_v35  ;;  %v545_v38 = vsel %vm4401_vm4, 0, %v544_v37  ;;  %v547_v39 = vld [vmem:[#allocation2 + $0x50] sm:$0x1] }
  0x20   : > { %543 = vst [vmem:[#allocation2 + $0x38] sm:$0x1] %v542_v36  ;;  %v548_v40 = vsel %vm4401_vm4, 0, %v547_v39  ;;  %v550_v41 = vld [vmem:[#allocation2 + $0x5c] sm:$0x1] }
  0x21   : > { %546 = vst [vmem:[#allocation2 + $0x44] sm:$0x1] %v545_v38  ;;  %v551_v42 = vsel %vm4401_vm4, 0, %v550_v41  ;;  %v553_v43 = vld [vmem:[#allocation2 + $0x68] sm:$0x1]  ;;  %562 = sbr.rel (%p3614_p10) target bundleno = 42 (0x2a), region = 56 }
  0x22   : > { %549 = vst [vmem:[#allocation2 + $0x50] sm:$0x1] %v548_v40  ;;  %v554_v44 = vsel %vm4401_vm4, 0, %v553_v43  ;;  %v556_v45 = vld [vmem:[#allocation2 + $0x74] sm:$0x1] }
  0x23   : > { %552 = vst [vmem:[#allocation2 + $0x5c] sm:$0x1] %v551_v42  ;;  %v557_v46 = vsel %vm4401_vm4, 0, %v556_v45 }
  0x24   : > { %555 = vst [vmem:[#allocation2 + $0x68] sm:$0x1] %v554_v44 }
  0x25   : > { %558 = vst [vmem:[#allocation2 + $0x74] sm:$0x1] %v557_v46 }
  0x26   : > { %v4235_v47 = vmov 0  }
  0x27   : > { %563 = vst [vmem:[#allocation2] sm:$0xf] %v4235_v47 }
  0x28   : > { %564 = vst [vmem:[#allocation2 + $0x4] sm:$0xf] %v4235_v47 }
  0x29   : > { %565 = vst [vmem:[#allocation2 + $0x8] sm:$0xf] %v4235_v47 }
  0x2a PF: > { %p3615_p11 = scmp.ne.s32.totalorder %s4217_s27, 1 }
  0x2c   : > { %569 = sbr.rel (%p3615_p11) target bundleno = 53 (0x35), region = 60 }
  0x31   : > { %v4236_v48 = vmov 0  }
  0x32   : > { %571 = vst [vmem:[#allocation2 + $0x6c] sm:$0xf] %v4236_v48 }
  0x33   : > { %572 = vst [vmem:[#allocation2 + $0x70] sm:$0xf] %v4236_v48 }
  0x34   : > { %573 = vst [vmem:[#allocation2 + $0x74] sm:$0xf] %v4236_v48 }
  0x35 PF: > { %p3616_p12 = scmp.le.s32.totalorder %s4217_s27, 0 }
  0x37   : > { %577 = sbr.rel (%p3616_p12) target bundleno = 80 (0x50), region = 64 }
  0x3c   : > { %v578_v49 = vld [vmem:[%s4411_s16] sm:$0xff]  ;;  %v581_v50 = vperm.slane %v4344_v7, 0  ;;  %v586_v51 = vperm.slane %v4387_v22, 0  ;;  %v579_v52 = vld [vmem:[%s4411_s16 + $0x8] sm:$0xff]  ;;  %vm616_vm5 = vcmask 1043456  }
  0x3d   : > { %vm594_vm6 = vsmask.f32 4368  ;;  %vm617_vm7 = vmand %vm616_vm5, %vm527_vm3  ;;  %v618_v4 = vld [vmem:[#allocation2] sm:$0xf]  ;;  %v622_v5 = vld [vmem:[#allocation2 + $0x8] sm:$0x1] }
  0x3e   : > { %v583_v53 = vmul.f32 %v581_v50, %v578_v49  ;;  %v584_v54 = vmul.f32 %v581_v50, %v579_v52  ;;  %vm595_vm8 = vmor %vm495_vm1, %vm594_vm6 }
  0x40   : > { %v588_v55 = vadd.f32 %v586_v51, %v583_v53  ;;  %v589_v56 = vadd.f32 %v586_v51, %v584_v54 }
  0x42   : > { %v590_v57 = vmax.f32 %v588_v55, 0.0  ;;  %v591_v58 = vmax.f32 %v589_v56, 0.0 }
  0x44   : > { %v592_v59 = vpack.c.bf16 %v590_v57, %v590_v57  ;;  %v593_v60 = vpack.c.bf16 %v591_v58, %v591_v58 }
  0x46   : > { %v597_v61 = vshrl.u32 %v592_v59, 16  ;;  %v600_v62 = vshll.u32 %v592_v59, 16  ;;  %v605_v63 = vshrl.u32 %v593_v60, 16  ;;  %v608_v1 = vshll.u32 %v593_v60, 16 }
  0x48   : > { %v599_v2 = vrot.slane %v597_v61, 7  ;;  %v607_v3 = vrot.slane %v605_v63, 7 }
  0x4a   : > { %v602_v6 = vor.u32 %v600_v62, %v599_v2  ;;  %v603_v8 = vrot.slane %v599_v2, 4  ;;  %v610_v9 = vor.u32 %v608_v1, %v607_v3  ;;  %v612_v10 = vrot.slane %v607_v3, 4 }
  0x4c   : > { %v619_v11 = vsel %vm617_vm7, %v602_v6, %v618_v4  ;;  %v611_v12 = vsel %vm595_vm8, %v603_v8, %v610_v9  ;;  %v623_v13 = vsel %vm4325_vm2, %v612_v10, %v622_v5 }
  0x4d   : > { %620 = vst [vmem:[#allocation2] sm:$0xf] %v619_v11 }
  0x4e   : > { %621 = vst [vmem:[#allocation2 + $0x4] sm:$0xf] %v611_v12 }
  0x4f   : > { %624 = vst [vmem:[#allocation2 + $0x8] sm:$0x1] %v623_v13 }
  0x50 PF: > { %p3617_p13 = scmp.ge.s32.totalorder %s4217_s27, 1 }
  0x52   : > { %628 = sbr.rel (%p3617_p13) target bundleno = 107 (0x6b), region = 68 }
  0x57   : > { %v629_v14 = vld [vmem:[%s4420_s18] sm:$0xff]  ;;  %v632_v15 = vperm.slane %v4344_v7, 0  ;;  %v637_v16 = vperm.slane %v4387_v22, 0  ;;  %v630_v17 = vld [vmem:[%s4420_s18 + $0x8] sm:$0xff]  ;;  %vm668_vm9 = vcmask 1043456  }
  0x58   : > { %vm645_vm10 = vsmask.f32 4368  ;;  %vm669_vm11 = vmand %vm668_vm9, %vm527_vm3  ;;  %v670_v33 = vld [vmem:[#allocation2 + $0x6c] sm:$0xf]  ;;  %v674_v34 = vld [vmem:[#allocation2 + $0x74] sm:$0x1] }
  0x59   : > { %v634_v18 = vmul.f32 %v632_v15, %v629_v14  ;;  %v635_v19 = vmul.f32 %v632_v15, %v630_v17  ;;  %vm646_vm12 = vmor %vm495_vm1, %vm645_vm10 }
  0x5b   : > { %v639_v20 = vadd.f32 %v637_v16, %v634_v18  ;;  %v640_v21 = vadd.f32 %v637_v16, %v635_v19 }
  0x5d   : > { %v641_v23 = vmax.f32 %v639_v20, 0.0  ;;  %v642_v24 = vmax.f32 %v640_v21, 0.0 }
  0x5f   : > { %v643_v25 = vpack.c.bf16 %v641_v23, %v641_v23  ;;  %v644_v26 = vpack.c.bf16 %v642_v24, %v642_v24 }
  0x61   : > { %v648_v27 = vshrl.u32 %v643_v25, 16  ;;  %v651_v28 = vshll.u32 %v643_v25, 16  ;;  %v656_v29 = vshrl.u32 %v644_v26, 16  ;;  %v659_v30 = vshll.u32 %v644_v26, 16 }
  0x63   : > { %v650_v31 = vrot.slane %v648_v27, 7  ;;  %v658_v32 = vrot.slane %v656_v29, 7 }
  0x65   : > { %v653_v35 = vor.u32 %v651_v28, %v650_v31  ;;  %v654_v36 = vrot.slane %v650_v31, 4  ;;  %v661_v37 = vor.u32 %v659_v30, %v658_v32  ;;  %v663_v38 = vrot.slane %v658_v32, 4 }
  0x67   : > { %v671_v39 = vsel %vm669_vm11, %v653_v35, %v670_v33  ;;  %v662_v40 = vsel %vm646_vm12, %v654_v36, %v661_v37  ;;  %v675_v41 = vsel %vm4325_vm2, %v663_v38, %v674_v34 }
  0x68   : > { %672 = vst [vmem:[#allocation2 + $0x6c] sm:$0xf] %v671_v39 }
  0x69   : > { %673 = vst [vmem:[#allocation2 + $0x70] sm:$0xf] %v662_v40 }
  0x6a   : > { %676 = vst [vmem:[#allocation2 + $0x74] sm:$0x1] %v675_v41 }
  0x6b PF: > { %v4053_v42 = vld [vmem:[%s5383_s5 + $0x78] sm:$0xff]  ;;  %v4460_v43 = vperm.slane %v4344_v7, 0  ;;  %v4463_v44 = vperm.slane %v4387_v22, 0  ;;  %v4052_v45 = vld [vmem:[%s5383_s5 + $0x70] sm:$0xff]  ;;  %v4051_v52 = vld [vmem:[%s5383_s5 + $0x68] sm:$0xff]  ;;  %vm926_vm13 = vcmask 1043456  }
  0x6c   : > { %4126 = vmatpush.bf16.msra.mxu1 %v4053_v42  ;;  %4127 = vmatpush.bf16.msra.mxu2 %v4053_v42  ;;  %v679_v46 = vld [vmem:[%s4365_s12 + $0x10] sm:$0xff]  ;;  %v680_v47 = vld [vmem:[%s4365_s12 + $0x18] sm:$0xff]  ;;  %v681_v61 = vld [vmem:[%s4365_s12 + $0x20] sm:$0xff]  ;;  %vm763_vm14 = vsmask.f32 4368  ;;  %vm1534_vm6 = vcmask 1046532  }
  0x6d   : > { %4128 = vmatpush.bf16.msra.mxu3 %v4053_v42  ;;  %1315 = vmatpush.bf16.msra.mxu0 %v4053_v42  ;;  %v698_v48 = vmul.f32 %v4460_v43, %v679_v46  ;;  %v699_v7 = vmul.f32 %v4460_v43, %v680_v47  ;;  %v683_v49 = vld [vmem:[%s4365_s12 + $0x30] sm:$0xff]  ;;  %v684_v50 = vld [vmem:[%s4365_s12 + $0x38] sm:$0xff]  ;;  %v4488_v1 = vld [vmem:[#allocation2] sm:$0xf]  ;;  %v4491_v2 = vmul.f32 %v4460_v43, %v681_v61  ;;  %vm1024_vm0 = vsmask.f32 3328 }
  0x6e   : > { %v702_v51 = vmul.f32 %v4460_v43, %v683_v49  ;;  %v703_v54 = vmul.f32 %v4460_v43, %v684_v50  ;;  %v687_v55 = vld [vmem:[%s4365_s12 + $0x50] sm:$0xff]  ;;  %v688_v56 = vld [vmem:[%s4365_s12 + $0x58] sm:$0xff]  ;;  %v4050_v8 = vld [vmem:[%s5383_s5 + $0x60] sm:$0xff]  ;;  %v1028_v11 = vshrl.u32 %v4488_v1, 16  ;;  %v1031_v12 = vshll.u32 %v4488_v1, 16 }
  0x6f   : > { %v717_v22 = vadd.f32 %v4463_v44, %v698_v48  ;;  %v718_v53 = vadd.f32 %v4463_v44, %v699_v7  ;;  %v706_v59 = vmul.f32 %v4460_v43, %v687_v55  ;;  %v707_v60 = vmul.f32 %v4460_v43, %v688_v56  ;;  %v4049_v26 = vld [vmem:[%s5383_s5 + $0x58] sm:$0xff]  ;;  %vm4505_vm15 = vmand %vm926_vm13, %vm527_vm3  ;;  %v939_v36 = vld [vmem:[#allocation2 + $0x20] sm:$0x1] }
  0x70   : > { %4129 = vmatpush.bf16.msra.mxu1 %v4052_v45  ;;  %4130 = vmatpush.bf16.msra.mxu2 %v4052_v45  ;;  %v721_v58 = vadd.f32 %v4463_v44, %v702_v51  ;;  %v722_v63 = vadd.f32 %v4463_v44, %v703_v54  ;;  %v935_v29 = vld [vmem:[#allocation2 + $0x18] sm:$0xf]  ;;  %vm1025_vm4 = vsmask.f32 7440  ;;  %vm4513_vm5 = vmor %vm495_vm1, %vm763_vm14  ;;  %v949_v42 = vld [vmem:[#allocation2 + $0x30] sm:$0xf] }
  0x71   : > { %4131 = vmatpush.bf16.msra.mxu3 %v4052_v45  ;;  %1316 = vmatpush.bf16.msra.mxu0 %v4052_v45  ;;  %v733_v57 = vmax.f32 %v717_v22, 0.0  ;;  %v734_v62 = vmax.f32 %v718_v53, 0.0  ;;  %v725_v5 = vadd.f32 %v4463_v44, %v706_v59  ;;  %v726_v6 = vadd.f32 %v4463_v44, %v707_v60  ;;  %v953_v7 = vld [vmem:[#allocation2 + $0x38] sm:$0x1]  ;;  %v963_v22 = vld [vmem:[#allocation2 + $0x48] sm:$0xf]  ;;  %vm4570_vm1 = vmor %vm1024_vm0, %vm1025_vm4 }
  0x72   : > { %v737_v4 = vmax.f32 %v721_v58, 0.0  ;;  %v738_v10 = vmax.f32 %v722_v63, 0.0  ;;  %v4048_v50 = vld [vmem:[%s5383_s5 + $0x50] sm:$0xff]  ;;  %v4528_v54 = vld [vmem:[#allocation2 + $0x4] sm:$0xf]  ;;  %v682_v55 = vld [vmem:[%s4365_s12 + $0x28] sm:$0xff] }
  0x73   : > { %v749_v3 = vpack.c.bf16 %v733_v57, %v733_v57  ;;  %v750_v9 = vpack.c.bf16 %v734_v62, %v734_v62  ;;  %v741_v16 = vmax.f32 %v725_v5, 0.0  ;;  %v742_v20 = vmax.f32 %v726_v6, 0.0  ;;  %v4535_v60 = vld [vmem:[#allocation2 + $0x8] sm:$0x1] }
  0x74   : > { %4132 = vmatpush.bf16.msra.mxu1 %v4051_v52  ;;  %4133 = vmatpush.bf16.msra.mxu2 %v4051_v52  ;;  %v753_v15 = vpack.c.bf16 %v737_v4, %v737_v4  ;;  %v754_v19 = vpack.c.bf16 %v738_v10, %v738_v10  ;;  %v4047_v4 = vld [vmem:[%s5383_s5 + $0x48] sm:$0xff]  ;;  %vm1533_vm3 = vcmask 1042432  }
  0x75   : > { %4134 = vmatpush.bf16.msra.mxu3 %v4051_v52  ;;  %1317 = vmatpush.bf16.msra.mxu0 %v4051_v52  ;;  %v783_v13 = vshrl.u32 %v749_v3, 16  ;;  %v786_v14 = vshll.u32 %v749_v3, 16  ;;  %v791_v17 = vshrl.u32 %v750_v9, 16  ;;  %v794_v18 = vshll.u32 %v750_v9, 16  ;;  %vm4811_vm7 = vmor %vm1533_vm3, %vm1534_vm6  ;;  %v4111_v33 = vld [vmem:[%s5383_s5 + $0x1c8] sm:$0xff] }
  0x76   : > { %v817_v23 = vshrl.u32 %v753_v15, 16  ;;  %v820_v24 = vshll.u32 %v753_v15, 16  ;;  %v757_v25 = vpack.c.bf16 %v741_v16, %v741_v16  ;;  %v825_v30 = vshrl.u32 %v754_v19, 16  ;;  %v685_v15 = vld [vmem:[%s4365_s12 + $0x40] sm:$0xff]  ;;  %v967_v16 = vld [vmem:[#allocation2 + $0x50] sm:$0x1] }
  0x77   : > { %v785_v21 = vrot.slane %v783_v13, 7  ;;  %v793_v27 = vrot.slane %v791_v17, 7  ;;  %v828_v31 = vshll.u32 %v754_v19, 16  ;;  %v4509_v32 = vpack.c.bf16 %v742_v20, %v742_v20  ;;  %v4119_v0 = vld [vmem:[%s5383_s5 + $0x208] sm:$0xff] }
  0x78   : > { %4135 = vmatpush.bf16.msra.mxu1 %v4050_v8  ;;  %4136 = vmatpush.bf16.msra.mxu2 %v4050_v8  ;;  %v819_v37 = vrot.slane %v817_v23, 7  ;;  %v851_v38 = vshrl.u32 %v757_v25, 16  ;;  %v827_v41 = vrot.slane %v825_v30, 7  ;;  %v854_v45 = vshll.u32 %v757_v25, 16  ;;  %v4046_v23 = vld [vmem:[%s5383_s5 + $0x40] sm:$0xff] }
  0x79   : > { %4137 = vmatpush.bf16.msra.mxu3 %v4050_v8  ;;  %1318 = vmatpush.bf16.msra.mxu0 %v4050_v8  ;;  %v788_v34 = vor.u32 %v786_v14, %v785_v21  ;;  %v789_v35 = vrot.slane %v785_v21, 4  ;;  %v796_v39 = vor.u32 %v794_v18, %v793_v27  ;;  %v798_v40 = vrot.slane %v793_v27, 4 }
  0x7a   : > { %v822_v47 = vor.u32 %v820_v24, %v819_v37  ;;  %v823_v48 = vrot.slane %v819_v37, 4  ;;  %v4519_v49 = vrot.slane %v851_v38, 7  ;;  %v830_v53 = vor.u32 %v828_v31, %v827_v41  ;;  %v4045_v37 = vld [vmem:[%s5383_s5 + $0x38] sm:$0xff] }
  0x7b   : > { %v936_v46 = vsel %vm4505_vm15, %v788_v34, %v935_v29  ;;  %v797_v51 = vsel %vm4513_vm5, %v789_v35, %v796_v39  ;;  %v940_v52 = vsel %vm4325_vm2, %v798_v40, %v939_v36  ;;  %v832_v56 = vrot.slane %v827_v41, 4  ;;  %v4061_v36 = vld [vmem:[%s5383_s5 + $0xb8] sm:$0xff] }
  0x7c   : > { %4138 = vmatpush.bf16.msra.mxu1 %v4049_v26  ;;  %4139 = vmatpush.bf16.msra.mxu2 %v4049_v26  ;;  %937 = vst [vmem:[#allocation2 + $0x18] sm:$0xf] %v936_v46  ;;  %v950_v57 = vsel %vm4505_vm15, %v822_v47, %v949_v42  ;;  %v856_v58 = vor.u32 %v854_v45, %v4519_v49  ;;  %v857_v59 = vrot.slane %v4519_v49, 4  ;;  %v859_v62 = vshrl.u32 %v4509_v32, 16  ;;  %v4077_v41 = vld [vmem:[%s5383_s5 + $0xf8] sm:$0xff] }
  0x7d   : > { %4140 = vmatpush.bf16.msra.mxu3 %v4049_v26  ;;  %1319 = vmatpush.bf16.msra.mxu0 %v4049_v26  ;;  %938 = vst [vmem:[#allocation2 + $0x1c] sm:$0xf] %v797_v51  ;;  %v831_v61 = vsel %vm4513_vm5, %v823_v48, %v830_v53  ;;  %v862_v63 = vshll.u32 %v4509_v32, 16  ;;  %v1030_v3 = vrot.slane %v1028_v11, 4  ;;  %v954_v5 = vsel %vm4325_vm2, %v832_v56, %v953_v7 }
  0x7e   : > { %941 = vst [vmem:[#allocation2 + $0x20] sm:$0x1] %v940_v52  ;;  %v964_v6 = vsel %vm4505_vm15, %v856_v58, %v963_v22  ;;  %v1033_v8 = vrot.slane %v1031_v12, 5  ;;  %v1037_v9 = vshll.u32 %v4528_v54, 16  ;;  %v861_v10 = vrot.slane %v859_v62, 7  ;;  %v4085_v22 = vld [vmem:[%s5383_s5 + $0x138] sm:$0xff] }
  0x7f   : > { %951 = vst [vmem:[#allocation2 + $0x30] sm:$0xf] %v950_v57  ;;  %v1041_v11 = vshrl.u32 %v4528_v54, 16  ;;  %v1047_v13 = vshll.u32 %v4535_v60, 16  ;;  %v701_v14 = vmul.f32 %v4460_v43, %v682_v55  ;;  %v4561_v12 = vadd.f32 %v4463_v44, %v4491_v2  ;;  %v4060_v62 = vld [vmem:[%s5383_s5 + $0xb0] sm:$0xff] }
  0x80   : > { %4141 = vmatpush.bf16.msra.mxu1 %v4048_v50  ;;  %4142 = vmatpush.bf16.msra.mxu2 %v4048_v50  ;;  %952 = vst [vmem:[#allocation2 + $0x34] sm:$0xf] %v831_v61  ;;  %v1034_v17 = vor.u32 %v1033_v8, %v1030_v3  ;;  %v4557_v1 = vrot.slane %v1037_v9, 5  ;;  %v864_v18 = vor.u32 %v862_v63, %v861_v10  ;;  %v866_v19 = vrot.slane %v861_v10, 4 }
  0x81   : > { %4143 = vmatpush.bf16.msra.mxu3 %v4048_v50  ;;  %1320 = vmatpush.bf16.msra.mxu0 %v4048_v50  ;;  %955 = vst [vmem:[#allocation2 + $0x38] sm:$0x1] %v954_v5  ;;  %v1043_v20 = vrot.slane %v1041_v11, 4  ;;  %v4563_v21 = vrot.slane %v1047_v13, 5  ;;  %v4575_v2 = vadd.f32 %v4463_v44, %v701_v14  ;;  %v735_v27 = vmax.f32 %v4561_v12, 0.0 }
  0x82   : > { %965 = vst [vmem:[#allocation2 + $0x48] sm:$0xf] %v964_v6  ;;  %v1035_v26 = vrot.slane %v1034_v17, 4  ;;  %v4579_v29 = vmul.f32 %v4460_v43, %v685_v15  ;;  %v865_v34 = vsel %vm4513_vm5, %v857_v59, %v864_v18  ;;  %v968_v35 = vsel %vm4325_vm2, %v866_v19, %v967_v16  ;;  %v4044_v6 = vld [vmem:[%s5383_s5 + $0x30] sm:$0xff] }
  0x83   : > { %v988_v24 = vld [vmem:[#allocation2 + $0x18] sm:$0xf]  ;;  %966 = vst [vmem:[#allocation2 + $0x4c] sm:$0xf] %v865_v34  ;;  %v1044_v45 = vor.u32 %v1043_v20, %v4557_v1  ;;  %v4084_v18 = vld [vmem:[%s5383_s5 + $0x130] sm:$0xff] }
  0x84   : > { %4144 = vmatpush.bf16.msra.mxu1 %v4047_v4  ;;  %4145 = vmatpush.bf16.msra.mxu2 %v4047_v4  ;;  %v4581_v30 = vld [vmem:[#allocation2 + $0x1c] sm:$0xf]  ;;  %v1076_v31 = vshrl.u32 %v988_v24, 16  ;;  %v1079_v32 = vshll.u32 %v988_v24, 16  ;;  %v1040_v42 = vsel %vm4570_vm1, %v1035_v26, %v4557_v1  ;;  %969 = vst [vmem:[#allocation2 + $0x50] sm:$0x1] %v968_v35 }
  0x85   : > { %4146 = vmatpush.bf16.msra.mxu3 %v4047_v4  ;;  %1321 = vmatpush.bf16.msra.mxu0 %v4047_v4  ;;  %v4593_v38 = vld [vmem:[#allocation2 + $0x20] sm:$0x1]  ;;  %v1085_v39 = vshll.u32 %v4581_v30, 16  ;;  %v1089_v40 = vshrl.u32 %v4581_v30, 16  ;;  %v4605_v49 = vunpack.c.l.b16 %v1040_v42  ;;  %v1045_v13 = vrot.slane %v1044_v45, 4  ;;  %v4076_v1 = vld [vmem:[%s5383_s5 + $0xf0] sm:$0xff] }
  0x86   : > { %v1078_v46 = vrot.slane %v1076_v31, 4  ;;  %v1081_v47 = vrot.slane %v1079_v32, 5  ;;  %v1095_v48 = vshll.u32 %v4593_v38, 16  ;;  %v992_v7 = vld [vmem:[#allocation2 + $0x30] sm:$0xf] }
  0x87   : > { %v1087_v50 = vrot.slane %v1085_v39, 5  ;;  %v1091_v51 = vrot.slane %v1089_v40, 4  ;;  %v4610_v52 = vld [vmem:[#allocation2 + $0x34] sm:$0xf]  ;;  %v1124_v53 = vshrl.u32 %v992_v7, 16  ;;  %v1127_v55 = vshll.u32 %v992_v7, 16 }
  0x88   : > { %4147 = vmatpush.bf16.msra.mxu1 %v4046_v23  ;;  %4148 = vmatpush.bf16.msra.mxu2 %v4046_v23  ;;  %v1082_v56 = vor.u32 %v1081_v47, %v1078_v46  ;;  %v1097_v57 = vrot.slane %v1095_v48, 5  ;;  %v4612_v58 = vld [vmem:[#allocation2 + $0x38] sm:$0x1]  ;;  %v1133_v59 = vshll.u32 %v4610_v52, 16  ;;  %v1137_v61 = vshrl.u32 %v4610_v52, 16  ;;  %v4043_v46 = vld [vmem:[%s5383_s5 + $0x28] sm:$0xff] }
  0x89   : > { %4149 = vmatpush.bf16.msra.mxu3 %v4046_v23  ;;  %1322 = vmatpush.bf16.msra.mxu0 %v4046_v23  ;;  %v1092_v63 = vor.u32 %v1091_v51, %v1087_v50  ;;  %v1126_v3 = vrot.slane %v1124_v53, 4  ;;  %v1129_v4 = vrot.slane %v1127_v55, 5  ;;  %v1143_v5 = vshll.u32 %v4612_v58, 16  ;;  %v996_v11 = vld [vmem:[#allocation2 + $0x48] sm:$0xf] }
  0x8a   : > { %v1083_v8 = vrot.slane %v1082_v56, 4  ;;  %v1135_v9 = vrot.slane %v1133_v59, 5  ;;  %v1139_v10 = vrot.slane %v1137_v61, 4  ;;  %v1172_v17 = vshrl.u32 %v996_v11, 16  ;;  %v997_v23 = vld [vmem:[#allocation2 + $0x4c] sm:$0xf] }
  0x8b   : > { %v1093_v14 = vrot.slane %v1092_v63, 4  ;;  %v1130_v15 = vor.u32 %v1129_v4, %v1126_v3  ;;  %v1145_v16 = vrot.slane %v1143_v5, 5  ;;  %v1175_v24 = vshll.u32 %v996_v11, 16  ;;  %v4075_v47 = vld [vmem:[%s5383_s5 + $0xe8] sm:$0xff]  ;;  %v1022_v51 = vld [vmem:[#allocation2 + $0x50] sm:$0x1] }
  0x8c   : > { %1688 = vmatpush.bf16.msrb.mxu2 %v4061_v36  ;;  %1460 = vmatpush.bf16.msrb.mxu1 %v4045_v37  ;;  %v1088_v19 = vsel %vm4570_vm1, %v1083_v8, %v1087_v50  ;;  %v1140_v20 = vor.u32 %v1139_v10, %v1135_v9  ;;  %v1050_v26 = vsel %vm4570_vm1, %v1045_v13, %v4563_v21  ;;  %v1174_v35 = vrot.slane %v1172_v17, 4  ;;  %v686_v55 = vld [vmem:[%s4365_s12 + $0x48] sm:$0xff]  ;;  %v4058_v3 = vld [vmem:[%s5383_s5 + $0xa0] sm:$0xff] }
  0x8d   : > { %1881 = vmatpush.bf16.msrb.mxu3 %v4077_v41  ;;  %2258 = vmatpush.bf16.msrb.mxu0 %v4085_v22  ;;  %v1098_v31 = vsel %vm4570_vm1, %v1093_v14, %v1097_v57  ;;  %v1239_v32 = vunpack.c.l.b16 %v1088_v19  ;;  %v1131_v34 = vrot.slane %v1130_v15, 4  ;;  %v1177_v39 = vrot.slane %v1175_v24, 5  ;;  %v4059_v41 = vld [vmem:[%s5383_s5 + $0xa8] sm:$0xff]  ;;  %v4074_v10 = vld [vmem:[%s5383_s5 + $0xe0] sm:$0xff] }
  0x8e   : > { %v1240_v36 = vunpack.c.l.b16 %v1098_v31  ;;  %v1141_v37 = vrot.slane %v1140_v20, 4  ;;  %v1181_v40 = vshll.u32 %v997_v23, 16  ;;  %v1185_v42 = vshrl.u32 %v997_v23, 16  ;;  %v689_v11 = vld [vmem:[%s4365_s12 + $0x60] sm:$0xff] }
  0x8f   : > { %v1136_v21 = vsel %vm4570_vm1, %v1131_v34, %v1135_v9  ;;  %v1236_v45 = vunpack.c.l.b16 %v1050_v26  ;;  %v736_v48 = vmax.f32 %v4575_v2, 0.0  ;;  %v1178_v53 = vor.u32 %v1177_v39, %v1174_v35  ;;  %v677_v17 = vld [vmem:[%s4365_s12] sm:$0xff] }
  0x90   : > { %1689 = vmatpush.bf16.msrb.mxu2 %v4060_v62  ;;  %1461 = vmatpush.bf16.msrb.mxu1 %v4044_v6  ;;  %v1253_v7 = vpack.c.b16 %v1240_v36, %v1239_v32  ;;  %v1146_v22 = vsel %vm4570_vm1, %v1141_v37, %v1145_v16  ;;  %v1243_v50 = vunpack.c.l.b16 %v1136_v21  ;;  %v1183_v57 = vrot.slane %v1181_v40, 5  ;;  %v4083_v62 = vld [vmem:[%s5383_s5 + $0x128] sm:$0xff]  ;;  %v4082_v19 = vld [vmem:[%s5383_s5 + $0x120] sm:$0xff] }
  0x91   : > { %1882 = vmatpush.bf16.msrb.mxu3 %v4076_v1  ;;  %2259 = vmatpush.bf16.msrb.mxu0 %v4084_v18  ;;  %v1244_v56 = vunpack.c.l.b16 %v1146_v22  ;;  %v1187_v59 = vrot.slane %v1185_v42, 4  ;;  %v1191_v61 = vshll.u32 %v1022_v51, 16  ;;  %v1179_v63 = vrot.slane %v1178_v53, 4  ;;  %v690_v16 = vld [vmem:[%s4365_s12 + $0x68] sm:$0xff]  ;;  %v942_v35 = vld [vmem:[#allocation2 + $0x24] sm:$0xf] }
  0x92   : > { %1333 = vmatmul.bf16.vlgmr.msra.gmra.mxu1 %v1253_v7  ;;  %v1251_v2 = vpack.c.b16 %v1236_v45, %v4605_v49  ;;  %v751_v4 = vpack.c.bf16 %v735_v27, %v735_v27  ;;  %v752_v5 = vpack.c.bf16 %v736_v48, %v736_v48  ;;  %v4042_v49 = vld [vmem:[%s5383_s5 + $0x20] sm:$0xff]  ;;  %v705_v12 = vmul.f32 %v4460_v43, %v686_v55  ;;  %v946_v42 = vld [vmem:[#allocation2 + $0x2c] sm:$0x1] }
  0x93   : > { %v1255_v6 = vpack.c.b16 %v1244_v56, %v1243_v50  ;;  %v1188_v8 = vor.u32 %v1187_v59, %v1183_v57  ;;  %v1193_v9 = vrot.slane %v1191_v61, 5  ;;  %v1184_v27 = vsel %vm4570_vm1, %v1179_v63, %v1183_v57  ;;  %v678_v7 = vld [vmem:[%s4365_s12 + $0x8] sm:$0xff] }
  0x94   : > { %1690 = vmatpush.bf16.msrb.mxu2 %v4059_v41  ;;  %1462 = vmatpush.bf16.msrb.mxu1 %v4043_v46  ;;  %v800_v13 = vshrl.u32 %v751_v4, 16  ;;  %v803_v14 = vshll.u32 %v751_v4, 16  ;;  %v808_v15 = vshrl.u32 %v752_v5, 16  ;;  %v1247_v18 = vunpack.c.l.b16 %v1184_v27 }
  0x95   : > { %1883 = vmatpush.bf16.msrb.mxu3 %v4075_v47  ;;  %1323 = vmatmul.bf16.vlgmr.msra.gmra.mxu0 %v1251_v2  ;;  %v1189_v1 = vrot.slane %v1188_v8, 4  ;;  %v811_v20 = vshll.u32 %v752_v5, 16  ;;  %v723_v23 = vadd.f32 %v4463_v44, %v4579_v29  ;;  %v724_v31 = vadd.f32 %v4463_v44, %v705_v12  ;;  %v956_v8 = vld [vmem:[#allocation2 + $0x3c] sm:$0xf] }
  0x96   : > { %1343 = vmatmul.bf16.vlgmr.msra.gmra.mxu2 %v1255_v6  ;;  %2260 = vmatpush.bf16.msrb.mxu0 %v4083_v62  ;;  %v802_v24 = vrot.slane %v800_v13, 7  ;;  %v810_v26 = vrot.slane %v808_v15, 7  ;;  %v708_v32 = vmul.f32 %v4460_v43, %v689_v11  ;;  %v709_v37 = vmul.f32 %v4460_v43, %v690_v16  ;;  %v4057_v6 = vld [vmem:[%s5383_s5 + $0x98] sm:$0xff]  ;;  %v960_v16 = vld [vmem:[#allocation2 + $0x44] sm:$0x1] }
  0x97   : > { %v1194_v34 = vsel %vm4570_vm1, %v1189_v1, %v1193_v9  ;;  %v739_v36 = vmax.f32 %v723_v23, 0.0  ;;  %v696_v39 = vmul.f32 %v4460_v43, %v677_v17  ;;  %v740_v46 = vmax.f32 %v724_v31, 0.0  ;;  %v4073_v12 = vld [vmem:[%s5383_s5 + $0xd8] sm:$0xff] }
  0x98   : > { %1691 = vmatpush.bf16.msrb.mxu2 %v4058_v3  ;;  %1463 = vmatpush.bf16.msrb.mxu1 %v4042_v49  ;;  %v1248_v29 = vunpack.c.l.b16 %v1194_v34  ;;  %v805_v40 = vor.u32 %v803_v14, %v802_v24  ;;  %v806_v41 = vrot.slane %v802_v24, 4  ;;  %v813_v21 = vor.u32 %v811_v20, %v810_v26 }
  0x99   : > { %1884 = vmatpush.bf16.msrb.mxu3 %v4074_v10  ;;  %v815_v45 = vrot.slane %v810_v26, 4  ;;  %v755_v47 = vpack.c.bf16 %v739_v36, %v739_v36  ;;  %v727_v48 = vadd.f32 %v4463_v44, %v708_v32  ;;  %v728_v53 = vadd.f32 %v4463_v44, %v709_v37  ;;  %v4041_v10 = vld [vmem:[%s5383_s5 + $0x18] sm:$0xff]  ;;  %v970_v26 = vld [vmem:[#allocation2 + $0x54] sm:$0xf] }
  0x9a   : > { %2261 = vmatpush.bf16.msrb.mxu0 %v4082_v19  ;;  %v1257_v22 = vpack.c.b16 %v1248_v29, %v1247_v18  ;;  %v814_v50 = vsel %vm4513_vm5, %v806_v41, %v813_v21  ;;  %v943_v51 = vsel %vm4505_vm15, %v805_v40, %v942_v35  ;;  %v756_v56 = vpack.c.bf16 %v740_v46, %v740_v46  ;;  %v974_v21 = vld [vmem:[#allocation2 + $0x5c] sm:$0x1] }
  0x9b   : > { %944 = vst [vmem:[#allocation2 + $0x24] sm:$0xf] %v943_v51  ;;  %v947_v55 = vsel %vm4325_vm2, %v815_v45, %v946_v42  ;;  %v834_v57 = vshrl.u32 %v755_v47, 16  ;;  %v837_v59 = vshll.u32 %v755_v47, 16  ;;  %v743_v61 = vmax.f32 %v727_v48, 0.0 }
  0x9c   : > { %1353 = vmatmul.bf16.vlgmr.msra.gmra.mxu3 %v1257_v22  ;;  %945 = vst [vmem:[#allocation2 + $0x28] sm:$0xf] %v814_v50  ;;  %v744_v62 = vmax.f32 %v728_v53, 0.0  ;;  %v697_v63 = vmul.f32 %v4460_v43, %v678_v7  ;;  %v715_v2 = vadd.f32 %v4463_v44, %v696_v39  ;;  %v842_v4 = vshrl.u32 %v756_v56, 16  ;;  %1692 = vmatpush.bf16.msrb.mxu2 %v4057_v6 }
  0x9d   : > { %948 = vst [vmem:[#allocation2 + $0x2c] sm:$0x1] %v947_v55  ;;  %v836_v3 = vrot.slane %v834_v57, 7  ;;  %v845_v5 = vshll.u32 %v756_v56, 16  ;;  %v759_v9 = vpack.c.bf16 %v743_v61, %v743_v61  ;;  %1464 = vmatpush.bf16.msrb.mxu1 %v4041_v10  ;;  %1885 = vmatpush.bf16.msrb.mxu3 %v4073_v12 }
  0x9e   : > { %v760_v49 = vpack.c.bf16 %v744_v62, %v744_v62  ;;  %v716_v11 = vadd.f32 %v4463_v44, %v697_v63  ;;  %v731_v27 = vmax.f32 %v715_v2, 0.0  ;;  %v844_v15 = vrot.slane %v842_v4, 7 }
  0x9f   : > { %v839_v13 = vor.u32 %v837_v59, %v836_v3  ;;  %v840_v14 = vrot.slane %v836_v3, 4  ;;  %v868_v17 = vshrl.u32 %v759_v9, 16  ;;  %v871_v1 = vshll.u32 %v759_v9, 16 }
  0xa0   : > { %v876_v18 = vshrl.u32 %v760_v49, 16  ;;  %v879_v19 = vshll.u32 %v760_v49, 16  ;;  %v847_v20 = vor.u32 %v845_v5, %v844_v15  ;;  %v849_v23 = vrot.slane %v844_v15, 4 }
  0xa1   : > { %v957_v24 = vsel %vm4505_vm15, %v839_v13, %v956_v8  ;;  %v732_v31 = vmax.f32 %v716_v11, 0.0  ;;  %v870_v34 = vrot.slane %v868_v17, 7  ;;  %v4707_v36 = vpack.c.bf16 %v731_v27, %v731_v27  ;;  %v4081_v27 = vld [vmem:[%s5383_s5 + $0x118] sm:$0xff]  ;;  %v4056_v13 = vld [vmem:[%s5383_s5 + $0x90] sm:$0xff] }
  0xa2   : > { %v990_v32 = vld [vmem:[#allocation2 + $0x24] sm:$0xf]  ;;  %958 = vst [vmem:[#allocation2 + $0x3c] sm:$0xf] %v957_v24  ;;  %v878_v35 = vrot.slane %v876_v18, 7  ;;  %v848_v40 = vsel %vm4513_vm5, %v840_v14, %v847_v20  ;;  %v961_v41 = vsel %vm4325_vm2, %v849_v23, %v960_v16  ;;  %v4072_v18 = vld [vmem:[%s5383_s5 + $0xd0] sm:$0xff]  ;;  %2262 = vmatpush.bf16.msrb.mxu0 %v4081_v27  ;;  %1693 = vmatpush.bf16.msrb.mxu2 %v4056_v13 }
  0xa3   : > { %v4709_v37 = vld [vmem:[#allocation2 + $0x28] sm:$0xf]  ;;  %v1100_v39 = vshrl.u32 %v990_v32, 16  ;;  %v1103_v29 = vshll.u32 %v990_v32, 16  ;;  %959 = vst [vmem:[#allocation2 + $0x40] sm:$0xf] %v848_v40  ;;  %v873_v47 = vor.u32 %v871_v1, %v870_v34  ;;  %v748_v63 = vpack.c.bf16 %v732_v31, %v732_v31  ;;  %1886 = vmatpush.bf16.msrb.mxu3 %v4072_v18 }
  0xa4   : > { %v4715_v42 = vld [vmem:[#allocation2 + $0x2c] sm:$0x1]  ;;  %v1109_v45 = vshll.u32 %v4709_v37, 16  ;;  %v1113_v46 = vshrl.u32 %v4709_v37, 16  ;;  %v881_v48 = vor.u32 %v879_v19, %v878_v35  ;;  %962 = vst [vmem:[#allocation2 + $0x44] sm:$0x1] %v961_v41 }
  0xa5   : > { %v1102_v7 = vrot.slane %v1100_v39, 4  ;;  %v1105_v22 = vrot.slane %v1103_v29, 5  ;;  %v1119_v50 = vshll.u32 %v4715_v42, 16  ;;  %v874_v51 = vrot.slane %v870_v34, 4  ;;  %v4040_v1 = vld [vmem:[%s5383_s5 + $0x10] sm:$0xff]  ;;  %v4055_v32 = vld [vmem:[%s5383_s5 + $0x88] sm:$0xff] }
  0xa6   : > { %v1111_v53 = vrot.slane %v1109_v45, 5  ;;  %v1115_v55 = vrot.slane %v1113_v46, 4  ;;  %v883_v56 = vrot.slane %v878_v35, 4  ;;  %v971_v57 = vsel %vm4505_vm15, %v873_v47, %v970_v26  ;;  %v4080_v31 = vld [vmem:[%s5383_s5 + $0x110] sm:$0xff]  ;;  %1465 = vmatpush.bf16.msrb.mxu1 %v4040_v1  ;;  %v4071_v29 = vld [vmem:[%s5383_s5 + $0xc8] sm:$0xff]  ;;  %1694 = vmatpush.bf16.msrb.mxu2 %v4055_v32 }
  0xa7   : > { %v1106_v59 = vor.u32 %v1105_v22, %v1102_v7  ;;  %v1121_v61 = vrot.slane %v1119_v50, 5  ;;  %v882_v62 = vsel %vm4513_vm5, %v874_v51, %v881_v48  ;;  %972 = vst [vmem:[#allocation2 + $0x54] sm:$0xf] %v971_v57  ;;  %v766_v4 = vshrl.u32 %v4707_v36, 16  ;;  %v4039_v47 = vld [vmem:[%s5383_s5 + $0x8] sm:$0xff]  ;;  %2263 = vmatpush.bf16.msrb.mxu0 %v4080_v31  ;;  %1887 = vmatpush.bf16.msrb.mxu3 %v4071_v29 }
  0xa8   : > { %v1116_v2 = vor.u32 %v1115_v55, %v1111_v53  ;;  %973 = vst [vmem:[#allocation2 + $0x58] sm:$0xf] %v882_v62  ;;  %v975_v3 = vsel %vm4325_vm2, %v883_v56, %v974_v21  ;;  %v769_v5 = vshll.u32 %v4707_v36, 16  ;;  %v774_v9 = vshrl.u32 %v748_v63, 16  ;;  %v4079_v48 = vld [vmem:[%s5383_s5 + $0x108] sm:$0xff]  ;;  %v4054_v55 = vld [vmem:[%s5383_s5 + $0x80] sm:$0xff] }
  0xa9   : > { %v1107_v6 = vrot.slane %v1106_v59, 4  ;;  %v994_v8 = vld [vmem:[#allocation2 + $0x3c] sm:$0xf]  ;;  %976 = vst [vmem:[#allocation2 + $0x5c] sm:$0x1] %v975_v3  ;;  %v768_v11 = vrot.slane %v766_v4, 7 }
  0xaa   : > { %v1117_v49 = vrot.slane %v1116_v2, 4  ;;  %v1148_v10 = vshrl.u32 %v994_v8, 16  ;;  %v1151_v12 = vshll.u32 %v994_v8, 16  ;;  %v4736_v15 = vld [vmem:[#allocation2 + $0x40] sm:$0xf]  ;;  %v4738_v16 = vrot.slane %v774_v9, 7  ;;  %1466 = vmatpush.bf16.msrb.mxu1 %v4039_v47  ;;  %1695 = vmatpush.bf16.msrb.mxu2 %v4054_v55 }
  0xab   : > { %v1112_v14 = vsel %vm4570_vm1, %v1107_v6, %v1111_v53  ;;  %v777_v17 = vshll.u32 %v748_v63, 16  ;;  %v4748_v23 = vld [vmem:[#allocation2 + $0x44] sm:$0x1]  ;;  %v1157_v35 = vshll.u32 %v4736_v15, 16  ;;  %v1161_v36 = vshrl.u32 %v4736_v15, 16  ;;  %2264 = vmatpush.bf16.msrb.mxu0 %v4079_v48  ;;  %v4093_v55 = vld [vmem:[%s5383_s5 + $0x178] sm:$0xff] }
  0xac   : > { %v1122_v19 = vsel %vm4570_vm1, %v1117_v49, %v1121_v61  ;;  %v1241_v20 = vunpack.c.l.b16 %v1112_v14  ;;  %v1150_v24 = vrot.slane %v1148_v10, 4  ;;  %v1153_v26 = vrot.slane %v1151_v12, 5  ;;  %v4038_v6 = vld [vmem:[%s5383_s5] sm:$0xff] }
  0xad   : > { %v1242_v34 = vunpack.c.l.b16 %v1122_v19  ;;  %v1167_v39 = vshll.u32 %v4748_v23, 16  ;;  %v771_v21 = vor.u32 %v769_v5, %v768_v11  ;;  %v772_v45 = vrot.slane %v768_v11, 4  ;;  %v928_v5 = vld [vmem:[#allocation2 + $0xc] sm:$0xf]  ;;  %v4070_v8 = vld [vmem:[%s5383_s5 + $0xc0] sm:$0xff]  ;;  %v4109_v11 = vld [vmem:[%s5383_s5 + $0x1b8] sm:$0xff] }
  0xae   : > { %v1154_v40 = vor.u32 %v1153_v26, %v1150_v24  ;;  %v998_v41 = vld [vmem:[#allocation2 + $0x54] sm:$0xf]  ;;  %v779_v46 = vor.u32 %v777_v17, %v4738_v16  ;;  %v1159_v22 = vrot.slane %v1157_v35, 5  ;;  %v1163_v50 = vrot.slane %v1161_v36, 4  ;;  %v4078_v24 = vld [vmem:[%s5383_s5 + $0x100] sm:$0xff]  ;;  %1888 = vmatpush.bf16.msrb.mxu3 %v4070_v8  ;;  %2701 = vmatpush.bf16.msra.mxu2 %v4109_v11 }
  0xaf   : > { %v1254_v7 = vpack.c.b16 %v1242_v34, %v1241_v20  ;;  %v1169_v51 = vrot.slane %v1167_v39, 5  ;;  %v4769_v53 = vld [vmem:[#allocation2 + $0x58] sm:$0xf]  ;;  %v1196_v59 = vshrl.u32 %v998_v41, 16  ;;  %v1199_v61 = vshll.u32 %v998_v41, 16  ;;  %1467 = vmatpush.bf16.msrb.mxu1 %v4038_v6  ;;  %2265 = vmatpush.bf16.msrb.mxu0 %v4078_v24 }
  0xb0   : > { %v1155_v56 = vrot.slane %v1154_v40, 4  ;;  %v4774_v57 = vld [vmem:[#allocation2 + $0x5c] sm:$0x1]  ;;  %v1205_v62 = vshll.u32 %v4769_v53, 16  ;;  %v1164_v63 = vor.u32 %v1163_v50, %v1159_v22  ;;  %v1209_v2 = vshrl.u32 %v4769_v53, 16 }
  0xb1   : > { %1338 = vmatmul.bf16.gmra.mxu1 %v1254_v7  ;;  %v1215_v3 = vshll.u32 %v4774_v57, 16  ;;  %v780_v4 = vsel %vm4513_vm5, %v772_v45, %v779_v46  ;;  %v1198_v49 = vrot.slane %v1196_v59, 4  ;;  %v1201_v10 = vrot.slane %v1199_v61, 5  ;;  %v932_v17 = vld [vmem:[#allocation2 + $0x14] sm:$0x1] }
  0xb2   : > { %v1160_v9 = vsel %vm4570_vm1, %v1155_v56, %v1159_v22  ;;  %v1207_v12 = vrot.slane %v1205_v62, 5  ;;  %931 = vst [vmem:[#allocation2 + $0x10] sm:$0xf] %v780_v4  ;;  %v1165_v27 = vrot.slane %v1164_v63, 4  ;;  %v1211_v14 = vrot.slane %v1209_v2, 4  ;;  %v4125_v56 = vld [vmem:[%s5383_s5 + $0x238] sm:$0xff] }
  0xb3   : > { %v1245_v13 = vunpack.c.l.b16 %v1160_v9  ;;  %v1202_v1 = vor.u32 %v1201_v10, %v1198_v49  ;;  %v1217_v18 = vrot.slane %v1215_v3, 5  ;;  %v781_v19 = vrot.slane %v4738_v16, 4  ;;  %v1509_v32 = vld [vmem:[#allocation2] sm:$0xe]  ;;  %2507 = vmatpush.bf16.msra.mxu1 %v4093_v55  ;;  %3327 = vmatpush.bf16.msra.mxu0 %v4125_v56 }
  0xb4   : > { %v929_v20 = vsel %vm4505_vm15, %v771_v21, %v928_v5  ;;  %v1170_v26 = vsel %vm4570_vm1, %v1165_v27, %v1169_v51  ;;  %v1212_v31 = vor.u32 %v1211_v14, %v1207_v12  ;;  %v1538_v36 = vrot.slane %v4528_v54, 5  ;;  %v4117_v51 = vld [vmem:[%s5383_s5 + $0x1f8] sm:$0xff]  ;;  %v4030_v4 = vld [vmem:[#allocation2] sm:$0xff] }
  0xb5   : > { %930 = vst [vmem:[#allocation2 + $0xc] sm:$0xf] %v929_v20  ;;  %v1246_v16 = vunpack.c.l.b16 %v1170_v26  ;;  %v1203_v34 = vrot.slane %v1202_v1, 4  ;;  %v933_v35 = vsel %vm4325_vm2, %v781_v19, %v932_v17  ;;  %v3714_v41 = vrot.slane %v1509_v32, 9  ;;  %3078 = vmatpush.bf16.msra.mxu3 %v4117_v51 }
  0xb6   : > { %v1213_v39 = vrot.slane %v1212_v31, 4  ;;  %934 = vst [vmem:[#allocation2 + $0x14] sm:$0x1] %v933_v35  ;;  %v1540_v54 = vrot.slane %v1538_v36, 4  ;;  %v1541_v48 = vrot.slane %v4535_v60, 5 }
  0xb7   : > { %v1256_v29 = vpack.c.b16 %v1246_v16, %v1245_v13  ;;  %v1208_v40 = vsel %vm4570_vm1, %v1203_v34, %v1207_v12  ;;  %v1539_v5 = vsel %vm4811_vm7, %v3714_v41, %v1538_v36 }
  0xb8   : > { %v1218_v21 = vsel %vm4570_vm1, %v1213_v39, %v1217_v18  ;;  %v1249_v45 = vunpack.c.l.b16 %v1208_v40  ;;  %v1542_v6 = vsel %vm4811_vm7, %v1540_v54, %v1541_v48  ;;  %v4108_v18 = vld [vmem:[%s5383_s5 + $0x1b0] sm:$0xff]  ;;  %v1608_v24 = vunpack.c.l.b16 %v1539_v5  ;;  %v4855_v5 = vld [vmem:[#allocation2 + $0x1c] sm:$0xf] }
  0xb9   : > { %v4807_v46 = vld [vmem:[#allocation2 + $0x10] sm:$0xf]  ;;  %1348 = vmatmul.bf16.gmra.mxu2 %v1256_v29  ;;  %v1250_v7 = vunpack.c.l.b16 %v1218_v21  ;;  %v1609_v26 = vunpack.c.l.b16 %v1542_v6 }
  0xba   : > { %v1061_v22 = vshll.u32 %v4807_v46, 16  ;;  %v1065_v50 = vshrl.u32 %v4807_v46, 16  ;;  %v4827_v59 = vld [vmem:[#allocation2 + $0x10] sm:$0xf]  ;;  %2702 = vmatpush.bf16.msra.mxu2 %v4108_v18 }
  0xbb   : > { %v1258_v60 = vpack.c.b16 %v1250_v7, %v1249_v45  ;;  %v1980_v12 = vshll.u32 %v4827_v59, 16  ;;  %v1984_v11 = vshrl.u32 %v4827_v59, 16  ;;  %v1624_v45 = vpack.c.b16 %v1609_v26, %v1608_v24 }
  0xbc   : > { %v986_v61 = vld [vmem:[#allocation2 + $0xc] sm:$0xf]  ;;  %v1063_v62 = vrot.slane %v1061_v22, 5  ;;  %v1067_v63 = vrot.slane %v1065_v50, 4  ;;  %v1545_v7 = vrot.slane %v4807_v46, 5  ;;  %v4124_v46 = vld [vmem:[%s5383_s5 + $0x230] sm:$0xff] }
  0xbd   : > { %v1052_v2 = vshrl.u32 %v986_v61, 16  ;;  %v1055_v3 = vshll.u32 %v986_v61, 16  ;;  %v1946_v8 = vld [vmem:[#allocation2 + $0xc] sm:$0xf]  ;;  %1358 = vmatmul.bf16.gmra.mxu3 %v1258_v60  ;;  %v1017_v9 = vld [vmem:[#allocation2 + $0x14] sm:$0x1]  ;;  %3328 = vmatpush.bf16.msra.mxu0 %v4124_v46 }
  0xbe   : > { %v1068_v49 = vor.u32 %v1067_v63, %v1063_v62  ;;  %v1971_v10 = vshrl.u32 %v1946_v8, 16  ;;  %v1071_v14 = vshll.u32 %v1017_v9, 16  ;;  %v1974_v17 = vshll.u32 %v1946_v8, 16  ;;  %v4838_v31 = vld [vmem:[#allocation2 + $0x14] sm:$0x1]  ;;  %v4062_v51 = vld [vmem:[#allocation2 + $0xc] sm:$0xff] }
  0xbf   : > { %v1054_v27 = vrot.slane %v1052_v2, 4  ;;  %v1057_v13 = vrot.slane %v1055_v3, 5  ;;  %v1982_v32 = vrot.slane %v1980_v12, 5  ;;  %v1986_v16 = vrot.slane %v1984_v11, 4  ;;  %v1510_v48 = vld [vmem:[#allocation2 + $0xc] sm:$0xe] }
  0xc0   : > { %v1069_v1 = vrot.slane %v1068_v49, 4  ;;  %v1073_v20 = vrot.slane %v1071_v14, 5  ;;  %v1973_v36 = vrot.slane %v1971_v10, 4  ;;  %v1976_v39 = vrot.slane %v1974_v17, 5  ;;  %v4092_v2 = vld [vmem:[%s5383_s5 + $0x170] sm:$0xff]  ;;  %v4107_v12 = vld [vmem:[%s5383_s5 + $0x1a8] sm:$0xff] }
  0xc1   : > { %v1058_v19 = vor.u32 %v1057_v13, %v1054_v27  ;;  %1468 = vmatmul.bf16.vlgmr.msrb.gmra.mxu1 %v4030_v4  ;;  %v1990_v41 = vshll.u32 %v4838_v31, 16  ;;  %v1987_v54 = vor.u32 %v1986_v16, %v1982_v32  ;;  %v3715_v56 = vrot.slane %v1510_v48, 9  ;;  %v1949_v4 = vld [vmem:[#allocation2 + $0x18] sm:$0xf]  ;;  %v4031_v6 = vld [vmem:[#allocation2 + $0xc] sm:$0xff]  ;;  %2703 = vmatpush.bf16.msra.mxu2 %v4107_v12 }
  0xc2   : > { %v1074_v35 = vsel %vm4570_vm1, %v1069_v1, %v1073_v20  ;;  %v1977_v22 = vor.u32 %v1976_v39, %v1973_v36  ;;  %v1547_v61 = vrot.slane %v1545_v7, 4  ;;  %v1548_v63 = vrot.slane %v1017_v9, 5  ;;  %2508 = vmatpush.bf16.msra.mxu1 %v4092_v2  ;;  %v1952_v48 = vld [vmem:[#allocation2 + $0x24] sm:$0xf] }
  0xc3   : > { %v1059_v34 = vrot.slane %v1058_v19, 4  ;;  %v1238_v29 = vunpack.c.l.b16 %v1074_v35  ;;  %v1992_v55 = vrot.slane %v1990_v41, 5  ;;  %v1988_v60 = vrot.slane %v1987_v54, 4 }
  0xc4   : > { %v1978_v3 = vrot.slane %v1977_v22, 4  ;;  %v1546_v9 = vsel %vm4811_vm7, %v3715_v56, %v1545_v7  ;;  %v1549_v49 = vsel %vm4811_vm7, %v1547_v61, %v1548_v63  ;;  %v1995_v10 = vshrl.u32 %v1949_v4, 16  ;;  %v4875_v7 = vld [vmem:[#allocation2 + $0x28] sm:$0xf]  ;;  %v1512_v63 = vld [vmem:[#allocation2 + $0x24] sm:$0xe] }
  0xc5   : > { %v1064_v40 = vsel %vm4570_vm1, %v1059_v34, %v1063_v62  ;;  %v4116_v62 = vld [vmem:[%s5383_s5 + $0x1f0] sm:$0xff]  ;;  %v1993_v8 = vsel %vm4570_vm1, %v1988_v60, %v1992_v55  ;;  %v1998_v27 = vshll.u32 %v1949_v4, 16  ;;  %v2004_v13 = vshll.u32 %v4855_v5, 16  ;;  %v4870_v34 = vld [vmem:[#allocation2 + $0x20] sm:$0x1] }
  0xc6   : > { %v1237_v21 = vunpack.c.l.b16 %v1064_v40  ;;  %3079 = vmatpush.bf16.msra.mxu3 %v4116_v62  ;;  %v1983_v11 = vsel %vm4570_vm1, %v1978_v3, %v1982_v32  ;;  %v2008_v14 = vshrl.u32 %v4855_v5, 16  ;;  %v2179_v1 = vunpack.c.l.b16 %v1993_v8  ;;  %v1511_v32 = vld [vmem:[#allocation2 + $0x18] sm:$0xe] }
  0xc7   : > { %v2178_v17 = vunpack.c.l.b16 %v1983_v11  ;;  %v1610_v18 = vunpack.c.l.b16 %v1546_v9  ;;  %v1611_v19 = vunpack.c.l.b16 %v1549_v49  ;;  %v1997_v20 = vrot.slane %v1995_v10, 4  ;;  %v4032_v3 = vld [vmem:[#allocation2 + $0x18] sm:$0xff]  ;;  %v4106_v10 = vld [vmem:[%s5383_s5 + $0x1a0] sm:$0xff] }
  0xc8   : > { %v1252_v50 = vpack.c.b16 %v1238_v29, %v1237_v21  ;;  %v2000_v24 = vrot.slane %v1998_v27, 5  ;;  %v2006_v26 = vrot.slane %v2004_v13, 5  ;;  %v2010_v16 = vrot.slane %v2008_v14, 4  ;;  %v4063_v21 = vld [vmem:[#allocation2 + $0x18] sm:$0xff]  ;;  %2704 = vmatpush.bf16.msra.mxu2 %v4106_v10 }
  0xc9   : > { %1696 = vmatmul.bf16.vlgmr.msrb.gmra.mxu2 %v1624_v45  ;;  %v2194_v35 = vpack.c.b16 %v2179_v1, %v2178_v17  ;;  %v1625_v36 = vpack.c.b16 %v1611_v19, %v1610_v18  ;;  %v1552_v39 = vrot.slane %v4581_v30, 5  ;;  %v2014_v41 = vshll.u32 %v4870_v34, 16  ;;  %v4091_v30 = vld [vmem:[%s5383_s5 + $0x168] sm:$0xff] }
  0xca   : > { %1328 = vmatmul.bf16.gmra.mxu0 %v1252_v50  ;;  %v2001_v29 = vor.u32 %v2000_v24, %v1997_v20  ;;  %v2011_v40 = vor.u32 %v2010_v16, %v2006_v26  ;;  %v3716_v45 = vrot.slane %v1511_v32, 9  ;;  %v1555_v54 = vrot.slane %v4593_v38, 5  ;;  %v4115_v50 = vld [vmem:[%s5383_s5 + $0x1e8] sm:$0xff]  ;;  %2509 = vmatpush.bf16.msra.mxu1 %v4091_v30  ;;  %v1955_v30 = vld [vmem:[#allocation2 + $0x30] sm:$0xf] }
  0xcb   : > { %v1554_v22 = vrot.slane %v1552_v39, 4  ;;  %v1559_v38 = vrot.slane %v4709_v37, 5  ;;  %v1562_v55 = vrot.slane %v4715_v42, 5  ;;  %v2016_v61 = vrot.slane %v2014_v41, 5  ;;  %3080 = vmatpush.bf16.msra.mxu3 %v4115_v50  ;;  %v4064_v41 = vld [vmem:[#allocation2 + $0x24] sm:$0xff] }
  0xcc   : > { %v2002_v56 = vrot.slane %v2001_v29, 4  ;;  %v2012_v60 = vrot.slane %v2011_v40, 4  ;;  %v2019_v62 = vshrl.u32 %v1952_v48, 16  ;;  %v3717_v2 = vrot.slane %v1512_v63, 9  ;;  %v4122_v50 = vld [vmem:[%s5383_s5 + $0x220] sm:$0xff] }
  0xcd   : > { %1889 = vmatmul.bf16.vlgmr.msrb.gmra.mxu3 %v4062_v51  ;;  %v4123_v51 = vld [vmem:[%s5383_s5 + $0x228] sm:$0xff]  ;;  %v1561_v46 = vrot.slane %v1559_v38, 4  ;;  %v2022_v4 = vshll.u32 %v1952_v48, 16  ;;  %v2032_v8 = vshrl.u32 %v4875_v7, 16  ;;  %v1553_v37 = vsel %vm4811_vm7, %v3716_v45, %v1552_v39  ;;  %v4114_v48 = vld [vmem:[%s5383_s5 + $0x1e0] sm:$0xff] }
  0xce   : > { %3329 = vmatpush.bf16.msra.mxu0 %v4123_v51  ;;  %v1556_v42 = vsel %vm4811_vm7, %v1554_v22, %v1555_v54  ;;  %v1560_v9 = vsel %vm4811_vm7, %v3717_v2, %v1559_v38  ;;  %v2007_v12 = vsel %vm4570_vm1, %v2002_v56, %v2006_v26  ;;  %v2017_v11 = vsel %vm4570_vm1, %v2012_v60, %v2016_v61  ;;  %v4090_v22 = vld [vmem:[%s5383_s5 + $0x160] sm:$0xff]  ;;  %v4917_v51 = vld [vmem:[#allocation2 + $0x34] sm:$0xf]  ;;  %v4105_v2 = vld [vmem:[%s5383_s5 + $0x198] sm:$0xff] }
  0xcf   : > { %v1563_v49 = vsel %vm4811_vm7, %v1561_v46, %v1562_v55  ;;  %v1614_v27 = vunpack.c.l.b16 %v1560_v9  ;;  %v2021_v14 = vrot.slane %v2019_v62, 4  ;;  %v2024_v17 = vrot.slane %v2022_v4, 5  ;;  %3081 = vmatpush.bf16.msra.mxu3 %v4114_v48  ;;  %2510 = vmatpush.bf16.msra.mxu1 %v4090_v22  ;;  %v4033_v56 = vld [vmem:[#allocation2 + $0x24] sm:$0xff] }
  0xd0   : > { %v1615_v13 = vunpack.c.l.b16 %v1563_v49  ;;  %v2034_v18 = vrot.slane %v2032_v8, 4  ;;  %v2180_v20 = vunpack.c.l.b16 %v2007_v12  ;;  %v2181_v24 = vunpack.c.l.b16 %v2017_v11  ;;  %2705 = vmatpush.bf16.msra.mxu2 %v4105_v2 }
  0xd1   : > { %1473 = vmatmul.bf16.gmra.mxu1 %v4031_v6  ;;  %v2028_v6 = vshll.u32 %v4875_v7, 16  ;;  %v1612_v16 = vunpack.c.l.b16 %v1553_v37  ;;  %v2025_v32 = vor.u32 %v2024_v17, %v2021_v14  ;;  %v2043_v60 = vshrl.u32 %v1955_v30, 16  ;;  %v1958_v14 = vld [vmem:[#allocation2 + $0x3c] sm:$0xf]  ;;  %v4932_v17 = vld [vmem:[#allocation2 + $0x40] sm:$0xf] }
  0xd2   : > { %v1627_v19 = vpack.c.b16 %v1615_v13, %v1614_v27  ;;  %v2195_v29 = vpack.c.b16 %v2181_v24, %v2180_v20  ;;  %3330 = vmatpush.bf16.msra.mxu0 %v4122_v50  ;;  %v2046_v61 = vshll.u32 %v1955_v30, 16  ;;  %v2052_v63 = vshll.u32 %v4917_v51, 16  ;;  %v1513_v27 = vld [vmem:[#allocation2 + $0x30] sm:$0xe]  ;;  %v4113_v24 = vld [vmem:[%s5383_s5 + $0x1d8] sm:$0xff] }
  0xd3   : > { %v2030_v1 = vrot.slane %v2028_v6, 5  ;;  %v2056_v62 = vshrl.u32 %v4917_v51, 16  ;;  %v2045_v4 = vrot.slane %v2043_v60, 4  ;;  %v1566_v11 = vrot.slane %v4610_v52, 5  ;;  %v4065_v13 = vld [vmem:[#allocation2 + $0x30] sm:$0xff]  ;;  %v4121_v52 = vld [vmem:[%s5383_s5 + $0x218] sm:$0xff]  ;;  %3082 = vmatpush.bf16.msra.mxu3 %v4113_v24 }
  0xd4   : > { %v2048_v6 = vrot.slane %v2046_v61, 5  ;;  %v2054_v8 = vrot.slane %v2052_v63, 5  ;;  %v4968_v24 = vld [vmem:[#allocation2 + $0x4c] sm:$0xf] }
  0xd5   : > { %v2035_v26 = vor.u32 %v2034_v18, %v2030_v1  ;;  %v2058_v37 = vrot.slane %v2056_v62, 4 }
  0xd6   : > { %v2049_v49 = vor.u32 %v2048_v6, %v2045_v4  ;;  %3331 = vmatpush.bf16.msra.mxu0 %v4121_v52  ;;  %v691_v4 = vld [vmem:[%s4365_s12 + $0x70] sm:$0xff]  ;;  %v692_v6 = vld [vmem:[%s4365_s12 + $0x78] sm:$0xff] }
  0xd7   : > { %v2036_v45 = vrot.slane %v2035_v26, 4  ;;  %v2059_v10 = vor.u32 %v2058_v37, %v2054_v8  ;;  %v1569_v26 = vrot.slane %v4612_v58, 5  ;;  %v4104_v58 = vld [vmem:[%s5383_s5 + $0x190] sm:$0xff]  ;;  %v1573_v37 = vrot.slane %v4736_v15, 5 }
  0xd8   : > { %2706 = vmatpush.bf16.msra.mxu2 %v4104_v58  ;;  %v4088_v52 = vld [vmem:[%s5383_s5 + $0x150] sm:$0xff]  ;;  %v4103_v58 = vld [vmem:[%s5383_s5 + $0x188] sm:$0xff] }
  0xd9   : > { %1701 = vmatmul.bf16.gmra.mxu2 %v1625_v36  ;;  %v4905_v36 = vld [vmem:[#allocation2 + $0x2c] sm:$0x1]  ;;  %v2060_v18 = vrot.slane %v2059_v10, 4  ;;  %v1514_v10 = vld [vmem:[#allocation2 + $0x3c] sm:$0xe] }
  0xda   : > { %2266 = vmatmul.bf16.vlgmr.msrb.gmra.mxu0 %v2194_v35  ;;  %v1613_v35 = vunpack.c.l.b16 %v1556_v42  ;;  %v2038_v39 = vshll.u32 %v4905_v36, 16  ;;  %v4928_v42 = vld [vmem:[#allocation2 + $0x38] sm:$0x1]  ;;  %v3719_v15 = vrot.slane %v1514_v10, 9 }
  0xdb   : > { %v2062_v12 = vshll.u32 %v4928_v42, 16 }
  0xdc   : > { %v1626_v40 = vpack.c.b16 %v1613_v35, %v1612_v16  ;;  %v2040_v54 = vrot.slane %v2038_v39, 5  ;;  %v4089_v16 = vld [vmem:[%s5383_s5 + $0x158] sm:$0xff]  ;;  %v3718_v35 = vrot.slane %v1513_v27, 9  ;;  %v2070_v39 = vshll.u32 %v1958_v14, 16  ;;  %2707 = vmatpush.bf16.msra.mxu2 %v4103_v58  ;;  %v4036_v58 = vld [vmem:[#allocation2 + $0x48] sm:$0xff] }
  0xdd   : > { %1894 = vmatmul.bf16.gmra.mxu3 %v4063_v21  ;;  %v2026_v21 = vrot.slane %v2025_v32, 4  ;;  %v2064_v20 = vrot.slane %v2062_v12, 5  ;;  %v1568_v32 = vrot.slane %v1566_v11, 4  ;;  %2511 = vmatpush.bf16.msra.mxu1 %v4089_v16  ;;  %v4066_v12 = vld [vmem:[#allocation2 + $0x3c] sm:$0xff]  ;;  %v1575_v16 = vrot.slane %v1573_v37, 4 }
  0xde   : > { %v2041_v55 = vsel %vm4570_vm1, %v2036_v45, %v2040_v54  ;;  %v1567_v54 = vsel %vm4811_vm7, %v3718_v35, %v1566_v11  ;;  %v2072_v50 = vrot.slane %v2070_v39, 5  ;;  %v4035_v39 = vld [vmem:[#allocation2 + $0x3c] sm:$0xff] }
  0xdf   : > { %v2031_v38 = vsel %vm4570_vm1, %v2026_v21, %v2030_v1  ;;  %v2050_v1 = vrot.slane %v2049_v49, 4  ;;  %v2065_v45 = vsel %vm4570_vm1, %v2060_v18, %v2064_v20  ;;  %v1570_v48 = vsel %vm4811_vm7, %v1568_v32, %v1569_v26  ;;  %v1961_v20 = vld [vmem:[#allocation2 + $0x48] sm:$0xf] }
  0xe0   : > { %v2182_v46 = vunpack.c.l.b16 %v2031_v38  ;;  %v2185_v38 = vunpack.c.l.b16 %v2065_v45  ;;  %v1616_v61 = vunpack.c.l.b16 %v1567_v54  ;;  %v1617_v63 = vunpack.c.l.b16 %v1570_v48 }
  0xe1   : > { %1478 = vmatmul.bf16.gmra.mxu1 %v4032_v3  ;;  %v2183_v3 = vunpack.c.l.b16 %v2041_v55  ;;  %v2055_v21 = vsel %vm4570_vm1, %v2050_v1, %v2054_v8  ;;  %v4957_v55 = vld [vmem:[#allocation2 + $0x44] sm:$0x1]  ;;  %v711_v49 = vmul.f32 %v4460_v43, %v692_v6  ;;  %v1576_v18 = vrot.slane %v4748_v23, 5 }
  0xe2   : > { %v2184_v30 = vunpack.c.l.b16 %v2055_v21  ;;  %v2086_v2 = vshll.u32 %v4957_v55, 16  ;;  %v1628_v8 = vpack.c.b16 %v1617_v63, %v1616_v61  ;;  %2512 = vmatpush.bf16.msra.mxu1 %v4088_v52  ;;  %v1574_v21 = vsel %vm4811_vm7, %v3719_v15, %v1573_v37  ;;  %v4067_v52 = vld [vmem:[#allocation2 + $0x48] sm:$0xff] }
  0xe3   : > { %v2196_v9 = vpack.c.b16 %v2183_v3, %v2182_v46  ;;  %v1577_v45 = vsel %vm4811_vm7, %v1575_v16, %v1576_v18 }
  0xe4   : > { %v2197_v46 = vpack.c.b16 %v2185_v38, %v2184_v30  ;;  %v2088_v27 = vrot.slane %v2086_v2, 5 }
  0xe9   : > { %1706 = vmatmul.bf16.gmra.mxu2 %v1626_v40  ;;  %v2076_v40 = vshll.u32 %v4932_v17, 16 }
  0xea   : > { %2271 = vmatmul.bf16.gmra.mxu0 %v2195_v29  ;;  %v4034_v29 = vld [vmem:[#allocation2 + $0x30] sm:$0xff] }
  0xed   : > { %1899 = vmatmul.bf16.gmra.mxu3 %v4064_v41  ;;  %v2080_v41 = vshrl.u32 %v4932_v17, 16 }
  0xef   : > { %v2082_v60 = vrot.slane %v2080_v41, 4  ;;  %v2100_v41 = vshll.u32 %v4968_v24, 16 }
  0xf1   : > { %1483 = vmatmul.bf16.gmra.mxu1 %v4033_v56  ;;  %v2078_v56 = vrot.slane %v2076_v40, 5  ;;  %v2094_v40 = vshll.u32 %v1961_v20, 16 }
  0xf3   : > { %v2083_v3 = vor.u32 %v2082_v60, %v2078_v56  ;;  %v1619_v60 = vunpack.c.l.b16 %v1577_v45 }
  0xf5   : > { %v2084_v1 = vrot.slane %v2083_v3, 4  ;;  %v2102_v3 = vrot.slane %v2100_v41, 5 }
  0xf9   : > { %1711 = vmatmul.bf16.gmra.mxu2 %v1627_v19  ;;  %v2067_v19 = vshrl.u32 %v1958_v14, 16  ;;  %v730_v14 = vadd.f32 %v4463_v44, %v711_v49  ;;  %v977_v49 = vld [vmem:[#allocation2 + $0x60] sm:$0xf] }
  0xfa   : > { %2276 = vmatmul.bf16.gmra.mxu0 %v2196_v9  ;;  %v710_v9 = vmul.f32 %v4460_v43, %v691_v4  ;;  %v4112_v43 = vld [vmem:[%s5383_s5 + $0x1d0] sm:$0xff] }
  0xfb   : > { %v2069_v22 = vrot.slane %v2067_v19, 4  ;;  %v746_v35 = vmax.f32 %v730_v14, 0.0  ;;  %3083 = vmatpush.bf16.msra.mxu3 %v4112_v43  ;;  %v2089_v19 = vsel %vm4570_vm1, %v2084_v1, %v2088_v27  ;;  %v981_v43 = vld [vmem:[#allocation2 + $0x68] sm:$0x1] }
  0xfc   : > { %v2187_v30 = vunpack.c.l.b16 %v2089_v19 }
  0xfd   : > { %1904 = vmatmul.bf16.gmra.mxu3 %v4065_v13  ;;  %v2073_v62 = vor.u32 %v2072_v50, %v2069_v22  ;;  %v729_v13 = vadd.f32 %v4463_v44, %v710_v9  ;;  %v4120_v44 = vld [vmem:[%s5383_s5 + $0x210] sm:$0xff]  ;;  %v762_v54 = vpack.c.bf16 %v746_v35, %v746_v35  ;;  %v2104_v22 = vshrl.u32 %v4968_v24, 16  ;;  %v5001_v35 = vld [vmem:[#allocation2 + $0x58] sm:$0xf] }
  0xfe   : > { %3332 = vmatpush.bf16.msra.mxu0 %v4120_v44  ;;  %v1515_v44 = vld [vmem:[#allocation2 + $0x48] sm:$0xe] }
  0xff   : > { %v2074_v11 = vrot.slane %v2073_v62, 4  ;;  %v745_v23 = vmax.f32 %v729_v13, 0.0  ;;  %v893_v63 = vshrl.u32 %v762_v54, 16  ;;  %v4992_v62 = vld [vmem:[#allocation2 + $0x50] sm:$0x1]  ;;  %v896_v4 = vshll.u32 %v762_v54, 16  ;;  %3084 = vmatpush.bf16.msra.mxu3 %v4111_v33 }
 0x100   : > { %v2106_v6 = vrot.slane %v2104_v22, 4  ;;  %v2110_v14 = vshll.u32 %v4992_v62, 16  ;;  %v2124_v22 = vshll.u32 %v5001_v35, 16 }
 0x101   : > { %1488 = vmatmul.bf16.gmra.mxu1 %v4034_v29  ;;  %v2079_v32 = vsel %vm4570_vm1, %v2074_v11, %v2078_v56  ;;  %v761_v26 = vpack.c.bf16 %v745_v23, %v745_v23  ;;  %v2091_v29 = vshrl.u32 %v1961_v20, 16  ;;  %v1618_v56 = vunpack.c.l.b16 %v1574_v21  ;;  %v4193_v20 = vld [vmem:[#allocation2 + $0x4c] sm:$0xf]  ;;  %v1964_v23 = vld [vmem:[#allocation2 + $0x54] sm:$0xf] }
 0x102   : > { %v2186_v50 = vunpack.c.l.b16 %v2079_v32  ;;  %v895_v9 = vrot.slane %v893_v63, 7  ;;  %v2107_v18 = vor.u32 %v2106_v6, %v2102_v3  ;;  %v1580_v15 = vrot.slane %v4193_v20, 5  ;;  %v4194_v21 = vld [vmem:[#allocation2 + $0x50] sm:$0x1]  ;;  %3333 = vmatpush.bf16.msra.mxu0 %v4119_v0 }
 0x103   : > { %v885_v48 = vshrl.u32 %v761_v26, 16  ;;  %v888_v61 = vshll.u32 %v761_v26, 16  ;;  %v2093_v2 = vrot.slane %v2091_v29, 4  ;;  %v1629_v27 = vpack.c.b16 %v1619_v60, %v1618_v56 }
 0x104   : > { %v2198_v10 = vpack.c.b16 %v2187_v30, %v2186_v50  ;;  %v900_v1 = vrot.slane %v895_v9, 4  ;;  %v2112_v26 = vrot.slane %v2110_v14, 5  ;;  %v2108_v29 = vrot.slane %v2107_v18, 4  ;;  %v1516_v14 = vld [vmem:[#allocation2 + $0x54] sm:$0xe] }
 0x105   : > { %v887_v38 = vrot.slane %v885_v48, 7  ;;  %v1582_v41 = vrot.slane %v1580_v15, 4  ;;  %v1583_v45 = vrot.slane %v4194_v21, 5  ;;  %v2115_v54 = vshrl.u32 %v1964_v23, 16 }
 0x106   : > { %v982_v28 = vsel %vm4325_vm2, %v900_v1, %v981_v43  ;;  %v2118_v48 = vshll.u32 %v1964_v23, 16  ;;  %v2128_v50 = vshrl.u32 %v5001_v35, 16  ;;  %v4102_v1 = vld [vmem:[%s5383_s5 + $0x180] sm:$0xff] }
 0x107   : > { %v891_v37 = vrot.slane %v887_v38, 4  ;;  %983 = vst [vmem:[#allocation2 + $0x68] sm:$0x1] %v982_v28  ;;  %v1584_v60 = vsel %vm4811_vm7, %v1582_v41, %v1583_v45  ;;  %v2117_v63 = vrot.slane %v2115_v54, 4  ;;  %2708 = vmatpush.bf16.msra.mxu2 %v4102_v1  ;;  %v3721_v28 = vrot.slane %v1516_v14, 9 }
 0x109   : > { %1716 = vmatmul.bf16.gmra.mxu2 %v1628_v8  ;;  %v890_v8 = vor.u32 %v888_v61, %v887_v38  ;;  %v2113_v38 = vsel %vm4570_vm1, %v2108_v29, %v2112_v26  ;;  %v5024_v61 = vld [vmem:[#allocation2 + $0x5c] sm:$0x1]  ;;  %v4086_v26 = vld [vmem:[%s5383_s5 + $0x140] sm:$0xff] }
 0x10a   : > { %2281 = vmatmul.bf16.gmra.mxu0 %v2197_v46  ;;  %v2096_v46 = vrot.slane %v2094_v40, 5  ;;  %v3720_v40 = vrot.slane %v1515_v44, 9  ;;  %v4068_v44 = vld [vmem:[#allocation2 + $0x54] sm:$0xff] }
 0x10b   : > { %v978_v11 = vsel %vm4505_vm15, %v890_v8, %v977_v49  ;;  %v2189_v8 = vunpack.c.l.b16 %v2113_v38 }
 0x10c   : > { %v2097_v13 = vor.u32 %v2096_v46, %v2093_v2  ;;  %979 = vst [vmem:[#allocation2 + $0x60] sm:$0xf] %v978_v11  ;;  %v1581_v56 = vsel %vm4811_vm7, %v3720_v40, %v1580_v15  ;;  %v2120_v2 = vrot.slane %v2118_v48, 5  ;;  %v2126_v46 = vrot.slane %v2124_v22, 5  ;;  %v4118_v22 = vld [vmem:[%s5383_s5 + $0x200] sm:$0xff] }
 0x10d   : > { %1909 = vmatmul.bf16.gmra.mxu3 %v4066_v12  ;;  %v898_v12 = vor.u32 %v896_v4, %v895_v9  ;;  %v2130_v4 = vrot.slane %v2128_v50, 4  ;;  %v2134_v9 = vshll.u32 %v5024_v61, 16  ;;  %v2360_v48 = vrot.slane %v4838_v31, 5  ;;  %3334 = vmatpush.bf16.msra.mxu0 %v4118_v22 }
 0x10e   : > { %v2098_v32 = vrot.slane %v2097_v13, 4  ;;  %v1587_v13 = vrot.slane %v4769_v53, 5  ;;  %v1590_v53 = vrot.slane %v4774_v57, 5  ;;  %v4037_v57 = vld [vmem:[#allocation2 + $0x54] sm:$0xff]  ;;  %v2357_v50 = vrot.slane %v4827_v59, 5 }
 0x10f   : > { %v899_v16 = vsel %vm4513_vm5, %v891_v37, %v898_v12  ;;  %v5003_v19 = vpop.f32.mrf.mxu1  ;;  %v1620_v37 = vunpack.c.l.b16 %v1581_v56  ;;  %v2131_v12 = vor.u32 %v2130_v4, %v2126_v46  ;;  %v2136_v18 = vrot.slane %v2134_v9, 5  ;;  %v5065_v31 = vld [vmem:[#allocation2 + $0x68] sm:$0x1] }
 0x110   : > { %980 = vst [vmem:[#allocation2 + $0x64] sm:$0xf] %v899_v16  ;;  %v2103_v30 = vsel %vm4570_vm1, %v2098_v32, %v2102_v3  ;;  %v1621_v3 = vunpack.c.l.b16 %v1584_v60  ;;  %v1589_v23 = vrot.slane %v1587_v13, 4  ;;  %v4110_v32 = vld [vmem:[%s5383_s5 + $0x1c0] sm:$0xff]  ;;  %v2359_v9 = vrot.slane %v2357_v50, 4 }
 0x111   : > { %1493 = vmatmul.bf16.gmra.mxu1 %v4035_v39  ;;  %v4087_v39 = vld [vmem:[%s5383_s5 + $0x148] sm:$0xff]  ;;  %v2188_v6 = vunpack.c.l.b16 %v2103_v30  ;;  %v2132_v15 = vrot.slane %v2131_v12, 4  ;;  %3085 = vmatpush.bf16.msra.mxu3 %v4110_v32  ;;  %v2766_v30 = vld [vmem:[#allocation2 + $0x18] sm:$0xf] }
 0x112   : > { %2513 = vmatpush.bf16.msra.mxu1 %v4087_v39  ;;  %v1591_v54 = vsel %vm4811_vm7, %v1589_v23, %v1590_v53  ;;  %v2794_v59 = vshll.u32 %v2766_v30, 16  ;;  %v1324_v12 = vpop.f32.mrf.mxu0 }
 0x113   : > { %v2199_v11 = vpack.c.b16 %v2189_v8, %v2188_v6  ;;  %v1967_v43 = vld [vmem:[#allocation2 + $0x60] sm:$0xf]  ;;  %v2137_v29 = vsel %vm4570_vm1, %v2132_v15, %v2136_v18  ;;  %v1623_v6 = vunpack.c.l.b16 %v1591_v54  ;;  %v2158_v15 = vshll.u32 %v5065_v31, 16 }
 0x114   : > { %v2139_v33 = vshrl.u32 %v1967_v43, 16  ;;  %v2142_v39 = vshll.u32 %v1967_v43, 16  ;;  %v2191_v56 = vunpack.c.l.b16 %v2137_v29  ;;  %v2796_v53 = vrot.slane %v2794_v59, 5  ;;  %v5090_v59 = vld [vmem:[#allocation2 + $0x28] sm:$0xf] }
 0x116   : > { %2514 = vmatpush.bf16.msra.mxu1 %v4086_v26  ;;  %v2141_v60 = vrot.slane %v2139_v33, 4 }
 0x117   : > { %v5027_v49 = vpop.f32.mrf.mxu1 }
 0x119   : > { %1721 = vmatmul.bf16.gmra.mxu2 %v1629_v27  ;;  %v1630_v27 = vpack.c.b16 %v1621_v3, %v1620_v37  ;;  %v5033_v16 = vpop.f32.mrf.mxu2 }
 0x11a   : > { %2286 = vmatmul.bf16.gmra.mxu0 %v2198_v10  ;;  %v2121_v10 = vor.u32 %v2120_v2, %v2117_v63  ;;  %v2144_v63 = vrot.slane %v2142_v39, 5  ;;  %v2323_v2 = vld [vmem:[#allocation2 + $0xc] sm:$0xe]  ;;  %v5080_v39 = vld [vmem:[#allocation2 + $0x20] sm:$0x1] }
 0x11b   : > { %v3850_v3 = vrot.slane %v2323_v2, 9 }
 0x11c   : > { %v2122_v20 = vrot.slane %v2121_v10, 4  ;;  %v2791_v10 = vshrl.u32 %v2766_v30, 16  ;;  %v2145_v18 = vor.u32 %v2144_v63, %v2141_v60 }
 0x11d   : > { %1914 = vmatmul.bf16.gmra.mxu3 %v4067_v52  ;;  %v5035_v52 = vld [vmem:[#allocation2 + $0x64] sm:$0xf] }
 0x11e   : > { %v2127_v0 = vsel %vm4570_vm1, %v2122_v20, %v2126_v46  ;;  %v2148_v41 = vshll.u32 %v5035_v52, 16  ;;  %v2152_v21 = vshrl.u32 %v5035_v52, 16  ;;  %v5063_v46 = vld [vmem:[#allocation2 + $0x1c] sm:$0xf]  ;;  %v2793_v23 = vrot.slane %v2791_v10, 4 }
 0x11f   : > { %v5048_v40 = vpop.f32.mrf.mxu3  ;;  %v2190_v38 = vunpack.c.l.b16 %v2127_v0  ;;  %v2324_v10 = vld [vmem:[#allocation2 + $0x18] sm:$0xe] }
 0x120   : > { %v2150_v8 = vrot.slane %v2148_v41, 5  ;;  %v2154_v37 = vrot.slane %v2152_v21, 4  ;;  %v2146_v41 = vrot.slane %v2145_v18, 4  ;;  %v2797_v54 = vor.u32 %v2796_v53, %v2793_v23 }
 0x121   : > { %1498 = vmatmul.bf16.gmra.mxu1 %v4036_v58  ;;  %v1588_v58 = vsel %vm4811_vm7, %v3721_v28, %v1587_v13  ;;  %v2804_v13 = vshrl.u32 %v5063_v46, 16  ;;  %v2200_v14 = vpack.c.b16 %v2191_v56, %v2190_v38  ;;  %v2361_v28 = vsel %vm4811_vm7, %v2359_v9, %v2360_v48 }
 0x122   : > { %v1622_v4 = vunpack.c.l.b16 %v1588_v58  ;;  %v2155_v20 = vor.u32 %v2154_v37, %v2150_v8  ;;  %v2428_v29 = vunpack.c.l.b16 %v2361_v28  ;;  %v2160_v58 = vrot.slane %v2158_v15, 5 }
 0x123   : > { %v2806_v33 = vrot.slane %v2804_v13, 4  ;;  %v2810_v48 = vshll.u32 %v5080_v39, 16  ;;  %v2151_v56 = vsel %vm4570_vm1, %v2146_v41, %v2150_v8  ;;  %v2798_v2 = vrot.slane %v2797_v54, 4  ;;  %v4094_v41 = vld [vmem:[#allocation2 + $0x18] sm:$0xff] }
 0x124   : > { %v1631_v1 = vpack.c.b16 %v1623_v6, %v1622_v4  ;;  %v2156_v21 = vrot.slane %v2155_v20, 4  ;;  %v2769_v4 = vld [vmem:[#allocation2 + $0x24] sm:$0xf]  ;;  %v2364_v9 = vrot.slane %v4855_v5, 5  ;;  %v3851_v18 = vrot.slane %v2324_v10, 9 }
 0x125   : > { %v2815_v8 = vshrl.u32 %v2769_v4, 16  ;;  %v2367_v15 = vrot.slane %v4870_v34, 5  ;;  %v2828_v28 = vshrl.u32 %v5090_v59, 16  ;;  %v3177_v23 = vrot.slane %v5063_v46, 5 }
 0x126   : > { %v2161_v60 = vsel %vm4570_vm1, %v2156_v21, %v2160_v58  ;;  %v2366_v20 = vrot.slane %v2364_v9, 4 }
 0x127   : > { %v5078_v32 = vpop.f32.mrf.mxu3  ;;  %v2193_v13 = vunpack.c.l.b16 %v2161_v60  ;;  %v3179_v60 = vrot.slane %v3177_v23, 4 }
 0x128   : > { %v2368_v54 = vsel %vm4811_vm7, %v2366_v20, %v2367_v15 }
 0x129   : > { %1726 = vmatmul.bf16.gmra.mxu2 %v1630_v27  ;;  %v2800_v27 = vshll.u32 %v5063_v46, 16  ;;  %v2830_v46 = vrot.slane %v2828_v28, 4 }
 0x12a   : > { %2291 = vmatmul.bf16.gmra.mxu0 %v2199_v11  ;;  %v5067_v11 = vpop.f32.mrf.mxu2 }
 0x12b   : > { %v2802_v26 = vrot.slane %v2800_v27, 5  ;;  %v2192_v27 = vunpack.c.l.b16 %v2151_v56 }
 0x12d   : > { %1919 = vmatmul.bf16.gmra.mxu3 %v4068_v44  ;;  %v2358_v44 = vsel %vm4811_vm7, %v3850_v3, %v2357_v50  ;;  %v2807_v22 = vor.u32 %v2806_v33, %v2802_v26  ;;  %v1326_v50 = vpop.f32.mrf.mxu0  ;;  %v2812_v3 = vrot.slane %v2810_v48, 5  ;;  %v2201_v53 = vpack.c.b16 %v2193_v13, %v2192_v27 }
 0x12e   : > { %v5052_v45 = vpop.f32.mrf.mxu1  ;;  %v2427_v0 = vunpack.c.l.b16 %v2358_v44  ;;  %v2824_v44 = vshll.u32 %v5090_v59, 16 }
 0x12f   : > { %v2808_v37 = vrot.slane %v2807_v22, 4 }
 0x130   : > { %v2443_v38 = vpack.c.b16 %v2428_v29, %v2427_v0  ;;  %v3143_v0 = vld [vmem:[#allocation2 + $0x18] sm:$0xe]  ;;  %v2817_v29 = vrot.slane %v2815_v8, 4 }
 0x131   : > { %1503 = vmatmul.bf16.gmra.mxu1 %v4037_v57  ;;  %v4069_v57 = vld [vmem:[#allocation2 + $0x60] sm:$0xff]  ;;  %v2813_v5 = vsel %vm4570_vm1, %v2808_v37, %v2812_v3  ;;  %v3986_v56 = vrot.slane %v3143_v0, 9  ;;  %v2430_v3 = vunpack.c.l.b16 %v2368_v54  ;;  %v2371_v0 = vrot.slane %v4875_v7, 5 }
 0x132   : > { %v2999_v21 = vunpack.c.l.b16 %v2813_v5 }
 0x136   : > { %v5072_v43 = vpop.f32.mrf.mxu1 }
 0x139   : > { %1731 = vmatmul.bf16.gmra.mxu2 %v1631_v1  ;;  %v2818_v1 = vshll.u32 %v2769_v4, 16  ;;  %v3180_v4 = vrot.slane %v5080_v39, 5 }
 0x13a   : > { %2296 = vmatmul.bf16.gmra.mxu0 %v2200_v14 }
 0x13b   : > { %v3181_v8 = vsel %vm4811_vm7, %v3179_v60, %v3180_v4 }
 0x13c   : > { %v5083_v30 = vpop.f32.mrf.mxu2 }
 0x13d   : > { %1924 = vmatmul.bf16.gmra.mxu3 %v4069_v57  ;;  %v2820_v57 = vrot.slane %v2818_v1, 5 }
 0x13e   : > { %v1469_v63 = vpop.f32.mrf.mxu1 }
 0x13f   : > { %v1470_v6 = vadd.f32 %v1469_v63, %v1324_v12  ;;  %v2803_v12 = vsel %vm4570_vm1, %v2798_v2, %v2802_v26  ;;  %v2365_v26 = vsel %vm4811_vm7, %v3851_v18, %v2364_v9  ;;  %v5108_v63 = vld [vmem:[#allocation2 + $0x2c] sm:$0x1]  ;;  %v2821_v10 = vor.u32 %v2820_v57, %v2817_v29 }
 0x140   : > { %v5092_v14 = vpop.f32.mrf.mxu3  ;;  %v2998_v34 = vunpack.c.l.b16 %v2803_v12  ;;  %v2429_v37 = vunpack.c.l.b16 %v2365_v26  ;;  %v2834_v13 = vshll.u32 %v5108_v63, 16  ;;  %v2772_v12 = vld [vmem:[#allocation2 + $0x30] sm:$0xf]  ;;  %v3248_v57 = vunpack.c.l.b16 %v3181_v8  ;;  %v3144_v8 = vld [vmem:[#allocation2 + $0x24] sm:$0xe] }
 0x141   : > { %2515 = vmatmul.bf16.vlgmr.msra.gmra.mxu1 %v2443_v38  ;;  %v2826_v38 = vrot.slane %v2824_v44, 5  ;;  %v2822_v20 = vrot.slane %v2821_v10, 4  ;;  %v3184_v10 = vrot.slane %v5090_v59, 5 }
 0x142   : > { %v3014_v9 = vpack.c.b16 %v2999_v21, %v2998_v34  ;;  %v2444_v18 = vpack.c.b16 %v2430_v3, %v2429_v37 }
 0x143   : > { %v2831_v27 = vor.u32 %v2830_v46, %v2826_v38  ;;  %v2827_v21 = vsel %vm4570_vm1, %v2822_v20, %v2826_v38  ;;  %v2373_v46 = vrot.slane %v2371_v0, 4 }
 0x144   : > { %v5102_v33 = vpop.f32.mrf.mxu2  ;;  %v3000_v3 = vunpack.c.l.b16 %v2827_v21  ;;  %v3186_v21 = vrot.slane %v3184_v10, 4 }
 0x145   : > { %v2832_v28 = vrot.slane %v2831_v27, 4 }
 0x146   : > { %v1471_v58 = vpop.f32.mrf.mxu1 }
 0x147   : > { %v1329_v22 = vpop.f32.mrf.mxu0  ;;  %v1472_v48 = vadd.f32 %v1471_v58, %v1326_v50  ;;  %v3178_v50 = vsel %vm4811_vm7, %v3986_v56, %v3177_v23  ;;  %v5119_v23 = vld [vmem:[#allocation2 + $0x34] sm:$0xf]  ;;  %v2839_v58 = vshrl.u32 %v2772_v12, 16 }
 0x148   : > { %v5110_v2 = vpop.f32.mrf.mxu3  ;;  %v3247_v29 = vunpack.c.l.b16 %v3178_v50  ;;  %v2848_v56 = vshll.u32 %v5119_v23, 16  ;;  %v2852_v60 = vshrl.u32 %v5119_v23, 16 }
 0x149   : > { %2709 = vmatmul.bf16.vlgmr.msra.gmra.mxu2 %v4094_v41  ;;  %v2325_v41 = vld [vmem:[#allocation2 + $0x24] sm:$0xe]  ;;  %v2841_v38 = vrot.slane %v2839_v58, 4  ;;  %v3187_v58 = vrot.slane %v5108_v63, 5  ;;  %v2378_v63 = vrot.slane %v4917_v51, 5 }
 0x14a   : > { %2301 = vmatmul.bf16.gmra.mxu0 %v2201_v53  ;;  %v2836_v53 = vrot.slane %v2834_v13, 5  ;;  %v3852_v54 = vrot.slane %v2325_v41, 9  ;;  %v3263_v4 = vpack.c.b16 %v3248_v57, %v3247_v29  ;;  %v4095_v13 = vld [vmem:[#allocation2 + $0x24] sm:$0xff] }
 0x14c   : > { %v1697_v1 = vpop.f32.mrf.mxu2  ;;  %v2837_v7 = vsel %vm4570_vm1, %v2832_v28, %v2836_v53  ;;  %v5133_v28 = vld [vmem:[#allocation2 + $0x38] sm:$0x1] }
 0x14d   : > { %3086 = vmatmul.bf16.vlgmr.msra.gmra.mxu3 %v3014_v9  ;;  %v1737_v39 = vadd.f32 %v1697_v1, %v1470_v6  ;;  %v2842_v6 = vshll.u32 %v2772_v12, 16  ;;  %v3001_v50 = vunpack.c.l.b16 %v2837_v7  ;;  %v2854_v12 = vrot.slane %v2852_v60, 4 }
 0x14e   : > { %v1474_v15 = vpop.f32.mrf.mxu1  ;;  %v3188_v7 = vsel %vm4811_vm7, %v3186_v21, %v3187_v58 }
 0x14f   : > { %v1331_v5 = vpop.f32.mrf.mxu0  ;;  %v1475_v44 = vadd.f32 %v1474_v15, %v1329_v22  ;;  %v2374_v22 = vrot.slane %v4905_v36, 5  ;;  %v2844_v9 = vrot.slane %v2842_v6, 5  ;;  %v2372_v36 = vsel %vm4811_vm7, %v3852_v54, %v2371_v0 }
 0x150   : > { %v1890_v34 = vpop.f32.mrf.mxu3  ;;  %v2850_v15 = vrot.slane %v2848_v56, 5  ;;  %v2431_v29 = vunpack.c.l.b16 %v2372_v36  ;;  %v3015_v0 = vpack.c.b16 %v3001_v50, %v3000_v3  ;;  %v3250_v50 = vunpack.c.l.b16 %v3188_v7 }
 0x151   : > { %2520 = vmatmul.bf16.gmra.mxu1 %v2444_v18  ;;  %v1930_v26 = vadd.f32 %v1890_v34, %v1737_v39  ;;  %v2375_v18 = vsel %vm4811_vm7, %v2373_v46, %v2374_v22  ;;  %v2845_v41 = vor.u32 %v2844_v9, %v2841_v38 }
 0x152   : > { %v2432_v57 = vunpack.c.l.b16 %v2375_v18  ;;  %v2855_v6 = vor.u32 %v2854_v12, %v2850_v15  ;;  %v2380_v12 = vrot.slane %v2378_v63, 4 }
 0x153   : > { %v2846_v22 = vrot.slane %v2845_v41, 4 }
 0x154   : > { %v1699_v37 = vpop.f32.mrf.mxu2  ;;  %v2445_v46 = vpack.c.b16 %v2432_v57, %v2431_v29  ;;  %v2856_v3 = vrot.slane %v2855_v6, 4  ;;  %v3191_v57 = vrot.slane %v5119_v23, 5 }
 0x155   : > { %v1738_v27 = vadd.f32 %v1699_v37, %v1472_v48  ;;  %v3987_v48 = vrot.slane %v3144_v8, 9 }
 0x156   : > { %v1476_v1 = vpop.f32.mrf.mxu1 }
 0x157   : > { %v2267_v20 = vpop.f32.mrf.mxu0  ;;  %v1477_v39 = vadd.f32 %v1476_v1, %v1331_v5  ;;  %v2858_v5 = vshll.u32 %v5133_v28, 16  ;;  %v3185_v54 = vsel %vm4811_vm7, %v3987_v48, %v3184_v10  ;;  %v2851_v1 = vsel %vm4570_vm1, %v2846_v22, %v2850_v15  ;;  %v3145_v15 = vld [vmem:[#allocation2 + $0x30] sm:$0xe] }
 0x158   : > { %v5135_v59 = vadd.f32 %v2267_v20, %v1930_v26  ;;  %v1892_v53 = vpop.f32.mrf.mxu3  ;;  %v3249_v9 = vunpack.c.l.b16 %v3185_v54 }
 0x159   : > { %v1931_v34 = vadd.f32 %v1892_v53, %v1738_v27  ;;  %2714 = vmatmul.bf16.gmra.mxu2 %v4095_v13  ;;  %v2860_v38 = vrot.slane %v2858_v5, 5  ;;  %v2326_v27 = vld [vmem:[#allocation2 + $0x30] sm:$0xe]  ;;  %v5144_v13 = vld [vmem:[#allocation2 + $0x40] sm:$0xf]  ;;  %v2381_v53 = vrot.slane %v4928_v42, 5 }
 0x15a   : > { %3335 = vmatmul.bf16.vlgmr.msra.gmra.mxu0 %v3263_v4  ;;  %v2775_v4 = vld [vmem:[#allocation2 + $0x3c] sm:$0xf]  ;;  %v3853_v20 = vrot.slane %v2326_v27, 9  ;;  %v2872_v48 = vshll.u32 %v5144_v13, 16  ;;  %v2876_v29 = vshrl.u32 %v5144_v13, 16  ;;  %v3264_v41 = vpack.c.b16 %v3250_v50, %v3249_v9  ;;  %v4096_v5 = vld [vmem:[#allocation2 + $0x30] sm:$0xff] }
 0x15b   : > { %v2866_v36 = vshll.u32 %v2775_v4, 16  ;;  %v2861_v51 = vsel %vm4570_vm1, %v2856_v3, %v2860_v38  ;;  %v5161_v3 = vld [vmem:[#allocation2 + $0x44] sm:$0x1]  ;;  %v3194_v9 = vrot.slane %v5133_v28, 5 }
 0x15c   : > { %v1702_v26 = vpop.f32.mrf.mxu2  ;;  %v3003_v54 = vunpack.c.l.b16 %v2861_v51  ;;  %v2379_v42 = vsel %vm4811_vm7, %v3853_v20, %v2378_v63  ;;  %v2874_v23 = vrot.slane %v2872_v48, 5 }
 0x15d   : > { %3091 = vmatmul.bf16.gmra.mxu3 %v3015_v0  ;;  %v1739_v56 = vadd.f32 %v1702_v26, %v1475_v44  ;;  %v2863_v44 = vshrl.u32 %v2775_v4, 16  ;;  %v3002_v0 = vunpack.c.l.b16 %v2851_v1  ;;  %v2868_v58 = vrot.slane %v2866_v36, 5 }
 0x15e   : > { %v1479_v60 = vpop.f32.mrf.mxu1  ;;  %v3988_v4 = vrot.slane %v3145_v15, 9  ;;  %v2433_v27 = vunpack.c.l.b16 %v2379_v42 }
 0x15f   : > { %v2269_v37 = vpop.f32.mrf.mxu0  ;;  %v2865_v21 = vrot.slane %v2863_v44, 4  ;;  %v3016_v1 = vpack.c.b16 %v3003_v54, %v3002_v0  ;;  %v1480_v36 = vadd.f32 %v1479_v60, %v5003_v19  ;;  %v2385_v19 = vrot.slane %v4932_v17, 5 }
 0x160   : > { %v5146_v10 = vadd.f32 %v2269_v37, %v1931_v34  ;;  %v1895_v8 = vpop.f32.mrf.mxu3  ;;  %v3193_v37 = vrot.slane %v3191_v57, 4  ;;  %v3192_v20 = vsel %vm4811_vm7, %v3988_v4, %v3191_v57  ;;  %v2327_v57 = vld [vmem:[#allocation2 + $0x3c] sm:$0xe] }
 0x161   : > { %2525 = vmatmul.bf16.gmra.mxu1 %v2445_v46  ;;  %v1932_v18 = vadd.f32 %v1895_v8, %v1739_v56  ;;  %v2382_v46 = vsel %vm4811_vm7, %v2380_v12, %v2381_v53  ;;  %v2878_v56 = vrot.slane %v2876_v29, 4  ;;  %v2869_v63 = vor.u32 %v2868_v58, %v2865_v21  ;;  %v2778_v29 = vld [vmem:[#allocation2 + $0x48] sm:$0xf]  ;;  %v5174_v58 = vld [vmem:[#allocation2 + $0x4c] sm:$0xf] }
 0x162   : > { %v2434_v50 = vunpack.c.l.b16 %v2382_v46  ;;  %v3251_v60 = vunpack.c.l.b16 %v3192_v20  ;;  %v2890_v42 = vshll.u32 %v2778_v29, 16  ;;  %v2896_v4 = vshll.u32 %v5174_v58, 16 }
 0x163   : > { %v2879_v44 = vor.u32 %v2878_v56, %v2874_v23  ;;  %v2870_v53 = vrot.slane %v2869_v63, 4  ;;  %v2388_v56 = vrot.slane %v4957_v55, 5 }
 0x164   : > { %v1704_v34 = vpop.f32.mrf.mxu2  ;;  %v2446_v28 = vpack.c.b16 %v2434_v50, %v2433_v27  ;;  %v3198_v50 = vrot.slane %v5144_v13, 5  ;;  %v2892_v63 = vrot.slane %v2890_v42, 5 }
 0x165   : > { %v1740_v6 = vadd.f32 %v1704_v34, %v1477_v39  ;;  %v2880_v0 = vrot.slane %v2879_v44, 4  ;;  %v2875_v54 = vsel %vm4570_vm1, %v2870_v53, %v2874_v23 }
 0x166   : > { %v1481_v26 = vpop.f32.mrf.mxu1  ;;  %v3004_v27 = vunpack.c.l.b16 %v2875_v54 }
 0x167   : > { %v2272_v22 = vpop.f32.mrf.mxu0  ;;  %v1482_v7 = vadd.f32 %v1481_v26, %v5027_v49  ;;  %v2882_v49 = vshll.u32 %v5161_v3, 16  ;;  %v2887_v26 = vshrl.u32 %v2778_v29, 16 }
 0x168   : > { %v5163_v38 = vadd.f32 %v2272_v22, %v1932_v18  ;;  %v1897_v39 = vpop.f32.mrf.mxu3  ;;  %v3195_v18 = vsel %vm4811_vm7, %v3193_v37, %v3194_v9  ;;  %v2387_v22 = vrot.slane %v2385_v19, 4  ;;  %v2900_v37 = vshrl.u32 %v5174_v58, 16 }
 0x169   : > { %v1933_v8 = vadd.f32 %v1897_v39, %v1740_v6  ;;  %2719 = vmatmul.bf16.gmra.mxu2 %v4096_v5  ;;  %v2884_v15 = vrot.slane %v2882_v49, 5  ;;  %v3252_v21 = vunpack.c.l.b16 %v3195_v18  ;;  %v2889_v23 = vrot.slane %v2887_v26, 4  ;;  %v3146_v49 = vld [vmem:[#allocation2 + $0x3c] sm:$0xe] }
 0x16a   : > { %3340 = vmatmul.bf16.gmra.mxu0 %v3264_v41  ;;  %v2389_v20 = vsel %vm4811_vm7, %v2387_v22, %v2388_v56  ;;  %v2902_v53 = vrot.slane %v2900_v37, 4  ;;  %v2781_v56 = vld [vmem:[#allocation2 + $0x54] sm:$0xf] }
 0x16b   : > { %v2885_v17 = vsel %vm4570_vm1, %v2880_v0, %v2884_v15  ;;  %v3265_v39 = vpack.c.b16 %v3252_v21, %v3251_v60  ;;  %v2893_v0 = vor.u32 %v2892_v63, %v2889_v23  ;;  %v3200_v60 = vrot.slane %v3198_v50, 4 }
 0x16c   : > { %v1707_v12 = vpop.f32.mrf.mxu2  ;;  %v3005_v44 = vunpack.c.l.b16 %v2885_v17  ;;  %v3201_v21 = vrot.slane %v5161_v3, 5  ;;  %v2392_v3 = vrot.slane %v4968_v24, 5 }
 0x16d   : > { %3096 = vmatmul.bf16.gmra.mxu3 %v3016_v1  ;;  %v1741_v51 = vadd.f32 %v1707_v12, %v1480_v36  ;;  %v4097_v1 = vld [vmem:[#allocation2 + $0x3c] sm:$0xff]  ;;  %v2894_v42 = vrot.slane %v2893_v0, 4 }
 0x16e   : > { %v1484_v48 = vpop.f32.mrf.mxu1 }
 0x16f   : > { %v2274_v41 = vpop.f32.mrf.mxu0  ;;  %v1485_v34 = vadd.f32 %v1484_v48, %v5052_v45  ;;  %v3854_v45 = vrot.slane %v2327_v57, 9  ;;  %v3989_v48 = vrot.slane %v3146_v49, 9 }
 0x170   : > { %v5176_v6 = vadd.f32 %v2274_v41, %v1933_v8  ;;  %v1900_v5 = vpop.f32.mrf.mxu3  ;;  %v2436_v41 = vunpack.c.l.b16 %v2389_v20 }
 0x171   : > { %2530 = vmatmul.bf16.gmra.mxu1 %v2446_v28  ;;  %v1934_v46 = vadd.f32 %v1900_v5, %v1741_v51  ;;  %v2386_v55 = vsel %vm4811_vm7, %v3854_v45, %v2385_v19  ;;  %v2898_v28 = vrot.slane %v2896_v4, 5  ;;  %v5191_v51 = vld [vmem:[#allocation2 + $0x50] sm:$0x1]  ;;  %v3017_v19 = vpack.c.b16 %v3005_v44, %v3004_v27  ;;  %v5202_v27 = vld [vmem:[#allocation2 + $0x58] sm:$0xf] }
 0x172   : > { %v2435_v29 = vunpack.c.l.b16 %v2386_v55  ;;  %v3199_v5 = vsel %vm4811_vm7, %v3989_v48, %v3198_v50  ;;  %v2395_v55 = vrot.slane %v4992_v62, 5  ;;  %v2920_v20 = vshll.u32 %v5202_v27, 16 }
 0x173   : > { %v2903_v57 = vor.u32 %v2902_v53, %v2898_v28  ;;  %v3205_v53 = vrot.slane %v5174_v58, 5 }
 0x174   : > { %v1709_v9 = vpop.f32.mrf.mxu2  ;;  %v2447_v26 = vpack.c.b16 %v2436_v41, %v2435_v29 }
 0x175   : > { %v1742_v8 = vadd.f32 %v1709_v9, %v1482_v7  ;;  %v2904_v4 = vrot.slane %v2903_v57, 4  ;;  %v2328_v9 = vld [vmem:[#allocation2 + $0x48] sm:$0xe] }
 0x176   : > { %v1486_v36 = vpop.f32.mrf.mxu1  ;;  %v3855_v49 = vrot.slane %v2328_v9, 9 }
 0x177   : > { %v2277_v18 = vpop.f32.mrf.mxu0  ;;  %v1487_v12 = vadd.f32 %v1486_v36, %v5072_v43  ;;  %v2906_v43 = vshll.u32 %v5191_v51, 16  ;;  %v2394_v36 = vrot.slane %v2392_v3, 4 }
 0x178   : > { %v5193_v13 = vadd.f32 %v2277_v18, %v1934_v46  ;;  %v1902_v7 = vpop.f32.mrf.mxu3  ;;  %v3202_v46 = vsel %vm4811_vm7, %v3200_v60, %v3201_v21  ;;  %v2924_v18 = vshrl.u32 %v5202_v27, 16  ;;  %v2393_v62 = vsel %vm4811_vm7, %v3855_v49, %v2392_v3 }
 0x179   : > { %v1935_v15 = vadd.f32 %v1902_v7, %v1742_v8  ;;  %2724 = vmatmul.bf16.gmra.mxu2 %v4097_v1  ;;  %v2908_v37 = vrot.slane %v2906_v43, 5  ;;  %v3254_v23 = vunpack.c.l.b16 %v3202_v46  ;;  %v2899_v8 = vsel %vm4570_vm1, %v2894_v42, %v2898_v28  ;;  %v3147_v28 = vld [vmem:[#allocation2 + $0x48] sm:$0xe]  ;;  %v5218_v42 = vld [vmem:[#allocation2 + $0x5c] sm:$0x1] }
 0x17a   : > { %3345 = vmatmul.bf16.gmra.mxu0 %v3265_v39  ;;  %v3253_v39 = vunpack.c.l.b16 %v3199_v5  ;;  %v2914_v1 = vshll.u32 %v2781_v56, 16  ;;  %v3006_v29 = vunpack.c.l.b16 %v2899_v8  ;;  %v2396_v57 = vsel %vm4811_vm7, %v2394_v36, %v2395_v55  ;;  %v5229_v55 = vld [vmem:[#allocation2 + $0x64] sm:$0xf] }
 0x17b   : > { %v2909_v24 = vsel %vm4570_vm1, %v2904_v4, %v2908_v37  ;;  %v2922_v5 = vrot.slane %v2920_v20, 5  ;;  %v3990_v58 = vrot.slane %v3147_v28, 9  ;;  %v2930_v9 = vshll.u32 %v5218_v42, 16 }
 0x17c   : > { %v1712_v54 = vpop.f32.mrf.mxu2  ;;  %v3266_v7 = vpack.c.b16 %v3254_v23, %v3253_v39  ;;  %v2916_v0 = vrot.slane %v2914_v1, 5  ;;  %v3007_v60 = vunpack.c.l.b16 %v2909_v24 }
 0x17d   : > { %3101 = vmatmul.bf16.gmra.mxu3 %v3017_v19  ;;  %v1743_v45 = vadd.f32 %v1712_v54, %v1485_v34  ;;  %v2911_v34 = vshrl.u32 %v2781_v56, 16  ;;  %v4098_v19 = vld [vmem:[#allocation2 + $0x48] sm:$0xff]  ;;  %v2926_v54 = vrot.slane %v2924_v18, 4  ;;  %v2437_v56 = vunpack.c.l.b16 %v2393_v62 }
 0x17e   : > { %v1489_v22 = vpop.f32.mrf.mxu1  ;;  %v3018_v3 = vpack.c.b16 %v3007_v60, %v3006_v29 }
 0x17f   : > { %v2279_v17 = vpop.f32.mrf.mxu0  ;;  %v2913_v41 = vrot.slane %v2911_v34, 4  ;;  %v2927_v39 = vor.u32 %v2926_v54, %v2922_v5  ;;  %v1490_v23 = vadd.f32 %v1489_v22, %v5033_v16  ;;  %v2399_v16 = vrot.slane %v5001_v35, 5 }
 0x180   : > { %v5204_v50 = vadd.f32 %v2279_v17, %v1935_v15  ;;  %v1905_v63 = vpop.f32.mrf.mxu3  ;;  %v2438_v17 = vunpack.c.l.b16 %v2396_v57  ;;  %v2402_v35 = vrot.slane %v5024_v61, 5 }
 0x181   : > { %2535 = vmatmul.bf16.gmra.mxu1 %v2447_v26  ;;  %v1936_v44 = vadd.f32 %v1905_v63, %v1743_v45  ;;  %v3207_v26 = vrot.slane %v3205_v53, 4  ;;  %v2917_v4 = vor.u32 %v2916_v0, %v2913_v41  ;;  %v3206_v63 = vsel %vm4811_vm7, %v3990_v58, %v3205_v53  ;;  %v2329_v53 = vld [vmem:[#allocation2 + $0x54] sm:$0xe] }
 0x182   : > { %v3255_v20 = vunpack.c.l.b16 %v3206_v63  ;;  %v2928_v18 = vrot.slane %v2927_v39, 4  ;;  %v3856_v62 = vrot.slane %v2329_v53, 9  ;;  %v2401_v57 = vrot.slane %v2399_v16, 4  ;;  %v4099_v39 = vld [vmem:[#allocation2 + $0x54] sm:$0xff] }
 0x183   : > { %v2918_v1 = vrot.slane %v2917_v4, 4 }
 0x184   : > { %v1714_v48 = vpop.f32.mrf.mxu2  ;;  %v2400_v61 = vsel %vm4811_vm7, %v3856_v62, %v2399_v16  ;;  %v2403_v63 = vsel %vm4811_vm7, %v2401_v57, %v2402_v35  ;;  %v3215_v16 = vrot.slane %v5218_v42, 5  ;;  %v2406_v35 = vrot.slane %v5035_v52, 5  ;;  %v2330_v42 = vld [vmem:[#allocation2 + $0x60] sm:$0xe] }
 0x185   : > { %v1744_v15 = vadd.f32 %v1714_v48, %v1487_v12  ;;  %v3208_v12 = vrot.slane %v5191_v51, 5  ;;  %v2448_v51 = vpack.c.b16 %v2438_v17, %v2437_v56  ;;  %v2923_v0 = vsel %vm4570_vm1, %v2918_v1, %v2922_v5  ;;  %v3148_v5 = vld [vmem:[#allocation2 + $0x54] sm:$0xe] }
 0x186   : > { %v1491_v21 = vpop.f32.mrf.mxu1  ;;  %v3008_v56 = vunpack.c.l.b16 %v2923_v0  ;;  %v3212_v17 = vrot.slane %v5202_v27, 5  ;;  %v2439_v1 = vunpack.c.l.b16 %v2400_v61  ;;  %v2409_v52 = vrot.slane %v5065_v31, 5 }
 0x187   : > { %v2282_v43 = vpop.f32.mrf.mxu0  ;;  %v3209_v8 = vsel %vm4811_vm7, %v3207_v26, %v3208_v12  ;;  %v1492_v58 = vadd.f32 %v1491_v21, %v5067_v11  ;;  %v5247_v11 = vld [vmem:[#allocation2 + $0x68] sm:$0x1] }
 0x188   : > { %v5220_v46 = vadd.f32 %v2282_v43, %v1936_v44  ;;  %v1907_v45 = vpop.f32.mrf.mxu3  ;;  %v2784_v44 = vld [vmem:[#allocation2 + $0x60] sm:$0xf]  ;;  %v3256_v22 = vunpack.c.l.b16 %v3209_v8  ;;  %v3991_v8 = vrot.slane %v3148_v5, 9  ;;  %v3857_v5 = vrot.slane %v2330_v42, 9 }
 0x189   : > { %v1937_v37 = vadd.f32 %v1907_v45, %v1744_v15  ;;  %2729 = vmatmul.bf16.gmra.mxu2 %v4098_v19  ;;  %v2935_v48 = vshrl.u32 %v2784_v44, 16  ;;  %v2938_v29 = vshll.u32 %v2784_v44, 16  ;;  %v2944_v15 = vshll.u32 %v5229_v55, 16 }
 0x18a   : > { %3350 = vmatmul.bf16.gmra.mxu0 %v3266_v7  ;;  %v2932_v7 = vrot.slane %v2930_v9, 5  ;;  %v2948_v19 = vshrl.u32 %v5229_v55, 16  ;;  %v3267_v54 = vpack.c.b16 %v3256_v22, %v3255_v20  ;;  %v2440_v44 = vunpack.c.l.b16 %v2403_v63 }
 0x18b   : > { %v2937_v26 = vrot.slane %v2935_v48, 4  ;;  %v2940_v45 = vrot.slane %v2938_v29, 5  ;;  %v2946_v4 = vrot.slane %v2944_v15, 5  ;;  %v3213_v15 = vsel %vm4811_vm7, %v3991_v8, %v3212_v17 }
 0x18c   : > { %v1717_v34 = vpop.f32.mrf.mxu2  ;;  %v2933_v43 = vsel %vm4570_vm1, %v2928_v18, %v2932_v7  ;;  %v3214_v7 = vrot.slane %v3212_v17, 4  ;;  %v2449_v48 = vpack.c.b16 %v2440_v44, %v2439_v1  ;;  %v2408_v17 = vrot.slane %v2406_v35, 4 }
 0x18d   : > { %3106 = vmatmul.bf16.gmra.mxu3 %v3018_v3  ;;  %v1745_v49 = vadd.f32 %v1717_v34, %v1490_v23  ;;  %v3009_v9 = vunpack.c.l.b16 %v2933_v43  ;;  %v2941_v34 = vor.u32 %v2940_v45, %v2937_v26  ;;  %v2787_v43 = vld [vmem:[#allocation2 + $0x6c] sm:$0xf]  ;;  %v2407_v31 = vsel %vm4811_vm7, %v3857_v5, %v2406_v35 }
 0x18e   : > { %v1494_v36 = vpop.f32.mrf.mxu1 }
 0x18f   : > { %v2284_v24 = vpop.f32.mrf.mxu0  ;;  %v3019_v18 = vpack.c.b16 %v3009_v9, %v3008_v56  ;;  %v1495_v22 = vadd.f32 %v1494_v36, %v5083_v30  ;;  %v2942_v29 = vrot.slane %v2941_v34, 4  ;;  %v5259_v30 = vld [vmem:[#allocation2 + $0x70] sm:$0xf] }
 0x190   : > { %v5232_v28 = vadd.f32 %v2284_v24, %v1937_v37  ;;  %v1910_v41 = vpop.f32.mrf.mxu3  ;;  %v2950_v37 = vrot.slane %v2948_v19, 4  ;;  %v2954_v24 = vshll.u32 %v5247_v11, 16  ;;  %v3216_v19 = vsel %vm4811_vm7, %v3214_v7, %v3215_v16  ;;  %v5276_v16 = vld [vmem:[#allocation2 + $0x74] sm:$0x1] }
 0x191   : > { %2540 = vmatmul.bf16.gmra.mxu1 %v2448_v51  ;;  %v1938_v60 = vadd.f32 %v1910_v41, %v1745_v49  ;;  %v2947_v45 = vsel %vm4570_vm1, %v2942_v29, %v2946_v4  ;;  %v2972_v9 = vshrl.u32 %v5259_v30, 16  ;;  %v2978_v35 = vshll.u32 %v5276_v16, 16 }
 0x192   : > { %v2951_v49 = vor.u32 %v2950_v37, %v2946_v4  ;;  %v2956_v0 = vrot.slane %v2954_v24, 5  ;;  %v2959_v37 = vshrl.u32 %v2787_v43, 16  ;;  %v3010_v8 = vunpack.c.l.b16 %v2947_v45 }
 0x193   : > { %v3219_v4 = vrot.slane %v5229_v55, 5 }
 0x194   : > { %v1719_v12 = vpop.f32.mrf.mxu2  ;;  %v2952_v41 = vrot.slane %v2951_v49, 4  ;;  %v2410_v49 = vsel %vm4811_vm7, %v2408_v17, %v2409_v52  ;;  %v2980_v17 = vrot.slane %v2978_v35, 5 }
 0x195   : > { %v1746_v3 = vadd.f32 %v1719_v12, %v1492_v58  ;;  %v3258_v58 = vunpack.c.l.b16 %v3216_v19  ;;  %v3222_v19 = vrot.slane %v5247_v11, 5 }
 0x196   : > { %v1496_v23 = vpop.f32.mrf.mxu1  ;;  %v2957_v12 = vsel %vm4570_vm1, %v2952_v41, %v2956_v0 }
 0x197   : > { %v2287_v21 = vpop.f32.mrf.mxu0  ;;  %v1497_v61 = vadd.f32 %v1496_v23, %v5102_v33  ;;  %v3011_v1 = vunpack.c.l.b16 %v2957_v12  ;;  %v2974_v23 = vrot.slane %v2972_v9, 4 }
 0x198   : > { %v5249_v51 = vadd.f32 %v2287_v21, %v1938_v60  ;;  %v1912_v27 = vpop.f32.mrf.mxu3 }
 0x199   : > { %v1939_v20 = vadd.f32 %v1912_v27, %v1746_v3  ;;  %2734 = vmatmul.bf16.gmra.mxu2 %v4099_v39  ;;  %v2962_v3 = vshll.u32 %v2787_v43, 16  ;;  %v2968_v39 = vshll.u32 %v5259_v30, 16  ;;  %v4100_v27 = vld [vmem:[#allocation2 + $0x60] sm:$0xff]  ;;  %v3020_v41 = vpack.c.b16 %v3011_v1, %v3010_v8 }
 0x19a   : > { %3355 = vmatmul.bf16.gmra.mxu0 %v3267_v54  ;;  %v3257_v54 = vunpack.c.l.b16 %v3213_v15  ;;  %v3221_v15 = vrot.slane %v3219_v4, 4 }
 0x19b   : > { %v2964_v7 = vrot.slane %v2962_v3, 5  ;;  %v2970_v33 = vrot.slane %v2968_v39, 5 }
 0x19c   : > { %v1722_v53 = vpop.f32.mrf.mxu2  ;;  %v3268_v63 = vpack.c.b16 %v3258_v58, %v3257_v54 }
 0x19d   : > { %3111 = vmatmul.bf16.gmra.mxu3 %v3019_v18  ;;  %v1747_v60 = vadd.f32 %v1722_v53, %v1495_v22  ;;  %v2961_v18 = vrot.slane %v2959_v37, 4  ;;  %v2441_v53 = vunpack.c.l.b16 %v2407_v31 }
 0x19e   : > { %v1499_v62 = vpop.f32.mrf.mxu1 }
 0x19f   : > { %v2289_v57 = vpop.f32.mrf.mxu0  ;;  %v1500_v42 = vadd.f32 %v1499_v62, %v5048_v40 }
 0x1a0   : > { %v5261_v36 = vadd.f32 %v2289_v57, %v1939_v20  ;;  %v1915_v26 = vpop.f32.mrf.mxu3  ;;  %v3149_v20 = vld [vmem:[#allocation2 + $0x60] sm:$0xe]  ;;  %v2975_v57 = vor.u32 %v2974_v23, %v2970_v33 }
 0x1a1   : > { %2545 = vmatmul.bf16.gmra.mxu1 %v2449_v48  ;;  %v1940_v56 = vadd.f32 %v1915_v26, %v1747_v60  ;;  %v2442_v48 = vunpack.c.l.b16 %v2410_v49  ;;  %v3992_v0 = vrot.slane %v3149_v20, 9  ;;  %v2965_v60 = vor.u32 %v2964_v7, %v2961_v18 }
 0x1a2   : > { %v2976_v11 = vrot.slane %v2975_v57, 4  ;;  %v3226_v49 = vrot.slane %v5259_v30, 5 }
 0x1a3   : > { %v2450_v54 = vpack.c.b16 %v2442_v48, %v2441_v53  ;;  %v3220_v58 = vsel %vm4811_vm7, %v3992_v0, %v3219_v4  ;;  %v2966_v5 = vrot.slane %v2965_v60, 4  ;;  %v4101_v4 = vld [vmem:[#allocation2 + $0x6c] sm:$0xff] }
 0x1a4   : > { %v1724_v21 = vpop.f32.mrf.mxu2  ;;  %v3259_v40 = vunpack.c.l.b16 %v3220_v58  ;;  %v2981_v9 = vsel %vm4570_vm1, %v2976_v11, %v2980_v17 }
 0x1a5   : > { %v1748_v34 = vadd.f32 %v1724_v21, %v1497_v61  ;;  %v2971_v39 = vsel %vm4570_vm1, %v2966_v5, %v2970_v33 }
 0x1a6   : > { %v1501_v44 = vpop.f32.mrf.mxu1 }
 0x1a7   : > { %v2292_v24 = vpop.f32.mrf.mxu0  ;;  %v1502_v61 = vadd.f32 %v1501_v44, %v5078_v32  ;;  %v3228_v32 = vrot.slane %v3226_v49, 4  ;;  %v3229_v44 = vrot.slane %v5276_v16, 5 }
 0x1a8   : > { %v5278_v22 = vadd.f32 %v2292_v24, %v1940_v56  ;;  %v1917_v55 = vpop.f32.mrf.mxu3  ;;  %v3223_v56 = vsel %vm4811_vm7, %v3221_v15, %v3222_v19  ;;  %v3150_v24 = vld [vmem:[#allocation2 + $0x6c] sm:$0xe] }
 0x1a9   : > { %v1941_v29 = vadd.f32 %v1917_v55, %v1748_v34  ;;  %2739 = vmatmul.bf16.gmra.mxu2 %v4100_v27  ;;  %v3260_v62 = vunpack.c.l.b16 %v3223_v56  ;;  %v3012_v34 = vunpack.c.l.b16 %v2971_v39  ;;  %v3013_v27 = vunpack.c.l.b16 %v2981_v9 }
 0x1aa   : > { %3360 = vmatmul.bf16.gmra.mxu0 %v3268_v63  ;;  %v3993_v33 = vrot.slane %v3150_v24, 9 }
 0x1ab   : > { %v3269_v21 = vpack.c.b16 %v3260_v62, %v3259_v40  ;;  %v3021_v25 = vpack.c.b16 %v3013_v27, %v3012_v34  ;;  %v5314_v62 = vld [vmem:[%s5384_s6] ss:$0 sm:$0xff] }
 0x1ac   : > { %v1727_v43 = vpop.f32.mrf.mxu2  ;;  %v3227_v30 = vsel %vm4811_vm7, %v3993_v33, %v3226_v49 }
 0x1ad   : > { %3116 = vmatmul.bf16.gmra.mxu3 %v3020_v41  ;;  %v1749_v26 = vadd.f32 %v1727_v43, %v1500_v42  ;;  %v3230_v41 = vsel %vm4811_vm7, %v3228_v32, %v3229_v44  ;;  %v3261_v19 = vunpack.c.l.b16 %v3227_v30 }
 0x1ae   : > { %v1504_v45 = vpop.f32.mrf.mxu1  ;;  %v3262_v60 = vunpack.c.l.b16 %v3230_v41 }
 0x1af   : > { %v2294_v12 = vpop.f32.mrf.mxu0  ;;  %v1505_v23 = vadd.f32 %v1504_v45, %v5092_v14 }
 0x1b0   : > { %v5287_v52 = vadd.f32 %v2294_v12, %v1941_v29  ;;  %v1920_v37 = vpop.f32.mrf.mxu3  ;;  %v3270_v35 = vpack.c.b16 %v3262_v60, %v3261_v19 }
 0x1b1   : > { %2550 = vmatmul.bf16.gmra.mxu1 %v2450_v54  ;;  %v1942_v3 = vadd.f32 %v1920_v37, %v1749_v26 }
 0x1b4   : > { %v1729_v63 = vpop.f32.mrf.mxu2 }
 0x1b5   : > { %v1750_v8 = vadd.f32 %v1729_v63, %v1502_v61 }
 0x1b6   : > { %v1506_v1 = vpop.f32.mrf.mxu1 }
 0x1b7   : > { %v2297_v31 = vpop.f32.mrf.mxu0  ;;  %v1507_v16 = vadd.f32 %v1506_v1, %v5110_v2 }
 0x1b8   : > { %v5295_v20 = vadd.f32 %v2297_v31, %v1942_v3  ;;  %v1922_v18 = vpop.f32.mrf.mxu3 }
 0x1b9   : > { %v1943_v7 = vadd.f32 %v1922_v18, %v1750_v8  ;;  %2744 = vmatmul.bf16.gmra.mxu2 %v4101_v4 }
 0x1ba   : > { %3365 = vmatmul.bf16.gmra.mxu0 %v3269_v21 }
 0x1bc   : > { %v1732_v55 = vpop.f32.mrf.mxu2 }
 0x1bd   : > { %3121 = vmatmul.bf16.gmra.mxu3 %v3021_v25  ;;  %v1751_v53 = vadd.f32 %v1732_v55, %v1505_v23 }
 0x1be   : > { %v2516_v48 = vpop.f32.mrf.mxu1 }
 0x1bf   : > { %v2299_v29 = vpop.f32.mrf.mxu0  ;;  %v2556_v12 = vadd.f32 %v2516_v48, %v5135_v59 }
 0x1c0   : > { %v5303_v0 = vadd.f32 %v2299_v29, %v1943_v7  ;;  %v1925_v15 = vpop.f32.mrf.mxu3 }
 0x1c1   : > { %v1944_v57 = vadd.f32 %v1925_v15, %v1751_v53 }
 0x1c4   : > { %v1734_v14 = vpop.f32.mrf.mxu2 }
 0x1c5   : > { %v1752_v42 = vadd.f32 %v1734_v14, %v1507_v16 }
 0x1c6   : > { %v2518_v43 = vpop.f32.mrf.mxu1 }
 0x1c7   : > { %v2302_v54 = vpop.f32.mrf.mxu0  ;;  %v2557_v3 = vadd.f32 %v2518_v43, %v5146_v10 }
 0x1c8   : > { %v5306_v58 = vadd.f32 %v2302_v54, %v1944_v57  ;;  %v1927_v26 = vpop.f32.mrf.mxu3 }
 0x1c9   : > { %v1945_v45 = vadd.f32 %v1927_v26, %v1752_v42 }
 0x1ca   : > { %3370 = vmatmul.bf16.gmra.mxu0 %v3270_v35 }
 0x1cc   : > { %v2710_v47 = vpop.f32.mrf.mxu2 }
 0x1cd   : > { %v2750_v11 = vadd.f32 %v2710_v47, %v2556_v12 }
 0x1ce   : > { %v2521_v56 = vpop.f32.mrf.mxu1 }
 0x1cf   : > { %v2304_v5 = vpop.f32.mrf.mxu0  ;;  %v2558_v34 = vadd.f32 %v2521_v56, %v5163_v38 }
 0x1d0   : > { %v5309_v17 = vadd.f32 %v2304_v5, %v1945_v45  ;;  %v3087_v2 = vpop.f32.mrf.mxu3 }
 0x1d1   : > { %v3127_v37 = vadd.f32 %v3087_v2, %v2750_v11 }
 0x1d4   : > { %v2712_v40 = vpop.f32.mrf.mxu2 }
 0x1d5   : > { %v2751_v61 = vadd.f32 %v2712_v40, %v2557_v3 }
 0x1d6   : > { %v2523_v39 = vpop.f32.mrf.mxu1 }
 0x1d7   : > { %v3336_v9 = vpop.f32.mrf.mxu0  ;;  %v2559_v25 = vadd.f32 %v2523_v39, %v5176_v6 }
 0x1d8   : > { %v3376_v59 = vadd.f32 %v3336_v9, %v3127_v37  ;;  %v3089_v63 = vpop.f32.mrf.mxu3 }
 0x1d9   : > { %v3128_v8 = vadd.f32 %v3089_v63, %v2751_v61 }
 0x1da   : > { %v3396_v21 = vadd.f32 %v5314_v62, %v3376_v59 }
 0x1dc   : > { %3412 = vst [vmem:[%s4394_s13] sm:$0xff] %v3396_v21  ;;  %v2715_v4 = vpop.f32.mrf.mxu2 }
 0x1dd   : > { %v2752_v49 = vadd.f32 %v2715_v4, %v2558_v34 }
 0x1de   : > { %v2526_v27 = vpop.f32.mrf.mxu1 }
 0x1df   : > { %v3338_v1 = vpop.f32.mrf.mxu0  ;;  %v2560_v29 = vadd.f32 %v2526_v27, %v5193_v13 }
 0x1e0   : > { %v3377_v31 = vadd.f32 %v3338_v1, %v3128_v8  ;;  %v3092_v24 = vpop.f32.mrf.mxu3 }
 0x1e1   : > { %v3129_v18 = vadd.f32 %v3092_v24, %v2752_v49 }
 0x1e2   : > { %v3397_v10 = vadd.f32 %v5314_v62, %v3377_v31 }
 0x1e4   : > { %3413 = vst [vmem:[%s4394_s13 + $0x8] sm:$0xff] %v3397_v10  ;;  %v2717_v7 = vpop.f32.mrf.mxu2 }
 0x1e5   : > { %v2753_v23 = vadd.f32 %v2717_v7, %v2559_v25 }
 0x1e6   : > { %v2528_v33 = vpop.f32.mrf.mxu1 }
 0x1e7   : > { %v3341_v32 = vpop.f32.mrf.mxu0  ;;  %v2561_v14 = vadd.f32 %v2528_v33, %v5204_v50 }
 0x1e8   : > { %v3378_v44 = vadd.f32 %v3341_v32, %v3129_v18  ;;  %v3094_v55 = vpop.f32.mrf.mxu3 }
 0x1e9   : > { %v3130_v53 = vadd.f32 %v3094_v55, %v2753_v23 }
 0x1ea   : > { %v3398_v38 = vadd.f32 %v5314_v62, %v3378_v44 }
 0x1ec   : > { %3414 = vst [vmem:[%s4394_s13 + $0x10] sm:$0xff] %v3398_v38  ;;  %v2720_v48 = vpop.f32.mrf.mxu2 }
 0x1ed   : > { %v2754_v19 = vadd.f32 %v2720_v48, %v2560_v29 }
 0x1ee   : > { %v2531_v30 = vpop.f32.mrf.mxu1 }
 0x1ef   : > { %v3343_v41 = vpop.f32.mrf.mxu0  ;;  %v2562_v12 = vadd.f32 %v2531_v30, %v5220_v46 }
 0x1f0   : > { %v3379_v15 = vadd.f32 %v3343_v41, %v3130_v53  ;;  %v3097_v60 = vpop.f32.mrf.mxu3 }
 0x1f1   : > { %v3131_v57 = vadd.f32 %v3097_v60, %v2754_v19 }
 0x1f2   : > { %v3399_v6 = vadd.f32 %v5314_v62, %v3379_v15 }
 0x1f4   : > { %3415 = vst [vmem:[%s4394_s13 + $0x18] sm:$0xff] %v3399_v6  ;;  %v2722_v16 = vpop.f32.mrf.mxu2 }
 0x1f5   : > { %v2755_v54 = vadd.f32 %v2722_v16, %v2561_v14 }
 0x1f6   : > { %v2533_v35 = vpop.f32.mrf.mxu1 }
 0x1f7   : > { %v3346_v42 = vpop.f32.mrf.mxu0  ;;  %v2563_v39 = vadd.f32 %v2533_v35, %v5232_v28 }
 0x1f8   : > { %v3380_v43 = vadd.f32 %v3346_v42, %v3131_v57  ;;  %v3099_v26 = vpop.f32.mrf.mxu3 }
 0x1f9   : > { %v3132_v45 = vadd.f32 %v3099_v26, %v2755_v54 }
 0x1fa   : > { %v3400_v13 = vadd.f32 %v5314_v62, %v3380_v43 }
 0x1fc   : > { %3416 = vst [vmem:[%s4394_s13 + $0x20] sm:$0xff] %v3400_v13  ;;  %v2725_v47 = vpop.f32.mrf.mxu2 }
 0x1fd   : > { %v2756_v2 = vadd.f32 %v2725_v47, %v2562_v12 }
 0x1fe   : > { %v2536_v56 = vpop.f32.mrf.mxu1 }
 0x1ff   : > { %v3348_v5 = vpop.f32.mrf.mxu0  ;;  %v2564_v34 = vadd.f32 %v2536_v56, %v5249_v51 }
 0x200   : > { %v3381_v11 = vadd.f32 %v3348_v5, %v3132_v45  ;;  %v3102_v37 = vpop.f32.mrf.mxu3 }
 0x201   : > { %v3133_v40 = vadd.f32 %v3102_v37, %v2756_v2 }
 0x202   : > { %v3401_v50 = vadd.f32 %v5314_v62, %v3381_v11 }
 0x204   : > { %3417 = vst [vmem:[%s4394_s13 + $0x28] sm:$0xff] %v3401_v50  ;;  %v2727_v3 = vpop.f32.mrf.mxu2 }
 0x205   : > { %v2757_v63 = vadd.f32 %v2727_v3, %v2563_v39 }
 0x206   : > { %v2538_v59 = vpop.f32.mrf.mxu1 }
 0x207   : > { %v3351_v9 = vpop.f32.mrf.mxu0  ;;  %v2565_v7 = vadd.f32 %v2538_v59, %v5261_v36 }
 0x208   : > { %v3382_v61 = vadd.f32 %v3351_v9, %v3133_v40  ;;  %v3104_v21 = vpop.f32.mrf.mxu3 }
 0x209   : > { %v3134_v8 = vadd.f32 %v3104_v21, %v2757_v63 }
 0x20a   : > { %v3402_v46 = vadd.f32 %v5314_v62, %v3382_v61 }
 0x20c   : > { %3418 = vst [vmem:[%s4394_s13 + $0x30] sm:$0xff] %v3402_v46  ;;  %v2730_v4 = vpop.f32.mrf.mxu2 }
 0x20d   : > { %v2758_v31 = vadd.f32 %v2730_v4, %v2564_v34 }
 0x20e   : > { %v2541_v24 = vpop.f32.mrf.mxu1 }
 0x20f   : > { %v3353_v27 = vpop.f32.mrf.mxu0  ;;  %v2566_v53 = vadd.f32 %v2541_v24, %v5278_v22 }
 0x210   : > { %v3383_v1 = vadd.f32 %v3353_v27, %v3134_v8  ;;  %v3107_v49 = vpop.f32.mrf.mxu3 }
 0x211   : > { %v3135_v10 = vadd.f32 %v3107_v49, %v2758_v31 }
 0x212   : > { %v3403_v28 = vadd.f32 %v5314_v62, %v3383_v1 }
 0x214   : > { %3419 = vst [vmem:[%s4394_s13 + $0x38] sm:$0xff] %v3403_v28  ;;  %v2732_v18 = vpop.f32.mrf.mxu2 }
 0x215   : > { %v2759_v32 = vadd.f32 %v2732_v18, %v2565_v7 }
 0x216   : > { %v2543_v23 = vpop.f32.mrf.mxu1 }
 0x217   : > { %v3356_v25 = vpop.f32.mrf.mxu0  ;;  %v2567_v6 = vadd.f32 %v2543_v23, %v5287_v52 }
 0x218   : > { %v3384_v33 = vadd.f32 %v3356_v25, %v3135_v10  ;;  %v3109_v44 = vpop.f32.mrf.mxu3 }
 0x219   : > { %v3136_v55 = vadd.f32 %v3109_v44, %v2759_v32 }
 0x21a   : > { %v3404_v51 = vadd.f32 %v5314_v62, %v3384_v33 }
 0x21c   : > { %3420 = vst [vmem:[%s4394_s13 + $0x40] sm:$0xff] %v3404_v51  ;;  %v2735_v38 = vpop.f32.mrf.mxu2 }
 0x21d   : > { %v2760_v30 = vadd.f32 %v2735_v38, %v2566_v53 }
 0x21e   : > { %v2546_v60 = vpop.f32.mrf.mxu1 }
 0x21f   : > { %v3358_v48 = vpop.f32.mrf.mxu0  ;;  %v2568_v54 = vadd.f32 %v2546_v60, %v5295_v20 }
 0x220   : > { %v3385_v29 = vadd.f32 %v3358_v48, %v3136_v55  ;;  %v3112_v41 = vpop.f32.mrf.mxu3 }
 0x221   : > { %v3137_v15 = vadd.f32 %v3112_v41, %v2760_v30 }
 0x222   : > { %v3405_v36 = vadd.f32 %v5314_v62, %v3385_v29 }
 0x224   : > { %3421 = vst [vmem:[%s4394_s13 + $0x48] sm:$0xff] %v3405_v36  ;;  %v2737_v19 = vpop.f32.mrf.mxu2 }
 0x225   : > { %v2761_v14 = vadd.f32 %v2737_v19, %v2567_v6 }
 0x226   : > { %v2548_v13 = vpop.f32.mrf.mxu1 }
 0x227   : > { %v3361_v57 = vpop.f32.mrf.mxu0  ;;  %v2569_v11 = vadd.f32 %v2548_v13, %v5303_v0 }
 0x228   : > { %v3386_v16 = vadd.f32 %v3361_v57, %v3137_v15  ;;  %v3114_v35 = vpop.f32.mrf.mxu3 }
 0x229   : > { %v3138_v42 = vadd.f32 %v3114_v35, %v2761_v14 }
 0x22a   : > { %v3406_v22 = vadd.f32 %v5314_v62, %v3386_v16 }
 0x22c   : > { %3422 = vst [vmem:[%s4394_s13 + $0x50] sm:$0xff] %v3406_v22  ;;  %v2740_v43 = vpop.f32.mrf.mxu2 }
 0x22d   : > { %v2762_v47 = vadd.f32 %v2740_v43, %v2568_v54 }
 0x22e   : > { %v2551_v3 = vpop.f32.mrf.mxu1 }
 0x22f   : > { %v3363_v26 = vpop.f32.mrf.mxu0  ;;  %v2570_v59 = vadd.f32 %v2551_v3, %v5306_v58 }
 0x230   : > { %v3387_v45 = vadd.f32 %v3363_v26, %v3138_v42  ;;  %v3117_v12 = vpop.f32.mrf.mxu3 }
 0x231   : > { %v3139_v56 = vadd.f32 %v3117_v12, %v2762_v47 }
 0x232   : > { %v3407_v52 = vadd.f32 %v5314_v62, %v3387_v45 }
 0x234   : > { %3423 = vst [vmem:[%s4394_s13 + $0x58] sm:$0xff] %v3407_v52  ;;  %v2742_v5 = vpop.f32.mrf.mxu2 }
 0x235   : > { %v2763_v50 = vadd.f32 %v2742_v5, %v2569_v11 }
 0x236   : > { %v2553_v8 = vpop.f32.mrf.mxu1 }
 0x237   : > { %v3366_v2 = vpop.f32.mrf.mxu0  ;;  %v2571_v27 = vadd.f32 %v2553_v8, %v5309_v17 }
 0x238   : > { %v3388_v37 = vadd.f32 %v3366_v2, %v3139_v56  ;;  %v3119_v40 = vpop.f32.mrf.mxu3 }
 0x239   : > { %v3140_v39 = vadd.f32 %v3119_v40, %v2763_v50 }
 0x23a   : > { %v3408_v20 = vadd.f32 %v5314_v62, %v3388_v37 }
 0x23c   : > { %3424 = vst [vmem:[%s4394_s13 + $0x60] sm:$0xff] %v3408_v20  ;;  %v2745_v9 = vpop.f32.mrf.mxu2 }
 0x23d   : > { %v2764_v21 = vadd.f32 %v2745_v9, %v2570_v59 }
 0x23f   : > { %v3368_v61 = vpop.f32.mrf.mxu0 }
 0x240   : > { %v3389_v63 = vadd.f32 %v3368_v61, %v3140_v39  ;;  %v3122_v46 = vpop.f32.mrf.mxu3 }
 0x241   : > { %v3141_v4 = vadd.f32 %v3122_v46, %v2764_v21 }
 0x242   : > { %v3409_v0 = vadd.f32 %v5314_v62, %v3389_v63 }
 0x244   : > { %3425 = vst [vmem:[%s4394_s13 + $0x68] sm:$0xff] %v3409_v0  ;;  %v2747_v34 = vpop.f32.mrf.mxu2 }
 0x245   : > { %v2765_v49 = vadd.f32 %v2747_v34, %v2571_v27 }
 0x247   : > { %v3371_v1 = vpop.f32.mrf.mxu0 }
 0x248   : > { %v3390_v31 = vadd.f32 %v3371_v1, %v3141_v4  ;;  %v3124_v58 = vpop.f32.mrf.mxu3 }
 0x249   : > { %v3142_v28 = vadd.f32 %v3124_v58, %v2765_v49 }
 0x24a   : > { %v3410_v24 = vadd.f32 %v5314_v62, %v3390_v31 }
 0x24c   : > { %3426 = vst [vmem:[%s4394_s13 + $0x70] sm:$0xff] %v3410_v24 }
 0x24f   : > { %v3373_v10 = vpop.f32.mrf.mxu0 }
 0x250   : > { %v3391_v18 = vadd.f32 %v3373_v10, %v3142_v28 }
 0x252   : > { %v3411_v7 = vadd.f32 %v5314_v62, %v3391_v18 }
 0x254   : > { %3427 = vst [vmem:[%s4394_s13 + $0x78] sm:$0xff] %v3411_v7 }
 0x255 PF: > { %s18_s9 = sadd.s32 1, %s4233_s9   ;;  %s5400_s27 = smov %s4225_s29 }
 0x256   : > { %p15_p0 = scmp.ge.s32.totalorder %s18_s9, 6   ;;  %s5401_s28 = smov %s4229_s30 }
 0x257   : > { %s5402_s29 = smov %s5405_s10  ;;  %s5403_s30 = smov %s5409_s11 }
 0x258   :  { %17 = sbr.rel (!%p15_p0) target bundleno = 3 (0x3), region = 111 }

// kernel: resup_forward.6
= control target key start
LH: loop header
LB: loop body
LE: loop exit
PB: predicated region body
PF: predicated region fallthrough
CT: control target
= control target key end

     0   :  { %s4730_s17 = smov 0   ;;  %s4732_s18 = smov 0   ;;  %s5879_s0 = inlined_call_operand.vmem [shape: f32[2,16,16,128], index: 0, kind: input, shape index: {}, may-alias: {0,1,2}]   ;;  %s5880_s1 = inlined_call_operand.vmem [shape: f32[2,16,16,128], index: 1, kind: input, shape index: {}, may-alias: {0,1,2}]   ;;  %s5881_s2 = inlined_call_operand.vmem [shape: f32[2,16,16,128], index: 2, kind: input, shape index: {}, may-alias: {0,1,2}]   ;;  %s5882_s3 = inlined_call_operand.vmem [shape: f32[1,128], index: 3, kind: input, shape index: {}]   ;;  %s5883_s4 = inlined_call_operand.vmem [shape: f32[1,128], index: 4, kind: input, shape index: {}]   ;;  %s5884_s5 = inlined_call_operand.vmem [shape: bf16[1152,128], index: 5, kind: input, shape index: {}]   ;;  %s5885_s6 = inlined_call_operand.vmem [shape: f32[1,128], index: 6, kind: input, shape index: {}]   ;;  %s5886_s7 = inlined_call_operand.vmem [shape: f32[2,16,16,128], index: 7, kind: input, shape index: {}]   ;;  %s5887_s8 = inlined_call_operand.vmem [shape: bf16[128,128], index: 8, kind: input, shape index: {}]   ;;  %s5888_s9 = inlined_call_operand.vmem [shape: f32[1,128], index: 9, kind: input, shape index: {}]   ;;  %s5889_s10 = inlined_call_operand.vmem [shape: f32[2,16,16,128], index: 10, kind: output, shape index: {0}]   ;;  %s5890_s11 = inlined_call_operand.vmem [shape: f32[2,16,16,128], index: 11, kind: output, shape index: {1}]  }
   0x1   :  { %5891 = sst [smem:[#allocation3_spill]] %s5879_s0  ;;  %s4734_s19 = smov 0  }
   0x2   :  { %5892 = sst [smem:[#allocation4_spill]] %s5882_s3  ;;  %s4736_s20 = smov 0  }
   0x3   :  { %5893 = sst [smem:[#allocation5_spill]] %s5883_s4  ;;  %s4738_s21 = smov 0  }
   0x4 LB: > { %s31_s22 = sadd.s32 1, %s4658_s19  ;;  %s34_s23 = sadd.s32 1, %s4662_s20  ;;  %s4666_s21 = sphi %s4738_s21, %s22_s21   ;;  %s4662_s20 = sphi %s4736_s20, %s5913_s20   ;;  %s4658_s19 = sphi %s4734_s19, %s5912_s19   ;;  %s4654_s18 = sphi %s4732_s18, %s5911_s18   ;;  %s4650_s17 = sphi %s4730_s17, %s5910_s17  }
   0x5   : > { %p32_p0 = scmp.ge.s32.totalorder %s31_s22, 2  ;;  %p3974_p1 = scmp.ge.s32.totalorder %s4666_s21, 1 }
   0x6   : > { %p446_p2 = scmp.lt.s32.totalorder %s4666_s21, 5 }
   0x7   : > { %s5915_s22 = smov (%p32_p0, %s31_s22), 0  ;;  %s5917_s23 = smov (!%p32_p0, %s34_s23), %s4662_s20 }
   0x8   : > { %p447_p3 = pnand %p3974_p1, %p446_p2  ;;  %p36_p4 = scmp.ge.s32.totalorder %s5917_s23, 2 }
   0x9   : > { %s4763_s24 = sshll.u32 (!%p447_p3), %s4650_s17, 3  ;;  %p543_p5 = scmp.lt.s32.totalorder (!%p447_p3), %s4654_s18, 1 }
   0xa   : > { %s5919_s23 = smov (%p36_p4, %s5917_s23), 0  ;;  %450 = sbr.rel (%p447_p3) target bundleno = 603 (0x25b), region = 60 }
   0xb   : > { %s5894_s3 = sld [smem:[#allocation4_spill]] (!%p447_p3)  ;;  %p545_p6 = scmp.lt.s32.totalorder (!%p447_p3), %s4763_s24, 15 }
   0xc   : > { %s5895_s4 = sld [smem:[#allocation5_spill]] (!%p447_p3)  ;;  %s4777_s29 = sadd.s32 (!%p447_p3), 4294967295, %s4763_s24 }
   0xd   : > { %p555_p7 = scmp.gt.s32.totalorder (!%p447_p3), %s4777_s29, 0  ;;  %p3981_p8 = scmp.lt.s32.totalorder (!%p447_p3), %s4777_s29, 15 }
   0xe   : > { %s571_s15 = sadd.s32 (!%p447_p3), 8, %s4763_s24  ;;  %s5899_s0 = sld [smem:[#allocation3_spill]] (!%p447_p3) }
   0xf   : > { %vm623_vm0 = vcmask 1040384   ;;  %vm624_vm1 = vsmask.f32 256  ;;  %s5921_s18 = smov (!%p543_p5, %s4654_s18), 1  ;;  %v626_v3 = vld [vmem:[#allocation2] sm:$0x1] }
  0x10   : > { %vm4781_vm2 = vmand %vm623_vm0, %vm624_vm1  ;;  %v629_v4 = vld [vmem:[#allocation2 + $0xc] sm:$0x1]  ;;  %s546_s30 = scalar_select %p545_p6, %s4763_s24, 15  ;;  %v632_v7 = vld [vmem:[#allocation2 + $0x18] sm:$0x1] }
  0x11   : > { %v4768_v0 = vld [vmem:[%s5894_s3] sm:$0x1]  ;;  %v627_v5 = vsel %vm4781_vm2, 0, %v626_v3  ;;  %v630_v6 = vsel %vm4781_vm2, 0, %v629_v4  ;;  %s4790_s12 = sshll.u32 %s5921_s18, 5  ;;  %v633_v8 = vsel %vm4781_vm2, 0, %v632_v7 }
  0x12   : > { %v4773_v1 = vld [vmem:[%s5895_s4] sm:$0x1]  ;;  %628 = vst [vmem:[#allocation2] sm:$0x1] %v627_v5  ;;  %s3976_s13 = sshll.u32 %s546_s30, 1  ;;  %p4802_p9 = scmp.lt.s32.totalorder %s571_s15, 15 }
  0x13   : > { %631 = vst [vmem:[#allocation2 + $0xc] sm:$0x1] %v630_v6  ;;  %v635_v9 = vld [vmem:[#allocation2 + $0x24] sm:$0x1]  ;;  %s549_s14 = sadd.s32 %s4790_s12, %s3976_s13  ;;  %v638_v11 = vld [vmem:[#allocation2 + $0x30] sm:$0x1] }
  0x14   : > { %634 = vst [vmem:[#allocation2 + $0x18] sm:$0x1] %v633_v8  ;;  %v636_v10 = vsel %vm4781_vm2, 0, %v635_v9  ;;  %s4800_s16 = sshll.u32 %s549_s14, 3  ;;  %v639_v12 = vsel %vm4781_vm2, 0, %v638_v11  ;;  %s5923_s15 = smov (!%p4802_p9, %s571_s15), 15 }
  0x15   : > { %637 = vst [vmem:[#allocation2 + $0x24] sm:$0x1] %v636_v10  ;;  %s4812_s26 = scalar_lea.vmem %s5899_s0, %s4800_s16  ;;  %s4818_s30 = scalar_lea.vmem %s5886_s7, %s4800_s16  ;;  %v641_v13 = vld [vmem:[#allocation2 + $0x3c] sm:$0x1]  ;;  %v644_v14 = vld [vmem:[#allocation2 + $0x48] sm:$0x1] }
  0x16   : > { %640 = vst [vmem:[#allocation2 + $0x30] sm:$0x1] %v639_v12  ;;  %s556_s13 = scalar_select %p555_p7, %s4777_s29, 0  ;;  %v642_v15 = vsel %vm4781_vm2, 0, %v641_v13  ;;  %v645_v16 = vsel %vm4781_vm2, 0, %v644_v14 }
  0x17   : > { %v647_v17 = vld [vmem:[#allocation2 + $0x54] sm:$0x1]  ;;  %643 = vst [vmem:[#allocation2 + $0x3c] sm:$0x1] %v642_v15  ;;  %v650_v19 = vld [vmem:[#allocation2 + $0x60] sm:$0x1]  ;;  %s4843_s27 = scalar_lea.vmem %s5889_s10, %s4800_s16  ;;  %s4873_s4 = scalar_lea.vmem %s5890_s11, %s4800_s16 }
  0x18   : > { %v648_v18 = vsel %vm4781_vm2, 0, %v647_v17  ;;  %s5925_s13 = smov (!%p3981_p8, %s556_s13), 15  ;;  %646 = vst [vmem:[#allocation2 + $0x48] sm:$0x1] %v645_v16  ;;  %v651_v20 = vsel %vm4781_vm2, 0, %v650_v19  ;;  %s5927_s15 = smov (!%p4802_p9, %s5923_s15), 15 }
  0x19   : > { %v653_v21 = vld [vmem:[#allocation2 + $0x6c] sm:$0x1]  ;;  %649 = vst [vmem:[#allocation2 + $0x54] sm:$0x1] %v648_v18  ;;  %vm656_vm3 = vsmask.f32 7938 }
  0x1a   : > { %v654_v22 = vsel %vm4781_vm2, 0, %v653_v21  ;;  %s3986_s14 = sshll.u32 %s5925_s13, 1  ;;  %652 = vst [vmem:[#allocation2 + $0x60] sm:$0x1] %v651_v20  ;;  %vm4847_vm4 = vmand %vm623_vm0, %vm656_vm3  ;;  %v658_v24 = vld [vmem:[#allocation2 + $0x8] sm:$0x1] }
  0x1b   : > { %s563_s29 = sadd.s32 %s3986_s14, %s4790_s12  ;;  %s3993_s18 = sshll.u32 %s5927_s15, 1  ;;  %655 = vst [vmem:[#allocation2 + $0x6c] sm:$0x1] %v654_v22  ;;  %v659_v25 = vsel %vm4847_vm4, 0, %v658_v24  ;;  %v661_v26 = vld [vmem:[#allocation2 + $0x14] sm:$0x1] }
  0x1c   : > { %s3988_s28 = sshll.u32 %s563_s29, 3  ;;  %s580_s13 = sadd.s32 %s3993_s18, %s4790_s12  ;;  %660 = vst [vmem:[#allocation2 + $0x8] sm:$0x1] %v659_v25  ;;  %v662_v27 = vsel %vm4847_vm4, 0, %v661_v26  ;;  %v664_v28 = vld [vmem:[#allocation2 + $0x20] sm:$0x1] }
  0x1d   : > { %s4860_s0 = scalar_lea.vmem %s5880_s1, %s3988_s28  ;;  %s3995_s14 = sshll.u32 %s580_s13, 3  ;;  %663 = vst [vmem:[#allocation2 + $0x14] sm:$0x1] %v662_v27  ;;  %v665_v29 = vsel %vm4847_vm4, 0, %v664_v28  ;;  %v667_v30 = vld [vmem:[#allocation2 + $0x2c] sm:$0x1] }
  0x1e   : > { %s4867_s12 = scalar_lea.vmem %s5881_s2, %s3995_s14  ;;  %666 = vst [vmem:[#allocation2 + $0x20] sm:$0x1] %v665_v29  ;;  %v668_v31 = vsel %vm4847_vm4, 0, %v667_v30  ;;  %v670_v32 = vld [vmem:[#allocation2 + $0x38] sm:$0x1]  ;;  %p4008_p10 = scmp.ne.s32.totalorder %s4650_s17, 0 }
  0x1f   : > { %669 = vst [vmem:[#allocation2 + $0x2c] sm:$0x1] %v668_v31  ;;  %v671_v33 = vsel %vm4847_vm4, 0, %v670_v32  ;;  %v673_v34 = vld [vmem:[#allocation2 + $0x44] sm:$0x1] }
  0x20   : > { %672 = vst [vmem:[#allocation2 + $0x38] sm:$0x1] %v671_v33  ;;  %v674_v35 = vsel %vm4847_vm4, 0, %v673_v34  ;;  %v676_v36 = vld [vmem:[#allocation2 + $0x50] sm:$0x1] }
  0x21   : > { %675 = vst [vmem:[#allocation2 + $0x44] sm:$0x1] %v674_v35  ;;  %v677_v37 = vsel %vm4847_vm4, 0, %v676_v36  ;;  %v679_v38 = vld [vmem:[#allocation2 + $0x5c] sm:$0x1]  ;;  %691 = sbr.rel (%p4008_p10) target bundleno = 42 (0x2a), region = 64 }
  0x22   : > { %678 = vst [vmem:[#allocation2 + $0x50] sm:$0x1] %v677_v37  ;;  %v680_v39 = vsel %vm4847_vm4, 0, %v679_v38  ;;  %v682_v40 = vld [vmem:[#allocation2 + $0x68] sm:$0x1] }
  0x23   : > { %681 = vst [vmem:[#allocation2 + $0x5c] sm:$0x1] %v680_v39  ;;  %v683_v41 = vsel %vm4847_vm4, 0, %v682_v40  ;;  %v685_v42 = vld [vmem:[#allocation2 + $0x74] sm:$0x1] }
  0x24   : > { %684 = vst [vmem:[#allocation2 + $0x68] sm:$0x1] %v683_v41  ;;  %v686_v43 = vsel %vm4847_vm4, 0, %v685_v42 }
  0x25   : > { %687 = vst [vmem:[#allocation2 + $0x74] sm:$0x1] %v686_v43 }
  0x26   : > { %v4668_v44 = vmov 0  }
  0x27   : > { %692 = vst [vmem:[#allocation2] sm:$0xf] %v4668_v44 }
  0x28   : > { %693 = vst [vmem:[#allocation2 + $0x4] sm:$0xf] %v4668_v44 }
  0x29   : > { %694 = vst [vmem:[#allocation2 + $0x8] sm:$0xf] %v4668_v44 }
  0x2a PF: > { %p4009_p11 = scmp.ne.s32.totalorder %s4650_s17, 1 }
  0x2c   : > { %698 = sbr.rel (%p4009_p11) target bundleno = 53 (0x35), region = 68 }
  0x31   : > { %v4669_v45 = vmov 0  }
  0x32   : > { %700 = vst [vmem:[#allocation2 + $0x6c] sm:$0xf] %v4669_v45 }
  0x33   : > { %701 = vst [vmem:[#allocation2 + $0x70] sm:$0xf] %v4669_v45 }
  0x34   : > { %702 = vst [vmem:[#allocation2 + $0x74] sm:$0xf] %v4669_v45 }
  0x35 PF: > { %p4010_p12 = scmp.le.s32.totalorder %s4650_s17, 0 }
  0x37   : > { %706 = sbr.rel (%p4010_p12) target bundleno = 80 (0x50), region = 72 }
  0x3c   : > { %v707_v46 = vld [vmem:[%s4860_s0] sm:$0xff]  ;;  %v710_v47 = vperm.slane %v4768_v0, 0  ;;  %v715_v48 = vperm.slane %v4773_v1, 0  ;;  %v708_v49 = vld [vmem:[%s4860_s0 + $0x8] sm:$0xff]  ;;  %vm745_vm5 = vcmask 1043456  }
  0x3d   : > { %vm723_vm6 = vsmask.f32 4368  ;;  %vm746_vm7 = vmand %vm745_vm5, %vm656_vm3  ;;  %v747_v3 = vld [vmem:[#allocation2] sm:$0xf]  ;;  %v751_v4 = vld [vmem:[#allocation2 + $0x8] sm:$0x1] }
  0x3e   : > { %v712_v50 = vmul.f32 %v710_v47, %v707_v46  ;;  %v713_v51 = vmul.f32 %v710_v47, %v708_v49  ;;  %vm724_vm8 = vmor %vm624_vm1, %vm723_vm6 }
  0x40   : > { %v717_v52 = vadd.f32 %v715_v48, %v712_v50  ;;  %v718_v53 = vadd.f32 %v715_v48, %v713_v51 }
  0x42   : > { %v719_v54 = vmax.f32 %v717_v52, 0.0  ;;  %v720_v55 = vmax.f32 %v718_v53, 0.0 }
  0x44   : > { %v721_v56 = vpack.c.bf16 %v719_v54, %v719_v54  ;;  %v722_v57 = vpack.c.bf16 %v720_v55, %v720_v55 }
  0x46   : > { %v726_v58 = vshrl.u32 %v721_v56, 16  ;;  %v729_v59 = vshll.u32 %v721_v56, 16  ;;  %v734_v60 = vshrl.u32 %v722_v57, 16  ;;  %v737_v61 = vshll.u32 %v722_v57, 16 }
  0x48   : > { %v728_v62 = vrot.slane %v726_v58, 7  ;;  %v736_v63 = vrot.slane %v734_v60, 7 }
  0x4a   : > { %v731_v5 = vor.u32 %v729_v59, %v728_v62  ;;  %v732_v6 = vrot.slane %v728_v62, 4  ;;  %v739_v7 = vor.u32 %v737_v61, %v736_v63  ;;  %v741_v8 = vrot.slane %v736_v63, 4 }
  0x4c   : > { %v748_v9 = vsel %vm746_vm7, %v731_v5, %v747_v3  ;;  %v740_v10 = vsel %vm724_vm8, %v732_v6, %v739_v7  ;;  %v752_v11 = vsel %vm4781_vm2, %v741_v8, %v751_v4 }
  0x4d   : > { %749 = vst [vmem:[#allocation2] sm:$0xf] %v748_v9 }
  0x4e   : > { %750 = vst [vmem:[#allocation2 + $0x4] sm:$0xf] %v740_v10 }
  0x4f   : > { %753 = vst [vmem:[#allocation2 + $0x8] sm:$0x1] %v752_v11 }
  0x50 PF: > { %p4011_p13 = scmp.ge.s32.totalorder %s4650_s17, 1 }
  0x52   : > { %757 = sbr.rel (%p4011_p13) target bundleno = 107 (0x6b), region = 76 }
  0x57   : > { %v758_v12 = vld [vmem:[%s4867_s12] sm:$0xff]  ;;  %v761_v13 = vperm.slane %v4768_v0, 0  ;;  %v766_v14 = vperm.slane %v4773_v1, 0  ;;  %v759_v15 = vld [vmem:[%s4867_s12 + $0x8] sm:$0xff]  ;;  %vm797_vm9 = vcmask 1043456  }
  0x58   : > { %vm774_vm10 = vsmask.f32 4368  ;;  %vm798_vm11 = vmand %vm797_vm9, %vm656_vm3  ;;  %v799_v30 = vld [vmem:[#allocation2 + $0x6c] sm:$0xf]  ;;  %v803_v31 = vld [vmem:[#allocation2 + $0x74] sm:$0x1] }
  0x59   : > { %v763_v16 = vmul.f32 %v761_v13, %v758_v12  ;;  %v764_v17 = vmul.f32 %v761_v13, %v759_v15  ;;  %vm775_vm12 = vmor %vm624_vm1, %vm774_vm10 }
  0x5b   : > { %v768_v18 = vadd.f32 %v766_v14, %v763_v16  ;;  %v769_v19 = vadd.f32 %v766_v14, %v764_v17 }
  0x5d   : > { %v770_v20 = vmax.f32 %v768_v18, 0.0  ;;  %v771_v21 = vmax.f32 %v769_v19, 0.0 }
  0x5f   : > { %v772_v22 = vpack.c.bf16 %v770_v20, %v770_v20  ;;  %v773_v23 = vpack.c.bf16 %v771_v21, %v771_v21 }
  0x61   : > { %v777_v24 = vshrl.u32 %v772_v22, 16  ;;  %v780_v25 = vshll.u32 %v772_v22, 16  ;;  %v785_v26 = vshrl.u32 %v773_v23, 16  ;;  %v788_v27 = vshll.u32 %v773_v23, 16 }
  0x63   : > { %v779_v28 = vrot.slane %v777_v24, 7  ;;  %v787_v29 = vrot.slane %v785_v26, 7 }
  0x65   : > { %v782_v32 = vor.u32 %v780_v25, %v779_v28  ;;  %v783_v33 = vrot.slane %v779_v28, 4  ;;  %v790_v34 = vor.u32 %v788_v27, %v787_v29  ;;  %v792_v35 = vrot.slane %v787_v29, 4 }
  0x67   : > { %v800_v36 = vsel %vm798_vm11, %v782_v32, %v799_v30  ;;  %v791_v37 = vsel %vm775_vm12, %v783_v33, %v790_v34  ;;  %v804_v38 = vsel %vm4781_vm2, %v792_v35, %v803_v31 }
  0x68   : > { %801 = vst [vmem:[#allocation2 + $0x6c] sm:$0xf] %v800_v36 }
  0x69   : > { %802 = vst [vmem:[#allocation2 + $0x70] sm:$0xf] %v791_v37 }
  0x6a   : > { %805 = vst [vmem:[#allocation2 + $0x74] sm:$0x1] %v804_v38 }
  0x6b PF: > { %v4471_v39 = vld [vmem:[%s5884_s5 + $0x38] sm:$0xff]  ;;  %v4470_v41 = vld [vmem:[%s5884_s5 + $0x30] sm:$0xff]  ;;  %v4922_v43 = vperm.slane %v4768_v0, 0  ;;  %v4925_v44 = vperm.slane %v4773_v1, 0  ;;  %v4469_v47 = vld [vmem:[%s5884_s5 + $0x28] sm:$0xff]  ;;  %vm1055_vm13 = vcmask 1043456  }
  0x6c   : > { %v4479_v40 = vld [vmem:[%s5884_s5 + $0x78] sm:$0xff]  ;;  %4568 = vmatpush.bf16.msra.mxu3 %v4471_v39  ;;  %v4478_v42 = vld [vmem:[%s5884_s5 + $0x70] sm:$0xff]  ;;  %1589 = vmatpush.bf16.msra.mxu1 %v4471_v39  ;;  %v4477_v48 = vld [vmem:[%s5884_s5 + $0x68] sm:$0xff]  ;;  %vm892_vm14 = vsmask.f32 4368  ;;  %vm1663_vm6 = vcmask 1046532  }
  0x6d   : > { %4560 = vmatpush.bf16.msra.mxu2 %v4479_v40  ;;  %1444 = vmatpush.bf16.msra.mxu0 %v4479_v40  ;;  %v812_v45 = vld [vmem:[%s4812_s26 + $0x30] sm:$0xff]  ;;  %v813_v46 = vld [vmem:[%s4812_s26 + $0x38] sm:$0xff]  ;;  %vm1153_vm15 = vsmask.f32 3328  ;;  %v1113_v1 = vld [vmem:[#allocation2] sm:$0xf] }
  0x6e   : > { %v831_v0 = vmul.f32 %v4922_v43, %v812_v45  ;;  %v832_v49 = vmul.f32 %v4922_v43, %v813_v46  ;;  %v4939_v52 = vld [vmem:[#allocation2 + $0x4] sm:$0xf]  ;;  %v4941_v53 = vld [vmem:[#allocation2 + $0x8] sm:$0x1]  ;;  %v1157_v54 = vshrl.u32 %v1113_v1, 16  ;;  %v1160_v55 = vshll.u32 %v1113_v1, 16  ;;  %vm4968_vm4 = vmor %vm624_vm1, %vm892_vm14 }
  0x6f   : > { %v4468_v56 = vld [vmem:[%s5884_s5 + $0x20] sm:$0xff]  ;;  %v1166_v57 = vshll.u32 %v4939_v52, 16  ;;  %v1170_v58 = vshrl.u32 %v4939_v52, 16  ;;  %v1176_v59 = vshll.u32 %v4941_v53, 16  ;;  %v815_v61 = vld [vmem:[%s4812_s26 + $0x48] sm:$0xff]  ;;  %v4467_v19 = vld [vmem:[%s5884_s5 + $0x18] sm:$0xff] }
  0x70   : > { %4569 = vmatpush.bf16.msra.mxu3 %v4470_v41  ;;  %1590 = vmatpush.bf16.msra.mxu1 %v4470_v41  ;;  %v850_v50 = vadd.f32 %v4925_v44, %v831_v0  ;;  %v851_v51 = vadd.f32 %v4925_v44, %v832_v49  ;;  %v814_v60 = vld [vmem:[%s4812_s26 + $0x40] sm:$0xff]  ;;  %v1159_v4 = vrot.slane %v1157_v54, 4  ;;  %v1162_v5 = vrot.slane %v1160_v55, 5  ;;  %v807_v17 = vld [vmem:[%s4812_s26 + $0x8] sm:$0xff]  ;;  %v4475_v20 = vld [vmem:[%s5884_s5 + $0x58] sm:$0xff] }
  0x71   : > { %4561 = vmatpush.bf16.msra.mxu2 %v4478_v42  ;;  %1445 = vmatpush.bf16.msra.mxu0 %v4478_v42  ;;  %v4476_v62 = vld [vmem:[%s5884_s5 + $0x60] sm:$0xff]  ;;  %vm1154_vm0 = vsmask.f32 7440  ;;  %v1168_v7 = vrot.slane %v1166_v57, 5  ;;  %v1172_v8 = vrot.slane %v1170_v58, 4  ;;  %v833_v9 = vmul.f32 %v4922_v43, %v814_v60  ;;  %vm4983_vm1 = vmand %vm1055_vm13, %vm656_vm3  ;;  %v4466_v42 = vld [vmem:[%s5884_s5 + $0x10] sm:$0xff] }
  0x72   : > { %v866_v63 = vmax.f32 %v850_v50, 0.0  ;;  %v867_v3 = vmax.f32 %v851_v51, 0.0  ;;  %v806_v6 = vld [vmem:[%s4812_s26] sm:$0xff]  ;;  %v1163_v12 = vor.u32 %v1162_v5, %v1159_v4  ;;  %v834_v13 = vmul.f32 %v4922_v43, %v815_v61  ;;  %v1078_v32 = vld [vmem:[#allocation2 + $0x30] sm:$0xf]  ;;  %vm4975_vm5 = vmor %vm1153_vm15, %vm1154_vm0 }
  0x73   : > { %v1173_v14 = vor.u32 %v1172_v8, %v1168_v7  ;;  %v1178_v15 = vrot.slane %v1176_v59, 5  ;;  %v852_v16 = vadd.f32 %v4925_v44, %v833_v9  ;;  %v825_v18 = vmul.f32 %v4922_v43, %v806_v6  ;;  %v1082_v37 = vld [vmem:[#allocation2 + $0x38] sm:$0x1]  ;;  %v4474_v45 = vld [vmem:[%s5884_s5 + $0x50] sm:$0xff]  ;;  %v4465_v55 = vld [vmem:[%s5884_s5 + $0x8] sm:$0xff] }
  0x74   : > { %4570 = vmatpush.bf16.msra.mxu3 %v4469_v47  ;;  %1591 = vmatpush.bf16.msra.mxu1 %v4469_v47  ;;  %v882_v10 = vpack.c.bf16 %v866_v63, %v866_v63  ;;  %v883_v11 = vpack.c.bf16 %v867_v3, %v867_v3  ;;  %v1164_v26 = vrot.slane %v1163_v12, 4  ;;  %v853_v28 = vadd.f32 %v4925_v44, %v834_v13  ;;  %v816_v54 = vld [vmem:[%s4812_s26 + $0x50] sm:$0xff]  ;;  %v817_v60 = vld [vmem:[%s4812_s26 + $0x58] sm:$0xff]  ;;  %v4473_v5 = vld [vmem:[%s5884_s5 + $0x48] sm:$0xff] }
  0x75   : > { %4562 = vmatpush.bf16.msra.mxu2 %v4477_v48  ;;  %1446 = vmatpush.bf16.msra.mxu0 %v4477_v48  ;;  %v1174_v27 = vrot.slane %v1173_v14, 4  ;;  %v868_v29 = vmax.f32 %v852_v16, 0.0  ;;  %v826_v34 = vmul.f32 %v4922_v43, %v807_v17  ;;  %v844_v35 = vadd.f32 %v4925_v44, %v825_v18  ;;  %v808_v4 = vld [vmem:[%s4812_s26 + $0x10] sm:$0xff]  ;;  %v1085_v6 = vld [vmem:[#allocation2 + $0x3c] sm:$0xf]  ;;  %v4545_v36 = vld [vmem:[%s5884_s5 + $0x208] sm:$0xff] }
  0x76   : > { %v946_v21 = vshrl.u32 %v882_v10, 16  ;;  %v949_v22 = vshll.u32 %v882_v10, 16  ;;  %v954_v23 = vshrl.u32 %v883_v11, 16  ;;  %v957_v24 = vshll.u32 %v883_v11, 16  ;;  %v1089_v14 = vld [vmem:[#allocation2 + $0x44] sm:$0x1] }
  0x77   : > { %v1169_v38 = vsel %vm4975_vm5, %v1164_v26, %v1168_v7  ;;  %v1179_v39 = vsel %vm4975_vm5, %v1174_v27, %v1178_v15  ;;  %v869_v40 = vmax.f32 %v853_v28, 0.0  ;;  %v884_v41 = vpack.c.bf16 %v868_v29, %v868_v29  ;;  %v809_v18 = vld [vmem:[%s4812_s26 + $0x18] sm:$0xff] }
  0x78   : > { %4571 = vmatpush.bf16.msra.mxu3 %v4468_v56  ;;  %1592 = vmatpush.bf16.msra.mxu1 %v4468_v56  ;;  %v948_v30 = vrot.slane %v946_v21, 7  ;;  %v956_v31 = vrot.slane %v954_v23, 7  ;;  %v4997_v49 = vunpack.c.l.b16 %v1169_v38  ;;  %v4999_v1 = vunpack.c.l.b16 %v1179_v39  ;;  %v4472_v21 = vld [vmem:[%s5884_s5 + $0x40] sm:$0xff]  ;;  %v4487_v27 = vld [vmem:[%s5884_s5 + $0xb8] sm:$0xff]  ;;  %v1057_v38 = vld [vmem:[#allocation2 + $0xc] sm:$0xf] }
  0x79   : > { %4563 = vmatpush.bf16.msra.mxu2 %v4476_v62  ;;  %1447 = vmatpush.bf16.msra.mxu0 %v4476_v62  ;;  %v885_v50 = vpack.c.bf16 %v869_v40, %v869_v40  ;;  %v963_v51 = vshrl.u32 %v884_v41, 16  ;;  %v966_v59 = vshll.u32 %v884_v41, 16  ;;  %v845_v7 = vadd.f32 %v4925_v44, %v826_v34  ;;  %v4511_v34 = vld [vmem:[%s5884_s5 + $0x138] sm:$0xff] }
  0x7a   : > { %v951_v46 = vor.u32 %v949_v22, %v948_v30  ;;  %v952_v47 = vrot.slane %v948_v30, 4  ;;  %v959_v48 = vor.u32 %v957_v24, %v956_v31  ;;  %v961_v0 = vrot.slane %v956_v31, 4 }
  0x7b   : > { %v1380_v61 = vpack.c.b16 %v4999_v1, %v4997_v49  ;;  %v965_v62 = vrot.slane %v963_v51, 7  ;;  %v971_v63 = vshrl.u32 %v885_v50, 16  ;;  %v974_v3 = vshll.u32 %v885_v50, 16 }
  0x7c   : > { %4572 = vmatpush.bf16.msra.mxu3 %v4467_v19  ;;  %1593 = vmatpush.bf16.msra.mxu1 %v4467_v19  ;;  %v960_v56 = vsel %vm4968_vm4, %v952_v47, %v959_v48  ;;  %v1079_v57 = vsel %vm4983_vm1, %v951_v46, %v1078_v32  ;;  %v1083_v58 = vsel %vm4781_vm2, %v961_v0, %v1082_v37  ;;  %v860_v8 = vmax.f32 %v844_v35, 0.0  ;;  %v4503_v32 = vld [vmem:[%s5884_s5 + $0xf8] sm:$0xff]  ;;  %v818_v0 = vld [vmem:[%s4812_s26 + $0x60] sm:$0xff] }
  0x7d   : > { %4564 = vmatpush.bf16.msra.mxu2 %v4475_v20  ;;  %1448 = vmatpush.bf16.msra.mxu0 %v4475_v20  ;;  %1080 = vst [vmem:[#allocation2 + $0x30] sm:$0xf] %v1079_v57  ;;  %v835_v9 = vmul.f32 %v4922_v43, %v816_v54  ;;  %v968_v10 = vor.u32 %v966_v59, %v965_v62  ;;  %v969_v11 = vrot.slane %v965_v62, 4  ;;  %v973_v12 = vrot.slane %v971_v63, 7  ;;  %v4464_v20 = vld [vmem:[%s5884_s5] sm:$0xff] }
  0x7e   : > { %1081 = vst [vmem:[#allocation2 + $0x34] sm:$0xf] %v960_v56  ;;  %v836_v13 = vmul.f32 %v4922_v43, %v817_v60  ;;  %v861_v15 = vmax.f32 %v845_v7, 0.0  ;;  %v876_v16 = vpack.c.bf16 %v860_v8, %v860_v8  ;;  %v827_v19 = vmul.f32 %v4922_v43, %v808_v4  ;;  %v4519_v7 = vld [vmem:[%s5884_s5 + $0x178] sm:$0xff] }
  0x7f   : > { %1084 = vst [vmem:[#allocation2 + $0x38] sm:$0x1] %v1083_v58  ;;  %v854_v17 = vadd.f32 %v4925_v44, %v835_v9  ;;  %v976_v22 = vor.u32 %v974_v3, %v973_v12  ;;  %v978_v23 = vrot.slane %v973_v12, 4  ;;  %v1086_v24 = vsel %vm4983_vm1, %v968_v10, %v1085_v6  ;;  %v4486_v6 = vld [vmem:[%s5884_s5 + $0xb0] sm:$0xff] }
  0x80   : > { %4573 = vmatpush.bf16.msra.mxu3 %v4466_v42  ;;  %1594 = vmatpush.bf16.msra.mxu1 %v4466_v42  ;;  %v855_v26 = vadd.f32 %v4925_v44, %v836_v13  ;;  %1087 = vst [vmem:[#allocation2 + $0x3c] sm:$0xf] %v1086_v24  ;;  %v5036_v28 = vpack.c.bf16 %v861_v15, %v861_v15  ;;  %v895_v29 = vshrl.u32 %v876_v16, 16  ;;  %v898_v30 = vshll.u32 %v876_v16, 16  ;;  %v4456_v42 = vld [vmem:[#allocation2] sm:$0xff]  ;;  %v819_v15 = vld [vmem:[%s4812_s26 + $0x68] sm:$0xff] }
  0x81   : > { %4565 = vmatpush.bf16.msra.mxu2 %v4474_v45  ;;  %1449 = vmatpush.bf16.msra.mxu0 %v4474_v45  ;;  %v870_v31 = vmax.f32 %v854_v17, 0.0  ;;  %v977_v35 = vsel %vm4968_vm4, %v969_v11, %v976_v22  ;;  %v1090_v37 = vsel %vm4781_vm2, %v978_v23, %v1089_v14  ;;  %v828_v40 = vmul.f32 %v4922_v43, %v809_v18  ;;  %v4502_v11 = vld [vmem:[%s5884_s5 + $0xf0] sm:$0xff] }
  0x82   : > { %v871_v39 = vmax.f32 %v855_v26, 0.0  ;;  %1088 = vst [vmem:[#allocation2 + $0x40] sm:$0xf] %v977_v35  ;;  %v5049_v45 = vrot.slane %v895_v29, 7  ;;  %v903_v46 = vshrl.u32 %v5036_v28, 16  ;;  %v5055_v48 = vadd.f32 %v4925_v44, %v827_v19  ;;  %v4510_v14 = vld [vmem:[%s5884_s5 + $0x130] sm:$0xff] }
  0x83   : > { %v5052_v47 = vpack.c.bf16 %v870_v31, %v870_v31  ;;  %v906_v56 = vshll.u32 %v5036_v28, 16  ;;  %1091 = vst [vmem:[#allocation2 + $0x44] sm:$0x1] %v1090_v37  ;;  %v5063_v63 = vadd.f32 %v4925_v44, %v828_v40  ;;  %v1061_v26 = vld [vmem:[#allocation2 + $0x14] sm:$0x1]  ;;  %v4485_v35 = vld [vmem:[%s5884_s5 + $0xa8] sm:$0xff] }
  0x84   : > { %4574 = vmatpush.bf16.msra.mxu3 %v4465_v55  ;;  %1595 = vmatpush.bf16.msra.mxu1 %v4465_v55  ;;  %v1121_v41 = vld [vmem:[#allocation2 + $0x30] sm:$0xf]  ;;  %v5059_v57 = vpack.c.bf16 %v871_v39, %v871_v39  ;;  %v900_v62 = vor.u32 %v898_v30, %v5049_v45  ;;  %v901_v8 = vrot.slane %v5049_v45, 4  ;;  %v905_v12 = vrot.slane %v903_v46, 7  ;;  %v4501_v37 = vld [vmem:[%s5884_s5 + $0xe8] sm:$0xff] }
  0x85   : > { %4566 = vmatpush.bf16.msra.mxu2 %v4473_v5  ;;  %1450 = vmatpush.bf16.msra.mxu0 %v4473_v5  ;;  %v4460_v50 = vld [vmem:[#allocation2 + $0x30] sm:$0xff]  ;;  %v1253_v54 = vshrl.u32 %v1121_v41, 16  ;;  %v1256_v55 = vshll.u32 %v1121_v41, 16  ;;  %v980_v19 = vshrl.u32 %v5052_v47, 16  ;;  %v4509_v45 = vld [vmem:[%s5884_s5 + $0x128] sm:$0xff]  ;;  %vm1662_vm3 = vcmask 1042432  }
  0x86   : > { %v1122_v51 = vld [vmem:[#allocation2 + $0x34] sm:$0xf]  ;;  %v1149_v58 = vld [vmem:[#allocation2 + $0x38] sm:$0x1]  ;;  %v1058_v13 = vsel %vm4983_vm1, %v900_v62, %v1057_v38  ;;  %v908_v24 = vor.u32 %v906_v56, %v905_v12  ;;  %v910_v29 = vrot.slane %v905_v12, 4  ;;  %v4517_v62 = vld [vmem:[%s5884_s5 + $0x168] sm:$0xff] }
  0x87   : > { %v1262_v59 = vshll.u32 %v1122_v51, 16  ;;  %v1266_v60 = vshrl.u32 %v1122_v51, 16  ;;  %v1255_v3 = vrot.slane %v1253_v54, 4  ;;  %v1258_v4 = vrot.slane %v1256_v55, 5  ;;  %v1123_v18 = vld [vmem:[#allocation2 + $0x3c] sm:$0xf]  ;;  %vm5251_vm7 = vmor %vm1662_vm3, %vm1663_vm6 }
  0x88   : > { %4575 = vmatpush.bf16.msra.mxu3 %v4464_v20  ;;  %1596 = vmatpush.bf16.msra.mxu1 %v4464_v20  ;;  %v1272_v5 = vshll.u32 %v1149_v58, 16  ;;  %1059 = vst [vmem:[#allocation2 + $0xc] sm:$0xf] %v1058_v13  ;;  %v5083_v20 = vmul.f32 %v4922_v43, %v818_v0  ;;  %v1277_v22 = vshrl.u32 %v1123_v18, 16  ;;  %v1280_v23 = vshll.u32 %v1123_v18, 16  ;;  %v4518_v30 = vld [vmem:[%s5884_s5 + $0x170] sm:$0xff] }
  0x89   : > { %4567 = vmatpush.bf16.msra.mxu2 %v4472_v21  ;;  %1451 = vmatpush.bf16.msra.mxu0 %v4472_v21  ;;  %v1264_v9 = vrot.slane %v1262_v59, 5  ;;  %v1268_v10 = vrot.slane %v1266_v60, 4  ;;  %v1259_v16 = vor.u32 %v1258_v4, %v1255_v3  ;;  %v1124_v28 = vld [vmem:[#allocation2 + $0x40] sm:$0xf]  ;;  %v5091_v31 = vrot.slane %v980_v19, 7 }
  0x8a   : > { %v1274_v17 = vrot.slane %v1272_v5, 5  ;;  %v1279_v1 = vrot.slane %v1277_v22, 4  ;;  %v1150_v39 = vld [vmem:[#allocation2 + $0x44] sm:$0x1]  ;;  %v1290_v40 = vshrl.u32 %v1124_v28, 16  ;;  %v909_v41 = vsel %vm4968_vm4, %v901_v8, %v908_v24  ;;  %v4461_v19 = vld [vmem:[#allocation2 + $0x3c] sm:$0xff] }
  0x8b   : > { %1617 = vmatmul.bf16.vlgmr.msra.gmra.mxu3 %v4460_v50  ;;  %v1269_v21 = vor.u32 %v1268_v10, %v1264_v9  ;;  %1597 = vmatmul.bf16.vlgmr.msra.gmra.mxu1 %v4456_v42  ;;  %v1062_v42 = vsel %vm4781_vm2, %v910_v29, %v1061_v26  ;;  %1060 = vst [vmem:[#allocation2 + $0x10] sm:$0xf] %v909_v41  ;;  %v4484_v54 = vld [vmem:[%s5884_s5 + $0xa0] sm:$0xff]  ;;  %v1296_v59 = vshll.u32 %v1150_v39, 16  ;;  %v983_v60 = vshll.u32 %v5052_v47, 16 }
  0x8c   : > { %2010 = vmatpush.bf16.msrb.mxu3 %v4503_v32  ;;  %1452 = vmatmul.bf16.vlgmr.msra.gmra.mxu0 %v1380_v61  ;;  %v5094_v32 = vmul.f32 %v4922_v43, %v819_v15  ;;  %v1282_v61 = vrot.slane %v1280_v23, 5  ;;  %v4500_v55 = vld [vmem:[%s5884_s5 + $0xe0] sm:$0xff]  ;;  %v1292_v58 = vrot.slane %v1290_v40, 4  ;;  %1063 = vst [vmem:[#allocation2 + $0x14] sm:$0x1] %v1062_v42  ;;  %v986_v5 = vrot.slane %v5091_v31, 4 }
  0x8d   : > { %1817 = vmatpush.bf16.msrb.mxu2 %v4487_v27  ;;  %2387 = vmatpush.bf16.msrb.mxu0 %v4511_v34  ;;  %v1260_v27 = vrot.slane %v1259_v16, 4  ;;  %v1270_v49 = vrot.slane %v1269_v21, 4  ;;  %v1286_v34 = vshll.u32 %v1124_v28, 16  ;;  %v1298_v10 = vrot.slane %v1296_v59, 5  ;;  %v1092_v47 = vld [vmem:[#allocation2 + $0x48] sm:$0xf] }
  0x8e   : > { %2636 = vmatpush.bf16.msrb.mxu1 %v4519_v7  ;;  %v1283_v50 = vor.u32 %v1282_v61, %v1279_v1  ;;  %v991_v7 = vshll.u32 %v5059_v57, 16  ;;  %v1096_v26 = vld [vmem:[#allocation2 + $0x50] sm:$0x1]  ;;  %v4516_v42 = vld [vmem:[%s5884_s5 + $0x160] sm:$0xff] }
  0x8f   : > { %v1265_v38 = vsel %vm4975_vm5, %v1260_v27, %v1264_v9  ;;  %v1275_v46 = vsel %vm4975_vm5, %v1270_v49, %v1274_v17  ;;  %v1288_v51 = vrot.slane %v1286_v34, 5  ;;  %v1115_v4 = vld [vmem:[#allocation2 + $0xc] sm:$0xf]  ;;  %v4483_v27 = vld [vmem:[%s5884_s5 + $0x98] sm:$0xff]  ;;  %v856_v49 = vadd.f32 %v4925_v44, %v5083_v20 }
  0x90   : > { %2011 = vmatpush.bf16.msrb.mxu3 %v4502_v11  ;;  %v1372_v0 = vunpack.c.l.b16 %v1265_v38  ;;  %v1373_v56 = vunpack.c.l.b16 %v1275_v46  ;;  %v1284_v3 = vrot.slane %v1283_v50, 4  ;;  %v1181_v11 = vshrl.u32 %v1115_v4, 16  ;;  %v4499_v38 = vld [vmem:[%s5884_s5 + $0xd8] sm:$0xff]  ;;  %v4498_v46 = vld [vmem:[%s5884_s5 + $0xd0] sm:$0xff]  ;;  %v811_v50 = vld [vmem:[%s4812_s26 + $0x28] sm:$0xff] }
  0x91   : > { %1818 = vmatpush.bf16.msrb.mxu2 %v4486_v6  ;;  %2388 = vmatpush.bf16.msrb.mxu0 %v4510_v14  ;;  %v988_v6 = vshrl.u32 %v5059_v57, 16  ;;  %v1293_v9 = vor.u32 %v1292_v58, %v1288_v51  ;;  %v1184_v13 = vshll.u32 %v1115_v4, 16  ;;  %v985_v14 = vor.u32 %v983_v60, %v5091_v31  ;;  %v4507_v58 = vld [vmem:[%s5884_s5 + $0x118] sm:$0xff] }
  0x92   : > { %2637 = vmatpush.bf16.msrb.mxu1 %v4518_v30  ;;  %v1384_v8 = vpack.c.b16 %v1373_v56, %v1372_v0  ;;  %v1289_v12 = vsel %vm4975_vm5, %v1284_v3, %v1288_v51  ;;  %v1183_v18 = vrot.slane %v1181_v11, 4  ;;  %v862_v57 = vmax.f32 %v5055_v48, 0.0  ;;  %v5139_v29 = vld [vmem:[#allocation2 + $0x10] sm:$0xf]  ;;  %v810_v0 = vld [vmem:[%s4812_s26 + $0x20] sm:$0xff] }
  0x93   : > { %v990_v15 = vrot.slane %v988_v6, 7  ;;  %v1294_v16 = vrot.slane %v1293_v9, 4  ;;  %v5129_v17 = vunpack.c.l.b16 %v1289_v12  ;;  %v1186_v21 = vrot.slane %v1184_v13, 5  ;;  %v4457_v48 = vld [vmem:[#allocation2 + $0xc] sm:$0xff]  ;;  %v5146_v61 = vld [vmem:[#allocation2 + $0x14] sm:$0x1] }
  0x94   : > { %2012 = vmatpush.bf16.msrb.mxu3 %v4501_v37  ;;  %1472 = vmatmul.bf16.vlgmr.msra.gmra.mxu2 %v1384_v8  ;;  %v1093_v24 = vsel %vm4983_vm1, %v985_v14, %v1092_v47  ;;  %v863_v30 = vmax.f32 %v5063_v63, 0.0  ;;  %v878_v31 = vpack.c.bf16 %v862_v57, %v862_v57  ;;  %v1194_v37 = vshrl.u32 %v5139_v29, 16  ;;  %v4508_v63 = vld [vmem:[%s5884_s5 + $0x120] sm:$0xff]  ;;  %v4515_v47 = vld [vmem:[%s5884_s5 + $0x158] sm:$0xff] }
  0x95   : > { %1819 = vmatpush.bf16.msrb.mxu2 %v4485_v35  ;;  %2389 = vmatpush.bf16.msrb.mxu0 %v4509_v45  ;;  %v993_v22 = vor.u32 %v991_v7, %v990_v15  ;;  %v995_v23 = vrot.slane %v990_v15, 4  ;;  %v1299_v28 = vsel %vm4975_vm5, %v1294_v16, %v1298_v10  ;;  %1094 = vst [vmem:[#allocation2 + $0x48] sm:$0xf] %v1093_v24  ;;  %v1190_v35 = vshll.u32 %v5139_v29, 16  ;;  %v4482_v45 = vld [vmem:[%s5884_s5 + $0x90] sm:$0xff] }
  0x96   : > { %2638 = vmatpush.bf16.msrb.mxu1 %v4517_v62  ;;  %v5144_v1 = vunpack.c.l.b16 %v1299_v28  ;;  %v1187_v34 = vor.u32 %v1186_v21, %v1183_v18  ;;  %v1200_v20 = vshll.u32 %v5146_v61, 16  ;;  %v879_v41 = vpack.c.bf16 %v863_v30, %v863_v30  ;;  %v1064_v14 = vld [vmem:[#allocation2 + $0x18] sm:$0xf] }
  0x97   : > { %v994_v39 = vsel %vm4968_vm4, %v986_v5, %v993_v22  ;;  %v1097_v40 = vsel %vm4781_vm2, %v995_v23, %v1096_v26  ;;  %v1196_v56 = vrot.slane %v1194_v37, 4  ;;  %v912_v60 = vshrl.u32 %v878_v31, 16  ;;  %v1068_v22 = vld [vmem:[#allocation2 + $0x20] sm:$0x1] }
  0x98   : > { %2013 = vmatpush.bf16.msrb.mxu3 %v4500_v55  ;;  %v1385_v51 = vpack.c.b16 %v5144_v1, %v5129_v17  ;;  %v1192_v55 = vrot.slane %v1190_v35, 5  ;;  %1095 = vst [vmem:[#allocation2 + $0x4c] sm:$0xf] %v994_v39  ;;  %v1202_v59 = vrot.slane %v1200_v20, 5  ;;  %v915_v62 = vshll.u32 %v878_v31, 16 }
  0x99   : > { %1820 = vmatpush.bf16.msrb.mxu2 %v4484_v54  ;;  %v1188_v54 = vrot.slane %v1187_v34, 4  ;;  %1098 = vst [vmem:[#allocation2 + $0x50] sm:$0x1] %v1097_v40  ;;  %v920_v3 = vshrl.u32 %v879_v41, 16  ;;  %2390 = vmatpush.bf16.msrb.mxu0 %v4508_v63  ;;  %v923_v6 = vshll.u32 %v879_v41, 16  ;;  %v857_v7 = vadd.f32 %v4925_v44, %v5094_v32 }
  0x9a   : > { %v1197_v5 = vor.u32 %v1196_v56, %v1192_v55  ;;  %v914_v9 = vrot.slane %v912_v60, 7  ;;  %2639 = vmatpush.bf16.msrb.mxu1 %v4516_v42  ;;  %v872_v11 = vmax.f32 %v856_v49, 0.0  ;;  %v829_v16 = vmul.f32 %v4922_v43, %v810_v0 }
  0x9b   : > { %1622 = vmatmul.bf16.gmra.mxu3 %v4461_v19  ;;  %v1193_v4 = vsel %vm4975_vm5, %v1188_v54, %v1192_v55  ;;  %1602 = vmatmul.bf16.gmra.mxu1 %v4457_v48  ;;  %v922_v10 = vrot.slane %v920_v3, 7  ;;  %v873_v15 = vmax.f32 %v857_v7, 0.0  ;;  %v830_v18 = vmul.f32 %v4922_v43, %v811_v50 }
  0x9c   : > { %2014 = vmatpush.bf16.msrb.mxu3 %v4499_v38  ;;  %v1366_v8 = vunpack.c.l.b16 %v1193_v4  ;;  %v1198_v12 = vrot.slane %v1197_v5, 4  ;;  %v1125_v13 = vld [vmem:[#allocation2 + $0x48] sm:$0xf]  ;;  %v917_v19 = vor.u32 %v915_v62, %v914_v9  ;;  %v918_v21 = vrot.slane %v914_v9, 4 }
  0x9d   : > { %1821 = vmatpush.bf16.msrb.mxu2 %v4483_v27  ;;  %v1301_v32 = vshrl.u32 %v1125_v13, 16  ;;  %v1304_v57 = vshll.u32 %v1125_v13, 16  ;;  %2391 = vmatpush.bf16.msrb.mxu0 %v4507_v58  ;;  %v925_v24 = vor.u32 %v923_v6, %v922_v10  ;;  %v927_v26 = vrot.slane %v922_v10, 4  ;;  %v4481_v58 = vld [vmem:[%s5884_s5 + $0x88] sm:$0xff]  ;;  %v1099_v6 = vld [vmem:[#allocation2 + $0x54] sm:$0xf] }
  0x9e   : > { %v1203_v23 = vsel %vm4975_vm5, %v1198_v12, %v1202_v59  ;;  %v888_v27 = vpack.c.bf16 %v872_v11, %v872_v11  ;;  %v1065_v49 = vsel %vm4983_vm1, %v917_v19, %v1064_v14  ;;  %2640 = vmatpush.bf16.msrb.mxu1 %v4515_v47  ;;  %v889_v41 = vpack.c.bf16 %v873_v15, %v873_v15 }
  0x9f   : > { %v1367_v28 = vunpack.c.l.b16 %v1203_v23  ;;  %v1126_v48 = vld [vmem:[#allocation2 + $0x4c] sm:$0xf]  ;;  %v1303_v30 = vrot.slane %v1301_v32, 4  ;;  %v1306_v31 = vrot.slane %v1304_v57, 5  ;;  %v926_v38 = vsel %vm4968_vm4, %v918_v21, %v925_v24  ;;  %1066 = vst [vmem:[#allocation2 + $0x18] sm:$0xf] %v1065_v49 }
  0xa0   : > { %2015 = vmatpush.bf16.msrb.mxu3 %v4498_v46  ;;  %v1151_v34 = vld [vmem:[#allocation2 + $0x50] sm:$0x1]  ;;  %v1310_v35 = vshll.u32 %v1126_v48, 16  ;;  %v1314_v37 = vshrl.u32 %v1126_v48, 16  ;;  %v1069_v63 = vsel %vm4781_vm2, %v927_v26, %v1068_v22  ;;  %1067 = vst [vmem:[#allocation2 + $0x1c] sm:$0xf] %v926_v38  ;;  %v848_v62 = vadd.f32 %v4925_v44, %v829_v16 }
  0xa1   : > { %1822 = vmatpush.bf16.msrb.mxu2 %v4482_v45  ;;  %v1381_v20 = vpack.c.b16 %v1367_v28, %v1366_v8  ;;  %v1307_v39 = vor.u32 %v1306_v31, %v1303_v30  ;;  %v1320_v40 = vshll.u32 %v1151_v34, 16  ;;  %1070 = vst [vmem:[#allocation2 + $0x20] sm:$0x1] %v1069_v63  ;;  %v997_v46 = vshrl.u32 %v888_v27, 16  ;;  %v4462_v4 = vld [vmem:[#allocation2 + $0x48] sm:$0xff]  ;;  %v4506_v63 = vld [vmem:[%s5884_s5 + $0x110] sm:$0xff] }
  0xa2   : > { %v1312_v42 = vrot.slane %v1310_v35, 5  ;;  %v1316_v45 = vrot.slane %v1314_v37, 4  ;;  %v1000_v0 = vshll.u32 %v888_v27, 16  ;;  %v1005_v55 = vshrl.u32 %v889_v41, 16  ;;  %v1103_v8 = vld [vmem:[#allocation2 + $0x5c] sm:$0x1]  ;;  %2392 = vmatpush.bf16.msrb.mxu0 %v4506_v63 }
  0xa3   : > { %1457 = vmatmul.bf16.gmra.mxu0 %v1381_v20  ;;  %v1308_v50 = vrot.slane %v1307_v39, 4  ;;  %v1322_v54 = vrot.slane %v1320_v40, 5  ;;  %v1008_v56 = vshll.u32 %v889_v41, 16  ;;  %v999_v60 = vrot.slane %v997_v46, 7  ;;  %v4497_v38 = vld [vmem:[%s5884_s5 + $0xc8] sm:$0xff]  ;;  %v4514_v20 = vld [vmem:[%s5884_s5 + $0x150] sm:$0xff] }
  0xa4   : > { %1477 = vmatmul.bf16.gmra.mxu2 %v1385_v51  ;;  %v1317_v59 = vor.u32 %v1316_v45, %v1312_v42  ;;  %v849_v3 = vadd.f32 %v4925_v44, %v830_v18  ;;  %v1007_v5 = vrot.slane %v1005_v55, 7  ;;  %v864_v47 = vmax.f32 %v848_v62, 0.0  ;;  %2016 = vmatpush.bf16.msrb.mxu3 %v4497_v38 }
  0xa5   : > { %1823 = vmatpush.bf16.msrb.mxu2 %v4481_v58  ;;  %v1313_v17 = vsel %vm4975_vm5, %v1308_v50, %v1312_v42  ;;  %v1002_v51 = vor.u32 %v1000_v0, %v999_v60  ;;  %v1003_v7 = vrot.slane %v999_v60, 4  ;;  %v4480_v42 = vld [vmem:[%s5884_s5 + $0x80] sm:$0xff]  ;;  %2641 = vmatpush.bf16.msrb.mxu1 %v4514_v20  ;;  %v1667_v62 = vrot.slane %v4939_v52, 5 }
  0xa6   : > { %v1318_v1 = vrot.slane %v1317_v59, 4  ;;  %v1117_v9 = vld [vmem:[#allocation2 + $0x18] sm:$0xf]  ;;  %v1010_v10 = vor.u32 %v1008_v56, %v1007_v5  ;;  %v1012_v11 = vrot.slane %v1007_v5, 4  ;;  %v865_v12 = vmax.f32 %v849_v3, 0.0  ;;  %v4496_v50 = vld [vmem:[%s5884_s5 + $0xc0] sm:$0xff] }
  0xa7   : > { %v5206_v14 = vld [vmem:[#allocation2 + $0x1c] sm:$0xf]  ;;  %v1205_v15 = vshrl.u32 %v1117_v9, 16  ;;  %v1208_v16 = vshll.u32 %v1117_v9, 16  ;;  %v1100_v32 = vsel %vm4983_vm1, %v1002_v51, %v1099_v6  ;;  %v1376_v57 = vunpack.c.l.b16 %v1313_v17  ;;  %v4513_v59 = vld [vmem:[%s5884_s5 + $0x148] sm:$0xff] }
  0xa8   : > { %v1323_v13 = vsel %vm4975_vm5, %v1318_v1, %v1322_v54  ;;  %v4458_v18 = vld [vmem:[#allocation2 + $0x18] sm:$0xff]  ;;  %v5210_v19 = vld [vmem:[#allocation2 + $0x20] sm:$0x1]  ;;  %v1214_v21 = vshll.u32 %v5206_v14, 16  ;;  %v1218_v22 = vshrl.u32 %v5206_v14, 16  ;;  %v1011_v23 = vsel %vm4968_vm4, %v1003_v7, %v1010_v10  ;;  %v4505_v54 = vld [vmem:[%s5884_s5 + $0x108] sm:$0xff]  ;;  %2017 = vmatpush.bf16.msrb.mxu3 %v4496_v50 }
  0xa9   : > { %1101 = vst [vmem:[#allocation2 + $0x54] sm:$0xf] %v1100_v32  ;;  %v1207_v24 = vrot.slane %v1205_v15, 4  ;;  %v1210_v26 = vrot.slane %v1208_v16, 5  ;;  %v1224_v27 = vshll.u32 %v5210_v19, 16  ;;  %v1104_v28 = vsel %vm4781_vm2, %v1012_v11, %v1103_v8  ;;  %1824 = vmatpush.bf16.msrb.mxu2 %v4480_v42  ;;  %2393 = vmatpush.bf16.msrb.mxu0 %v4505_v54  ;;  %v4504_v32 = vld [vmem:[%s5884_s5 + $0x100] sm:$0xff] }
  0xaa   : > { %1102 = vst [vmem:[#allocation2 + $0x58] sm:$0xf] %v1011_v23  ;;  %v1377_v48 = vunpack.c.l.b16 %v1323_v13  ;;  %v1216_v30 = vrot.slane %v1214_v21, 5  ;;  %v1220_v31 = vrot.slane %v1218_v22, 4  ;;  %v880_v49 = vpack.c.bf16 %v864_v47, %v864_v47  ;;  %v1638_v60 = vld [vmem:[#allocation2] sm:$0xe]  ;;  %2642 = vmatpush.bf16.msrb.mxu1 %v4513_v59 }
  0xab   : > { %1627 = vmatmul.bf16.gmra.mxu3 %v4462_v4  ;;  %1607 = vmatmul.bf16.gmra.mxu1 %v4458_v18  ;;  %1105 = vst [vmem:[#allocation2 + $0x5c] sm:$0x1] %v1104_v28  ;;  %v1211_v34 = vor.u32 %v1210_v26, %v1207_v24  ;;  %v1226_v35 = vrot.slane %v1224_v27, 5  ;;  %v881_v37 = vpack.c.bf16 %v865_v12, %v865_v12  ;;  %v4108_v6 = vrot.slane %v1638_v60, 9  ;;  %v1071_v13 = vld [vmem:[#allocation2 + $0x24] sm:$0xf] }
  0xac   : > { %v1221_v39 = vor.u32 %v1220_v31, %v1216_v30  ;;  %v929_v40 = vshrl.u32 %v880_v49, 16  ;;  %v932_v41 = vshll.u32 %v880_v49, 16  ;;  %v1386_v55 = vpack.c.b16 %v1377_v48, %v1376_v57  ;;  %v4535_v21 = vld [vmem:[%s5884_s5 + $0x1b8] sm:$0xff]  ;;  %v1075_v27 = vld [vmem:[#allocation2 + $0x2c] sm:$0x1] }
  0xad   : > { %v1212_v45 = vrot.slane %v1211_v34, 4  ;;  %v937_v46 = vshrl.u32 %v881_v37, 16  ;;  %v940_v0 = vshll.u32 %v881_v37, 16  ;;  %v1670_v17 = vrot.slane %v4941_v53, 5  ;;  %2830 = vmatpush.bf16.msra.mxu2 %v4535_v21  ;;  %2394 = vmatpush.bf16.msrb.mxu0 %v4504_v32  ;;  %v1639_v32 = vld [vmem:[#allocation2 + $0xc] sm:$0xe] }
  0xae   : > { %v1222_v56 = vrot.slane %v1221_v39, 4  ;;  %v931_v58 = vrot.slane %v929_v40, 7  ;;  %v1668_v37 = vsel %vm5251_vm7, %v4108_v6, %v1667_v62  ;;  %v1669_v38 = vrot.slane %v1667_v62, 4  ;;  %v4543_v62 = vld [vmem:[%s5884_s5 + $0x1f8] sm:$0xff]  ;;  %v5756_v57 = vld [vmem:[%s5888_s9] ss:$0 sm:$0xff] }
  0xaf   : > { %v1217_v3 = vsel %vm4975_vm5, %v1212_v45, %v1216_v30  ;;  %v939_v5 = vrot.slane %v937_v46, 7  ;;  %v1737_v39 = vunpack.c.l.b16 %v1668_v37  ;;  %v2075_v46 = vld [vmem:[#allocation2 + $0xc] sm:$0xf]  ;;  %3207 = vmatpush.bf16.msra.mxu3 %v4543_v62 }
  0xb0   : > { %v1127_v4 = vld [vmem:[#allocation2 + $0x54] sm:$0xf]  ;;  %v1227_v1 = vsel %vm4975_vm5, %v1222_v56, %v1226_v35  ;;  %v1368_v51 = vunpack.c.l.b16 %v1217_v3  ;;  %v934_v52 = vor.u32 %v932_v41, %v931_v58  ;;  %v935_v53 = vrot.slane %v931_v58, 4  ;;  %v2076_v56 = vld [vmem:[#allocation2 + $0x10] sm:$0xf]  ;;  %v4512_v58 = vld [vmem:[%s5884_s5 + $0x140] sm:$0xff] }
  0xb1   : > { %v1128_v7 = vld [vmem:[#allocation2 + $0x58] sm:$0xf]  ;;  %v1325_v8 = vshrl.u32 %v1127_v4, 16  ;;  %v1328_v9 = vshll.u32 %v1127_v4, 16  ;;  %v1369_v10 = vunpack.c.l.b16 %v1227_v1  ;;  %v942_v26 = vor.u32 %v940_v0, %v939_v5  ;;  %2643 = vmatpush.bf16.msrb.mxu1 %v4512_v58 }
  0xb2   : > { %v1152_v11 = vld [vmem:[#allocation2 + $0x5c] sm:$0x1]  ;;  %v1334_v47 = vshll.u32 %v1128_v7, 16  ;;  %v1338_v12 = vshrl.u32 %v1128_v7, 16  ;;  %v4463_v28 = vld [vmem:[#allocation2 + $0x54] sm:$0xff]  ;;  %v944_v31 = vrot.slane %v939_v5, 4  ;;  %v1072_v49 = vsel %vm4983_vm1, %v934_v52, %v1071_v13 }
  0xb3   : > { %v1327_v15 = vrot.slane %v1325_v8, 4  ;;  %v1330_v16 = vrot.slane %v1328_v9, 5  ;;  %v1344_v18 = vshll.u32 %v1152_v11, 16  ;;  %v1382_v22 = vpack.c.b16 %v1369_v10, %v1368_v51  ;;  %1073 = vst [vmem:[#allocation2 + $0x24] sm:$0xf] %v1072_v49  ;;  %v4551_v3 = vld [vmem:[%s5884_s5 + $0x238] sm:$0xff] }
  0xb4   : > { %1482 = vmatmul.bf16.gmra.mxu2 %v1386_v55  ;;  %v1336_v23 = vrot.slane %v1334_v47, 5  ;;  %v1340_v24 = vrot.slane %v1338_v12, 4  ;;  %v943_v35 = vsel %vm4968_vm4, %v935_v53, %v942_v26  ;;  %v1076_v20 = vsel %vm4781_vm2, %v944_v31, %v1075_v27  ;;  %v2452_v5 = vld [vmem:[#allocation2 + $0xc] sm:$0xe]  ;;  %v2077_v9 = vld [vmem:[#allocation2 + $0x14] sm:$0x1]  ;;  %3456 = vmatpush.bf16.msra.mxu0 %v4551_v3 }
  0xb5   : > { %v1331_v48 = vor.u32 %v1330_v16, %v1327_v15  ;;  %v1346_v30 = vrot.slane %v1344_v18, 5  ;;  %1462 = vmatmul.bf16.gmra.mxu0 %v1382_v22  ;;  %1074 = vst [vmem:[#allocation2 + $0x28] sm:$0xf] %v943_v35  ;;  %v1671_v41 = vsel %vm5251_vm7, %v1669_v38, %v1670_v17  ;;  %v2100_v59 = vshrl.u32 %v2075_v46, 16  ;;  %v4559_v17 = vld [vmem:[%s5887_s8 + $0x38] sm:$0xff]  ;;  %v4534_v35 = vld [vmem:[%s5884_s5 + $0x1b0] sm:$0xff] }
  0xb6   : > { %v1341_v34 = vor.u32 %v1340_v24, %v1336_v23  ;;  %1077 = vst [vmem:[#allocation2 + $0x2c] sm:$0x1] %v1076_v20  ;;  %v1738_v45 = vunpack.c.l.b16 %v1671_v41  ;;  %v2103_v60 = vshll.u32 %v2075_v46, 16  ;;  %v2486_v6 = vrot.slane %v2076_v56, 5  ;;  %3681 = vmatpush.bf16.msra.mxu1 %v4559_v17  ;;  %2831 = vmatpush.bf16.msra.mxu2 %v4534_v35  ;;  %v2078_v17 = vld [vmem:[#allocation2 + $0x18] sm:$0xf] }
  0xb7   : > { %v1332_v63 = vrot.slane %v1331_v48, 4  ;;  %v2109_v10 = vshll.u32 %v2076_v56, 16  ;;  %v2113_v13 = vshrl.u32 %v2076_v56, 16  ;;  %v4244_v53 = vrot.slane %v2452_v5, 9  ;;  %v4489_v35 = vld [vmem:[#allocation2 + $0x18] sm:$0xff] }
  0xb8   : > { %v1342_v40 = vrot.slane %v1341_v34, 4  ;;  %v5272_v55 = vpack.c.b16 %v1738_v45, %v1737_v39  ;;  %v2489_v24 = vrot.slane %v2077_v9, 5  ;;  %v2102_v27 = vrot.slane %v2100_v59, 4  ;;  %v4488_v39 = vld [vmem:[#allocation2 + $0xc] sm:$0xff] }
  0xb9   : > { %v1337_v42 = vsel %vm4975_vm5, %v1332_v63, %v1336_v23  ;;  %v2488_v23 = vrot.slane %v2486_v6, 4  ;;  %v2111_v48 = vrot.slane %v2109_v10, 5  ;;  %v2115_v49 = vrot.slane %v2113_v13, 4  ;;  %v4542_v10 = vld [vmem:[%s5884_s5 + $0x1f0] sm:$0xff]  ;;  %v2453_v13 = vld [vmem:[#allocation2 + $0x18] sm:$0xe] }
  0xba   : > { %v1347_v0 = vsel %vm4975_vm5, %v1342_v40, %v1346_v30  ;;  %v1378_v50 = vunpack.c.l.b16 %v1337_v42  ;;  %v1119_v4 = vld [vmem:[#allocation2 + $0x24] sm:$0xf]  ;;  %v4109_v34 = vrot.slane %v1639_v32, 9  ;;  %v1674_v38 = vrot.slane %v5139_v29, 5  ;;  %3208 = vmatpush.bf16.msra.mxu3 %v4542_v10  ;;  %v2080_v32 = vld [vmem:[#allocation2 + $0x20] sm:$0x1] }
  0xbb   : > { %1632 = vmatmul.bf16.gmra.mxu3 %v4463_v28  ;;  %v1379_v54 = vunpack.c.l.b16 %v1347_v0  ;;  %v1229_v51 = vshrl.u32 %v1119_v4, 16  ;;  %v1232_v7 = vshll.u32 %v1119_v4, 16  ;;  %v2105_v28 = vrot.slane %v2103_v60, 5 }
  0xbc   : > { %v5286_v1 = vld [vmem:[#allocation2 + $0x28] sm:$0xf]  ;;  %v1677_v63 = vrot.slane %v5146_v61, 5  ;;  %v2119_v40 = vshll.u32 %v2077_v9, 16  ;;  %v2487_v41 = vsel %vm5251_vm7, %v4244_v53, %v2486_v6  ;;  %v2490_v42 = vsel %vm5251_vm7, %v2488_v23, %v2489_v24  ;;  %v2079_v9 = vld [vmem:[#allocation2 + $0x1c] sm:$0xf] }
  0xbd   : > { %v4459_v8 = vld [vmem:[#allocation2 + $0x24] sm:$0xff]  ;;  %v1387_v11 = vpack.c.b16 %v1379_v54, %v1378_v50  ;;  %v5288_v47 = vld [vmem:[#allocation2 + $0x2c] sm:$0x1]  ;;  %v1238_v12 = vshll.u32 %v5286_v1, 16  ;;  %v1242_v52 = vshrl.u32 %v5286_v1, 16  ;;  %v1231_v15 = vrot.slane %v1229_v51, 4 }
  0xbe   : > { %v1234_v16 = vrot.slane %v1232_v7, 5  ;;  %v1248_v18 = vshll.u32 %v5288_v47, 16  ;;  %1612 = vmatmul.bf16.gmra.mxu1 %v4459_v8  ;;  %v2106_v46 = vor.u32 %v2105_v28, %v2102_v27  ;;  %v1675_v0 = vsel %vm5251_vm7, %v4109_v34, %v1674_v38 }
  0xbf   : > { %v1240_v21 = vrot.slane %v1238_v12, 5  ;;  %v1244_v22 = vrot.slane %v1242_v52, 4  ;;  %v1676_v29 = vrot.slane %v1674_v38, 4  ;;  %v2116_v54 = vor.u32 %v2115_v49, %v2111_v48  ;;  %v4558_v52 = vld [vmem:[%s5887_s8 + $0x30] sm:$0xff] }
  0xc0   : > { %v1235_v26 = vor.u32 %v1234_v16, %v1231_v15  ;;  %v1250_v31 = vrot.slane %v1248_v18, 5  ;;  %v1739_v56 = vunpack.c.l.b16 %v1675_v0  ;;  %v2556_v59 = vunpack.c.l.b16 %v2487_v41  ;;  %3682 = vmatpush.bf16.msra.mxu1 %v4558_v52 }
  0xc1   : > { %v1245_v30 = vor.u32 %v1244_v22, %v1240_v21  ;;  %v2557_v60 = vunpack.c.l.b16 %v2490_v42  ;;  %v1678_v62 = vsel %vm5251_vm7, %v1676_v29, %v1677_v63  ;;  %v2121_v5 = vrot.slane %v2119_v40, 5 }
  0xc2   : > { %v1236_v37 = vrot.slane %v1235_v26, 4  ;;  %v1740_v3 = vunpack.c.l.b16 %v1678_v62  ;;  %v2107_v51 = vrot.slane %v2106_v46, 4  ;;  %v2117_v7 = vrot.slane %v2116_v54, 4  ;;  %v4549_v54 = vld [vmem:[%s5884_s5 + $0x228] sm:$0xff]  ;;  %v1640_v62 = vld [vmem:[#allocation2 + $0x18] sm:$0xe] }
  0xc3   : > { %v1246_v20 = vrot.slane %v1245_v30, 4  ;;  %v2572_v8 = vpack.c.b16 %v2557_v60, %v2556_v59  ;;  %v2493_v12 = vrot.slane %v2079_v9, 5  ;;  %v2124_v15 = vshrl.u32 %v2078_v17, 16  ;;  %v2454_v59 = vld [vmem:[#allocation2 + $0x24] sm:$0xe] }
  0xc4   : > { %1487 = vmatmul.bf16.gmra.mxu2 %v1387_v11  ;;  %v1241_v45 = vsel %vm4975_vm5, %v1236_v37, %v1240_v21  ;;  %v5310_v6 = vpack.c.b16 %v1740_v3, %v1739_v56  ;;  %v4550_v11 = vld [vmem:[%s5884_s5 + $0x230] sm:$0xff]  ;;  %v2127_v16 = vshll.u32 %v2078_v17, 16  ;;  %v2112_v18 = vsel %vm4975_vm5, %v2107_v51, %v2111_v48  ;;  %v4533_v48 = vld [vmem:[%s5884_s5 + $0x1a8] sm:$0xff] }
  0xc5   : > { %v1251_v61 = vsel %vm4975_vm5, %v1246_v20, %v1250_v31  ;;  %v1370_v50 = vunpack.c.l.b16 %v1241_v45  ;;  %3457 = vmatpush.bf16.msra.mxu0 %v4550_v11  ;;  %v2122_v53 = vsel %vm4975_vm5, %v2117_v7, %v2121_v5  ;;  %v2133_v21 = vshll.u32 %v2079_v9, 16  ;;  %2832 = vmatpush.bf16.msra.mxu2 %v4533_v48  ;;  %v2081_v45 = vld [vmem:[#allocation2 + $0x24] sm:$0xf]  ;;  %v2083_v17 = vld [vmem:[#allocation2 + $0x2c] sm:$0x1] }
  0xc6   : > { %v1371_v58 = vunpack.c.l.b16 %v1251_v61  ;;  %v2137_v22 = vshrl.u32 %v2079_v9, 16  ;;  %v4245_v23 = vrot.slane %v2453_v13, 9  ;;  %v2495_v24 = vrot.slane %v2493_v12, 4  ;;  %v2082_v61 = vld [vmem:[#allocation2 + $0x28] sm:$0xf] }
  0xc7   : > { %v2496_v26 = vrot.slane %v2080_v32, 5  ;;  %v2307_v27 = vunpack.c.l.b16 %v2112_v18  ;;  %v2308_v28 = vunpack.c.l.b16 %v2122_v53  ;;  %v2126_v30 = vrot.slane %v2124_v15, 4 }
  0xc8   : > { %v1383_v4 = vpack.c.b16 %v1371_v58, %v1370_v50  ;;  %v2129_v31 = vrot.slane %v2127_v16, 5  ;;  %v2135_v49 = vrot.slane %v2133_v21, 5  ;;  %v2139_v34 = vrot.slane %v2137_v22, 4  ;;  %v4541_v50 = vld [vmem:[%s5884_s5 + $0x1e8] sm:$0xff]  ;;  %v4532_v16 = vld [vmem:[%s5884_s5 + $0x1a0] sm:$0xff] }
  0xc9   : > { %v2494_v37 = vsel %vm5251_vm7, %v4245_v23, %v2493_v12  ;;  %v2497_v38 = vsel %vm5251_vm7, %v2495_v24, %v2496_v26  ;;  %v2323_v63 = vpack.c.b16 %v2308_v28, %v2307_v27  ;;  %v2500_v56 = vrot.slane %v2082_v61, 5  ;;  %v4557_v58 = vld [vmem:[%s5887_s8 + $0x28] sm:$0xff]  ;;  %3209 = vmatpush.bf16.msra.mxu3 %v4541_v50  ;;  %3458 = vmatpush.bf16.msra.mxu0 %v4549_v54  ;;  %v2455_v50 = vld [vmem:[#allocation2 + $0x30] sm:$0xe] }
  0xca   : > { %1467 = vmatmul.bf16.gmra.mxu0 %v1383_v4  ;;  %v2140_v20 = vor.u32 %v2139_v34, %v2135_v49  ;;  %v2558_v40 = vunpack.c.l.b16 %v2494_v37  ;;  %v2559_v41 = vunpack.c.l.b16 %v2497_v38  ;;  %v1681_v3 = vrot.slane %v5206_v14, 5  ;;  %3683 = vmatpush.bf16.msra.mxu1 %v4557_v58  ;;  %v4490_v22 = vld [vmem:[#allocation2 + $0x24] sm:$0xff]  ;;  %v2085_v37 = vld [vmem:[#allocation2 + $0x34] sm:$0xf] }
  0xcb   : > { %2018 = vmatmul.bf16.vlgmr.msrb.gmra.mxu3 %v4488_v39  ;;  %v2143_v39 = vshll.u32 %v2080_v32, 16  ;;  %v2148_v4 = vshrl.u32 %v2081_v45, 16  ;;  %v2151_v51 = vshll.u32 %v2081_v45, 16  ;;  %v2157_v7 = vshll.u32 %v2082_v61, 16  ;;  %2833 = vmatpush.bf16.msra.mxu2 %v4532_v16  ;;  %v4556_v45 = vld [vmem:[%s5887_s8 + $0x20] sm:$0xff] }
  0xcc   : > { %v2141_v46 = vrot.slane %v2140_v20, 4  ;;  %v2573_v29 = vpack.c.b16 %v2559_v41, %v2558_v40  ;;  %v4246_v9 = vrot.slane %v2454_v59, 9  ;;  %v2502_v10 = vrot.slane %v2500_v56, 4  ;;  %v4548_v40 = vld [vmem:[%s5884_s5 + $0x220] sm:$0xff] }
  0xcd   : > { %v2145_v0 = vrot.slane %v2143_v39, 5  ;;  %v2503_v11 = vrot.slane %v2083_v17, 5  ;;  %v1684_v12 = vrot.slane %v5210_v19, 5  ;;  %v4110_v14 = vrot.slane %v1640_v62, 9  ;;  %v4540_v39 = vld [vmem:[%s5884_s5 + $0x1e0] sm:$0xff]  ;;  %3459 = vmatpush.bf16.msra.mxu0 %v4548_v40 }
  0xce   : > { %2644 = vmatmul.bf16.vlgmr.msrb.gmra.mxu1 %v2572_v8  ;;  %v2161_v8 = vshrl.u32 %v2082_v61, 16  ;;  %v1683_v15 = vrot.slane %v1681_v3, 4  ;;  %v2150_v18 = vrot.slane %v2148_v4, 4  ;;  %v2153_v53 = vrot.slane %v2151_v51, 5  ;;  %v1641_v41 = vld [vmem:[#allocation2 + $0x24] sm:$0xe]  ;;  %3210 = vmatpush.bf16.msra.mxu3 %v4540_v39 }
  0xcf   : > { %v2146_v5 = vsel %vm4975_vm5, %v2141_v46, %v2145_v0  ;;  %v2159_v32 = vrot.slane %v2157_v7, 5  ;;  %v2501_v23 = vsel %vm5251_vm7, %v4246_v9, %v2500_v56  ;;  %v2504_v19 = vsel %vm5251_vm7, %v2502_v10, %v2503_v11  ;;  %3684 = vmatpush.bf16.msra.mxu1 %v4556_v45  ;;  %v4531_v10 = vld [vmem:[%s5884_s5 + $0x198] sm:$0xff] }
  0xd0   : > { %v2310_v13 = vunpack.c.l.b16 %v2146_v5  ;;  %v2163_v21 = vrot.slane %v2161_v8, 4  ;;  %v1682_v24 = vsel %vm5251_vm7, %v4110_v14, %v1681_v3  ;;  %v1685_v26 = vsel %vm5251_vm7, %v1683_v15, %v1684_v12  ;;  %2834 = vmatpush.bf16.msra.mxu2 %v4531_v10 }
  0xd1   : > { %v2167_v27 = vshll.u32 %v2083_v17, 16  ;;  %v2154_v28 = vor.u32 %v2153_v53, %v2150_v18  ;;  %v2561_v48 = vunpack.c.l.b16 %v2504_v19  ;;  %v1742_v34 = vunpack.c.l.b16 %v1685_v26 }
  0xd2   : > { %v2185_v61 = vshrl.u32 %v2085_v37, 16  ;;  %v1688_v56 = vrot.slane %v5286_v1, 5  ;;  %v4111_v62 = vrot.slane %v1641_v41, 9  ;;  %v4247_v3 = vrot.slane %v2455_v50, 9  ;;  %v4555_v41 = vld [vmem:[%s5887_s8 + $0x18] sm:$0xff] }
  0xd3   : > { %v2155_v38 = vrot.slane %v2154_v28, 4  ;;  %v1691_v1 = vrot.slane %v5288_v47, 5  ;;  %3685 = vmatpush.bf16.msra.mxu1 %v4555_v41 }
  0xd4   : > { %1825 = vmatmul.bf16.vlgmr.msrb.gmra.mxu2 %v5272_v55  ;;  %v2130_v55 = vor.u32 %v2129_v31, %v2126_v30  ;;  %v2164_v30 = vor.u32 %v2163_v21, %v2159_v32  ;;  %v2560_v31 = vunpack.c.l.b16 %v2501_v23  ;;  %v2187_v8 = vrot.slane %v2185_v61, 4 }
  0xd5   : > { %v2160_v58 = vsel %vm4975_vm5, %v2155_v38, %v2159_v32  ;;  %v1690_v9 = vrot.slane %v1688_v56, 4  ;;  %v1689_v15 = vsel %vm5251_vm7, %v4111_v62, %v1688_v56  ;;  %v1642_v38 = vld [vmem:[#allocation2 + $0x30] sm:$0xe] }
  0xd6   : > { %v2131_v42 = vrot.slane %v2130_v55, 4  ;;  %v2169_v55 = vrot.slane %v2167_v27, 5  ;;  %v2574_v20 = vpack.c.b16 %v2561_v48, %v2560_v31  ;;  %v2311_v11 = vunpack.c.l.b16 %v2160_v58  ;;  %v2087_v27 = vld [vmem:[#allocation2 + $0x3c] sm:$0xf] }
  0xd7   : > { %v1692_v53 = vsel %vm5251_vm7, %v1690_v9, %v1691_v1  ;;  %v1743_v23 = vunpack.c.l.b16 %v1689_v15  ;;  %v4539_v31 = vld [vmem:[%s5884_s5 + $0x1d8] sm:$0xff]  ;;  %v4112_v56 = vrot.slane %v1642_v38, 9  ;;  %v2457_v38 = vld [vmem:[#allocation2 + $0x48] sm:$0xe] }
  0xd8   : > { %v2136_v60 = vsel %vm4975_vm5, %v2131_v42, %v2135_v49  ;;  %v1741_v49 = vunpack.c.l.b16 %v1682_v24  ;;  %v2507_v42 = vrot.slane %v2085_v37, 5  ;;  %v1744_v19 = vunpack.c.l.b16 %v1692_v53  ;;  %v4547_v48 = vld [vmem:[%s5884_s5 + $0x218] sm:$0xff]  ;;  %3211 = vmatpush.bf16.msra.mxu3 %v4539_v31  ;;  %v4538_v31 = vld [vmem:[%s5884_s5 + $0x1d0] sm:$0xff] }
  0xd9   : > { %v2309_v52 = vunpack.c.l.b16 %v2136_v60  ;;  %v2086_v60 = vld [vmem:[#allocation2 + $0x38] sm:$0x1]  ;;  %3460 = vmatpush.bf16.msra.mxu0 %v4547_v48 }
  0xda   : > { %2395 = vmatmul.bf16.vlgmr.msrb.gmra.mxu0 %v2323_v63  ;;  %v2165_v63 = vrot.slane %v2164_v30, 4  ;;  %v1755_v54 = vpack.c.b16 %v1742_v34, %v1741_v49  ;;  %v2509_v4 = vrot.slane %v2507_v42, 4  ;;  %v2510_v5 = vrot.slane %v2086_v60, 5  ;;  %v2088_v30 = vld [vmem:[#allocation2 + $0x40] sm:$0xf]  ;;  %v821_v15 = vld [vmem:[%s4812_s26 + $0x78] sm:$0xff] }
  0xdb   : > { %2023 = vmatmul.bf16.gmra.mxu3 %v4489_v35  ;;  %v2084_v35 = vld [vmem:[#allocation2 + $0x30] sm:$0xf]  ;;  %v2191_v47 = vshll.u32 %v2086_v60, 16  ;;  %v2514_v49 = vrot.slane %v2088_v30, 5  ;;  %v1756_v34 = vpack.c.b16 %v1744_v19, %v1743_v23  ;;  %v2205_v39 = vshll.u32 %v2088_v30, 16 }
  0xdc   : > { %v2172_v46 = vshrl.u32 %v2084_v35, 16  ;;  %v2175_v0 = vshll.u32 %v2084_v35, 16  ;;  %v2170_v59 = vsel %vm4975_vm5, %v2165_v63, %v2169_v55  ;;  %v2511_v14 = vsel %vm5251_vm7, %v2509_v4, %v2510_v5  ;;  %v2456_v63 = vld [vmem:[#allocation2 + $0x3c] sm:$0xe]  ;;  %v4621_v5 = vld [vmem:[#allocation2 + $0x38] sm:$0x1]  ;;  %3212 = vmatpush.bf16.msra.mxu3 %v4538_v31 }
  0xdd   : > { %v2312_v12 = vunpack.c.l.b16 %v2170_v59  ;;  %v2193_v26 = vrot.slane %v2191_v47, 5  ;;  %v2196_v55 = vshrl.u32 %v2087_v27, 16  ;;  %v2209_v40 = vshrl.u32 %v2088_v30, 16  ;;  %v1106_v31 = vld [vmem:[#allocation2 + $0x60] sm:$0xf] }
  0xde   : > { %2649 = vmatmul.bf16.gmra.mxu1 %v2573_v29  ;;  %v2181_v29 = vshll.u32 %v2085_v37, 16  ;;  %v2174_v17 = vrot.slane %v2172_v46, 4  ;;  %v2177_v51 = vrot.slane %v2175_v0, 5  ;;  %v2089_v46 = vld [vmem:[#allocation2 + $0x44] sm:$0x1]  ;;  %v4248_v0 = vrot.slane %v2456_v63, 9 }
  0xdf   : > { %v2325_v32 = vpack.c.b16 %v2312_v12, %v2311_v11  ;;  %v2517_v61 = vrot.slane %v2089_v46, 5  ;;  %v2198_v58 = vrot.slane %v2196_v55, 4  ;;  %v5399_v60 = vrot.slane %v2205_v39, 5  ;;  %v1643_v63 = vld [vmem:[#allocation2 + $0x3c] sm:$0xe] }
  0xe0   : > { %v2183_v7 = vrot.slane %v2181_v29, 5  ;;  %v2178_v16 = vor.u32 %v2177_v51, %v2174_v17  ;;  %v2516_v29 = vrot.slane %v2514_v49, 4  ;;  %v2211_v62 = vrot.slane %v2209_v40, 4  ;;  %v4492_v51 = vld [vmem:[#allocation2 + $0x3c] sm:$0xff] }
  0xe1   : > { %v1698_v17 = vrot.slane %v4621_v5, 5  ;;  %v840_v23 = vmul.f32 %v4922_v43, %v821_v15  ;;  %v4493_v15 = vld [vmem:[#allocation2 + $0x48] sm:$0xff] }
  0xe2   : > { %v2188_v18 = vor.u32 %v2187_v8, %v2183_v7  ;;  %v2518_v8 = vsel %vm5251_vm7, %v2516_v29, %v2517_v61  ;;  %v2092_v29 = vld [vmem:[#allocation2 + $0x50] sm:$0x1] }
  0xe3   : > { %v2565_v53 = vunpack.c.l.b16 %v2518_v8  ;;  %v4554_v61 = vld [vmem:[%s5887_s8 + $0x10] sm:$0xff] }
  0xe4   : > { %1830 = vmatmul.bf16.gmra.mxu2 %v5310_v6  ;;  %v2324_v6 = vpack.c.b16 %v2310_v13, %v2309_v52  ;;  %v4491_v52 = vld [vmem:[#allocation2 + $0x30] sm:$0xff]  ;;  %v2508_v13 = vsel %vm5251_vm7, %v4247_v3, %v2507_v42  ;;  %v2189_v24 = vrot.slane %v2188_v18, 4  ;;  %3686 = vmatpush.bf16.msra.mxu1 %v4554_v61  ;;  %v4537_v61 = vld [vmem:[%s5884_s5 + $0x1c8] sm:$0xff] }
  0xe5   : > { %v2562_v21 = vunpack.c.l.b16 %v2508_v13  ;;  %v4620_v42 = vld [vmem:[#allocation2 + $0x34] sm:$0xf]  ;;  %v2215_v13 = vshll.u32 %v2089_v46, 16  ;;  %3213 = vmatpush.bf16.msra.mxu3 %v4537_v61 }
  0xe6   : > { %v2194_v37 = vsel %vm4975_vm5, %v2189_v24, %v2193_v26  ;;  %v1695_v45 = vrot.slane %v4620_v42, 5  ;;  %v4530_v3 = vld [vmem:[%s5884_s5 + $0x190] sm:$0xff] }
  0xe7   : > { %2835 = vmatpush.bf16.msra.mxu2 %v4530_v3  ;;  %v2217_v26 = vrot.slane %v2215_v13, 5 }
  0xe8   : > { %v1697_v4 = vrot.slane %v1695_v45, 4  ;;  %v1696_v11 = vsel %vm5251_vm7, %v4112_v56, %v1695_v45  ;;  %v2524_v56 = vrot.slane %v2092_v29, 5 }
  0xea   : > { %2400 = vmatmul.bf16.gmra.mxu0 %v2324_v6  ;;  %v2179_v6 = vrot.slane %v2178_v16, 4  ;;  %v1699_v18 = vsel %vm5251_vm7, %v1697_v4, %v1698_v17 }
  0xeb   : > { %2028 = vmatmul.bf16.gmra.mxu3 %v4490_v22  ;;  %v2563_v22 = vunpack.c.l.b16 %v2511_v14  ;;  %v820_v14 = vld [vmem:[%s4812_s26 + $0x70] sm:$0xff]  ;;  %v1746_v19 = vunpack.c.l.b16 %v1699_v18 }
  0xec   : > { %v2184_v35 = vsel %vm4975_vm5, %v2179_v6, %v2183_v7  ;;  %v2515_v7 = vsel %vm5251_vm7, %v4248_v0, %v2514_v49  ;;  %v4546_v49 = vld [vmem:[%s5884_s5 + $0x210] sm:$0xff] }
  0xed   : > { %v2575_v28 = vpack.c.b16 %v2563_v22, %v2562_v21  ;;  %v2313_v50 = vunpack.c.l.b16 %v2184_v35  ;;  %v2564_v47 = vunpack.c.l.b16 %v2515_v7  ;;  %v2090_v21 = vld [vmem:[#allocation2 + $0x48] sm:$0xf]  ;;  %v839_v22 = vmul.f32 %v4922_v43, %v820_v14  ;;  %3461 = vmatpush.bf16.msra.mxu0 %v4546_v49 }
  0xee   : > { %2654 = vmatmul.bf16.gmra.mxu1 %v2574_v20  ;;  %v2199_v20 = vshll.u32 %v2087_v27, 16  ;;  %v2091_v27 = vld [vmem:[#allocation2 + $0x4c] sm:$0xf]  ;;  %v859_v43 = vadd.f32 %v4925_v44, %v840_v23  ;;  %v2220_v35 = vshrl.u32 %v2090_v21, 16  ;;  %v2093_v23 = vld [vmem:[#allocation2 + $0x54] sm:$0xf] }
  0xef   : > { %v2576_v30 = vpack.c.b16 %v2565_v53, %v2564_v47  ;;  %v2521_v48 = vrot.slane %v2091_v27, 5  ;;  %v2229_v55 = vshll.u32 %v2091_v27, 16  ;;  %v2239_v47 = vshll.u32 %v2092_v29, 16 }
  0xf0   : > { %v2201_v59 = vrot.slane %v2199_v20, 5  ;;  %v2233_v20 = vshrl.u32 %v2091_v27, 16  ;;  %v875_v40 = vmax.f32 %v859_v43, 0.0 }
  0xf1   : > { %v5437_v3 = vrot.slane %v2229_v55, 5  ;;  %3462 = vmatpush.bf16.msra.mxu0 %v4545_v36 }
  0xf2   : > { %v2202_v12 = vor.u32 %v2201_v59, %v2198_v58  ;;  %v4113_v59 = vrot.slane %v1643_v63, 9  ;;  %v2235_v4 = vrot.slane %v2233_v20, 4  ;;  %v891_v5 = vpack.c.bf16 %v875_v40, %v875_v40 }
  0xf4   : > { %1835 = vmatmul.bf16.gmra.mxu2 %v1755_v54  ;;  %v2314_v54 = vunpack.c.l.b16 %v2194_v37  ;;  %v2203_v6 = vrot.slane %v2202_v12, 4  ;;  %v2223_v37 = vshll.u32 %v2090_v21, 16 }
  0xf6   : > { %v2326_v9 = vpack.c.b16 %v2314_v54, %v2313_v50  ;;  %v2208_v42 = vsel %vm4975_vm5, %v2203_v6, %v5399_v60  ;;  %v4249_v50 = vrot.slane %v2457_v38, 9  ;;  %v2523_v54 = vrot.slane %v2521_v48, 4 }
  0xf7   : > { %v2244_v38 = vshrl.u32 %v2093_v23, 16 }
  0xf8   : > { %v2525_v12 = vsel %vm5251_vm7, %v2523_v54, %v2524_v56 }
  0xf9   : > { %v2567_v27 = vunpack.c.l.b16 %v2525_v12 }
  0xfa   : > { %2405 = vmatmul.bf16.gmra.mxu0 %v2325_v32  ;;  %v1745_v32 = vunpack.c.l.b16 %v1696_v11  ;;  %v2522_v11 = vsel %vm5251_vm7, %v4249_v50, %v2521_v48 }
  0xfb   : > { %2033 = vmatmul.bf16.gmra.mxu3 %v4491_v52  ;;  %v2212_v52 = vor.u32 %v2211_v62, %v5399_v60  ;;  %v2222_v62 = vrot.slane %v2220_v35, 4  ;;  %v2225_v60 = vrot.slane %v2223_v37, 5  ;;  %v2241_v35 = vrot.slane %v2239_v47, 5  ;;  %v5455_v37 = vld [vmem:[#allocation2 + $0x58] sm:$0xf] }
  0xfc   : > { %v1757_v41 = vpack.c.b16 %v1746_v19, %v1745_v32  ;;  %v1022_v19 = vshrl.u32 %v891_v5, 16  ;;  %v2257_v29 = vshrl.u32 %v5455_v37, 16  ;;  %v2528_v56 = vrot.slane %v5455_v37, 5 }
  0xfd   : > { %v2213_v24 = vrot.slane %v2212_v52, 4  ;;  %v4529_v52 = vld [vmem:[%s5884_s5 + $0x188] sm:$0xff]  ;;  %v2226_v18 = vor.u32 %v2225_v60, %v2222_v62  ;;  %v2246_v60 = vrot.slane %v2244_v38, 4 }
  0xfe   : > { %2659 = vmatmul.bf16.gmra.mxu1 %v2575_v28  ;;  %2836 = vmatpush.bf16.msra.mxu2 %v4529_v52  ;;  %v1024_v55 = vrot.slane %v1022_v19, 7 }
  0xff   : > { %v2218_v45 = vsel %vm4975_vm5, %v2213_v24, %v2217_v26  ;;  %v2566_v26 = vunpack.c.l.b16 %v2522_v11  ;;  %v2227_v43 = vrot.slane %v2226_v18, 4  ;;  %v4553_v11 = vld [vmem:[%s5887_s8 + $0x8] sm:$0xff]  ;;  %v2530_v18 = vrot.slane %v2528_v56, 4 }
 0x100   : > { %v2316_v7 = vunpack.c.l.b16 %v2218_v45  ;;  %v1110_v45 = vld [vmem:[#allocation2 + $0x68] sm:$0x1]  ;;  %v1029_v54 = vrot.slane %v1024_v55, 4  ;;  %3687 = vmatpush.bf16.msra.mxu1 %v4553_v11  ;;  %v4626_v11 = vld [vmem:[#allocation2 + $0x58] sm:$0xf] }
 0x101   : > { %v2232_v25 = vsel %vm4975_vm5, %v2227_v43, %v5437_v3 }
 0x104   : > { %1840 = vmatmul.bf16.gmra.mxu2 %v1756_v34  ;;  %v858_v34 = vadd.f32 %v4925_v44, %v839_v22  ;;  %v4622_v44 = vld [vmem:[#allocation2 + $0x40] sm:$0xf]  ;;  %v2236_v22 = vor.u32 %v2235_v4, %v5437_v3  ;;  %v2458_v4 = vld [vmem:[#allocation2 + $0x54] sm:$0xe] }
 0x105   : > { %v1702_v0 = vrot.slane %v4622_v44, 5 }
 0x106   : > { %v874_v39 = vmax.f32 %v858_v34, 0.0  ;;  %v2237_v40 = vrot.slane %v2236_v22, 4  ;;  %v4625_v22 = vld [vmem:[#allocation2 + $0x50] sm:$0x1] }
 0x107   : > { %v1704_v8 = vrot.slane %v1702_v0, 4  ;;  %v1703_v21 = vsel %vm5251_vm7, %v4113_v59, %v1702_v0  ;;  %v2253_v0 = vshll.u32 %v5455_v37, 16  ;;  %v4624_v59 = vld [vmem:[#allocation2 + $0x4c] sm:$0xf]  ;;  %v1712_v3 = vrot.slane %v4625_v22, 5 }
 0x108   : > { %v1598_v10 = vpop.f32.mrf.mxu1  ;;  %v890_v58 = vpack.c.bf16 %v874_v39, %v874_v39  ;;  %v1747_v34 = vunpack.c.l.b16 %v1703_v21  ;;  %v1709_v62 = vrot.slane %v4624_v59, 5  ;;  %v2242_v2 = vsel %vm4975_vm5, %v2237_v40, %v2241_v35 }
 0x109   : > { %v1453_v1 = vpop.f32.mrf.mxu0  ;;  %v5484_v52 = vrot.slane %v2253_v0, 5  ;;  %v2318_v19 = vunpack.c.l.b16 %v2242_v2  ;;  %v2895_v0 = vld [vmem:[#allocation2 + $0x18] sm:$0xf] }
 0x10a   : > { %v5413_v16 = vadd.f32 %v1598_v10, %v1453_v1  ;;  %2410 = vmatmul.bf16.gmra.mxu0 %v2326_v9  ;;  %v1014_v17 = vshrl.u32 %v890_v58, 16  ;;  %v4623_v9 = vld [vmem:[#allocation2 + $0x44] sm:$0x1]  ;;  %v1017_v14 = vshll.u32 %v890_v58, 16  ;;  %v1711_v21 = vrot.slane %v1709_v62, 4 }
 0x10b   : > { %2038 = vmatmul.bf16.gmra.mxu3 %v4492_v51  ;;  %v2315_v51 = vunpack.c.l.b16 %v2208_v42  ;;  %v1705_v1 = vrot.slane %v4623_v9, 5  ;;  %v2247_v42 = vshll.u32 %v2093_v23, 16  ;;  %v1644_v9 = vld [vmem:[#allocation2 + $0x48] sm:$0xe]  ;;  %v2317_v23 = vunpack.c.l.b16 %v2232_v25 }
 0x10c   : > { %v1016_v13 = vrot.slane %v1014_v17, 7  ;;  %v1111_v17 = vsel %vm4781_vm2, %v1029_v54, %v1110_v45  ;;  %v1713_v37 = vsel %vm5251_vm7, %v1711_v21, %v1712_v3 }
 0x10d   : > { %v2327_v48 = vpack.c.b16 %v2316_v7, %v2315_v51  ;;  %v1706_v49 = vsel %vm5251_vm7, %v1704_v8, %v1705_v1  ;;  %v2249_v1 = vrot.slane %v2247_v42, 5  ;;  %1112 = vst [vmem:[#allocation2 + $0x68] sm:$0x1] %v1111_v17  ;;  %v2328_v38 = vpack.c.b16 %v2318_v19, %v2317_v23 }
 0x10e   : > { %v1618_v28 = vpop.f32.mrf.mxu3  ;;  %2664 = vmatmul.bf16.gmra.mxu1 %v2576_v30  ;;  %v1019_v30 = vor.u32 %v1017_v14, %v1016_v13  ;;  %v1020_v63 = vrot.slane %v1016_v13, 4  ;;  %v1748_v39 = vunpack.c.l.b16 %v1706_v49  ;;  %v2259_v13 = vrot.slane %v2257_v29, 4  ;;  %v5504_v29 = vld [vmem:[#allocation2 + $0x1c] sm:$0xf] }
 0x10f   : > { %v1750_v42 = vunpack.c.l.b16 %v1713_v37  ;;  %v2933_v25 = vshrl.u32 %v5504_v29, 16  ;;  %v4627_v37 = vld [vmem:[#allocation2 + $0x5c] sm:$0x1] }
 0x110   : > { %v5432_v46 = vpop.f32.mrf.mxu1  ;;  %v1107_v20 = vsel %vm4983_vm1, %v1019_v30, %v1106_v31  ;;  %v1758_v7 = vpack.c.b16 %v1748_v39, %v1747_v34  ;;  %v2250_v30 = vor.u32 %v2249_v1, %v2246_v60  ;;  %v2260_v31 = vor.u32 %v2259_v13, %v5484_v52  ;;  %v1645_v1 = vld [vmem:[#allocation2 + $0x54] sm:$0xe] }
 0x111   : > { %v5446_v32 = vpop.f32.mrf.mxu0  ;;  %1108 = vst [vmem:[#allocation2 + $0x60] sm:$0xf] %v1107_v20  ;;  %v2920_v60 = vshrl.u32 %v2895_v0, 16  ;;  %v2935_v19 = vrot.slane %v2933_v25, 4 }
 0x112   : > { %v2251_v39 = vrot.slane %v2250_v30, 4  ;;  %v2261_v40 = vrot.slane %v2260_v31, 4  ;;  %v4544_v31 = vld [vmem:[%s5884_s5 + $0x200] sm:$0xff] }
 0x113   : > { %v2922_v22 = vrot.slane %v2920_v60, 4  ;;  %3463 = vmatpush.bf16.msra.mxu0 %v4544_v31 }
 0x114   : > { %1845 = vmatmul.bf16.gmra.mxu2 %v1757_v41  ;;  %v2577_v41 = vpack.c.b16 %v2567_v27, %v2566_v26  ;;  %v4494_v27 = vld [vmem:[#allocation2 + $0x54] sm:$0xff]  ;;  %v2256_v59 = vsel %vm4975_vm5, %v2251_v39, %v5484_v52 }
 0x116   : > { %v1620_v10 = vpop.f32.mrf.mxu3 }
 0x117   : > { %v1473_v53 = vpop.f32.mrf.mxu2 }
 0x118   : > { %v5451_v6 = vadd.f32 %v1618_v28, %v1473_v53  ;;  %v1603_v24 = vpop.f32.mrf.mxu1  ;;  %v1025_v28 = vshll.u32 %v891_v5, 16  ;;  %v4114_v53 = vrot.slane %v1644_v9, 9  ;;  %v2096_v54 = vld [vmem:[#allocation2 + $0x60] sm:$0xf] }
 0x119   : > { %v2268_v52 = vshrl.u32 %v2096_v54, 16  ;;  %v2271_v13 = vshll.u32 %v2096_v54, 16 }
 0x11a   : > { %2415 = vmatmul.bf16.gmra.mxu0 %v2327_v48  ;;  %v1027_v50 = vor.u32 %v1025_v28, %v1024_v55  ;;  %v1710_v35 = vsel %vm5251_vm7, %v4114_v53, %v1709_v62  ;;  %v2459_v62 = vld [vmem:[#allocation2 + $0x60] sm:$0xe] }
 0x11b   : > { %2043 = vmatmul.bf16.gmra.mxu3 %v4493_v15  ;;  %v4250_v15 = vrot.slane %v2458_v4, 9  ;;  %v2923_v4 = vshll.u32 %v2895_v0, 16 }
 0x11c   : > { %v1028_v5 = vsel %vm4968_vm4, %v1020_v63, %v1027_v50 }
 0x11d   : > { %1109 = vst [vmem:[#allocation2 + $0x64] sm:$0xf] %v1028_v5  ;;  %v2929_v5 = vshll.u32 %v5504_v29, 16  ;;  %v2925_v3 = vrot.slane %v2923_v4, 5 }
 0x11e   : > { %v1623_v44 = vpop.f32.mrf.mxu3  ;;  %2669 = vmatmul.bf16.gmra.mxu1 %v2577_v41  ;;  %v1749_v41 = vunpack.c.l.b16 %v1710_v35 }
 0x11f   : > { %v1475_v58 = vpop.f32.mrf.mxu2  ;;  %v5521_v23 = vrot.slane %v2929_v5, 5 }
 0x120   : > { %v5472_v51 = vadd.f32 %v1620_v10, %v1475_v58  ;;  %v5474_v8 = vpop.f32.mrf.mxu1  ;;  %v1458_v12 = vpop.f32.mrf.mxu0  ;;  %v2095_v10 = vld [vmem:[#allocation2 + $0x5c] sm:$0x1] }
 0x121   : > { %v5486_v14 = vadd.f32 %v1603_v24, %v1458_v12  ;;  %v2531_v47 = vrot.slane %v2095_v10, 5  ;;  %v2529_v24 = vsel %vm5251_vm7, %v4250_v15, %v2528_v56  ;;  %v2263_v34 = vshll.u32 %v2095_v10, 16  ;;  %v4536_v56 = vld [vmem:[%s5884_s5 + $0x1c0] sm:$0xff]  ;;  %v5518_v10 = vld [vmem:[#allocation2 + $0x68] sm:$0x1] }
 0x122   : > { %v2568_v63 = vunpack.c.l.b16 %v2529_v24  ;;  %v1716_v12 = vrot.slane %v4626_v11, 5  ;;  %3214 = vmatpush.bf16.msra.mxu3 %v4536_v56  ;;  %v2538_v21 = vrot.slane %v5518_v10, 5  ;;  %v5526_v24 = vld [vmem:[#allocation2 + $0x20] sm:$0x1]  ;;  %v2287_v4 = vshll.u32 %v5518_v10, 16 }
 0x123   : > { %v2532_v48 = vsel %vm5251_vm7, %v2530_v18, %v2531_v47  ;;  %v2265_v45 = vrot.slane %v2263_v34, 5  ;;  %v4251_v47 = vrot.slane %v2459_v62, 9  ;;  %v2939_v54 = vshll.u32 %v5526_v24, 16 }
 0x124   : > { %1850 = vmatmul.bf16.gmra.mxu2 %v1758_v7  ;;  %v2569_v55 = vunpack.c.l.b16 %v2532_v48  ;;  %v2097_v61 = vld [vmem:[#allocation2 + $0x64] sm:$0xf]  ;;  %v1759_v7 = vpack.c.b16 %v1750_v42, %v1749_v41  ;;  %v1718_v35 = vrot.slane %v1716_v12, 4 }
 0x125   : > { %v2535_v58 = vrot.slane %v2097_v61, 5  ;;  %v2266_v9 = vsel %vm4975_vm5, %v2261_v40, %v2265_v45  ;;  %v2277_v15 = vshll.u32 %v2097_v61, 16  ;;  %v2281_v18 = vshrl.u32 %v2097_v61, 16  ;;  %v4552_v48 = vld [vmem:[%s5887_s8] sm:$0xff] }
 0x126   : > { %v1625_v26 = vpop.f32.mrf.mxu3  ;;  %v2578_v50 = vpack.c.b16 %v2569_v55, %v2568_v63  ;;  %v2320_v30 = vunpack.c.l.b16 %v2266_v9  ;;  %v2270_v63 = vrot.slane %v2268_v52, 4  ;;  %v2273_v55 = vrot.slane %v2271_v13, 5  ;;  %3688 = vmatpush.bf16.msra.mxu1 %v4552_v48  ;;  %v2898_v13 = vld [vmem:[#allocation2 + $0x24] sm:$0xf] }
 0x127   : > { %v1478_v49 = vpop.f32.mrf.mxu2  ;;  %v2537_v53 = vrot.slane %v2535_v58, 4  ;;  %v2279_v41 = vrot.slane %v2277_v15, 5  ;;  %v2283_v42 = vrot.slane %v2281_v18, 4  ;;  %v2536_v45 = vsel %vm5251_vm7, %v4251_v47, %v2535_v58  ;;  %v5546_v15 = vld [vmem:[#allocation2 + $0x28] sm:$0xf] }
 0x128   : > { %v5493_v43 = vadd.f32 %v1623_v44, %v1478_v49  ;;  %v5499_v28 = vpop.f32.mrf.mxu0  ;;  %v1608_v20 = vpop.f32.mrf.mxu1  ;;  %v4528_v44 = vld [vmem:[%s5884_s5 + $0x180] sm:$0xff]  ;;  %v2926_v61 = vor.u32 %v2925_v3, %v2922_v22  ;;  %v2274_v60 = vor.u32 %v2273_v55, %v2270_v63  ;;  %v2570_v5 = vunpack.c.l.b16 %v2536_v45 }
 0x129   : > { %2837 = vmatpush.bf16.msra.mxu2 %v4528_v44  ;;  %v4495_v44 = vld [vmem:[#allocation2 + $0x60] sm:$0xff]  ;;  %v2539_v0 = vsel %vm5251_vm7, %v2537_v53, %v2538_v21  ;;  %v2941_v11 = vrot.slane %v2939_v54, 5  ;;  %v2289_v22 = vrot.slane %v2287_v4, 5  ;;  %v2953_v31 = vshll.u32 %v5546_v15, 16  ;;  %v3272_v4 = vld [vmem:[#allocation2 + $0x18] sm:$0xe] }
 0x12a   : > { %2420 = vmatmul.bf16.gmra.mxu0 %v2328_v38  ;;  %v1719_v38 = vrot.slane %v4627_v37, 5  ;;  %v2927_v9 = vrot.slane %v2926_v61, 4  ;;  %v2275_v47 = vrot.slane %v2274_v60, 4  ;;  %v2957_v48 = vshrl.u32 %v5546_v15, 16 }
 0x12b   : > { %2048 = vmatmul.bf16.gmra.mxu3 %v4494_v27  ;;  %v2319_v27 = vunpack.c.l.b16 %v2256_v59 }
 0x12c   : > { %v1720_v58 = vsel %vm5251_vm7, %v1718_v35, %v1719_v38  ;;  %v2932_v3 = vsel %vm4975_vm5, %v2927_v9, %v5521_v23  ;;  %v2280_v35 = vsel %vm4975_vm5, %v2275_v47, %v2279_v41  ;;  %v2959_v45 = vrot.slane %v2957_v48, 4 }
 0x12d   : > { %v3127_v37 = vunpack.c.l.b16 %v2932_v3  ;;  %v3306_v9 = vrot.slane %v5504_v29, 5  ;;  %v4380_v47 = vrot.slane %v3272_v4, 9  ;;  %v3309_v29 = vrot.slane %v5526_v24, 5 }
 0x12e   : > { %v1628_v36 = vpop.f32.mrf.mxu3  ;;  %2674 = vmatmul.bf16.gmra.mxu1 %v2578_v50  ;;  %v2936_v50 = vor.u32 %v2935_v19, %v5521_v23 }
 0x12f   : > { %v1480_v17 = vpop.f32.mrf.mxu2 }
 0x130   : > { %v5516_v2 = vadd.f32 %v1625_v26, %v1480_v17  ;;  %v4115_v26 = vrot.slane %v1645_v1, 9  ;;  %v1610_v34 = vpop.f32.mrf.mxu1  ;;  %v2571_v17 = vunpack.c.l.b16 %v2539_v0  ;;  %v2937_v1 = vrot.slane %v2936_v50, 4 }
 0x132   : > { %v1463_v49 = vpop.f32.mrf.mxu0  ;;  %v1717_v62 = vsel %vm5251_vm7, %v4115_v26, %v1716_v12  ;;  %v2579_v53 = vpack.c.b16 %v2571_v17, %v2570_v5  ;;  %v2942_v19 = vsel %vm4975_vm5, %v2937_v1, %v2941_v11  ;;  %v2947_v26 = vshll.u32 %v2898_v13, 16  ;;  %v3589_v5 = vld [vmem:[%s4812_s26] sm:$0xff]  ;;  %v3590_v17 = vld [vmem:[%s4812_s26 + $0x8] sm:$0xff]  ;;  %v2901_v1 = vld [vmem:[#allocation2 + $0x30] sm:$0xf] }
 0x133   : > { %v5531_v39 = vadd.f32 %v1608_v20, %v1463_v49  ;;  %v2329_v20 = vpack.c.b16 %v2320_v30, %v2319_v27  ;;  %v1751_v52 = vunpack.c.l.b16 %v1717_v62  ;;  %v2944_v30 = vshrl.u32 %v2898_v13, 16  ;;  %v5571_v11 = vld [vmem:[#allocation2 + $0x34] sm:$0xf] }
 0x134   : > { %1855 = vmatmul.bf16.gmra.mxu2 %v1759_v7  ;;  %v2284_v7 = vor.u32 %v2283_v42, %v2279_v41  ;;  %v3128_v38 = vunpack.c.l.b16 %v2942_v19  ;;  %v2949_v55 = vrot.slane %v2947_v26, 5  ;;  %v2955_v42 = vrot.slane %v2953_v31, 5 }
 0x135   : > { %v2946_v63 = vrot.slane %v2944_v30, 4  ;;  %v2977_v3 = vshll.u32 %v5571_v11, 16  ;;  %v2981_v19 = vshrl.u32 %v5571_v11, 16 }
 0x136   : > { %v1630_v40 = vpop.f32.mrf.mxu3  ;;  %v2285_v21 = vrot.slane %v2284_v7, 4  ;;  %v3143_v54 = vpack.c.b16 %v3128_v38, %v3127_v37 }
 0x137   : > { %v1483_v56 = vpop.f32.mrf.mxu2  ;;  %v2979_v38 = vrot.slane %v2977_v3, 5  ;;  %v1601_v3 = vadd.f32 %v5432_v46, %v5446_v32 }
 0x138   : > { %v5539_v59 = vadd.f32 %v1628_v36, %v1483_v56  ;;  %v1752_v36 = vunpack.c.l.b16 %v1720_v58  ;;  %v2290_v23 = vsel %vm4975_vm5, %v2285_v21, %v2289_v22  ;;  %v2950_v56 = vor.u32 %v2949_v55, %v2946_v63 }
 0x139   : > { %v2322_v0 = vunpack.c.l.b16 %v2290_v23  ;;  %v2968_v21 = vshrl.u32 %v2901_v1, 16  ;;  %v2971_v22 = vshll.u32 %v2901_v1, 16  ;;  %v2983_v63 = vrot.slane %v2981_v19, 4  ;;  %v5599_v19 = vld [vmem:[#allocation2 + $0x40] sm:$0xf] }
 0x13a   : > { %v1465_v25 = vpop.f32.mrf.mxu0  ;;  %2425 = vmatmul.bf16.gmra.mxu0 %v2329_v20  ;;  %v2960_v20 = vor.u32 %v2959_v45, %v2955_v42 }
 0x13b   : > { %2053 = vmatmul.bf16.gmra.mxu3 %v4495_v44  ;;  %v5548_v12 = vadd.f32 %v1610_v34, %v1465_v25  ;;  %v1613_v10 = vpop.f32.mrf.mxu1  ;;  %v1760_v34 = vpack.c.b16 %v1752_v36, %v1751_v52  ;;  %v5563_v44 = vld [vmem:[#allocation2 + $0x2c] sm:$0x1]  ;;  %v2951_v52 = vrot.slane %v2950_v56, 4  ;;  %v2970_v23 = vrot.slane %v2968_v21, 4  ;;  %v3592_v21 = vld [vmem:[%s4812_s26 + $0x18] sm:$0xff] }
 0x13c   : > { %v2963_v62 = vshll.u32 %v5563_v44, 16  ;;  %v2961_v36 = vrot.slane %v2960_v20, 4  ;;  %v2973_v37 = vrot.slane %v2971_v22, 5  ;;  %v2984_v20 = vor.u32 %v2983_v63, %v2979_v38  ;;  %v2904_v22 = vld [vmem:[#allocation2 + $0x3c] sm:$0xf] }
 0x13d   : > { %v2995_v32 = vshll.u32 %v2904_v22, 16 }
 0x13e   : > { %v1633_v18 = vpop.f32.mrf.mxu3  ;;  %2679 = vmatmul.bf16.gmra.mxu1 %v2579_v53  ;;  %v2965_v13 = vrot.slane %v2963_v62, 5  ;;  %v3605_v53 = vpack.c.bf16 %v3590_v17, %v3589_v5  ;;  %v2974_v56 = vor.u32 %v2973_v37, %v2970_v23  ;;  %v3001_v23 = vshll.u32 %v5599_v19, 16 }
 0x13f   : > { %v1485_v27 = vpop.f32.mrf.mxu2  ;;  %v3005_v37 = vshrl.u32 %v5599_v19, 16 }
 0x140   : > { %v5557_v49 = vadd.f32 %v1630_v40, %v1485_v27  ;;  %v2321_v40 = vunpack.c.l.b16 %v2280_v35  ;;  %v3308_v27 = vrot.slane %v3306_v9, 4  ;;  %v2966_v31 = vsel %vm4975_vm5, %v2961_v36, %v2965_v13 }
 0x141   : > { %v3307_v35 = vsel %vm5251_vm7, %v4380_v47, %v3306_v9  ;;  %v2975_v1 = vrot.slane %v2974_v56, 4  ;;  %v2997_v56 = vrot.slane %v2995_v32, 5  ;;  %v5623_v32 = vld [vmem:[#allocation2 + $0x4c] sm:$0xf] }
 0x142   : > { %v2330_v60 = vpack.c.b16 %v2322_v0, %v2321_v40  ;;  %v3310_v55 = vsel %vm5251_vm7, %v3308_v27, %v3309_v29  ;;  %v5588_v40 = vld [vmem:[#allocation2 + $0x38] sm:$0x1] }
 0x143   : > { %v1615_v50 = vpop.f32.mrf.mxu1  ;;  %v2987_v62 = vshll.u32 %v5588_v40, 16 }
 0x144   : > { %1860 = vmatmul.bf16.gmra.mxu2 %v1760_v34  ;;  %v4520_v34 = vld [vmem:[#allocation2 + $0x18] sm:$0xff] }
 0x145   : > { %v2989_v36 = vrot.slane %v2987_v62, 5  ;;  %v3007_v62 = vrot.slane %v3005_v37, 4 }
 0x146   : > { %v1635_v61 = vpop.f32.mrf.mxu3 }
 0x147   : > { %v1488_v41 = vpop.f32.mrf.mxu2  ;;  %v1468_v7 = vpop.f32.mrf.mxu0 }
 0x148   : > { %v5566_v58 = vadd.f32 %v1633_v18, %v1488_v41  ;;  %v5573_v25 = vadd.f32 %v1613_v10, %v1468_v7  ;;  %v2956_v10 = vsel %vm4975_vm5, %v2951_v52, %v2955_v42  ;;  %v3130_v42 = vunpack.c.l.b16 %v2966_v31 }
 0x149   : > { %v3129_v45 = vunpack.c.l.b16 %v2956_v10  ;;  %v3313_v7 = vrot.slane %v5546_v15, 5  ;;  %v2985_v52 = vrot.slane %v2984_v20, 4  ;;  %v3316_v15 = vrot.slane %v5563_v44, 5 }
 0x14a   : > { %2430 = vmatmul.bf16.gmra.mxu0 %v2330_v60  ;;  %v3003_v20 = vrot.slane %v3001_v23, 5  ;;  %v1606_v23 = vadd.f32 %v5474_v8, %v5499_v28  ;;  %v3025_v8 = vshll.u32 %v5623_v32, 16  ;;  %v3029_v28 = vshrl.u32 %v5623_v32, 16 }
 0x14b   : > { %3215 = vmatmul.bf16.vlgmr.msra.gmra.mxu3 %v3143_v54  ;;  %v2645_v30 = vpop.f32.mrf.mxu1  ;;  %v3377_v54 = vunpack.c.l.b16 %v3310_v55  ;;  %v3144_v4 = vpack.c.b16 %v3130_v42, %v3129_v45  ;;  %v3315_v29 = vrot.slane %v3313_v7, 4  ;;  %v2990_v31 = vsel %vm4975_vm5, %v2985_v52, %v2989_v36 }
 0x14c   : > { %v3132_v42 = vunpack.c.l.b16 %v2990_v31 }
 0x14e   : > { %v2019_v18 = vpop.f32.mrf.mxu3  ;;  %3689 = vmatmul.bf16.vlgmr.msra.gmra.mxu1 %v3605_v53  ;;  %v3591_v53 = vld [vmem:[%s4812_s26 + $0x10] sm:$0xff] }
 0x14f   : > { %v1490_v26 = vpop.f32.mrf.mxu2  ;;  %v1470_v24 = vpop.f32.mrf.mxu0  ;;  %v3606_v10 = vpack.c.bf16 %v3592_v21, %v3591_v53 }
 0x150   : > { %v5582_v48 = vadd.f32 %v1635_v61, %v1490_v26  ;;  %v5590_v0 = vadd.f32 %v1615_v50, %v1470_v24  ;;  %v3376_v61 = vunpack.c.l.b16 %v3307_v35  ;;  %v3273_v50 = vld [vmem:[#allocation2 + $0x24] sm:$0xe] }
 0x151   : > { %v4521_v24 = vld [vmem:[#allocation2 + $0x24] sm:$0xff] }
 0x152   : > { %v3392_v9 = vpack.c.b16 %v3377_v54, %v3376_v61 }
 0x153   : > { %v2647_v60 = vpop.f32.mrf.mxu1 }
 0x154   : > { %2838 = vmatmul.bf16.vlgmr.msra.gmra.mxu2 %v4520_v34  ;;  %v2992_v34 = vshrl.u32 %v2904_v22, 16  ;;  %v3274_v22 = vld [vmem:[#allocation2 + $0x30] sm:$0xe] }
 0x155   : > { %v4382_v37 = vrot.slane %v3274_v22, 9 }
 0x156   : > { %v2021_v41 = vpop.f32.mrf.mxu3 }
 0x157   : > { %v1826_v5 = vpop.f32.mrf.mxu2  ;;  %v2396_v13 = vpop.f32.mrf.mxu0 }
 0x158   : > { %v1866_v17 = vadd.f32 %v1826_v5, %v5413_v16  ;;  %v4381_v16 = vrot.slane %v3273_v50, 9 }
 0x15a   : > { %v2059_v47 = vadd.f32 %v2019_v18, %v1866_v17  ;;  %3464 = vmatmul.bf16.vlgmr.msra.gmra.mxu0 %v3392_v9  ;;  %v2980_v18 = vsel %vm4975_vm5, %v2975_v1, %v2979_v38  ;;  %v3314_v55 = vsel %vm5251_vm7, %v4381_v16, %v3313_v7  ;;  %v3317_v38 = vsel %vm5251_vm7, %v3315_v29, %v3316_v15  ;;  %v3593_v29 = vld [vmem:[%s4812_s26 + $0x20] sm:$0xff]  ;;  %v3594_v15 = vld [vmem:[%s4812_s26 + $0x28] sm:$0xff] }
 0x15b   : > { %3220 = vmatmul.bf16.gmra.mxu3 %v3144_v4  ;;  %v2650_v46 = vpop.f32.mrf.mxu1  ;;  %v3131_v45 = vunpack.c.l.b16 %v2980_v18  ;;  %v5614_v4 = vld [vmem:[#allocation2 + $0x44] sm:$0x1]  ;;  %v3378_v17 = vunpack.c.l.b16 %v3314_v55  ;;  %v3379_v9 = vunpack.c.l.b16 %v3317_v38 }
 0x15c   : > { %v2436_v27 = vadd.f32 %v2396_v13, %v2059_v47  ;;  %v3008_v13 = vor.u32 %v3007_v62, %v3003_v20 }
 0x15d   : > { %v3145_v50 = vpack.c.b16 %v3132_v42, %v3131_v45  ;;  %v3393_v21 = vpack.c.b16 %v3379_v9, %v3378_v17 }
 0x15e   : > { %v2024_v26 = vpop.f32.mrf.mxu3  ;;  %v5606_v35 = vadd.f32 %v2645_v30, %v2436_v27  ;;  %3694 = vmatmul.bf16.gmra.mxu1 %v3606_v10  ;;  %v2994_v30 = vrot.slane %v2992_v34, 4  ;;  %v2907_v34 = vld [vmem:[#allocation2 + $0x48] sm:$0xf] }
 0x15f   : > { %v1828_v63 = vpop.f32.mrf.mxu2  ;;  %v2398_v61 = vpop.f32.mrf.mxu0  ;;  %v3016_v42 = vshrl.u32 %v2907_v34, 16 }
 0x160   : > { %v1867_v44 = vadd.f32 %v1828_v63, %v1601_v3  ;;  %v2998_v36 = vor.u32 %v2997_v56, %v2994_v30  ;;  %v3320_v3 = vrot.slane %v5571_v11, 5  ;;  %v3607_v11 = vpack.c.bf16 %v3594_v15, %v3593_v29 }
 0x161   : > { %v3019_v30 = vshll.u32 %v2907_v34, 16  ;;  %v3018_v17 = vrot.slane %v3016_v42, 4  ;;  %v3596_v34 = vld [vmem:[%s4812_s26 + $0x38] sm:$0xff] }
 0x162   : > { %v2060_v54 = vadd.f32 %v2021_v41, %v1867_v44  ;;  %v3011_v41 = vshll.u32 %v5614_v4, 16  ;;  %v2999_v10 = vrot.slane %v2998_v36, 4  ;;  %v3322_v63 = vrot.slane %v3320_v3, 4 }
 0x163   : > { %v2652_v52 = vpop.f32.mrf.mxu1  ;;  %v3021_v9 = vrot.slane %v3019_v30, 5  ;;  %v3031_v36 = vrot.slane %v3029_v28, 4 }
 0x164   : > { %v2437_v5 = vadd.f32 %v2398_v61, %v2060_v54  ;;  %2843 = vmatmul.bf16.gmra.mxu2 %v4521_v24  ;;  %v3013_v18 = vrot.slane %v3011_v41, 5  ;;  %v3004_v55 = vsel %vm4975_vm5, %v2999_v10, %v3003_v20  ;;  %v4522_v54 = vld [vmem:[#allocation2 + $0x30] sm:$0xff] }
 0x165   : > { %v3133_v62 = vunpack.c.l.b16 %v3004_v55  ;;  %v5640_v41 = vld [vmem:[#allocation2 + $0x50] sm:$0x1] }
 0x166   : > { %v2026_v7 = vpop.f32.mrf.mxu3  ;;  %v5616_v1 = vadd.f32 %v2647_v60, %v2437_v5  ;;  %v3009_v60 = vrot.slane %v3008_v13, 4  ;;  %v3035_v15 = vshll.u32 %v5640_v41, 16 }
 0x167   : > { %v1831_v47 = vpop.f32.mrf.mxu2  ;;  %v2401_v27 = vpop.f32.mrf.mxu0 }
 0x168   : > { %v1868_v53 = vadd.f32 %v1831_v47, %v5486_v14  ;;  %v3014_v38 = vsel %vm4975_vm5, %v3009_v60, %v3013_v18  ;;  %v3275_v18 = vld [vmem:[#allocation2 + $0x3c] sm:$0xe] }
 0x169   : > { %v3134_v5 = vunpack.c.l.b16 %v3014_v38  ;;  %v3037_v38 = vrot.slane %v3035_v15, 5  ;;  %v4383_v42 = vrot.slane %v3275_v18, 9 }
 0x16a   : > { %v2061_v16 = vadd.f32 %v2024_v26, %v1868_v53  ;;  %3469 = vmatmul.bf16.gmra.mxu0 %v3393_v21  ;;  %v3323_v26 = vrot.slane %v5588_v40, 5 }
 0x16b   : > { %3225 = vmatmul.bf16.gmra.mxu3 %v3145_v50  ;;  %v2655_v24 = vpop.f32.mrf.mxu1  ;;  %v3027_v50 = vrot.slane %v3025_v8, 5 }
 0x16c   : > { %v2438_v31 = vadd.f32 %v2401_v27, %v2061_v16  ;;  %v3324_v20 = vsel %vm5251_vm7, %v3322_v63, %v3323_v26  ;;  %v3022_v16 = vor.u32 %v3021_v9, %v3018_v17  ;;  %v3327_v63 = vrot.slane %v5599_v19, 5  ;;  %v4523_v17 = vld [vmem:[#allocation2 + $0x3c] sm:$0xff] }
 0x16d   : > { %v3381_v53 = vunpack.c.l.b16 %v3324_v20  ;;  %v3032_v29 = vor.u32 %v3031_v36, %v3027_v50 }
 0x16e   : > { %v2029_v14 = vpop.f32.mrf.mxu3  ;;  %v5627_v44 = vadd.f32 %v2650_v46, %v2438_v31  ;;  %v3321_v46 = vsel %vm5251_vm7, %v4382_v37, %v3320_v3  ;;  %3699 = vmatmul.bf16.gmra.mxu1 %v3607_v11  ;;  %v3146_v3 = vpack.c.b16 %v3134_v5, %v3133_v62  ;;  %v3595_v31 = vld [vmem:[%s4812_s26 + $0x30] sm:$0xff]  ;;  %v5649_v11 = vld [vmem:[#allocation2 + $0x58] sm:$0xf]  ;;  %v3023_v26 = vrot.slane %v3022_v16, 4  ;;  %v5665_v16 = vld [vmem:[#allocation2 + $0x5c] sm:$0x1] }
 0x16f   : > { %v1833_v45 = vpop.f32.mrf.mxu2  ;;  %v2403_v40 = vpop.f32.mrf.mxu0  ;;  %v3380_v47 = vunpack.c.l.b16 %v3321_v46  ;;  %v3033_v55 = vrot.slane %v3032_v29, 4  ;;  %v3608_v30 = vpack.c.bf16 %v3596_v34, %v3595_v31  ;;  %v3329_v19 = vrot.slane %v3327_v63, 4 }
 0x170   : > { %v1869_v61 = vadd.f32 %v1833_v45, %v1606_v23  ;;  %v3330_v46 = vrot.slane %v5614_v4, 5  ;;  %v3028_v20 = vsel %vm4975_vm5, %v3023_v26, %v3027_v50  ;;  %v3328_v9 = vsel %vm5251_vm7, %v4383_v42, %v3327_v63 }
 0x171   : > { %v3394_v60 = vpack.c.b16 %v3381_v53, %v3380_v47  ;;  %v3038_v62 = vsel %vm4975_vm5, %v3033_v55, %v3037_v38  ;;  %v3135_v50 = vunpack.c.l.b16 %v3028_v20  ;;  %v3059_v31 = vshll.u32 %v5665_v16, 16  ;;  %v3276_v55 = vld [vmem:[#allocation2 + $0x48] sm:$0xe] }
 0x172   : > { %v2062_v56 = vadd.f32 %v2026_v7, %v1869_v61  ;;  %v3049_v61 = vshll.u32 %v5649_v11, 16 }
 0x173   : > { %v2657_v7 = vpop.f32.mrf.mxu1  ;;  %v3061_v42 = vrot.slane %v3059_v31, 5  ;;  %v5690_v31 = vld [vmem:[#allocation2 + $0x68] sm:$0x1] }
 0x174   : > { %v2439_v13 = vadd.f32 %v2403_v40, %v2062_v56  ;;  %2848 = vmatmul.bf16.gmra.mxu2 %v4522_v54 }
 0x176   : > { %v2031_v21 = vpop.f32.mrf.mxu3  ;;  %v5642_v22 = vadd.f32 %v2652_v52, %v2439_v13  ;;  %v2910_v52 = vld [vmem:[#allocation2 + $0x54] sm:$0xf]  ;;  %v3051_v13 = vrot.slane %v3049_v61, 5  ;;  %v3598_v61 = vld [vmem:[%s4812_s26 + $0x48] sm:$0xff] }
 0x177   : > { %v1836_v27 = vpop.f32.mrf.mxu2  ;;  %v2406_v23 = vpop.f32.mrf.mxu0  ;;  %v3040_v8 = vshrl.u32 %v2910_v52, 16  ;;  %v3043_v28 = vshll.u32 %v2910_v52, 16  ;;  %v3334_v52 = vrot.slane %v5623_v32, 5 }
 0x178   : > { %v1870_v10 = vadd.f32 %v1836_v27, %v5531_v39  ;;  %v3136_v27 = vunpack.c.l.b16 %v3038_v62 }
 0x179   : > { %v3045_v36 = vrot.slane %v3043_v28, 5  ;;  %v3597_v28 = vld [vmem:[%s4812_s26 + $0x40] sm:$0xff] }
 0x17a   : > { %v2063_v37 = vadd.f32 %v2029_v14, %v1870_v10  ;;  %3474 = vmatmul.bf16.gmra.mxu0 %v3394_v60  ;;  %v3053_v14 = vshrl.u32 %v5649_v11, 16  ;;  %v3609_v20 = vpack.c.bf16 %v3598_v61, %v3597_v28  ;;  %v3277_v28 = vld [vmem:[#allocation2 + $0x54] sm:$0xe]  ;;  %v3341_v61 = vrot.slane %v5649_v11, 5 }
 0x17b   : > { %3230 = vmatmul.bf16.gmra.mxu3 %v3146_v3  ;;  %v2660_v40 = vpop.f32.mrf.mxu1  ;;  %v3331_v3 = vsel %vm5251_vm7, %v3329_v19, %v3330_v46  ;;  %v4384_v46 = vrot.slane %v3276_v55, 9  ;;  %v3344_v11 = vrot.slane %v5665_v16, 5 }
 0x17c   : > { %v2440_v45 = vadd.f32 %v2406_v23, %v2063_v37  ;;  %v3055_v47 = vrot.slane %v3053_v14, 4  ;;  %v3383_v15 = vunpack.c.l.b16 %v3331_v3  ;;  %v3147_v23 = vpack.c.b16 %v3136_v27, %v3135_v50  ;;  %v2913_v14 = vld [vmem:[#allocation2 + $0x60] sm:$0xf] }
 0x17d   : > { %v3335_v3 = vsel %vm5251_vm7, %v4384_v46, %v3334_v52  ;;  %v3599_v46 = vld [vmem:[%s4812_s26 + $0x50] sm:$0xff] }
 0x17e   : > { %v2034_v39 = vpop.f32.mrf.mxu3  ;;  %v5653_v54 = vadd.f32 %v2655_v24, %v2440_v45  ;;  %3704 = vmatmul.bf16.gmra.mxu1 %v3608_v30  ;;  %v3042_v24 = vrot.slane %v3040_v8, 4  ;;  %v3056_v18 = vor.u32 %v3055_v47, %v3051_v13 }
 0x17f   : > { %v1838_v56 = vpop.f32.mrf.mxu2  ;;  %v2408_v4 = vpop.f32.mrf.mxu0 }
 0x180   : > { %v1871_v5 = vadd.f32 %v1838_v56, %v5548_v12  ;;  %v3382_v12 = vunpack.c.l.b16 %v3328_v9  ;;  %v3046_v60 = vor.u32 %v3045_v36, %v3042_v24  ;;  %v3057_v45 = vrot.slane %v3056_v18, 4 }
 0x181   : > { %v3336_v56 = vrot.slane %v3334_v52, 4  ;;  %v3067_v24 = vshll.u32 %v2913_v14, 16 }
 0x182   : > { %v2064_v53 = vadd.f32 %v2031_v21, %v1871_v5  ;;  %v3395_v26 = vpack.c.b16 %v3383_v15, %v3382_v12  ;;  %v3047_v38 = vrot.slane %v3046_v60, 4  ;;  %v3064_v5 = vshrl.u32 %v2913_v14, 16 }
 0x183   : > { %v2662_v21 = vpop.f32.mrf.mxu1  ;;  %v3069_v15 = vrot.slane %v3067_v24, 5 }
 0x184   : > { %v2441_v29 = vadd.f32 %v2408_v4, %v2064_v53  ;;  %2853 = vmatmul.bf16.gmra.mxu2 %v4523_v17  ;;  %v3052_v62 = vsel %vm4975_vm5, %v3047_v38, %v3051_v13  ;;  %v4524_v53 = vld [vmem:[#allocation2 + $0x48] sm:$0xff]  ;;  %v3066_v27 = vrot.slane %v3064_v5, 4  ;;  %v5699_v5 = vld [vmem:[#allocation2 + $0x70] sm:$0xf] }
 0x185   : > { %v3137_v50 = vunpack.c.l.b16 %v3052_v62 }
 0x186   : > { %v2036_v10 = vpop.f32.mrf.mxu3  ;;  %v5668_v34 = vadd.f32 %v2657_v7, %v2441_v29  ;;  %v5674_v7 = vld [vmem:[#allocation2 + $0x64] sm:$0xf]  ;;  %v3070_v38 = vor.u32 %v3069_v15, %v3066_v27  ;;  %v3101_v27 = vshrl.u32 %v5699_v5, 16 }
 0x187   : > { %v1841_v37 = vpop.f32.mrf.mxu2  ;;  %v2411_v30 = vpop.f32.mrf.mxu0  ;;  %v3073_v36 = vshll.u32 %v5674_v7, 16  ;;  %v3077_v47 = vshrl.u32 %v5674_v7, 16 }
 0x188   : > { %v1872_v63 = vadd.f32 %v1841_v37, %v5573_v25  ;;  %v3337_v25 = vrot.slane %v5640_v41, 5 }
 0x189   : > { %v3075_v60 = vrot.slane %v3073_v36, 5  ;;  %v3079_v18 = vrot.slane %v3077_v47, 4  ;;  %v4385_v36 = vrot.slane %v3277_v28, 9 }
 0x18a   : > { %v2065_v8 = vadd.f32 %v2034_v39, %v1872_v63  ;;  %3479 = vmatmul.bf16.gmra.mxu0 %v3395_v26  ;;  %v3062_v39 = vsel %vm4975_vm5, %v3057_v45, %v3061_v42  ;;  %v3338_v13 = vsel %vm5251_vm7, %v3336_v56, %v3337_v25  ;;  %v3600_v56 = vld [vmem:[%s4812_s26 + $0x58] sm:$0xff]  ;;  %v3071_v25 = vrot.slane %v3070_v38, 4 }
 0x18b   : > { %3235 = vmatmul.bf16.gmra.mxu3 %v3147_v23  ;;  %v2665_v9 = vpop.f32.mrf.mxu1  ;;  %v3385_v37 = vunpack.c.l.b16 %v3338_v13  ;;  %v3080_v45 = vor.u32 %v3079_v18, %v3075_v60  ;;  %v3610_v47 = vpack.c.bf16 %v3600_v56, %v3599_v46  ;;  %v3342_v16 = vsel %vm5251_vm7, %v4385_v36, %v3341_v61  ;;  %v3601_v36 = vld [vmem:[%s4812_s26 + $0x60] sm:$0xff] }
 0x18c   : > { %v2442_v19 = vadd.f32 %v2411_v30, %v2065_v8  ;;  %v3103_v38 = vrot.slane %v3101_v27, 4 }
 0x18e   : > { %v2039_v32 = vpop.f32.mrf.mxu3  ;;  %v5681_v17 = vadd.f32 %v2660_v40, %v2442_v19  ;;  %3709 = vmatmul.bf16.gmra.mxu1 %v3609_v20  ;;  %v3138_v40 = vunpack.c.l.b16 %v3062_v39  ;;  %v2916_v39 = vld [vmem:[#allocation2 + $0x6c] sm:$0xf] }
 0x18f   : > { %v1843_v4 = vpop.f32.mrf.mxu2  ;;  %v2413_v29 = vpop.f32.mrf.mxu0  ;;  %v3088_v13 = vshrl.u32 %v2916_v39, 16 }
 0x190   : > { %v1873_v41 = vadd.f32 %v1843_v4, %v5590_v0  ;;  %v3384_v0 = vunpack.c.l.b16 %v3335_v3  ;;  %v3148_v52 = vpack.c.b16 %v3138_v40, %v3137_v50  ;;  %v3091_v50 = vshll.u32 %v2916_v39, 16 }
 0x191   : > { %v3097_v40 = vshll.u32 %v5699_v5, 16  ;;  %v3348_v39 = vrot.slane %v5674_v7, 5 }
 0x192   : > { %v2066_v12 = vadd.f32 %v2036_v10, %v1873_v41  ;;  %v3083_v10 = vshll.u32 %v5690_v31, 16  ;;  %v3396_v8 = vpack.c.b16 %v3385_v37, %v3384_v0  ;;  %v3076_v41 = vsel %vm4975_vm5, %v3071_v25, %v3075_v60 }
 0x193   : > { %v2667_v55 = vpop.f32.mrf.mxu1  ;;  %v3139_v18 = vunpack.c.l.b16 %v3076_v41  ;;  %v3090_v0 = vrot.slane %v3088_v13, 4  ;;  %v3093_v37 = vrot.slane %v3091_v50, 5 }
 0x194   : > { %v2443_v23 = vadd.f32 %v2413_v29, %v2066_v12  ;;  %2858 = vmatmul.bf16.gmra.mxu2 %v4524_v53  ;;  %v3085_v20 = vrot.slane %v3083_v10, 5  ;;  %v5715_v10 = vld [vmem:[#allocation2 + $0x74] sm:$0x1] }
 0x195   : > { %v3107_v46 = vshll.u32 %v5715_v10, 16 }
 0x196   : > { %v2041_v63 = vpop.f32.mrf.mxu3  ;;  %v5692_v26 = vadd.f32 %v2662_v21, %v2443_v23  ;;  %v3081_v21 = vrot.slane %v3080_v45, 4 }
 0x197   : > { %v1846_v42 = vpop.f32.mrf.mxu2  ;;  %v2416_v14 = vpop.f32.mrf.mxu0 }
 0x198   : > { %v1874_v30 = vadd.f32 %v1846_v42, %v5451_v6  ;;  %v3343_v6 = vrot.slane %v3341_v61, 4  ;;  %v3086_v53 = vsel %vm4975_vm5, %v3081_v21, %v3085_v20 }
 0x199   : > { %v3140_v23 = vunpack.c.l.b16 %v3086_v53 }
 0x19a   : > { %v2067_v19 = vadd.f32 %v2039_v32, %v1874_v30  ;;  %3484 = vmatmul.bf16.gmra.mxu0 %v3396_v8  ;;  %v3345_v60 = vsel %vm5251_vm7, %v3343_v6, %v3344_v11  ;;  %v3602_v6 = vld [vmem:[%s4812_s26 + $0x68] sm:$0xff]  ;;  %v3109_v11 = vrot.slane %v3107_v46, 5 }
 0x19b   : > { %3240 = vmatmul.bf16.gmra.mxu3 %v3148_v52  ;;  %v2670_v32 = vpop.f32.mrf.mxu1  ;;  %v3099_v52 = vrot.slane %v3097_v40, 5  ;;  %v3387_v42 = vunpack.c.l.b16 %v3345_v60  ;;  %v3149_v28 = vpack.c.b16 %v3140_v23, %v3139_v18  ;;  %v3611_v13 = vpack.c.bf16 %v3602_v6, %v3601_v36  ;;  %v3279_v46 = vld [vmem:[#allocation2 + $0x6c] sm:$0xe] }
 0x19c   : > { %v2444_v62 = vadd.f32 %v2416_v14, %v2067_v19  ;;  %v3094_v14 = vor.u32 %v3093_v37, %v3090_v0  ;;  %v3351_v40 = vrot.slane %v5690_v31, 5 }
 0x19d   : > { %v3104_v19 = vor.u32 %v3103_v38, %v3099_v52 }
 0x19e   : > { %v2044_v24 = vpop.f32.mrf.mxu3  ;;  %v5701_v4 = vadd.f32 %v2665_v9, %v2444_v62  ;;  %v4525_v9 = vld [vmem:[#allocation2 + $0x54] sm:$0xff]  ;;  %3714 = vmatmul.bf16.gmra.mxu1 %v3610_v47  ;;  %v3278_v62 = vld [vmem:[#allocation2 + $0x60] sm:$0xe] }
 0x19f   : > { %v1848_v3 = vpop.f32.mrf.mxu2  ;;  %v2418_v12 = vpop.f32.mrf.mxu0  ;;  %v3105_v47 = vrot.slane %v3104_v19, 4  ;;  %v3604_v19 = vld [vmem:[%s4812_s26 + $0x78] sm:$0xff] }
 0x1a0   : > { %v1875_v29 = vadd.f32 %v1848_v3, %v5472_v51  ;;  %v3386_v51 = vunpack.c.l.b16 %v3342_v16  ;;  %v4386_v3 = vrot.slane %v3278_v62, 9  ;;  %v4526_v16 = vld [vmem:[#allocation2 + $0x60] sm:$0xff] }
 0x1a2   : > { %v2068_v15 = vadd.f32 %v2041_v63, %v1875_v29  ;;  %v3397_v25 = vpack.c.b16 %v3387_v42, %v3386_v51  ;;  %v3110_v29 = vsel %vm4975_vm5, %v3105_v47, %v3109_v11 }
 0x1a3   : > { %v2672_v63 = vpop.f32.mrf.mxu1  ;;  %v3142_v18 = vunpack.c.l.b16 %v3110_v29 }
 0x1a4   : > { %v2445_v45 = vadd.f32 %v2418_v12, %v2068_v15  ;;  %2863 = vmatmul.bf16.gmra.mxu2 %v4525_v9  ;;  %v3349_v12 = vsel %vm5251_vm7, %v4386_v3, %v3348_v39 }
 0x1a5   : > { %v3388_v33 = vunpack.c.l.b16 %v3349_v12 }
 0x1a6   : > { %v2046_v30 = vpop.f32.mrf.mxu3  ;;  %v5717_v8 = vadd.f32 %v2667_v55, %v2445_v45  ;;  %v3095_v55 = vrot.slane %v3094_v14, 4  ;;  %v3603_v14 = vld [vmem:[%s4812_s26 + $0x70] sm:$0xff] }
 0x1a7   : > { %v1851_v61 = vpop.f32.mrf.mxu2  ;;  %v2421_v21 = vpop.f32.mrf.mxu0 }
 0x1a8   : > { %v1876_v56 = vadd.f32 %v1851_v61, %v5493_v43  ;;  %v3350_v43 = vrot.slane %v3348_v39, 4  ;;  %v3100_v7 = vsel %vm4975_vm5, %v3095_v55, %v3099_v52  ;;  %v3355_v61 = vrot.slane %v5699_v5, 5  ;;  %v4527_v55 = vld [vmem:[#allocation2 + $0x6c] sm:$0xff] }
 0x1a9   : > { %v3141_v60 = vunpack.c.l.b16 %v3100_v7  ;;  %v3358_v39 = vrot.slane %v5715_v10, 5 }
 0x1aa   : > { %v2069_v20 = vadd.f32 %v2044_v24, %v1876_v56  ;;  %3489 = vmatmul.bf16.gmra.mxu0 %v3397_v25  ;;  %v3352_v31 = vsel %vm5251_vm7, %v3350_v43, %v3351_v40  ;;  %v3357_v62 = vrot.slane %v3355_v61, 4 }
 0x1ab   : > { %3245 = vmatmul.bf16.gmra.mxu3 %v3149_v28  ;;  %v2675_v24 = vpop.f32.mrf.mxu1  ;;  %v3389_v0 = vunpack.c.l.b16 %v3352_v31  ;;  %v3150_v38 = vpack.c.b16 %v3142_v18, %v3141_v60 }
 0x1ac   : > { %v2446_v41 = vadd.f32 %v2421_v21, %v2069_v20  ;;  %v3612_v21 = vpack.c.bf16 %v3604_v19, %v3603_v14  ;;  %v4387_v20 = vrot.slane %v3279_v46, 9 }
 0x1ad   : > { %v3398_v42 = vpack.c.b16 %v3389_v0, %v3388_v33 }
 0x1ae   : > { %v2049_v53 = vpop.f32.mrf.mxu3  ;;  %v5724_v50 = vadd.f32 %v2670_v32, %v2446_v41  ;;  %3719 = vmatmul.bf16.gmra.mxu1 %v3611_v13  ;;  %v3356_v11 = vsel %vm5251_vm7, %v4387_v20, %v3355_v61  ;;  %v3359_v41 = vsel %vm5251_vm7, %v3357_v62, %v3358_v39  ;;  %v3542_v39 = vld [vmem:[%s4818_s30 + $0x8] sm:$0xff] }
 0x1af   : > { %v1853_v27 = vpop.f32.mrf.mxu2  ;;  %v2423_v32 = vpop.f32.mrf.mxu0  ;;  %v3390_v3 = vunpack.c.l.b16 %v3356_v11  ;;  %v3391_v13 = vunpack.c.l.b16 %v3359_v41 }
 0x1b0   : > { %v1877_v9 = vadd.f32 %v1853_v27, %v5516_v2 }
 0x1b1   : > { %v3399_v27 = vpack.c.b16 %v3391_v13, %v3390_v3  ;;  %v3543_v3 = vld [vmem:[%s4818_s30 + $0x10] sm:$0xff] }
 0x1b2   : > { %v2070_v15 = vadd.f32 %v2046_v30, %v1877_v9 }
 0x1b3   : > { %v2677_v52 = vpop.f32.mrf.mxu1 }
 0x1b4   : > { %v2447_v23 = vadd.f32 %v2423_v32, %v2070_v15  ;;  %2868 = vmatmul.bf16.gmra.mxu2 %v4526_v16 }
 0x1b6   : > { %v2051_v37 = vpop.f32.mrf.mxu3  ;;  %v5736_v2 = vadd.f32 %v2672_v63, %v2447_v23 }
 0x1b7   : > { %v1856_v45 = vpop.f32.mrf.mxu2  ;;  %v2426_v30 = vpop.f32.mrf.mxu0 }
 0x1b8   : > { %v1878_v51 = vadd.f32 %v1856_v45, %v5539_v59 }
 0x1ba   : > { %v2071_v28 = vadd.f32 %v2049_v53, %v1878_v51  ;;  %3494 = vmatmul.bf16.gmra.mxu0 %v3398_v42 }
 0x1bb   : > { %3250 = vmatmul.bf16.gmra.mxu3 %v3150_v38  ;;  %v2680_v59 = vpop.f32.mrf.mxu1 }
 0x1bc   : > { %v2448_v56 = vadd.f32 %v2426_v30, %v2071_v28  ;;  %v3541_v28 = vld [vmem:[%s4818_s30] sm:$0xff] }
 0x1be   : > { %v2054_v25 = vpop.f32.mrf.mxu3  ;;  %v5742_v63 = vadd.f32 %v2675_v24, %v2448_v56  ;;  %3724 = vmatmul.bf16.gmra.mxu1 %v3612_v21 }
 0x1bf   : > { %v1858_v36 = vpop.f32.mrf.mxu2  ;;  %v2428_v5 = vpop.f32.mrf.mxu0 }
 0x1c0   : > { %v1879_v6 = vadd.f32 %v1858_v36, %v5557_v49 }
 0x1c2   : > { %v2072_v47 = vadd.f32 %v2051_v37, %v1879_v6 }
 0x1c3   : > { %v2682_v40 = vpop.f32.mrf.mxu1 }
 0x1c4   : > { %v2449_v53 = vadd.f32 %v2428_v5, %v2072_v47  ;;  %2873 = vmatmul.bf16.gmra.mxu2 %v4527_v55 }
 0x1c6   : > { %v2056_v43 = vpop.f32.mrf.mxu3  ;;  %v5750_v10 = vadd.f32 %v2677_v52, %v2449_v53 }
 0x1c7   : > { %v1861_v49 = vpop.f32.mrf.mxu2  ;;  %v2431_v7 = vpop.f32.mrf.mxu0 }
 0x1c8   : > { %v1880_v24 = vadd.f32 %v1861_v49, %v5566_v58 }
 0x1ca   : > { %v2073_v29 = vadd.f32 %v2054_v25, %v1880_v24  ;;  %3499 = vmatmul.bf16.gmra.mxu0 %v3399_v27 }
 0x1cb   : > { %v3690_v32 = vpop.f32.mrf.mxu1 }
 0x1cc   : > { %v2450_v9 = vadd.f32 %v2431_v7, %v2073_v29  ;;  %v3691_v31 = vadd.f32 %v5756_v57, %v3690_v32 }
 0x1ce   : > { %v3216_v16 = vpop.f32.mrf.mxu3  ;;  %v5758_v12 = vadd.f32 %v2680_v59, %v2450_v9  ;;  %3730 = vst [vmem:[%s4873_s4] sm:$0xff] %v3691_v31 }
 0x1cf   : > { %v1863_v15 = vpop.f32.mrf.mxu2  ;;  %v2433_v60 = vpop.f32.mrf.mxu0 }
 0x1d0   : > { %v1881_v58 = vadd.f32 %v1863_v15, %v5582_v48  ;;  %v5771_v48 = vld [vmem:[%s5885_s6] ss:$0 sm:$0xff] }
 0x1d2   : > { %v2074_v18 = vadd.f32 %v2056_v43, %v1881_v58 }
 0x1d3   : > { %v3692_v37 = vpop.f32.mrf.mxu1 }
 0x1d4   : > { %v2451_v23 = vadd.f32 %v2433_v60, %v2074_v18  ;;  %v3693_v38 = vadd.f32 %v5756_v57, %v3692_v37 }
 0x1d6   : > { %v3218_v33 = vpop.f32.mrf.mxu3  ;;  %v5763_v0 = vadd.f32 %v2682_v40, %v2451_v23  ;;  %3731 = vst [vmem:[%s4873_s4 + $0x8] sm:$0xff] %v3693_v38 }
 0x1d7   : > { %v2839_v52 = vpop.f32.mrf.mxu2  ;;  %v3465_v51 = vpop.f32.mrf.mxu0 }
 0x1d8   : > { %v2879_v45 = vadd.f32 %v2839_v52, %v5606_v35  ;;  %v3545_v52 = vld [vmem:[%s4818_s30 + $0x20] sm:$0xff] }
 0x1da   : > { %v3256_v42 = vadd.f32 %v3216_v16, %v2879_v45  ;;  %v3544_v16 = vld [vmem:[%s4818_s30 + $0x18] sm:$0xff] }
 0x1db   : > { %v3695_v19 = vpop.f32.mrf.mxu1 }
 0x1dc   : > { %v3505_v30 = vadd.f32 %v3465_v51, %v3256_v42  ;;  %v3696_v56 = vadd.f32 %v5756_v57, %v3695_v19 }
 0x1de   : > { %v3221_v61 = vpop.f32.mrf.mxu3  ;;  %v3525_v14 = vadd.f32 %v5771_v48, %v3505_v30  ;;  %3732 = vst [vmem:[%s4873_s4 + $0x10] sm:$0xff] %v3696_v56 }
 0x1df   : > { %v2841_v46 = vpop.f32.mrf.mxu2  ;;  %v3467_v21 = vpop.f32.mrf.mxu0 }
 0x1e0   : > { %v3557_v35 = vadd.f32 %v3541_v28, %v3525_v14  ;;  %v2880_v25 = vadd.f32 %v2841_v46, %v5616_v1  ;;  %v3546_v46 = vld [vmem:[%s4818_s30 + $0x28] sm:$0xff] }
 0x1e2   : > { %3573 = vst [vmem:[%s4843_s27] sm:$0xff] %v3557_v35  ;;  %v3257_v20 = vadd.f32 %v3218_v33, %v2880_v25 }
 0x1e3   : > { %v3697_v6 = vpop.f32.mrf.mxu1 }
 0x1e4   : > { %v3506_v62 = vadd.f32 %v3467_v21, %v3257_v20  ;;  %v3698_v5 = vadd.f32 %v5756_v57, %v3697_v6  ;;  %v3547_v6 = vld [vmem:[%s4818_s30 + $0x30] sm:$0xff] }
 0x1e6   : > { %v3223_v59 = vpop.f32.mrf.mxu3  ;;  %v3526_v36 = vadd.f32 %v5771_v48, %v3506_v62  ;;  %3733 = vst [vmem:[%s4873_s4 + $0x18] sm:$0xff] %v3698_v5 }
 0x1e7   : > { %v2844_v55 = vpop.f32.mrf.mxu2  ;;  %v3470_v1 = vpop.f32.mrf.mxu0 }
 0x1e8   : > { %v3558_v47 = vadd.f32 %v3542_v39, %v3526_v36  ;;  %v2881_v11 = vadd.f32 %v2844_v55, %v5627_v44 }
 0x1ea   : > { %3574 = vst [vmem:[%s4843_s27 + $0x8] sm:$0xff] %v3558_v47  ;;  %v3258_v41 = vadd.f32 %v3221_v61, %v2881_v11 }
 0x1eb   : > { %v3700_v40 = vpop.f32.mrf.mxu1 }
 0x1ec   : > { %v3507_v53 = vadd.f32 %v3470_v1, %v3258_v41  ;;  %v3701_v24 = vadd.f32 %v5756_v57, %v3700_v40 }
 0x1ee   : > { %v3226_v13 = vpop.f32.mrf.mxu3  ;;  %v3527_v43 = vadd.f32 %v5771_v48, %v3507_v53  ;;  %3734 = vst [vmem:[%s4873_s4 + $0x20] sm:$0xff] %v3701_v24 }
 0x1ef   : > { %v2846_v49 = vpop.f32.mrf.mxu2  ;;  %v3472_v44 = vpop.f32.mrf.mxu0 }
 0x1f0   : > { %v3559_v27 = vadd.f32 %v3543_v3, %v3527_v43  ;;  %v2882_v7 = vadd.f32 %v2846_v49, %v5642_v22  ;;  %v3548_v43 = vld [vmem:[%s4818_s30 + $0x38] sm:$0xff] }
 0x1f2   : > { %3575 = vst [vmem:[%s4843_s27 + $0x10] sm:$0xff] %v3559_v27  ;;  %v3259_v29 = vadd.f32 %v3223_v59, %v2882_v7 }
 0x1f3   : > { %v3702_v31 = vpop.f32.mrf.mxu1 }
 0x1f4   : > { %v3508_v9 = vadd.f32 %v3472_v44, %v3259_v29  ;;  %v3703_v60 = vadd.f32 %v5756_v57, %v3702_v31 }
 0x1f6   : > { %v3228_v32 = vpop.f32.mrf.mxu3  ;;  %v3528_v15 = vadd.f32 %v5771_v48, %v3508_v9  ;;  %3735 = vst [vmem:[%s4873_s4 + $0x28] sm:$0xff] %v3703_v60 }
 0x1f7   : > { %v2849_v58 = vpop.f32.mrf.mxu2  ;;  %v3475_v22 = vpop.f32.mrf.mxu0 }
 0x1f8   : > { %v3560_v18 = vadd.f32 %v3544_v16, %v3528_v15  ;;  %v2883_v23 = vadd.f32 %v2849_v58, %v5653_v54 }
 0x1fa   : > { %3576 = vst [vmem:[%s4843_s27 + $0x18] sm:$0xff] %v3560_v18  ;;  %v3260_v33 = vadd.f32 %v3226_v13, %v2883_v23 }
 0x1fb   : > { %v3705_v51 = vpop.f32.mrf.mxu1 }
 0x1fc   : > { %v3509_v37 = vadd.f32 %v3475_v22, %v3260_v33  ;;  %v3706_v30 = vadd.f32 %v5756_v57, %v3705_v51 }
 0x1fe   : > { %v3231_v38 = vpop.f32.mrf.mxu3  ;;  %v3529_v45 = vadd.f32 %v5771_v48, %v3509_v37  ;;  %3736 = vst [vmem:[%s4873_s4 + $0x30] sm:$0xff] %v3706_v30 }
 0x1ff   : > { %v2851_v42 = vpop.f32.mrf.mxu2  ;;  %v3477_v54 = vpop.f32.mrf.mxu0 }
 0x200   : > { %v3561_v28 = vadd.f32 %v3545_v52, %v3529_v45  ;;  %v2884_v61 = vadd.f32 %v2851_v42, %v5668_v34  ;;  %v3550_v52 = vld [vmem:[%s4818_s30 + $0x48] sm:$0xff] }
 0x202   : > { %3577 = vst [vmem:[%s4843_s27 + $0x20] sm:$0xff] %v3561_v28  ;;  %v3261_v14 = vadd.f32 %v3228_v32, %v2884_v61  ;;  %v3549_v32 = vld [vmem:[%s4818_s30 + $0x40] sm:$0xff] }
 0x203   : > { %v3707_v25 = vpop.f32.mrf.mxu1 }
 0x204   : > { %v3510_v19 = vadd.f32 %v3477_v54, %v3261_v14  ;;  %v3708_v20 = vadd.f32 %v5756_v57, %v3707_v25 }
 0x206   : > { %v3233_v56 = vpop.f32.mrf.mxu3  ;;  %v3530_v35 = vadd.f32 %v5771_v48, %v3510_v19  ;;  %3737 = vst [vmem:[%s4873_s4 + $0x38] sm:$0xff] %v3708_v20  ;;  %v3551_v19 = vld [vmem:[%s4818_s30 + $0x50] sm:$0xff] }
 0x207   : > { %v2854_v21 = vpop.f32.mrf.mxu2  ;;  %v3480_v34 = vpop.f32.mrf.mxu0 }
 0x208   : > { %v3562_v62 = vadd.f32 %v3546_v46, %v3530_v35  ;;  %v2885_v39 = vadd.f32 %v2854_v21, %v5681_v17 }
 0x20a   : > { %3578 = vst [vmem:[%s4843_s27 + $0x28] sm:$0xff] %v3562_v62  ;;  %v3262_v59 = vadd.f32 %v3231_v38, %v2885_v39 }
 0x20b   : > { %v3710_v47 = vpop.f32.mrf.mxu1 }
 0x20c   : > { %v3511_v36 = vadd.f32 %v3480_v34, %v3262_v59  ;;  %v3711_v1 = vadd.f32 %v5756_v57, %v3710_v47  ;;  %v3552_v59 = vld [vmem:[%s4818_s30 + $0x58] sm:$0xff] }
 0x20e   : > { %v3236_v55 = vpop.f32.mrf.mxu3  ;;  %v3531_v5 = vadd.f32 %v5771_v48, %v3511_v36  ;;  %3738 = vst [vmem:[%s4873_s4 + $0x40] sm:$0xff] %v3711_v1 }
 0x20f   : > { %v2856_v11 = vpop.f32.mrf.mxu2  ;;  %v3482_v17 = vpop.f32.mrf.mxu0 }
 0x210   : > { %v3563_v41 = vadd.f32 %v3547_v6, %v3531_v5  ;;  %v2886_v53 = vadd.f32 %v2856_v11, %v5692_v26 }
 0x212   : > { %3579 = vst [vmem:[%s4843_s27 + $0x30] sm:$0xff] %v3563_v41  ;;  %v3263_v3 = vadd.f32 %v3233_v56, %v2886_v53  ;;  %v3553_v53 = vld [vmem:[%s4818_s30 + $0x60] sm:$0xff] }
 0x213   : > { %v3712_v24 = vpop.f32.mrf.mxu1 }
 0x214   : > { %v3512_v13 = vadd.f32 %v3482_v17, %v3263_v3  ;;  %v3713_v7 = vadd.f32 %v5756_v57, %v3712_v24 }
 0x216   : > { %v3238_v40 = vpop.f32.mrf.mxu3  ;;  %v3532_v49 = vadd.f32 %v5771_v48, %v3512_v13  ;;  %3739 = vst [vmem:[%s4873_s4 + $0x48] sm:$0xff] %v3713_v7 }
 0x217   : > { %v2859_v27 = vpop.f32.mrf.mxu2  ;;  %v3485_v26 = vpop.f32.mrf.mxu0 }
 0x218   : > { %v3564_v44 = vadd.f32 %v3548_v43, %v3532_v49  ;;  %v2887_v29 = vadd.f32 %v2859_v27, %v5701_v4 }
 0x21a   : > { %3580 = vst [vmem:[%s4843_s27 + $0x38] sm:$0xff] %v3564_v44  ;;  %v3264_v9 = vadd.f32 %v3236_v55, %v2887_v29  ;;  %v3554_v44 = vld [vmem:[%s4818_s30 + $0x68] sm:$0xff] }
 0x21b   : > { %v3715_v31 = vpop.f32.mrf.mxu1 }
 0x21c   : > { %v3513_v16 = vadd.f32 %v3485_v26, %v3264_v9  ;;  %v3716_v18 = vadd.f32 %v5756_v57, %v3715_v31 }
 0x21e   : > { %v3533_v15 = vadd.f32 %v5771_v48, %v3513_v16  ;;  %v3241_v60 = vpop.f32.mrf.mxu3  ;;  %3740 = vst [vmem:[%s4873_s4 + $0x50] sm:$0xff] %v3716_v18  ;;  %v3555_v18 = vld [vmem:[%s4818_s30 + $0x70] sm:$0xff] }
 0x21f   : > { %v2861_v58 = vpop.f32.mrf.mxu2  ;;  %v3487_v4 = vpop.f32.mrf.mxu0 }
 0x220   : > { %v3565_v23 = vadd.f32 %v3549_v32, %v3533_v15  ;;  %v2888_v22 = vadd.f32 %v2861_v58, %v5717_v8 }
 0x222   : > { %3581 = vst [vmem:[%s4843_s27 + $0x40] sm:$0xff] %v3565_v23  ;;  %v3265_v33 = vadd.f32 %v3238_v40, %v2888_v22 }
 0x223   : > { %v3717_v45 = vpop.f32.mrf.mxu1 }
 0x224   : > { %v3514_v37 = vadd.f32 %v3487_v4, %v3265_v33  ;;  %v3718_v42 = vadd.f32 %v5756_v57, %v3717_v45 }
 0x226   : > { %v3534_v38 = vadd.f32 %v5771_v48, %v3514_v37  ;;  %v3243_v61 = vpop.f32.mrf.mxu3  ;;  %3741 = vst [vmem:[%s4873_s4 + $0x58] sm:$0xff] %v3718_v42 }
 0x227   : > { %v2864_v51 = vpop.f32.mrf.mxu2  ;;  %v3490_v8 = vpop.f32.mrf.mxu0 }
 0x228   : > { %v3566_v30 = vadd.f32 %v3550_v52, %v3534_v38  ;;  %v2889_v28 = vadd.f32 %v2864_v51, %v5724_v50 }
 0x22a   : > { %3582 = vst [vmem:[%s4843_s27 + $0x48] sm:$0xff] %v3566_v30  ;;  %v3266_v54 = vadd.f32 %v3241_v60, %v2889_v28 }
 0x22b   : > { %v3720_v56 = vpop.f32.mrf.mxu1 }
 0x22c   : > { %v3515_v14 = vadd.f32 %v3490_v8, %v3266_v54  ;;  %v3721_v25 = vadd.f32 %v5756_v57, %v3720_v56 }
 0x22e   : > { %v3535_v46 = vadd.f32 %v5771_v48, %v3515_v14  ;;  %3742 = vst [vmem:[%s4873_s4 + $0x60] sm:$0xff] %v3721_v25  ;;  %v3246_v39 = vpop.f32.mrf.mxu3 }
 0x22f   : > { %v2866_v35 = vpop.f32.mrf.mxu2  ;;  %v3492_v50 = vpop.f32.mrf.mxu0 }
 0x230   : > { %v3567_v21 = vadd.f32 %v3551_v19, %v3535_v46  ;;  %v2890_v20 = vadd.f32 %v2866_v35, %v5736_v2 }
 0x232   : > { %3583 = vst [vmem:[%s4843_s27 + $0x50] sm:$0xff] %v3567_v21  ;;  %v3267_v62 = vadd.f32 %v3243_v61, %v2890_v20 }
 0x233   : > { %v3722_v6 = vpop.f32.mrf.mxu1 }
 0x234   : > { %v3516_v34 = vadd.f32 %v3492_v50, %v3267_v62  ;;  %v3723_v5 = vadd.f32 %v5756_v57, %v3722_v6 }
 0x236   : > { %v3536_v36 = vadd.f32 %v5771_v48, %v3516_v34  ;;  %3743 = vst [vmem:[%s4873_s4 + $0x68] sm:$0xff] %v3723_v5  ;;  %v3248_v17 = vpop.f32.mrf.mxu3 }
 0x237   : > { %v2869_v55 = vpop.f32.mrf.mxu2  ;;  %v3495_v2 = vpop.f32.mrf.mxu0 }
 0x238   : > { %v3568_v47 = vadd.f32 %v3552_v59, %v3536_v36  ;;  %v2891_v11 = vadd.f32 %v2869_v55, %v5742_v63 }
 0x23a   : > { %3584 = vst [vmem:[%s4843_s27 + $0x58] sm:$0xff] %v3568_v47  ;;  %v3268_v1 = vadd.f32 %v3246_v39, %v2891_v11 }
 0x23b   : > { %v3725_v13 = vpop.f32.mrf.mxu1 }
 0x23c   : > { %v3517_v41 = vadd.f32 %v3495_v2, %v3268_v1  ;;  %v3726_v40 = vadd.f32 %v5756_v57, %v3725_v13 }
 0x23e   : > { %v3537_v3 = vadd.f32 %v5771_v48, %v3517_v41  ;;  %3744 = vst [vmem:[%s4873_s4 + $0x70] sm:$0xff] %v3726_v40  ;;  %v3251_v9 = vpop.f32.mrf.mxu3 }
 0x23f   : > { %v2871_v43 = vpop.f32.mrf.mxu2  ;;  %v3497_v63 = vpop.f32.mrf.mxu0 }
 0x240   : > { %v3569_v49 = vadd.f32 %v3553_v53, %v3537_v3  ;;  %v2892_v24 = vadd.f32 %v2871_v43, %v5750_v10 }
 0x242   : > { %3585 = vst [vmem:[%s4843_s27 + $0x60] sm:$0xff] %v3569_v49  ;;  %v3269_v27 = vadd.f32 %v3248_v17, %v2892_v24 }
 0x243   : > { %v3727_v26 = vpop.f32.mrf.mxu1 }
 0x244   : > { %v3518_v7 = vadd.f32 %v3497_v63, %v3269_v27  ;;  %v3728_v32 = vadd.f32 %v5756_v57, %v3727_v26 }
 0x246   : > { %v3538_v29 = vadd.f32 %v5771_v48, %v3518_v7  ;;  %3745 = vst [vmem:[%s4873_s4 + $0x78] sm:$0xff] %v3728_v32  ;;  %v3253_v37 = vpop.f32.mrf.mxu3 }
 0x247   : > { %v2874_v16 = vpop.f32.mrf.mxu2  ;;  %v3500_v10 = vpop.f32.mrf.mxu0 }
 0x248   : > { %v3570_v15 = vadd.f32 %v3554_v44, %v3538_v29  ;;  %v2893_v31 = vadd.f32 %v2874_v16, %v5758_v12  ;;  %v3556_v12 = vld [vmem:[%s4818_s30 + $0x78] sm:$0xff] }
 0x24a   : > { %3586 = vst [vmem:[%s4843_s27 + $0x68] sm:$0xff] %v3570_v15  ;;  %v3270_v58 = vadd.f32 %v3251_v9, %v2893_v31 }
 0x24c   : > { %v3519_v60 = vadd.f32 %v3500_v10, %v3270_v58 }
 0x24e   : > { %v3539_v23 = vadd.f32 %v5771_v48, %v3519_v60 }
 0x24f   : > { %v2876_v22 = vpop.f32.mrf.mxu2  ;;  %v3502_v52 = vpop.f32.mrf.mxu0 }
 0x250   : > { %v3571_v4 = vadd.f32 %v3555_v18, %v3539_v23  ;;  %v2894_v33 = vadd.f32 %v2876_v22, %v5763_v0 }
 0x252   : > { %3587 = vst [vmem:[%s4843_s27 + $0x70] sm:$0xff] %v3571_v4  ;;  %v3271_v57 = vadd.f32 %v3253_v37, %v2894_v33 }
 0x254   : > { %v3520_v38 = vadd.f32 %v3502_v52, %v3271_v57 }
 0x256   : > { %v3540_v45 = vadd.f32 %v5771_v48, %v3520_v38 }
 0x258   : > { %v3572_v51 = vadd.f32 %v3556_v12, %v3540_v45 }
 0x25a   : > { %3588 = vst [vmem:[%s4843_s27 + $0x78] sm:$0xff] %v3572_v51 }
 0x25b PF: > { %s22_s21 = sadd.s32 1, %s4666_s21   ;;  %s5910_s17 = smov %s4658_s19 }
 0x25c   : > { %p19_p0 = scmp.ge.s32.totalorder %s22_s21, 6   ;;  %s5911_s18 = smov %s4662_s20 }
 0x25d   : > { %s5912_s19 = smov %s5915_s22  ;;  %s5913_s20 = smov %s5919_s23 }
 0x25e   :  { %21 = sbr.rel (!%p19_p0) target bundleno = 4 (0x4), region = 131 }

// kernel: resup_forward.7
= control target key start
LH: loop header
LB: loop body
LE: loop exit
PB: predicated region body
PF: predicated region fallthrough
CT: control target
= control target key end

     0   :  { %s4410_s30 = smov 0   ;;  %s4412_s10 = smov 0   ;;  %s5562_s0 = inlined_call_operand.vmem [shape: f32[2,16,16,128], index: 0, kind: input, shape index: {}, may-alias: {0,1,2}]   ;;  %s5563_s1 = inlined_call_operand.vmem [shape: f32[2,16,16,128], index: 1, kind: input, shape index: {}, may-alias: {0,1,2}]   ;;  %s5564_s2 = inlined_call_operand.vmem [shape: f32[2,16,16,128], index: 2, kind: input, shape index: {}, may-alias: {0,1,2}]   ;;  %s5565_s3 = inlined_call_operand.vmem [shape: f32[1,128], index: 3, kind: input, shape index: {}]   ;;  %s5566_s4 = inlined_call_operand.vmem [shape: f32[1,128], index: 4, kind: input, shape index: {}]   ;;  %s5567_s5 = inlined_call_operand.vmem [shape: bf16[1152,128], index: 5, kind: input, shape index: {}]   ;;  %s5568_s6 = inlined_call_operand.vmem [shape: f32[1,128], index: 6, kind: input, shape index: {}]   ;;  %s5569_s7 = inlined_call_operand.vmem [shape: f32[2,1,128], index: 7, kind: input, shape index: {}]   ;;  %s5570_s8 = inlined_call_operand.vmem [shape: f32[2,16,16,128], index: 8, kind: input, shape index: {}, may-alias: {8,9}]   ;;  %s5571_s9 = inlined_call_operand.vmem [shape: f32[2,16,16,128], index: 9, kind: output, shape index: {}, may-alias: {8,9}]  }
   0x1   :  { %s4414_s11 = smov 0   ;;  %s4416_s12 = smov 0  }
   0x2   :  { %s4418_s13 = smov 0  }
   0x3 LB: > { %s28_s14 = sadd.s32 1, %s4348_s11  ;;  %s31_s15 = sadd.s32 1, %s4352_s12  ;;  %s4356_s13 = sphi %s4418_s13, %s19_s13   ;;  %s4352_s12 = sphi %s4416_s12, %s5588_s12   ;;  %s4348_s11 = sphi %s4414_s11, %s5587_s11   ;;  %s4344_s10 = sphi %s4412_s10, %s5586_s10   ;;  %s4340_s30 = sphi %s4410_s30, %s5585_s30  }
   0x4   : > { %p29_p0 = scmp.ge.s32.totalorder %s28_s14, 2  ;;  %p3707_p1 = scmp.ge.s32.totalorder %s4356_s13, 1 }
   0x5   : > { %p399_p2 = scmp.lt.s32.totalorder %s4356_s13, 5 }
   0x6   : > { %s5590_s14 = smov (%p29_p0, %s28_s14), 0  ;;  %s5592_s15 = smov (!%p29_p0, %s31_s15), %s4352_s12 }
   0x7   : > { %p400_p3 = pnand %p3707_p1, %p399_p2  ;;  %p33_p4 = scmp.ge.s32.totalorder %s5592_s15, 2 }
   0x8   : > { %s4443_s16 = sshll.u32 (!%p400_p3), %s4340_s30, 3  ;;  %p485_p5 = scmp.lt.s32.totalorder (!%p400_p3), %s4344_s10, 1 }
   0x9   : > { %s5594_s15 = smov (%p33_p4, %s5592_s15), 0  ;;  %403 = sbr.rel (%p400_p3) target bundleno = 599 (0x257), region = 56 }
   0xa   : > { %p487_p6 = scmp.lt.s32.totalorder (!%p400_p3), %s4443_s16, 15  ;;  %s4447_s17 = sadd.s32 (!%p400_p3), 4294967295, %s4443_s16 }
   0xb   : > { %p497_p7 = scmp.gt.s32.totalorder (!%p400_p3), %s4447_s17, 0  ;;  %p3714_p8 = scmp.lt.s32.totalorder (!%p400_p3), %s4447_s17, 15 }
   0xc   : > { %s513_s24 = sadd.s32 (!%p400_p3), 8, %s4443_s16  ;;  %p3737_p10 = scmp.ne.s32.totalorder (!%p400_p3), %s4340_s30, 0 }
   0xd   : > { %p4480_p9 = scmp.lt.s32.totalorder (!%p400_p3), %s513_s24, 15 }
   0xe   : > { %vm560_vm0 = vcmask 1040384   ;;  %vm561_vm1 = vsmask.f32 256  ;;  %s5596_s10 = smov (!%p485_p5, %s4344_s10), 1  ;;  %v563_v1 = vld [vmem:[#allocation2] sm:$0x1] }
   0xf   : > { %vm4453_vm2 = vmand %vm560_vm0, %vm561_vm1  ;;  %v566_v2 = vld [vmem:[#allocation2 + $0xc] sm:$0x1]  ;;  %s488_s18 = scalar_select %p487_p6, %s4443_s16, 15  ;;  %v569_v5 = vld [vmem:[#allocation2 + $0x18] sm:$0x1] }
  0x10   : > { %v564_v3 = vsel %vm4453_vm2, 0, %v563_v1  ;;  %v567_v4 = vsel %vm4453_vm2, 0, %v566_v2  ;;  %s4463_s19 = sshll.u32 %s5596_s10, 5  ;;  %v570_v6 = vsel %vm4453_vm2, 0, %v569_v5  ;;  %v4472_v7 = vld [vmem:[%s5565_s3] sm:$0x1]  ;;  %s531_s22 = scalar_lea.vmem %s5569_s7, %s5596_s10 }
  0x11   : > { %565 = vst [vmem:[#allocation2] sm:$0x1] %v564_v3  ;;  %s3709_s20 = sshll.u32 %s488_s18, 1  ;;  %v572_v8 = vld [vmem:[#allocation2 + $0x24] sm:$0x1]  ;;  %s5598_s24 = smov (!%p4480_p9, %s513_s24), 15 }
  0x12   : > { %568 = vst [vmem:[#allocation2 + $0xc] sm:$0x1] %v567_v4  ;;  %s491_s23 = sadd.s32 %s4463_s19, %s3709_s20  ;;  %v573_v9 = vsel %vm4453_vm2, 0, %v572_v8  ;;  %v575_v10 = vld [vmem:[#allocation2 + $0x30] sm:$0x1]  ;;  %s5602_s24 = smov (!%p4480_p9, %s5598_s24), 15 }
  0x13   : > { %571 = vst [vmem:[#allocation2 + $0x18] sm:$0x1] %v570_v6  ;;  %s4478_s25 = sshll.u32 %s491_s23, 3  ;;  %v556_v11 = vld [vmem:[%s5566_s4] sm:$0x1]  ;;  %v576_v12 = vsel %vm4453_vm2, 0, %v575_v10 }
  0x14   : > { %574 = vst [vmem:[#allocation2 + $0x24] sm:$0x1] %v573_v9  ;;  %s4493_s18 = scalar_lea.vmem %s5562_s0, %s4478_s25  ;;  %v578_v13 = vld [vmem:[#allocation2 + $0x3c] sm:$0x1]  ;;  %v581_v14 = vld [vmem:[#allocation2 + $0x48] sm:$0x1] }
  0x15   : > { %577 = vst [vmem:[#allocation2 + $0x30] sm:$0x1] %v576_v12  ;;  %s498_s23 = scalar_select %p497_p7, %s4447_s17, 0  ;;  %v557_v15 = vld [vmem:[%s531_s22] sm:$0x1]  ;;  %v579_v16 = vsel %vm4453_vm2, 0, %v578_v13 }
  0x16   : > { %v582_v17 = vsel %vm4453_vm2, 0, %v581_v14  ;;  %v558_v18 = vmul.f32 %v557_v15, %v4472_v7  ;;  %580 = vst [vmem:[#allocation2 + $0x3c] sm:$0x1] %v579_v16  ;;  %v584_v19 = vld [vmem:[#allocation2 + $0x54] sm:$0x1]  ;;  %s4523_s17 = scalar_lea.vmem %s5570_s8, %s4478_s25  ;;  %s3726_s29 = sshll.u32 %s5602_s24, 1 }
  0x17   : > { %s5600_s23 = smov (!%p3714_p8, %s498_s23), 15  ;;  %583 = vst [vmem:[#allocation2 + $0x48] sm:$0x1] %v582_v17  ;;  %v585_v20 = vsel %vm4453_vm2, 0, %v584_v19  ;;  %v587_v21 = vld [vmem:[#allocation2 + $0x60] sm:$0x1]  ;;  %s522_s20 = sadd.s32 %s3726_s29, %s4463_s19 }
  0x18   : > { %v4515_v22 = vadd.f32 %v558_v18, %v556_v11  ;;  %586 = vst [vmem:[#allocation2 + $0x54] sm:$0x1] %v585_v20  ;;  %v588_v23 = vsel %vm4453_vm2, 0, %v587_v21  ;;  %v590_v24 = vld [vmem:[#allocation2 + $0x6c] sm:$0x1]  ;;  %s3719_s10 = sshll.u32 %s5600_s23, 1  ;;  %s4555_s29 = scalar_lea.vmem %s5571_s9, %s4478_s25 }
  0x19   : > { %589 = vst [vmem:[#allocation2 + $0x60] sm:$0x1] %v588_v23  ;;  %v591_v25 = vsel %vm4453_vm2, 0, %v590_v24  ;;  %vm593_vm3 = vsmask.f32 7938  ;;  %s505_s26 = sadd.s32 %s3719_s10, %s4463_s19  ;;  %s3728_s24 = sshll.u32 %s522_s20, 3 }
  0x1a   : > { %592 = vst [vmem:[#allocation2 + $0x6c] sm:$0x1] %v591_v25  ;;  %vm4530_vm4 = vmand %vm560_vm0, %vm593_vm3  ;;  %v595_v27 = vld [vmem:[#allocation2 + $0x8] sm:$0x1]  ;;  %s3721_s16 = sshll.u32 %s505_s26, 3  ;;  %s4549_s27 = scalar_lea.vmem %s5564_s2, %s3728_s24 }
  0x1b   : > { %v596_v28 = vsel %vm4530_vm4, 0, %v595_v27  ;;  %v598_v29 = vld [vmem:[#allocation2 + $0x14] sm:$0x1]  ;;  %v601_v30 = vld [vmem:[#allocation2 + $0x20] sm:$0x1]  ;;  %s4540_s23 = scalar_lea.vmem %s5563_s1, %s3721_s16 }
  0x1c   : > { %597 = vst [vmem:[#allocation2 + $0x8] sm:$0x1] %v596_v28  ;;  %v599_v31 = vsel %vm4530_vm4, 0, %v598_v29  ;;  %v602_v32 = vsel %vm4530_vm4, 0, %v601_v30  ;;  %v604_v33 = vld [vmem:[#allocation2 + $0x2c] sm:$0x1] }
  0x1d   : > { %600 = vst [vmem:[#allocation2 + $0x14] sm:$0x1] %v599_v31  ;;  %v607_v34 = vld [vmem:[#allocation2 + $0x38] sm:$0x1]  ;;  %v605_v35 = vsel %vm4530_vm4, 0, %v604_v33 }
  0x1e   : > { %603 = vst [vmem:[#allocation2 + $0x20] sm:$0x1] %v602_v32  ;;  %v608_v36 = vsel %vm4530_vm4, 0, %v607_v34  ;;  %v610_v37 = vld [vmem:[#allocation2 + $0x44] sm:$0x1] }
  0x1f   : > { %606 = vst [vmem:[#allocation2 + $0x2c] sm:$0x1] %v605_v35  ;;  %v611_v38 = vsel %vm4530_vm4, 0, %v610_v37  ;;  %v613_v39 = vld [vmem:[#allocation2 + $0x50] sm:$0x1] }
  0x20   : > { %609 = vst [vmem:[#allocation2 + $0x38] sm:$0x1] %v608_v36  ;;  %v614_v40 = vsel %vm4530_vm4, 0, %v613_v39  ;;  %v616_v41 = vld [vmem:[#allocation2 + $0x5c] sm:$0x1] }
  0x21   : > { %612 = vst [vmem:[#allocation2 + $0x44] sm:$0x1] %v611_v38  ;;  %v617_v42 = vsel %vm4530_vm4, 0, %v616_v41  ;;  %v619_v43 = vld [vmem:[#allocation2 + $0x68] sm:$0x1]  ;;  %628 = sbr.rel (%p3737_p10) target bundleno = 42 (0x2a), region = 60 }
  0x22   : > { %615 = vst [vmem:[#allocation2 + $0x50] sm:$0x1] %v614_v40  ;;  %v620_v44 = vsel %vm4530_vm4, 0, %v619_v43  ;;  %v622_v45 = vld [vmem:[#allocation2 + $0x74] sm:$0x1] }
  0x23   : > { %618 = vst [vmem:[#allocation2 + $0x5c] sm:$0x1] %v617_v42  ;;  %v623_v46 = vsel %vm4530_vm4, 0, %v622_v45 }
  0x24   : > { %621 = vst [vmem:[#allocation2 + $0x68] sm:$0x1] %v620_v44 }
  0x25   : > { %624 = vst [vmem:[#allocation2 + $0x74] sm:$0x1] %v623_v46 }
  0x26   : > { %v4358_v47 = vmov 0  }
  0x27   : > { %629 = vst [vmem:[#allocation2] sm:$0xf] %v4358_v47 }
  0x28   : > { %630 = vst [vmem:[#allocation2 + $0x4] sm:$0xf] %v4358_v47 }
  0x29   : > { %631 = vst [vmem:[#allocation2 + $0x8] sm:$0xf] %v4358_v47 }
  0x2a PF: > { %p3738_p11 = scmp.ne.s32.totalorder %s4340_s30, 1 }
  0x2c   : > { %635 = sbr.rel (%p3738_p11) target bundleno = 53 (0x35), region = 64 }
  0x31   : > { %v4359_v48 = vmov 0  }
  0x32   : > { %637 = vst [vmem:[#allocation2 + $0x6c] sm:$0xf] %v4359_v48 }
  0x33   : > { %638 = vst [vmem:[#allocation2 + $0x70] sm:$0xf] %v4359_v48 }
  0x34   : > { %639 = vst [vmem:[#allocation2 + $0x74] sm:$0xf] %v4359_v48 }
  0x35 PF: > { %p3739_p12 = scmp.le.s32.totalorder %s4340_s30, 0 }
  0x37   : > { %643 = sbr.rel (%p3739_p12) target bundleno = 80 (0x50), region = 68 }
  0x3c   : > { %v644_v49 = vld [vmem:[%s4540_s23] sm:$0xff]  ;;  %v647_v50 = vperm.slane %v4472_v7, 0  ;;  %v652_v51 = vperm.slane %v4515_v22, 0  ;;  %v645_v52 = vld [vmem:[%s4540_s23 + $0x8] sm:$0xff]  ;;  %vm682_vm5 = vcmask 1043456  }
  0x3d   : > { %vm660_vm6 = vsmask.f32 4368  ;;  %vm683_vm7 = vmand %vm682_vm5, %vm593_vm3  ;;  %v684_v4 = vld [vmem:[#allocation2] sm:$0xf]  ;;  %v688_v5 = vld [vmem:[#allocation2 + $0x8] sm:$0x1] }
  0x3e   : > { %v649_v53 = vmul.f32 %v647_v50, %v644_v49  ;;  %v650_v54 = vmul.f32 %v647_v50, %v645_v52  ;;  %vm661_vm8 = vmor %vm561_vm1, %vm660_vm6 }
  0x40   : > { %v654_v55 = vadd.f32 %v652_v51, %v649_v53  ;;  %v655_v56 = vadd.f32 %v652_v51, %v650_v54 }
  0x42   : > { %v656_v57 = vmax.f32 %v654_v55, 0.0  ;;  %v657_v58 = vmax.f32 %v655_v56, 0.0 }
  0x44   : > { %v658_v59 = vpack.c.bf16 %v656_v57, %v656_v57  ;;  %v659_v60 = vpack.c.bf16 %v657_v58, %v657_v58 }
  0x46   : > { %v663_v61 = vshrl.u32 %v658_v59, 16  ;;  %v666_v62 = vshll.u32 %v658_v59, 16  ;;  %v671_v63 = vshrl.u32 %v659_v60, 16  ;;  %v674_v1 = vshll.u32 %v659_v60, 16 }
  0x48   : > { %v665_v2 = vrot.slane %v663_v61, 7  ;;  %v673_v3 = vrot.slane %v671_v63, 7 }
  0x4a   : > { %v668_v6 = vor.u32 %v666_v62, %v665_v2  ;;  %v669_v8 = vrot.slane %v665_v2, 4  ;;  %v676_v9 = vor.u32 %v674_v1, %v673_v3  ;;  %v678_v10 = vrot.slane %v673_v3, 4 }
  0x4c   : > { %v685_v11 = vsel %vm683_vm7, %v668_v6, %v684_v4  ;;  %v677_v12 = vsel %vm661_vm8, %v669_v8, %v676_v9  ;;  %v689_v13 = vsel %vm4453_vm2, %v678_v10, %v688_v5 }
  0x4d   : > { %686 = vst [vmem:[#allocation2] sm:$0xf] %v685_v11 }
  0x4e   : > { %687 = vst [vmem:[#allocation2 + $0x4] sm:$0xf] %v677_v12 }
  0x4f   : > { %690 = vst [vmem:[#allocation2 + $0x8] sm:$0x1] %v689_v13 }
  0x50 PF: > { %p3740_p13 = scmp.ge.s32.totalorder %s4340_s30, 1 }
  0x52   : > { %694 = sbr.rel (%p3740_p13) target bundleno = 107 (0x6b), region = 72 }
  0x57   : > { %v695_v14 = vld [vmem:[%s4549_s27] sm:$0xff]  ;;  %v698_v15 = vperm.slane %v4472_v7, 0  ;;  %v703_v16 = vperm.slane %v4515_v22, 0  ;;  %v696_v17 = vld [vmem:[%s4549_s27 + $0x8] sm:$0xff]  ;;  %vm734_vm9 = vcmask 1043456  }
  0x58   : > { %vm711_vm10 = vsmask.f32 4368  ;;  %vm735_vm11 = vmand %vm734_vm9, %vm593_vm3  ;;  %v736_v33 = vld [vmem:[#allocation2 + $0x6c] sm:$0xf]  ;;  %v740_v34 = vld [vmem:[#allocation2 + $0x74] sm:$0x1] }
  0x59   : > { %v700_v18 = vmul.f32 %v698_v15, %v695_v14  ;;  %v701_v19 = vmul.f32 %v698_v15, %v696_v17  ;;  %vm712_vm12 = vmor %vm561_vm1, %vm711_vm10 }
  0x5b   : > { %v705_v20 = vadd.f32 %v703_v16, %v700_v18  ;;  %v706_v21 = vadd.f32 %v703_v16, %v701_v19 }
  0x5d   : > { %v707_v23 = vmax.f32 %v705_v20, 0.0  ;;  %v708_v24 = vmax.f32 %v706_v21, 0.0 }
  0x5f   : > { %v709_v25 = vpack.c.bf16 %v707_v23, %v707_v23  ;;  %v710_v26 = vpack.c.bf16 %v708_v24, %v708_v24 }
  0x61   : > { %v714_v27 = vshrl.u32 %v709_v25, 16  ;;  %v717_v28 = vshll.u32 %v709_v25, 16  ;;  %v722_v29 = vshrl.u32 %v710_v26, 16  ;;  %v725_v30 = vshll.u32 %v710_v26, 16 }
  0x63   : > { %v716_v31 = vrot.slane %v714_v27, 7  ;;  %v724_v32 = vrot.slane %v722_v29, 7 }
  0x65   : > { %v719_v35 = vor.u32 %v717_v28, %v716_v31  ;;  %v720_v36 = vrot.slane %v716_v31, 4  ;;  %v727_v37 = vor.u32 %v725_v30, %v724_v32  ;;  %v729_v38 = vrot.slane %v724_v32, 4 }
  0x67   : > { %v737_v39 = vsel %vm735_vm11, %v719_v35, %v736_v33  ;;  %v728_v40 = vsel %vm712_vm12, %v720_v36, %v727_v37  ;;  %v741_v41 = vsel %vm4453_vm2, %v729_v38, %v740_v34 }
  0x68   : > { %738 = vst [vmem:[#allocation2 + $0x6c] sm:$0xf] %v737_v39 }
  0x69   : > { %739 = vst [vmem:[#allocation2 + $0x70] sm:$0xf] %v728_v40 }
  0x6a   : > { %742 = vst [vmem:[#allocation2 + $0x74] sm:$0x1] %v741_v41 }
  0x6b PF: > { %v4176_v42 = vld [vmem:[%s5567_s5 + $0x78] sm:$0xff]  ;;  %v4595_v43 = vperm.slane %v4472_v7, 0  ;;  %v4598_v44 = vperm.slane %v4515_v22, 0  ;;  %v4175_v45 = vld [vmem:[%s5567_s5 + $0x70] sm:$0xff]  ;;  %v4174_v52 = vld [vmem:[%s5567_s5 + $0x68] sm:$0xff]  ;;  %vm992_vm13 = vcmask 1043456  }
  0x6c   : > { %4249 = vmatpush.bf16.msra.mxu1 %v4176_v42  ;;  %4250 = vmatpush.bf16.msra.mxu2 %v4176_v42  ;;  %v745_v46 = vld [vmem:[%s4493_s18 + $0x10] sm:$0xff]  ;;  %v746_v47 = vld [vmem:[%s4493_s18 + $0x18] sm:$0xff]  ;;  %v747_v61 = vld [vmem:[%s4493_s18 + $0x20] sm:$0xff]  ;;  %vm829_vm14 = vsmask.f32 4368  ;;  %vm1600_vm6 = vcmask 1046532  }
  0x6d   : > { %4251 = vmatpush.bf16.msra.mxu3 %v4176_v42  ;;  %1381 = vmatpush.bf16.msra.mxu0 %v4176_v42  ;;  %v764_v48 = vmul.f32 %v4595_v43, %v745_v46  ;;  %v765_v7 = vmul.f32 %v4595_v43, %v746_v47  ;;  %v749_v49 = vld [vmem:[%s4493_s18 + $0x30] sm:$0xff]  ;;  %v750_v50 = vld [vmem:[%s4493_s18 + $0x38] sm:$0xff]  ;;  %v4623_v1 = vld [vmem:[#allocation2] sm:$0xf]  ;;  %v4626_v2 = vmul.f32 %v4595_v43, %v747_v61  ;;  %vm1090_vm0 = vsmask.f32 3328 }
  0x6e   : > { %v768_v51 = vmul.f32 %v4595_v43, %v749_v49  ;;  %v769_v54 = vmul.f32 %v4595_v43, %v750_v50  ;;  %v753_v55 = vld [vmem:[%s4493_s18 + $0x50] sm:$0xff]  ;;  %v754_v56 = vld [vmem:[%s4493_s18 + $0x58] sm:$0xff]  ;;  %v4173_v8 = vld [vmem:[%s5567_s5 + $0x60] sm:$0xff]  ;;  %v1094_v11 = vshrl.u32 %v4623_v1, 16  ;;  %v1097_v12 = vshll.u32 %v4623_v1, 16 }
  0x6f   : > { %v783_v22 = vadd.f32 %v4598_v44, %v764_v48  ;;  %v784_v53 = vadd.f32 %v4598_v44, %v765_v7  ;;  %v772_v59 = vmul.f32 %v4595_v43, %v753_v55  ;;  %v773_v60 = vmul.f32 %v4595_v43, %v754_v56  ;;  %v4172_v26 = vld [vmem:[%s5567_s5 + $0x58] sm:$0xff]  ;;  %vm4640_vm15 = vmand %vm992_vm13, %vm593_vm3  ;;  %v1005_v36 = vld [vmem:[#allocation2 + $0x20] sm:$0x1] }
  0x70   : > { %4252 = vmatpush.bf16.msra.mxu1 %v4175_v45  ;;  %4253 = vmatpush.bf16.msra.mxu2 %v4175_v45  ;;  %v787_v58 = vadd.f32 %v4598_v44, %v768_v51  ;;  %v788_v63 = vadd.f32 %v4598_v44, %v769_v54  ;;  %v1001_v29 = vld [vmem:[#allocation2 + $0x18] sm:$0xf]  ;;  %vm1091_vm4 = vsmask.f32 7440  ;;  %vm4648_vm5 = vmor %vm561_vm1, %vm829_vm14  ;;  %v1015_v42 = vld [vmem:[#allocation2 + $0x30] sm:$0xf] }
  0x71   : > { %4254 = vmatpush.bf16.msra.mxu3 %v4175_v45  ;;  %1382 = vmatpush.bf16.msra.mxu0 %v4175_v45  ;;  %v799_v57 = vmax.f32 %v783_v22, 0.0  ;;  %v800_v62 = vmax.f32 %v784_v53, 0.0  ;;  %v791_v5 = vadd.f32 %v4598_v44, %v772_v59  ;;  %v792_v6 = vadd.f32 %v4598_v44, %v773_v60  ;;  %v1019_v7 = vld [vmem:[#allocation2 + $0x38] sm:$0x1]  ;;  %v1029_v22 = vld [vmem:[#allocation2 + $0x48] sm:$0xf]  ;;  %vm4705_vm1 = vmor %vm1090_vm0, %vm1091_vm4 }
  0x72   : > { %v803_v4 = vmax.f32 %v787_v58, 0.0  ;;  %v804_v10 = vmax.f32 %v788_v63, 0.0  ;;  %v4171_v50 = vld [vmem:[%s5567_s5 + $0x50] sm:$0xff]  ;;  %v4663_v54 = vld [vmem:[#allocation2 + $0x4] sm:$0xf]  ;;  %v748_v55 = vld [vmem:[%s4493_s18 + $0x28] sm:$0xff] }
  0x73   : > { %v815_v3 = vpack.c.bf16 %v799_v57, %v799_v57  ;;  %v816_v9 = vpack.c.bf16 %v800_v62, %v800_v62  ;;  %v807_v16 = vmax.f32 %v791_v5, 0.0  ;;  %v808_v20 = vmax.f32 %v792_v6, 0.0  ;;  %v4670_v60 = vld [vmem:[#allocation2 + $0x8] sm:$0x1] }
  0x74   : > { %4255 = vmatpush.bf16.msra.mxu1 %v4174_v52  ;;  %4256 = vmatpush.bf16.msra.mxu2 %v4174_v52  ;;  %v819_v15 = vpack.c.bf16 %v803_v4, %v803_v4  ;;  %v820_v19 = vpack.c.bf16 %v804_v10, %v804_v10  ;;  %v4170_v4 = vld [vmem:[%s5567_s5 + $0x48] sm:$0xff]  ;;  %vm1599_vm3 = vcmask 1042432  }
  0x75   : > { %4257 = vmatpush.bf16.msra.mxu3 %v4174_v52  ;;  %1383 = vmatpush.bf16.msra.mxu0 %v4174_v52  ;;  %v849_v13 = vshrl.u32 %v815_v3, 16  ;;  %v852_v14 = vshll.u32 %v815_v3, 16  ;;  %v857_v17 = vshrl.u32 %v816_v9, 16  ;;  %v860_v18 = vshll.u32 %v816_v9, 16  ;;  %vm4946_vm7 = vmor %vm1599_vm3, %vm1600_vm6  ;;  %v4234_v33 = vld [vmem:[%s5567_s5 + $0x1c8] sm:$0xff] }
  0x76   : > { %v883_v23 = vshrl.u32 %v819_v15, 16  ;;  %v886_v24 = vshll.u32 %v819_v15, 16  ;;  %v823_v25 = vpack.c.bf16 %v807_v16, %v807_v16  ;;  %v891_v30 = vshrl.u32 %v820_v19, 16  ;;  %v751_v15 = vld [vmem:[%s4493_s18 + $0x40] sm:$0xff]  ;;  %v1033_v16 = vld [vmem:[#allocation2 + $0x50] sm:$0x1] }
  0x77   : > { %v851_v21 = vrot.slane %v849_v13, 7  ;;  %v859_v27 = vrot.slane %v857_v17, 7  ;;  %v894_v31 = vshll.u32 %v820_v19, 16  ;;  %v4644_v32 = vpack.c.bf16 %v808_v20, %v808_v20  ;;  %v4242_v0 = vld [vmem:[%s5567_s5 + $0x208] sm:$0xff] }
  0x78   : > { %4258 = vmatpush.bf16.msra.mxu1 %v4173_v8  ;;  %4259 = vmatpush.bf16.msra.mxu2 %v4173_v8  ;;  %v885_v37 = vrot.slane %v883_v23, 7  ;;  %v917_v38 = vshrl.u32 %v823_v25, 16  ;;  %v893_v41 = vrot.slane %v891_v30, 7  ;;  %v920_v45 = vshll.u32 %v823_v25, 16  ;;  %v4169_v23 = vld [vmem:[%s5567_s5 + $0x40] sm:$0xff] }
  0x79   : > { %4260 = vmatpush.bf16.msra.mxu3 %v4173_v8  ;;  %1384 = vmatpush.bf16.msra.mxu0 %v4173_v8  ;;  %v854_v34 = vor.u32 %v852_v14, %v851_v21  ;;  %v855_v35 = vrot.slane %v851_v21, 4  ;;  %v862_v39 = vor.u32 %v860_v18, %v859_v27  ;;  %v864_v40 = vrot.slane %v859_v27, 4 }
  0x7a   : > { %v888_v47 = vor.u32 %v886_v24, %v885_v37  ;;  %v889_v48 = vrot.slane %v885_v37, 4  ;;  %v4654_v49 = vrot.slane %v917_v38, 7  ;;  %v896_v53 = vor.u32 %v894_v31, %v893_v41  ;;  %v4168_v37 = vld [vmem:[%s5567_s5 + $0x38] sm:$0xff] }
  0x7b   : > { %v1002_v46 = vsel %vm4640_vm15, %v854_v34, %v1001_v29  ;;  %v863_v51 = vsel %vm4648_vm5, %v855_v35, %v862_v39  ;;  %v1006_v52 = vsel %vm4453_vm2, %v864_v40, %v1005_v36  ;;  %v898_v56 = vrot.slane %v893_v41, 4  ;;  %v4184_v36 = vld [vmem:[%s5567_s5 + $0xb8] sm:$0xff] }
  0x7c   : > { %4261 = vmatpush.bf16.msra.mxu1 %v4172_v26  ;;  %4262 = vmatpush.bf16.msra.mxu2 %v4172_v26  ;;  %1003 = vst [vmem:[#allocation2 + $0x18] sm:$0xf] %v1002_v46  ;;  %v1016_v57 = vsel %vm4640_vm15, %v888_v47, %v1015_v42  ;;  %v922_v58 = vor.u32 %v920_v45, %v4654_v49  ;;  %v923_v59 = vrot.slane %v4654_v49, 4  ;;  %v925_v62 = vshrl.u32 %v4644_v32, 16  ;;  %v4200_v41 = vld [vmem:[%s5567_s5 + $0xf8] sm:$0xff] }
  0x7d   : > { %4263 = vmatpush.bf16.msra.mxu3 %v4172_v26  ;;  %1385 = vmatpush.bf16.msra.mxu0 %v4172_v26  ;;  %1004 = vst [vmem:[#allocation2 + $0x1c] sm:$0xf] %v863_v51  ;;  %v897_v61 = vsel %vm4648_vm5, %v889_v48, %v896_v53  ;;  %v928_v63 = vshll.u32 %v4644_v32, 16  ;;  %v1096_v3 = vrot.slane %v1094_v11, 4  ;;  %v1020_v5 = vsel %vm4453_vm2, %v898_v56, %v1019_v7 }
  0x7e   : > { %1007 = vst [vmem:[#allocation2 + $0x20] sm:$0x1] %v1006_v52  ;;  %v1030_v6 = vsel %vm4640_vm15, %v922_v58, %v1029_v22  ;;  %v1099_v8 = vrot.slane %v1097_v12, 5  ;;  %v1103_v9 = vshll.u32 %v4663_v54, 16  ;;  %v927_v10 = vrot.slane %v925_v62, 7  ;;  %v4208_v22 = vld [vmem:[%s5567_s5 + $0x138] sm:$0xff] }
  0x7f   : > { %1017 = vst [vmem:[#allocation2 + $0x30] sm:$0xf] %v1016_v57  ;;  %v1107_v11 = vshrl.u32 %v4663_v54, 16  ;;  %v1113_v13 = vshll.u32 %v4670_v60, 16  ;;  %v767_v14 = vmul.f32 %v4595_v43, %v748_v55  ;;  %v4696_v12 = vadd.f32 %v4598_v44, %v4626_v2  ;;  %v4183_v62 = vld [vmem:[%s5567_s5 + $0xb0] sm:$0xff] }
  0x80   : > { %4264 = vmatpush.bf16.msra.mxu1 %v4171_v50  ;;  %4265 = vmatpush.bf16.msra.mxu2 %v4171_v50  ;;  %1018 = vst [vmem:[#allocation2 + $0x34] sm:$0xf] %v897_v61  ;;  %v1100_v17 = vor.u32 %v1099_v8, %v1096_v3  ;;  %v4692_v1 = vrot.slane %v1103_v9, 5  ;;  %v930_v18 = vor.u32 %v928_v63, %v927_v10  ;;  %v932_v19 = vrot.slane %v927_v10, 4 }
  0x81   : > { %4266 = vmatpush.bf16.msra.mxu3 %v4171_v50  ;;  %1386 = vmatpush.bf16.msra.mxu0 %v4171_v50  ;;  %1021 = vst [vmem:[#allocation2 + $0x38] sm:$0x1] %v1020_v5  ;;  %v1109_v20 = vrot.slane %v1107_v11, 4  ;;  %v4698_v21 = vrot.slane %v1113_v13, 5  ;;  %v4710_v2 = vadd.f32 %v4598_v44, %v767_v14  ;;  %v801_v27 = vmax.f32 %v4696_v12, 0.0 }
  0x82   : > { %1031 = vst [vmem:[#allocation2 + $0x48] sm:$0xf] %v1030_v6  ;;  %v1101_v26 = vrot.slane %v1100_v17, 4  ;;  %v4714_v29 = vmul.f32 %v4595_v43, %v751_v15  ;;  %v931_v34 = vsel %vm4648_vm5, %v923_v59, %v930_v18  ;;  %v1034_v35 = vsel %vm4453_vm2, %v932_v19, %v1033_v16  ;;  %v4167_v6 = vld [vmem:[%s5567_s5 + $0x30] sm:$0xff] }
  0x83   : > { %v1054_v24 = vld [vmem:[#allocation2 + $0x18] sm:$0xf]  ;;  %1032 = vst [vmem:[#allocation2 + $0x4c] sm:$0xf] %v931_v34  ;;  %v1110_v45 = vor.u32 %v1109_v20, %v4692_v1  ;;  %v4207_v18 = vld [vmem:[%s5567_s5 + $0x130] sm:$0xff] }
  0x84   : > { %4267 = vmatpush.bf16.msra.mxu1 %v4170_v4  ;;  %4268 = vmatpush.bf16.msra.mxu2 %v4170_v4  ;;  %v4716_v30 = vld [vmem:[#allocation2 + $0x1c] sm:$0xf]  ;;  %v1142_v31 = vshrl.u32 %v1054_v24, 16  ;;  %v1145_v32 = vshll.u32 %v1054_v24, 16  ;;  %v1106_v42 = vsel %vm4705_vm1, %v1101_v26, %v4692_v1  ;;  %1035 = vst [vmem:[#allocation2 + $0x50] sm:$0x1] %v1034_v35 }
  0x85   : > { %4269 = vmatpush.bf16.msra.mxu3 %v4170_v4  ;;  %1387 = vmatpush.bf16.msra.mxu0 %v4170_v4  ;;  %v4728_v38 = vld [vmem:[#allocation2 + $0x20] sm:$0x1]  ;;  %v1151_v39 = vshll.u32 %v4716_v30, 16  ;;  %v1155_v40 = vshrl.u32 %v4716_v30, 16  ;;  %v4740_v49 = vunpack.c.l.b16 %v1106_v42  ;;  %v1111_v13 = vrot.slane %v1110_v45, 4  ;;  %v4199_v1 = vld [vmem:[%s5567_s5 + $0xf0] sm:$0xff] }
  0x86   : > { %v1144_v46 = vrot.slane %v1142_v31, 4  ;;  %v1147_v47 = vrot.slane %v1145_v32, 5  ;;  %v1161_v48 = vshll.u32 %v4728_v38, 16  ;;  %v1058_v7 = vld [vmem:[#allocation2 + $0x30] sm:$0xf] }
  0x87   : > { %v1153_v50 = vrot.slane %v1151_v39, 5  ;;  %v1157_v51 = vrot.slane %v1155_v40, 4  ;;  %v4745_v52 = vld [vmem:[#allocation2 + $0x34] sm:$0xf]  ;;  %v1190_v53 = vshrl.u32 %v1058_v7, 16  ;;  %v1193_v55 = vshll.u32 %v1058_v7, 16 }
  0x88   : > { %4270 = vmatpush.bf16.msra.mxu1 %v4169_v23  ;;  %4271 = vmatpush.bf16.msra.mxu2 %v4169_v23  ;;  %v1148_v56 = vor.u32 %v1147_v47, %v1144_v46  ;;  %v1163_v57 = vrot.slane %v1161_v48, 5  ;;  %v4747_v58 = vld [vmem:[#allocation2 + $0x38] sm:$0x1]  ;;  %v1199_v59 = vshll.u32 %v4745_v52, 16  ;;  %v1203_v61 = vshrl.u32 %v4745_v52, 16  ;;  %v4166_v46 = vld [vmem:[%s5567_s5 + $0x28] sm:$0xff] }
  0x89   : > { %4272 = vmatpush.bf16.msra.mxu3 %v4169_v23  ;;  %1388 = vmatpush.bf16.msra.mxu0 %v4169_v23  ;;  %v1158_v63 = vor.u32 %v1157_v51, %v1153_v50  ;;  %v1192_v3 = vrot.slane %v1190_v53, 4  ;;  %v1195_v4 = vrot.slane %v1193_v55, 5  ;;  %v1209_v5 = vshll.u32 %v4747_v58, 16  ;;  %v1062_v11 = vld [vmem:[#allocation2 + $0x48] sm:$0xf] }
  0x8a   : > { %v1149_v8 = vrot.slane %v1148_v56, 4  ;;  %v1201_v9 = vrot.slane %v1199_v59, 5  ;;  %v1205_v10 = vrot.slane %v1203_v61, 4  ;;  %v1238_v17 = vshrl.u32 %v1062_v11, 16  ;;  %v1063_v23 = vld [vmem:[#allocation2 + $0x4c] sm:$0xf] }
  0x8b   : > { %v1159_v14 = vrot.slane %v1158_v63, 4  ;;  %v1196_v15 = vor.u32 %v1195_v4, %v1192_v3  ;;  %v1211_v16 = vrot.slane %v1209_v5, 5  ;;  %v1241_v24 = vshll.u32 %v1062_v11, 16  ;;  %v4198_v47 = vld [vmem:[%s5567_s5 + $0xe8] sm:$0xff]  ;;  %v1088_v51 = vld [vmem:[#allocation2 + $0x50] sm:$0x1] }
  0x8c   : > { %1754 = vmatpush.bf16.msrb.mxu2 %v4184_v36  ;;  %1526 = vmatpush.bf16.msrb.mxu1 %v4168_v37  ;;  %v1154_v19 = vsel %vm4705_vm1, %v1149_v8, %v1153_v50  ;;  %v1206_v20 = vor.u32 %v1205_v10, %v1201_v9  ;;  %v1116_v26 = vsel %vm4705_vm1, %v1111_v13, %v4698_v21  ;;  %v1240_v35 = vrot.slane %v1238_v17, 4  ;;  %v752_v55 = vld [vmem:[%s4493_s18 + $0x48] sm:$0xff]  ;;  %v4181_v3 = vld [vmem:[%s5567_s5 + $0xa0] sm:$0xff] }
  0x8d   : > { %1947 = vmatpush.bf16.msrb.mxu3 %v4200_v41  ;;  %2324 = vmatpush.bf16.msrb.mxu0 %v4208_v22  ;;  %v1164_v31 = vsel %vm4705_vm1, %v1159_v14, %v1163_v57  ;;  %v1305_v32 = vunpack.c.l.b16 %v1154_v19  ;;  %v1197_v34 = vrot.slane %v1196_v15, 4  ;;  %v1243_v39 = vrot.slane %v1241_v24, 5  ;;  %v4182_v41 = vld [vmem:[%s5567_s5 + $0xa8] sm:$0xff]  ;;  %v4197_v10 = vld [vmem:[%s5567_s5 + $0xe0] sm:$0xff] }
  0x8e   : > { %v1306_v36 = vunpack.c.l.b16 %v1164_v31  ;;  %v1207_v37 = vrot.slane %v1206_v20, 4  ;;  %v1247_v40 = vshll.u32 %v1063_v23, 16  ;;  %v1251_v42 = vshrl.u32 %v1063_v23, 16  ;;  %v755_v11 = vld [vmem:[%s4493_s18 + $0x60] sm:$0xff] }
  0x8f   : > { %v1202_v21 = vsel %vm4705_vm1, %v1197_v34, %v1201_v9  ;;  %v1302_v45 = vunpack.c.l.b16 %v1116_v26  ;;  %v802_v48 = vmax.f32 %v4710_v2, 0.0  ;;  %v1244_v53 = vor.u32 %v1243_v39, %v1240_v35  ;;  %v743_v17 = vld [vmem:[%s4493_s18] sm:$0xff] }
  0x90   : > { %1755 = vmatpush.bf16.msrb.mxu2 %v4183_v62  ;;  %1527 = vmatpush.bf16.msrb.mxu1 %v4167_v6  ;;  %v1319_v7 = vpack.c.b16 %v1306_v36, %v1305_v32  ;;  %v1212_v22 = vsel %vm4705_vm1, %v1207_v37, %v1211_v16  ;;  %v1309_v50 = vunpack.c.l.b16 %v1202_v21  ;;  %v1249_v57 = vrot.slane %v1247_v40, 5  ;;  %v4206_v62 = vld [vmem:[%s5567_s5 + $0x128] sm:$0xff]  ;;  %v4205_v19 = vld [vmem:[%s5567_s5 + $0x120] sm:$0xff] }
  0x91   : > { %1948 = vmatpush.bf16.msrb.mxu3 %v4199_v1  ;;  %2325 = vmatpush.bf16.msrb.mxu0 %v4207_v18  ;;  %v1310_v56 = vunpack.c.l.b16 %v1212_v22  ;;  %v1253_v59 = vrot.slane %v1251_v42, 4  ;;  %v1257_v61 = vshll.u32 %v1088_v51, 16  ;;  %v1245_v63 = vrot.slane %v1244_v53, 4  ;;  %v756_v16 = vld [vmem:[%s4493_s18 + $0x68] sm:$0xff]  ;;  %v1008_v35 = vld [vmem:[#allocation2 + $0x24] sm:$0xf] }
  0x92   : > { %1399 = vmatmul.bf16.vlgmr.msra.gmra.mxu1 %v1319_v7  ;;  %v1317_v2 = vpack.c.b16 %v1302_v45, %v4740_v49  ;;  %v817_v4 = vpack.c.bf16 %v801_v27, %v801_v27  ;;  %v818_v5 = vpack.c.bf16 %v802_v48, %v802_v48  ;;  %v4165_v49 = vld [vmem:[%s5567_s5 + $0x20] sm:$0xff]  ;;  %v771_v12 = vmul.f32 %v4595_v43, %v752_v55  ;;  %v1012_v42 = vld [vmem:[#allocation2 + $0x2c] sm:$0x1] }
  0x93   : > { %v1321_v6 = vpack.c.b16 %v1310_v56, %v1309_v50  ;;  %v1254_v8 = vor.u32 %v1253_v59, %v1249_v57  ;;  %v1259_v9 = vrot.slane %v1257_v61, 5  ;;  %v1250_v27 = vsel %vm4705_vm1, %v1245_v63, %v1249_v57  ;;  %v744_v7 = vld [vmem:[%s4493_s18 + $0x8] sm:$0xff] }
  0x94   : > { %1756 = vmatpush.bf16.msrb.mxu2 %v4182_v41  ;;  %1528 = vmatpush.bf16.msrb.mxu1 %v4166_v46  ;;  %v866_v13 = vshrl.u32 %v817_v4, 16  ;;  %v869_v14 = vshll.u32 %v817_v4, 16  ;;  %v874_v15 = vshrl.u32 %v818_v5, 16  ;;  %v1313_v18 = vunpack.c.l.b16 %v1250_v27 }
  0x95   : > { %1949 = vmatpush.bf16.msrb.mxu3 %v4198_v47  ;;  %1389 = vmatmul.bf16.vlgmr.msra.gmra.mxu0 %v1317_v2  ;;  %v1255_v1 = vrot.slane %v1254_v8, 4  ;;  %v877_v20 = vshll.u32 %v818_v5, 16  ;;  %v789_v23 = vadd.f32 %v4598_v44, %v4714_v29  ;;  %v790_v31 = vadd.f32 %v4598_v44, %v771_v12  ;;  %v1022_v8 = vld [vmem:[#allocation2 + $0x3c] sm:$0xf] }
  0x96   : > { %1409 = vmatmul.bf16.vlgmr.msra.gmra.mxu2 %v1321_v6  ;;  %2326 = vmatpush.bf16.msrb.mxu0 %v4206_v62  ;;  %v868_v24 = vrot.slane %v866_v13, 7  ;;  %v876_v26 = vrot.slane %v874_v15, 7  ;;  %v774_v32 = vmul.f32 %v4595_v43, %v755_v11  ;;  %v775_v37 = vmul.f32 %v4595_v43, %v756_v16  ;;  %v4180_v6 = vld [vmem:[%s5567_s5 + $0x98] sm:$0xff]  ;;  %v1026_v16 = vld [vmem:[#allocation2 + $0x44] sm:$0x1] }
  0x97   : > { %v1260_v34 = vsel %vm4705_vm1, %v1255_v1, %v1259_v9  ;;  %v805_v36 = vmax.f32 %v789_v23, 0.0  ;;  %v762_v39 = vmul.f32 %v4595_v43, %v743_v17  ;;  %v806_v46 = vmax.f32 %v790_v31, 0.0  ;;  %v4196_v12 = vld [vmem:[%s5567_s5 + $0xd8] sm:$0xff] }
  0x98   : > { %1757 = vmatpush.bf16.msrb.mxu2 %v4181_v3  ;;  %1529 = vmatpush.bf16.msrb.mxu1 %v4165_v49  ;;  %v1314_v29 = vunpack.c.l.b16 %v1260_v34  ;;  %v871_v40 = vor.u32 %v869_v14, %v868_v24  ;;  %v872_v41 = vrot.slane %v868_v24, 4  ;;  %v879_v21 = vor.u32 %v877_v20, %v876_v26 }
  0x99   : > { %1950 = vmatpush.bf16.msrb.mxu3 %v4197_v10  ;;  %v881_v45 = vrot.slane %v876_v26, 4  ;;  %v821_v47 = vpack.c.bf16 %v805_v36, %v805_v36  ;;  %v793_v48 = vadd.f32 %v4598_v44, %v774_v32  ;;  %v794_v53 = vadd.f32 %v4598_v44, %v775_v37  ;;  %v4164_v10 = vld [vmem:[%s5567_s5 + $0x18] sm:$0xff]  ;;  %v1036_v26 = vld [vmem:[#allocation2 + $0x54] sm:$0xf] }
  0x9a   : > { %2327 = vmatpush.bf16.msrb.mxu0 %v4205_v19  ;;  %v1323_v22 = vpack.c.b16 %v1314_v29, %v1313_v18  ;;  %v880_v50 = vsel %vm4648_vm5, %v872_v41, %v879_v21  ;;  %v1009_v51 = vsel %vm4640_vm15, %v871_v40, %v1008_v35  ;;  %v822_v56 = vpack.c.bf16 %v806_v46, %v806_v46  ;;  %v1040_v21 = vld [vmem:[#allocation2 + $0x5c] sm:$0x1] }
  0x9b   : > { %1010 = vst [vmem:[#allocation2 + $0x24] sm:$0xf] %v1009_v51  ;;  %v1013_v55 = vsel %vm4453_vm2, %v881_v45, %v1012_v42  ;;  %v900_v57 = vshrl.u32 %v821_v47, 16  ;;  %v903_v59 = vshll.u32 %v821_v47, 16  ;;  %v809_v61 = vmax.f32 %v793_v48, 0.0 }
  0x9c   : > { %1419 = vmatmul.bf16.vlgmr.msra.gmra.mxu3 %v1323_v22  ;;  %1011 = vst [vmem:[#allocation2 + $0x28] sm:$0xf] %v880_v50  ;;  %v810_v62 = vmax.f32 %v794_v53, 0.0  ;;  %v763_v63 = vmul.f32 %v4595_v43, %v744_v7  ;;  %v781_v2 = vadd.f32 %v4598_v44, %v762_v39  ;;  %v908_v4 = vshrl.u32 %v822_v56, 16  ;;  %1758 = vmatpush.bf16.msrb.mxu2 %v4180_v6 }
  0x9d   : > { %1014 = vst [vmem:[#allocation2 + $0x2c] sm:$0x1] %v1013_v55  ;;  %v902_v3 = vrot.slane %v900_v57, 7  ;;  %v911_v5 = vshll.u32 %v822_v56, 16  ;;  %v825_v9 = vpack.c.bf16 %v809_v61, %v809_v61  ;;  %1530 = vmatpush.bf16.msrb.mxu1 %v4164_v10  ;;  %1951 = vmatpush.bf16.msrb.mxu3 %v4196_v12 }
  0x9e   : > { %v826_v49 = vpack.c.bf16 %v810_v62, %v810_v62  ;;  %v782_v11 = vadd.f32 %v4598_v44, %v763_v63  ;;  %v797_v27 = vmax.f32 %v781_v2, 0.0  ;;  %v910_v15 = vrot.slane %v908_v4, 7 }
  0x9f   : > { %v905_v13 = vor.u32 %v903_v59, %v902_v3  ;;  %v906_v14 = vrot.slane %v902_v3, 4  ;;  %v934_v17 = vshrl.u32 %v825_v9, 16  ;;  %v937_v1 = vshll.u32 %v825_v9, 16 }
  0xa0   : > { %v942_v18 = vshrl.u32 %v826_v49, 16  ;;  %v945_v19 = vshll.u32 %v826_v49, 16  ;;  %v913_v20 = vor.u32 %v911_v5, %v910_v15  ;;  %v915_v23 = vrot.slane %v910_v15, 4 }
  0xa1   : > { %v1023_v24 = vsel %vm4640_vm15, %v905_v13, %v1022_v8  ;;  %v798_v31 = vmax.f32 %v782_v11, 0.0  ;;  %v936_v34 = vrot.slane %v934_v17, 7  ;;  %v4842_v36 = vpack.c.bf16 %v797_v27, %v797_v27  ;;  %v4204_v27 = vld [vmem:[%s5567_s5 + $0x118] sm:$0xff]  ;;  %v4179_v13 = vld [vmem:[%s5567_s5 + $0x90] sm:$0xff] }
  0xa2   : > { %v1056_v32 = vld [vmem:[#allocation2 + $0x24] sm:$0xf]  ;;  %1024 = vst [vmem:[#allocation2 + $0x3c] sm:$0xf] %v1023_v24  ;;  %v944_v35 = vrot.slane %v942_v18, 7  ;;  %v914_v40 = vsel %vm4648_vm5, %v906_v14, %v913_v20  ;;  %v1027_v41 = vsel %vm4453_vm2, %v915_v23, %v1026_v16  ;;  %v4195_v18 = vld [vmem:[%s5567_s5 + $0xd0] sm:$0xff]  ;;  %2328 = vmatpush.bf16.msrb.mxu0 %v4204_v27  ;;  %1759 = vmatpush.bf16.msrb.mxu2 %v4179_v13 }
  0xa3   : > { %v4844_v37 = vld [vmem:[#allocation2 + $0x28] sm:$0xf]  ;;  %v1166_v39 = vshrl.u32 %v1056_v32, 16  ;;  %v1169_v29 = vshll.u32 %v1056_v32, 16  ;;  %1025 = vst [vmem:[#allocation2 + $0x40] sm:$0xf] %v914_v40  ;;  %v939_v47 = vor.u32 %v937_v1, %v936_v34  ;;  %v814_v63 = vpack.c.bf16 %v798_v31, %v798_v31  ;;  %1952 = vmatpush.bf16.msrb.mxu3 %v4195_v18 }
  0xa4   : > { %v4850_v42 = vld [vmem:[#allocation2 + $0x2c] sm:$0x1]  ;;  %v1175_v45 = vshll.u32 %v4844_v37, 16  ;;  %v1179_v46 = vshrl.u32 %v4844_v37, 16  ;;  %v947_v48 = vor.u32 %v945_v19, %v944_v35  ;;  %1028 = vst [vmem:[#allocation2 + $0x44] sm:$0x1] %v1027_v41 }
  0xa5   : > { %v1168_v7 = vrot.slane %v1166_v39, 4  ;;  %v1171_v22 = vrot.slane %v1169_v29, 5  ;;  %v1185_v50 = vshll.u32 %v4850_v42, 16  ;;  %v940_v51 = vrot.slane %v936_v34, 4  ;;  %v4163_v1 = vld [vmem:[%s5567_s5 + $0x10] sm:$0xff]  ;;  %v4178_v32 = vld [vmem:[%s5567_s5 + $0x88] sm:$0xff] }
  0xa6   : > { %v1177_v53 = vrot.slane %v1175_v45, 5  ;;  %v1181_v55 = vrot.slane %v1179_v46, 4  ;;  %v949_v56 = vrot.slane %v944_v35, 4  ;;  %v1037_v57 = vsel %vm4640_vm15, %v939_v47, %v1036_v26  ;;  %v4203_v31 = vld [vmem:[%s5567_s5 + $0x110] sm:$0xff]  ;;  %1531 = vmatpush.bf16.msrb.mxu1 %v4163_v1  ;;  %v4194_v29 = vld [vmem:[%s5567_s5 + $0xc8] sm:$0xff]  ;;  %1760 = vmatpush.bf16.msrb.mxu2 %v4178_v32 }
  0xa7   : > { %v1172_v59 = vor.u32 %v1171_v22, %v1168_v7  ;;  %v1187_v61 = vrot.slane %v1185_v50, 5  ;;  %v948_v62 = vsel %vm4648_vm5, %v940_v51, %v947_v48  ;;  %1038 = vst [vmem:[#allocation2 + $0x54] sm:$0xf] %v1037_v57  ;;  %v832_v4 = vshrl.u32 %v4842_v36, 16  ;;  %v4162_v47 = vld [vmem:[%s5567_s5 + $0x8] sm:$0xff]  ;;  %2329 = vmatpush.bf16.msrb.mxu0 %v4203_v31  ;;  %1953 = vmatpush.bf16.msrb.mxu3 %v4194_v29 }
  0xa8   : > { %v1182_v2 = vor.u32 %v1181_v55, %v1177_v53  ;;  %1039 = vst [vmem:[#allocation2 + $0x58] sm:$0xf] %v948_v62  ;;  %v1041_v3 = vsel %vm4453_vm2, %v949_v56, %v1040_v21  ;;  %v835_v5 = vshll.u32 %v4842_v36, 16  ;;  %v840_v9 = vshrl.u32 %v814_v63, 16  ;;  %v4202_v48 = vld [vmem:[%s5567_s5 + $0x108] sm:$0xff]  ;;  %v4177_v55 = vld [vmem:[%s5567_s5 + $0x80] sm:$0xff] }
  0xa9   : > { %v1173_v6 = vrot.slane %v1172_v59, 4  ;;  %v1060_v8 = vld [vmem:[#allocation2 + $0x3c] sm:$0xf]  ;;  %1042 = vst [vmem:[#allocation2 + $0x5c] sm:$0x1] %v1041_v3  ;;  %v834_v11 = vrot.slane %v832_v4, 7 }
  0xaa   : > { %v1183_v49 = vrot.slane %v1182_v2, 4  ;;  %v1214_v10 = vshrl.u32 %v1060_v8, 16  ;;  %v1217_v12 = vshll.u32 %v1060_v8, 16  ;;  %v4871_v15 = vld [vmem:[#allocation2 + $0x40] sm:$0xf]  ;;  %v4873_v16 = vrot.slane %v840_v9, 7  ;;  %1532 = vmatpush.bf16.msrb.mxu1 %v4162_v47  ;;  %1761 = vmatpush.bf16.msrb.mxu2 %v4177_v55 }
  0xab   : > { %v1178_v14 = vsel %vm4705_vm1, %v1173_v6, %v1177_v53  ;;  %v843_v17 = vshll.u32 %v814_v63, 16  ;;  %v4883_v23 = vld [vmem:[#allocation2 + $0x44] sm:$0x1]  ;;  %v1223_v35 = vshll.u32 %v4871_v15, 16  ;;  %v1227_v36 = vshrl.u32 %v4871_v15, 16  ;;  %2330 = vmatpush.bf16.msrb.mxu0 %v4202_v48  ;;  %v4216_v55 = vld [vmem:[%s5567_s5 + $0x178] sm:$0xff] }
  0xac   : > { %v1188_v19 = vsel %vm4705_vm1, %v1183_v49, %v1187_v61  ;;  %v1307_v20 = vunpack.c.l.b16 %v1178_v14  ;;  %v1216_v24 = vrot.slane %v1214_v10, 4  ;;  %v1219_v26 = vrot.slane %v1217_v12, 5  ;;  %v4161_v6 = vld [vmem:[%s5567_s5] sm:$0xff] }
  0xad   : > { %v1308_v34 = vunpack.c.l.b16 %v1188_v19  ;;  %v1233_v39 = vshll.u32 %v4883_v23, 16  ;;  %v837_v21 = vor.u32 %v835_v5, %v834_v11  ;;  %v838_v45 = vrot.slane %v834_v11, 4  ;;  %v994_v5 = vld [vmem:[#allocation2 + $0xc] sm:$0xf]  ;;  %v4193_v8 = vld [vmem:[%s5567_s5 + $0xc0] sm:$0xff]  ;;  %v4232_v11 = vld [vmem:[%s5567_s5 + $0x1b8] sm:$0xff] }
  0xae   : > { %v1220_v40 = vor.u32 %v1219_v26, %v1216_v24  ;;  %v1064_v41 = vld [vmem:[#allocation2 + $0x54] sm:$0xf]  ;;  %v845_v46 = vor.u32 %v843_v17, %v4873_v16  ;;  %v1225_v22 = vrot.slane %v1223_v35, 5  ;;  %v1229_v50 = vrot.slane %v1227_v36, 4  ;;  %v4201_v24 = vld [vmem:[%s5567_s5 + $0x100] sm:$0xff]  ;;  %1954 = vmatpush.bf16.msrb.mxu3 %v4193_v8  ;;  %2767 = vmatpush.bf16.msra.mxu2 %v4232_v11 }
  0xaf   : > { %v1320_v7 = vpack.c.b16 %v1308_v34, %v1307_v20  ;;  %v1235_v51 = vrot.slane %v1233_v39, 5  ;;  %v4904_v53 = vld [vmem:[#allocation2 + $0x58] sm:$0xf]  ;;  %v1262_v59 = vshrl.u32 %v1064_v41, 16  ;;  %v1265_v61 = vshll.u32 %v1064_v41, 16  ;;  %1533 = vmatpush.bf16.msrb.mxu1 %v4161_v6  ;;  %2331 = vmatpush.bf16.msrb.mxu0 %v4201_v24 }
  0xb0   : > { %v1221_v56 = vrot.slane %v1220_v40, 4  ;;  %v4909_v57 = vld [vmem:[#allocation2 + $0x5c] sm:$0x1]  ;;  %v1271_v62 = vshll.u32 %v4904_v53, 16  ;;  %v1230_v63 = vor.u32 %v1229_v50, %v1225_v22  ;;  %v1275_v2 = vshrl.u32 %v4904_v53, 16 }
  0xb1   : > { %1404 = vmatmul.bf16.gmra.mxu1 %v1320_v7  ;;  %v1281_v3 = vshll.u32 %v4909_v57, 16  ;;  %v846_v4 = vsel %vm4648_vm5, %v838_v45, %v845_v46  ;;  %v1264_v49 = vrot.slane %v1262_v59, 4  ;;  %v1267_v10 = vrot.slane %v1265_v61, 5  ;;  %v998_v17 = vld [vmem:[#allocation2 + $0x14] sm:$0x1] }
  0xb2   : > { %v1226_v9 = vsel %vm4705_vm1, %v1221_v56, %v1225_v22  ;;  %v1273_v12 = vrot.slane %v1271_v62, 5  ;;  %997 = vst [vmem:[#allocation2 + $0x10] sm:$0xf] %v846_v4  ;;  %v1231_v27 = vrot.slane %v1230_v63, 4  ;;  %v1277_v14 = vrot.slane %v1275_v2, 4  ;;  %v4248_v56 = vld [vmem:[%s5567_s5 + $0x238] sm:$0xff] }
  0xb3   : > { %v1311_v13 = vunpack.c.l.b16 %v1226_v9  ;;  %v1268_v1 = vor.u32 %v1267_v10, %v1264_v49  ;;  %v1283_v18 = vrot.slane %v1281_v3, 5  ;;  %v847_v19 = vrot.slane %v4873_v16, 4  ;;  %v1575_v32 = vld [vmem:[#allocation2] sm:$0xe]  ;;  %2573 = vmatpush.bf16.msra.mxu1 %v4216_v55  ;;  %3393 = vmatpush.bf16.msra.mxu0 %v4248_v56 }
  0xb4   : > { %v995_v20 = vsel %vm4640_vm15, %v837_v21, %v994_v5  ;;  %v1236_v26 = vsel %vm4705_vm1, %v1231_v27, %v1235_v51  ;;  %v1278_v31 = vor.u32 %v1277_v14, %v1273_v12  ;;  %v1604_v36 = vrot.slane %v4663_v54, 5  ;;  %v4240_v51 = vld [vmem:[%s5567_s5 + $0x1f8] sm:$0xff]  ;;  %v4153_v4 = vld [vmem:[#allocation2] sm:$0xff] }
  0xb5   : > { %996 = vst [vmem:[#allocation2 + $0xc] sm:$0xf] %v995_v20  ;;  %v1312_v16 = vunpack.c.l.b16 %v1236_v26  ;;  %v1269_v34 = vrot.slane %v1268_v1, 4  ;;  %v999_v35 = vsel %vm4453_vm2, %v847_v19, %v998_v17  ;;  %v3837_v41 = vrot.slane %v1575_v32, 9  ;;  %3144 = vmatpush.bf16.msra.mxu3 %v4240_v51 }
  0xb6   : > { %v1279_v39 = vrot.slane %v1278_v31, 4  ;;  %1000 = vst [vmem:[#allocation2 + $0x14] sm:$0x1] %v999_v35  ;;  %v1606_v54 = vrot.slane %v1604_v36, 4  ;;  %v1607_v48 = vrot.slane %v4670_v60, 5 }
  0xb7   : > { %v1322_v29 = vpack.c.b16 %v1312_v16, %v1311_v13  ;;  %v1274_v40 = vsel %vm4705_vm1, %v1269_v34, %v1273_v12  ;;  %v1605_v5 = vsel %vm4946_vm7, %v3837_v41, %v1604_v36 }
  0xb8   : > { %v1284_v21 = vsel %vm4705_vm1, %v1279_v39, %v1283_v18  ;;  %v1315_v45 = vunpack.c.l.b16 %v1274_v40  ;;  %v1608_v6 = vsel %vm4946_vm7, %v1606_v54, %v1607_v48  ;;  %v4231_v18 = vld [vmem:[%s5567_s5 + $0x1b0] sm:$0xff]  ;;  %v1674_v24 = vunpack.c.l.b16 %v1605_v5  ;;  %v4990_v5 = vld [vmem:[#allocation2 + $0x1c] sm:$0xf] }
  0xb9   : > { %v4942_v46 = vld [vmem:[#allocation2 + $0x10] sm:$0xf]  ;;  %1414 = vmatmul.bf16.gmra.mxu2 %v1322_v29  ;;  %v1316_v7 = vunpack.c.l.b16 %v1284_v21  ;;  %v1675_v26 = vunpack.c.l.b16 %v1608_v6 }
  0xba   : > { %v1127_v22 = vshll.u32 %v4942_v46, 16  ;;  %v1131_v50 = vshrl.u32 %v4942_v46, 16  ;;  %v4962_v59 = vld [vmem:[#allocation2 + $0x10] sm:$0xf]  ;;  %2768 = vmatpush.bf16.msra.mxu2 %v4231_v18 }
  0xbb   : > { %v1324_v60 = vpack.c.b16 %v1316_v7, %v1315_v45  ;;  %v2046_v12 = vshll.u32 %v4962_v59, 16  ;;  %v2050_v11 = vshrl.u32 %v4962_v59, 16  ;;  %v1690_v45 = vpack.c.b16 %v1675_v26, %v1674_v24 }
  0xbc   : > { %v1052_v61 = vld [vmem:[#allocation2 + $0xc] sm:$0xf]  ;;  %v1129_v62 = vrot.slane %v1127_v22, 5  ;;  %v1133_v63 = vrot.slane %v1131_v50, 4  ;;  %v1611_v7 = vrot.slane %v4942_v46, 5  ;;  %v4247_v46 = vld [vmem:[%s5567_s5 + $0x230] sm:$0xff] }
  0xbd   : > { %v1118_v2 = vshrl.u32 %v1052_v61, 16  ;;  %v1121_v3 = vshll.u32 %v1052_v61, 16  ;;  %v2012_v8 = vld [vmem:[#allocation2 + $0xc] sm:$0xf]  ;;  %1424 = vmatmul.bf16.gmra.mxu3 %v1324_v60  ;;  %v1083_v9 = vld [vmem:[#allocation2 + $0x14] sm:$0x1]  ;;  %3394 = vmatpush.bf16.msra.mxu0 %v4247_v46 }
  0xbe   : > { %v1134_v49 = vor.u32 %v1133_v63, %v1129_v62  ;;  %v2037_v10 = vshrl.u32 %v2012_v8, 16  ;;  %v1137_v14 = vshll.u32 %v1083_v9, 16  ;;  %v2040_v17 = vshll.u32 %v2012_v8, 16  ;;  %v4973_v31 = vld [vmem:[#allocation2 + $0x14] sm:$0x1]  ;;  %v4185_v51 = vld [vmem:[#allocation2 + $0xc] sm:$0xff] }
  0xbf   : > { %v1120_v27 = vrot.slane %v1118_v2, 4  ;;  %v1123_v13 = vrot.slane %v1121_v3, 5  ;;  %v2048_v32 = vrot.slane %v2046_v12, 5  ;;  %v2052_v16 = vrot.slane %v2050_v11, 4  ;;  %v1576_v48 = vld [vmem:[#allocation2 + $0xc] sm:$0xe] }
  0xc0   : > { %v1135_v1 = vrot.slane %v1134_v49, 4  ;;  %v1139_v20 = vrot.slane %v1137_v14, 5  ;;  %v2039_v36 = vrot.slane %v2037_v10, 4  ;;  %v2042_v39 = vrot.slane %v2040_v17, 5  ;;  %v4215_v2 = vld [vmem:[%s5567_s5 + $0x170] sm:$0xff]  ;;  %v4230_v12 = vld [vmem:[%s5567_s5 + $0x1a8] sm:$0xff] }
  0xc1   : > { %v1124_v19 = vor.u32 %v1123_v13, %v1120_v27  ;;  %1534 = vmatmul.bf16.vlgmr.msrb.gmra.mxu1 %v4153_v4  ;;  %v2056_v41 = vshll.u32 %v4973_v31, 16  ;;  %v2053_v54 = vor.u32 %v2052_v16, %v2048_v32  ;;  %v3838_v56 = vrot.slane %v1576_v48, 9  ;;  %v2015_v4 = vld [vmem:[#allocation2 + $0x18] sm:$0xf]  ;;  %v4154_v6 = vld [vmem:[#allocation2 + $0xc] sm:$0xff]  ;;  %2769 = vmatpush.bf16.msra.mxu2 %v4230_v12 }
  0xc2   : > { %v1140_v35 = vsel %vm4705_vm1, %v1135_v1, %v1139_v20  ;;  %v2043_v22 = vor.u32 %v2042_v39, %v2039_v36  ;;  %v1613_v61 = vrot.slane %v1611_v7, 4  ;;  %v1614_v63 = vrot.slane %v1083_v9, 5  ;;  %2574 = vmatpush.bf16.msra.mxu1 %v4215_v2  ;;  %v2018_v48 = vld [vmem:[#allocation2 + $0x24] sm:$0xf] }
  0xc3   : > { %v1125_v34 = vrot.slane %v1124_v19, 4  ;;  %v1304_v29 = vunpack.c.l.b16 %v1140_v35  ;;  %v2058_v55 = vrot.slane %v2056_v41, 5  ;;  %v2054_v60 = vrot.slane %v2053_v54, 4 }
  0xc4   : > { %v2044_v3 = vrot.slane %v2043_v22, 4  ;;  %v1612_v9 = vsel %vm4946_vm7, %v3838_v56, %v1611_v7  ;;  %v1615_v49 = vsel %vm4946_vm7, %v1613_v61, %v1614_v63  ;;  %v2061_v10 = vshrl.u32 %v2015_v4, 16  ;;  %v5010_v7 = vld [vmem:[#allocation2 + $0x28] sm:$0xf]  ;;  %v1578_v63 = vld [vmem:[#allocation2 + $0x24] sm:$0xe] }
  0xc5   : > { %v1130_v40 = vsel %vm4705_vm1, %v1125_v34, %v1129_v62  ;;  %v4239_v62 = vld [vmem:[%s5567_s5 + $0x1f0] sm:$0xff]  ;;  %v2059_v8 = vsel %vm4705_vm1, %v2054_v60, %v2058_v55  ;;  %v2064_v27 = vshll.u32 %v2015_v4, 16  ;;  %v2070_v13 = vshll.u32 %v4990_v5, 16  ;;  %v5005_v34 = vld [vmem:[#allocation2 + $0x20] sm:$0x1] }
  0xc6   : > { %v1303_v21 = vunpack.c.l.b16 %v1130_v40  ;;  %3145 = vmatpush.bf16.msra.mxu3 %v4239_v62  ;;  %v2049_v11 = vsel %vm4705_vm1, %v2044_v3, %v2048_v32  ;;  %v2074_v14 = vshrl.u32 %v4990_v5, 16  ;;  %v2245_v1 = vunpack.c.l.b16 %v2059_v8  ;;  %v1577_v32 = vld [vmem:[#allocation2 + $0x18] sm:$0xe] }
  0xc7   : > { %v2244_v17 = vunpack.c.l.b16 %v2049_v11  ;;  %v1676_v18 = vunpack.c.l.b16 %v1612_v9  ;;  %v1677_v19 = vunpack.c.l.b16 %v1615_v49  ;;  %v2063_v20 = vrot.slane %v2061_v10, 4  ;;  %v4155_v3 = vld [vmem:[#allocation2 + $0x18] sm:$0xff]  ;;  %v4229_v10 = vld [vmem:[%s5567_s5 + $0x1a0] sm:$0xff] }
  0xc8   : > { %v1318_v50 = vpack.c.b16 %v1304_v29, %v1303_v21  ;;  %v2066_v24 = vrot.slane %v2064_v27, 5  ;;  %v2072_v26 = vrot.slane %v2070_v13, 5  ;;  %v2076_v16 = vrot.slane %v2074_v14, 4  ;;  %v4186_v21 = vld [vmem:[#allocation2 + $0x18] sm:$0xff]  ;;  %2770 = vmatpush.bf16.msra.mxu2 %v4229_v10 }
  0xc9   : > { %1762 = vmatmul.bf16.vlgmr.msrb.gmra.mxu2 %v1690_v45  ;;  %v2260_v35 = vpack.c.b16 %v2245_v1, %v2244_v17  ;;  %v1691_v36 = vpack.c.b16 %v1677_v19, %v1676_v18  ;;  %v1618_v39 = vrot.slane %v4716_v30, 5  ;;  %v2080_v41 = vshll.u32 %v5005_v34, 16  ;;  %v4214_v30 = vld [vmem:[%s5567_s5 + $0x168] sm:$0xff] }
  0xca   : > { %1394 = vmatmul.bf16.gmra.mxu0 %v1318_v50  ;;  %v2067_v29 = vor.u32 %v2066_v24, %v2063_v20  ;;  %v2077_v40 = vor.u32 %v2076_v16, %v2072_v26  ;;  %v3839_v45 = vrot.slane %v1577_v32, 9  ;;  %v1621_v54 = vrot.slane %v4728_v38, 5  ;;  %v4238_v50 = vld [vmem:[%s5567_s5 + $0x1e8] sm:$0xff]  ;;  %2575 = vmatpush.bf16.msra.mxu1 %v4214_v30  ;;  %v2021_v30 = vld [vmem:[#allocation2 + $0x30] sm:$0xf] }
  0xcb   : > { %v1620_v22 = vrot.slane %v1618_v39, 4  ;;  %v1625_v38 = vrot.slane %v4844_v37, 5  ;;  %v1628_v55 = vrot.slane %v4850_v42, 5  ;;  %v2082_v61 = vrot.slane %v2080_v41, 5  ;;  %3146 = vmatpush.bf16.msra.mxu3 %v4238_v50  ;;  %v4187_v41 = vld [vmem:[#allocation2 + $0x24] sm:$0xff] }
  0xcc   : > { %v2068_v56 = vrot.slane %v2067_v29, 4  ;;  %v2078_v60 = vrot.slane %v2077_v40, 4  ;;  %v2085_v62 = vshrl.u32 %v2018_v48, 16  ;;  %v3840_v2 = vrot.slane %v1578_v63, 9  ;;  %v4245_v50 = vld [vmem:[%s5567_s5 + $0x220] sm:$0xff] }
  0xcd   : > { %1955 = vmatmul.bf16.vlgmr.msrb.gmra.mxu3 %v4185_v51  ;;  %v4246_v51 = vld [vmem:[%s5567_s5 + $0x228] sm:$0xff]  ;;  %v1627_v46 = vrot.slane %v1625_v38, 4  ;;  %v2088_v4 = vshll.u32 %v2018_v48, 16  ;;  %v2098_v8 = vshrl.u32 %v5010_v7, 16  ;;  %v1619_v37 = vsel %vm4946_vm7, %v3839_v45, %v1618_v39  ;;  %v4237_v48 = vld [vmem:[%s5567_s5 + $0x1e0] sm:$0xff] }
  0xce   : > { %3395 = vmatpush.bf16.msra.mxu0 %v4246_v51  ;;  %v1622_v42 = vsel %vm4946_vm7, %v1620_v22, %v1621_v54  ;;  %v1626_v9 = vsel %vm4946_vm7, %v3840_v2, %v1625_v38  ;;  %v2073_v12 = vsel %vm4705_vm1, %v2068_v56, %v2072_v26  ;;  %v2083_v11 = vsel %vm4705_vm1, %v2078_v60, %v2082_v61  ;;  %v4213_v22 = vld [vmem:[%s5567_s5 + $0x160] sm:$0xff]  ;;  %v5052_v51 = vld [vmem:[#allocation2 + $0x34] sm:$0xf]  ;;  %v4228_v2 = vld [vmem:[%s5567_s5 + $0x198] sm:$0xff] }
  0xcf   : > { %v1629_v49 = vsel %vm4946_vm7, %v1627_v46, %v1628_v55  ;;  %v1680_v27 = vunpack.c.l.b16 %v1626_v9  ;;  %v2087_v14 = vrot.slane %v2085_v62, 4  ;;  %v2090_v17 = vrot.slane %v2088_v4, 5  ;;  %3147 = vmatpush.bf16.msra.mxu3 %v4237_v48  ;;  %2576 = vmatpush.bf16.msra.mxu1 %v4213_v22  ;;  %v4156_v56 = vld [vmem:[#allocation2 + $0x24] sm:$0xff] }
  0xd0   : > { %v1681_v13 = vunpack.c.l.b16 %v1629_v49  ;;  %v2100_v18 = vrot.slane %v2098_v8, 4  ;;  %v2246_v20 = vunpack.c.l.b16 %v2073_v12  ;;  %v2247_v24 = vunpack.c.l.b16 %v2083_v11  ;;  %2771 = vmatpush.bf16.msra.mxu2 %v4228_v2 }
  0xd1   : > { %1539 = vmatmul.bf16.gmra.mxu1 %v4154_v6  ;;  %v2094_v6 = vshll.u32 %v5010_v7, 16  ;;  %v1678_v16 = vunpack.c.l.b16 %v1619_v37  ;;  %v2091_v32 = vor.u32 %v2090_v17, %v2087_v14  ;;  %v2109_v60 = vshrl.u32 %v2021_v30, 16  ;;  %v2024_v14 = vld [vmem:[#allocation2 + $0x3c] sm:$0xf]  ;;  %v5067_v17 = vld [vmem:[#allocation2 + $0x40] sm:$0xf] }
  0xd2   : > { %v1693_v19 = vpack.c.b16 %v1681_v13, %v1680_v27  ;;  %v2261_v29 = vpack.c.b16 %v2247_v24, %v2246_v20  ;;  %3396 = vmatpush.bf16.msra.mxu0 %v4245_v50  ;;  %v2112_v61 = vshll.u32 %v2021_v30, 16  ;;  %v2118_v63 = vshll.u32 %v5052_v51, 16  ;;  %v1579_v27 = vld [vmem:[#allocation2 + $0x30] sm:$0xe]  ;;  %v4236_v24 = vld [vmem:[%s5567_s5 + $0x1d8] sm:$0xff] }
  0xd3   : > { %v2096_v1 = vrot.slane %v2094_v6, 5  ;;  %v2122_v62 = vshrl.u32 %v5052_v51, 16  ;;  %v2111_v4 = vrot.slane %v2109_v60, 4  ;;  %v1632_v11 = vrot.slane %v4745_v52, 5  ;;  %v4188_v13 = vld [vmem:[#allocation2 + $0x30] sm:$0xff]  ;;  %v4244_v52 = vld [vmem:[%s5567_s5 + $0x218] sm:$0xff]  ;;  %3148 = vmatpush.bf16.msra.mxu3 %v4236_v24 }
  0xd4   : > { %v2114_v6 = vrot.slane %v2112_v61, 5  ;;  %v2120_v8 = vrot.slane %v2118_v63, 5  ;;  %v5103_v24 = vld [vmem:[#allocation2 + $0x4c] sm:$0xf] }
  0xd5   : > { %v2101_v26 = vor.u32 %v2100_v18, %v2096_v1  ;;  %v2124_v37 = vrot.slane %v2122_v62, 4 }
  0xd6   : > { %v2115_v49 = vor.u32 %v2114_v6, %v2111_v4  ;;  %3397 = vmatpush.bf16.msra.mxu0 %v4244_v52  ;;  %v757_v4 = vld [vmem:[%s4493_s18 + $0x70] sm:$0xff]  ;;  %v758_v6 = vld [vmem:[%s4493_s18 + $0x78] sm:$0xff] }
  0xd7   : > { %v2102_v45 = vrot.slane %v2101_v26, 4  ;;  %v2125_v10 = vor.u32 %v2124_v37, %v2120_v8  ;;  %v1635_v26 = vrot.slane %v4747_v58, 5  ;;  %v4227_v58 = vld [vmem:[%s5567_s5 + $0x190] sm:$0xff]  ;;  %v1639_v37 = vrot.slane %v4871_v15, 5 }
  0xd8   : > { %2772 = vmatpush.bf16.msra.mxu2 %v4227_v58  ;;  %v4211_v52 = vld [vmem:[%s5567_s5 + $0x150] sm:$0xff]  ;;  %v4226_v58 = vld [vmem:[%s5567_s5 + $0x188] sm:$0xff] }
  0xd9   : > { %1767 = vmatmul.bf16.gmra.mxu2 %v1691_v36  ;;  %v5040_v36 = vld [vmem:[#allocation2 + $0x2c] sm:$0x1]  ;;  %v2126_v18 = vrot.slane %v2125_v10, 4  ;;  %v1580_v10 = vld [vmem:[#allocation2 + $0x3c] sm:$0xe] }
  0xda   : > { %2332 = vmatmul.bf16.vlgmr.msrb.gmra.mxu0 %v2260_v35  ;;  %v1679_v35 = vunpack.c.l.b16 %v1622_v42  ;;  %v2104_v39 = vshll.u32 %v5040_v36, 16  ;;  %v5063_v42 = vld [vmem:[#allocation2 + $0x38] sm:$0x1]  ;;  %v3842_v15 = vrot.slane %v1580_v10, 9 }
  0xdb   : > { %v2128_v12 = vshll.u32 %v5063_v42, 16 }
  0xdc   : > { %v1692_v40 = vpack.c.b16 %v1679_v35, %v1678_v16  ;;  %v2106_v54 = vrot.slane %v2104_v39, 5  ;;  %v4212_v16 = vld [vmem:[%s5567_s5 + $0x158] sm:$0xff]  ;;  %v3841_v35 = vrot.slane %v1579_v27, 9  ;;  %v2136_v39 = vshll.u32 %v2024_v14, 16  ;;  %2773 = vmatpush.bf16.msra.mxu2 %v4226_v58  ;;  %v4159_v58 = vld [vmem:[#allocation2 + $0x48] sm:$0xff] }
  0xdd   : > { %1960 = vmatmul.bf16.gmra.mxu3 %v4186_v21  ;;  %v2092_v21 = vrot.slane %v2091_v32, 4  ;;  %v2130_v20 = vrot.slane %v2128_v12, 5  ;;  %v1634_v32 = vrot.slane %v1632_v11, 4  ;;  %2577 = vmatpush.bf16.msra.mxu1 %v4212_v16  ;;  %v4189_v12 = vld [vmem:[#allocation2 + $0x3c] sm:$0xff]  ;;  %v1641_v16 = vrot.slane %v1639_v37, 4 }
  0xde   : > { %v2107_v55 = vsel %vm4705_vm1, %v2102_v45, %v2106_v54  ;;  %v1633_v54 = vsel %vm4946_vm7, %v3841_v35, %v1632_v11  ;;  %v2138_v50 = vrot.slane %v2136_v39, 5  ;;  %v4158_v39 = vld [vmem:[#allocation2 + $0x3c] sm:$0xff] }
  0xdf   : > { %v2097_v38 = vsel %vm4705_vm1, %v2092_v21, %v2096_v1  ;;  %v2116_v1 = vrot.slane %v2115_v49, 4  ;;  %v2131_v45 = vsel %vm4705_vm1, %v2126_v18, %v2130_v20  ;;  %v1636_v48 = vsel %vm4946_vm7, %v1634_v32, %v1635_v26  ;;  %v2027_v20 = vld [vmem:[#allocation2 + $0x48] sm:$0xf] }
  0xe0   : > { %v2248_v46 = vunpack.c.l.b16 %v2097_v38  ;;  %v2251_v38 = vunpack.c.l.b16 %v2131_v45  ;;  %v1682_v61 = vunpack.c.l.b16 %v1633_v54  ;;  %v1683_v63 = vunpack.c.l.b16 %v1636_v48 }
  0xe1   : > { %1544 = vmatmul.bf16.gmra.mxu1 %v4155_v3  ;;  %v2249_v3 = vunpack.c.l.b16 %v2107_v55  ;;  %v2121_v21 = vsel %vm4705_vm1, %v2116_v1, %v2120_v8  ;;  %v5092_v55 = vld [vmem:[#allocation2 + $0x44] sm:$0x1]  ;;  %v777_v49 = vmul.f32 %v4595_v43, %v758_v6  ;;  %v1642_v18 = vrot.slane %v4883_v23, 5 }
  0xe2   : > { %v2250_v30 = vunpack.c.l.b16 %v2121_v21  ;;  %v2152_v2 = vshll.u32 %v5092_v55, 16  ;;  %v1694_v8 = vpack.c.b16 %v1683_v63, %v1682_v61  ;;  %2578 = vmatpush.bf16.msra.mxu1 %v4211_v52  ;;  %v1640_v21 = vsel %vm4946_vm7, %v3842_v15, %v1639_v37  ;;  %v4190_v52 = vld [vmem:[#allocation2 + $0x48] sm:$0xff] }
  0xe3   : > { %v2262_v9 = vpack.c.b16 %v2249_v3, %v2248_v46  ;;  %v1643_v45 = vsel %vm4946_vm7, %v1641_v16, %v1642_v18 }
  0xe4   : > { %v2263_v46 = vpack.c.b16 %v2251_v38, %v2250_v30  ;;  %v2154_v27 = vrot.slane %v2152_v2, 5 }
  0xe9   : > { %1772 = vmatmul.bf16.gmra.mxu2 %v1692_v40  ;;  %v2142_v40 = vshll.u32 %v5067_v17, 16 }
  0xea   : > { %2337 = vmatmul.bf16.gmra.mxu0 %v2261_v29  ;;  %v4157_v29 = vld [vmem:[#allocation2 + $0x30] sm:$0xff] }
  0xed   : > { %1965 = vmatmul.bf16.gmra.mxu3 %v4187_v41  ;;  %v2146_v41 = vshrl.u32 %v5067_v17, 16 }
  0xef   : > { %v2148_v60 = vrot.slane %v2146_v41, 4  ;;  %v2166_v41 = vshll.u32 %v5103_v24, 16 }
  0xf1   : > { %1549 = vmatmul.bf16.gmra.mxu1 %v4156_v56  ;;  %v2144_v56 = vrot.slane %v2142_v40, 5  ;;  %v2160_v40 = vshll.u32 %v2027_v20, 16 }
  0xf3   : > { %v2149_v3 = vor.u32 %v2148_v60, %v2144_v56  ;;  %v1685_v60 = vunpack.c.l.b16 %v1643_v45 }
  0xf5   : > { %v2150_v1 = vrot.slane %v2149_v3, 4  ;;  %v2168_v3 = vrot.slane %v2166_v41, 5 }
  0xf9   : > { %1777 = vmatmul.bf16.gmra.mxu2 %v1693_v19  ;;  %v2133_v19 = vshrl.u32 %v2024_v14, 16  ;;  %v796_v14 = vadd.f32 %v4598_v44, %v777_v49  ;;  %v1043_v49 = vld [vmem:[#allocation2 + $0x60] sm:$0xf] }
  0xfa   : > { %2342 = vmatmul.bf16.gmra.mxu0 %v2262_v9  ;;  %v776_v9 = vmul.f32 %v4595_v43, %v757_v4  ;;  %v4235_v43 = vld [vmem:[%s5567_s5 + $0x1d0] sm:$0xff] }
  0xfb   : > { %v2135_v22 = vrot.slane %v2133_v19, 4  ;;  %v812_v35 = vmax.f32 %v796_v14, 0.0  ;;  %3149 = vmatpush.bf16.msra.mxu3 %v4235_v43  ;;  %v2155_v19 = vsel %vm4705_vm1, %v2150_v1, %v2154_v27  ;;  %v1047_v43 = vld [vmem:[#allocation2 + $0x68] sm:$0x1] }
  0xfc   : > { %v2253_v30 = vunpack.c.l.b16 %v2155_v19 }
  0xfd   : > { %1970 = vmatmul.bf16.gmra.mxu3 %v4188_v13  ;;  %v2139_v62 = vor.u32 %v2138_v50, %v2135_v22  ;;  %v795_v13 = vadd.f32 %v4598_v44, %v776_v9  ;;  %v4243_v44 = vld [vmem:[%s5567_s5 + $0x210] sm:$0xff]  ;;  %v828_v54 = vpack.c.bf16 %v812_v35, %v812_v35  ;;  %v2170_v22 = vshrl.u32 %v5103_v24, 16  ;;  %v5136_v35 = vld [vmem:[#allocation2 + $0x58] sm:$0xf] }
  0xfe   : > { %3398 = vmatpush.bf16.msra.mxu0 %v4243_v44  ;;  %v1581_v44 = vld [vmem:[#allocation2 + $0x48] sm:$0xe] }
  0xff   : > { %v2140_v11 = vrot.slane %v2139_v62, 4  ;;  %v811_v23 = vmax.f32 %v795_v13, 0.0  ;;  %v959_v63 = vshrl.u32 %v828_v54, 16  ;;  %v5127_v62 = vld [vmem:[#allocation2 + $0x50] sm:$0x1]  ;;  %v962_v4 = vshll.u32 %v828_v54, 16  ;;  %3150 = vmatpush.bf16.msra.mxu3 %v4234_v33 }
 0x100   : > { %v2172_v6 = vrot.slane %v2170_v22, 4  ;;  %v2176_v14 = vshll.u32 %v5127_v62, 16  ;;  %v2190_v22 = vshll.u32 %v5136_v35, 16 }
 0x101   : > { %1554 = vmatmul.bf16.gmra.mxu1 %v4157_v29  ;;  %v2145_v32 = vsel %vm4705_vm1, %v2140_v11, %v2144_v56  ;;  %v827_v26 = vpack.c.bf16 %v811_v23, %v811_v23  ;;  %v2157_v29 = vshrl.u32 %v2027_v20, 16  ;;  %v1684_v56 = vunpack.c.l.b16 %v1640_v21  ;;  %v4316_v20 = vld [vmem:[#allocation2 + $0x4c] sm:$0xf]  ;;  %v2030_v23 = vld [vmem:[#allocation2 + $0x54] sm:$0xf] }
 0x102   : > { %v2252_v50 = vunpack.c.l.b16 %v2145_v32  ;;  %v961_v9 = vrot.slane %v959_v63, 7  ;;  %v2173_v18 = vor.u32 %v2172_v6, %v2168_v3  ;;  %v1646_v15 = vrot.slane %v4316_v20, 5  ;;  %v4317_v21 = vld [vmem:[#allocation2 + $0x50] sm:$0x1]  ;;  %3399 = vmatpush.bf16.msra.mxu0 %v4242_v0 }
 0x103   : > { %v951_v48 = vshrl.u32 %v827_v26, 16  ;;  %v954_v61 = vshll.u32 %v827_v26, 16  ;;  %v2159_v2 = vrot.slane %v2157_v29, 4  ;;  %v1695_v27 = vpack.c.b16 %v1685_v60, %v1684_v56 }
 0x104   : > { %v2264_v10 = vpack.c.b16 %v2253_v30, %v2252_v50  ;;  %v966_v1 = vrot.slane %v961_v9, 4  ;;  %v2178_v26 = vrot.slane %v2176_v14, 5  ;;  %v2174_v29 = vrot.slane %v2173_v18, 4  ;;  %v1582_v14 = vld [vmem:[#allocation2 + $0x54] sm:$0xe] }
 0x105   : > { %v953_v38 = vrot.slane %v951_v48, 7  ;;  %v1648_v41 = vrot.slane %v1646_v15, 4  ;;  %v1649_v45 = vrot.slane %v4317_v21, 5  ;;  %v2181_v54 = vshrl.u32 %v2030_v23, 16 }
 0x106   : > { %v1048_v28 = vsel %vm4453_vm2, %v966_v1, %v1047_v43  ;;  %v2184_v48 = vshll.u32 %v2030_v23, 16  ;;  %v2194_v50 = vshrl.u32 %v5136_v35, 16  ;;  %v4225_v1 = vld [vmem:[%s5567_s5 + $0x180] sm:$0xff] }
 0x107   : > { %v957_v37 = vrot.slane %v953_v38, 4  ;;  %1049 = vst [vmem:[#allocation2 + $0x68] sm:$0x1] %v1048_v28  ;;  %v1650_v60 = vsel %vm4946_vm7, %v1648_v41, %v1649_v45  ;;  %v2183_v63 = vrot.slane %v2181_v54, 4  ;;  %2774 = vmatpush.bf16.msra.mxu2 %v4225_v1  ;;  %v3844_v28 = vrot.slane %v1582_v14, 9 }
 0x109   : > { %1782 = vmatmul.bf16.gmra.mxu2 %v1694_v8  ;;  %v956_v8 = vor.u32 %v954_v61, %v953_v38  ;;  %v2179_v38 = vsel %vm4705_vm1, %v2174_v29, %v2178_v26  ;;  %v5159_v61 = vld [vmem:[#allocation2 + $0x5c] sm:$0x1]  ;;  %v4209_v26 = vld [vmem:[%s5567_s5 + $0x140] sm:$0xff] }
 0x10a   : > { %2347 = vmatmul.bf16.gmra.mxu0 %v2263_v46  ;;  %v2162_v46 = vrot.slane %v2160_v40, 5  ;;  %v3843_v40 = vrot.slane %v1581_v44, 9  ;;  %v4191_v44 = vld [vmem:[#allocation2 + $0x54] sm:$0xff] }
 0x10b   : > { %v1044_v11 = vsel %vm4640_vm15, %v956_v8, %v1043_v49  ;;  %v2255_v8 = vunpack.c.l.b16 %v2179_v38 }
 0x10c   : > { %v2163_v13 = vor.u32 %v2162_v46, %v2159_v2  ;;  %1045 = vst [vmem:[#allocation2 + $0x60] sm:$0xf] %v1044_v11  ;;  %v1647_v56 = vsel %vm4946_vm7, %v3843_v40, %v1646_v15  ;;  %v2186_v2 = vrot.slane %v2184_v48, 5  ;;  %v2192_v46 = vrot.slane %v2190_v22, 5  ;;  %v4241_v22 = vld [vmem:[%s5567_s5 + $0x200] sm:$0xff] }
 0x10d   : > { %1975 = vmatmul.bf16.gmra.mxu3 %v4189_v12  ;;  %v964_v12 = vor.u32 %v962_v4, %v961_v9  ;;  %v2196_v4 = vrot.slane %v2194_v50, 4  ;;  %v2200_v9 = vshll.u32 %v5159_v61, 16  ;;  %v2426_v48 = vrot.slane %v4973_v31, 5  ;;  %3400 = vmatpush.bf16.msra.mxu0 %v4241_v22 }
 0x10e   : > { %v2164_v32 = vrot.slane %v2163_v13, 4  ;;  %v1653_v13 = vrot.slane %v4904_v53, 5  ;;  %v1656_v53 = vrot.slane %v4909_v57, 5  ;;  %v4160_v57 = vld [vmem:[#allocation2 + $0x54] sm:$0xff]  ;;  %v2423_v50 = vrot.slane %v4962_v59, 5 }
 0x10f   : > { %v965_v16 = vsel %vm4648_vm5, %v957_v37, %v964_v12  ;;  %v5138_v19 = vpop.f32.mrf.mxu1  ;;  %v1686_v37 = vunpack.c.l.b16 %v1647_v56  ;;  %v2197_v12 = vor.u32 %v2196_v4, %v2192_v46  ;;  %v2202_v18 = vrot.slane %v2200_v9, 5  ;;  %v5200_v31 = vld [vmem:[#allocation2 + $0x68] sm:$0x1] }
 0x110   : > { %1046 = vst [vmem:[#allocation2 + $0x64] sm:$0xf] %v965_v16  ;;  %v2169_v30 = vsel %vm4705_vm1, %v2164_v32, %v2168_v3  ;;  %v1687_v3 = vunpack.c.l.b16 %v1650_v60  ;;  %v1655_v23 = vrot.slane %v1653_v13, 4  ;;  %v4233_v32 = vld [vmem:[%s5567_s5 + $0x1c0] sm:$0xff]  ;;  %v2425_v9 = vrot.slane %v2423_v50, 4 }
 0x111   : > { %1559 = vmatmul.bf16.gmra.mxu1 %v4158_v39  ;;  %v4210_v39 = vld [vmem:[%s5567_s5 + $0x148] sm:$0xff]  ;;  %v2254_v6 = vunpack.c.l.b16 %v2169_v30  ;;  %v2198_v15 = vrot.slane %v2197_v12, 4  ;;  %3151 = vmatpush.bf16.msra.mxu3 %v4233_v32  ;;  %v2832_v30 = vld [vmem:[#allocation2 + $0x18] sm:$0xf] }
 0x112   : > { %2579 = vmatpush.bf16.msra.mxu1 %v4210_v39  ;;  %v1657_v54 = vsel %vm4946_vm7, %v1655_v23, %v1656_v53  ;;  %v2860_v59 = vshll.u32 %v2832_v30, 16  ;;  %v1390_v12 = vpop.f32.mrf.mxu0 }
 0x113   : > { %v2265_v11 = vpack.c.b16 %v2255_v8, %v2254_v6  ;;  %v2033_v43 = vld [vmem:[#allocation2 + $0x60] sm:$0xf]  ;;  %v2203_v29 = vsel %vm4705_vm1, %v2198_v15, %v2202_v18  ;;  %v1689_v6 = vunpack.c.l.b16 %v1657_v54  ;;  %v2224_v15 = vshll.u32 %v5200_v31, 16 }
 0x114   : > { %v2205_v33 = vshrl.u32 %v2033_v43, 16  ;;  %v2208_v39 = vshll.u32 %v2033_v43, 16  ;;  %v2257_v56 = vunpack.c.l.b16 %v2203_v29  ;;  %v2862_v53 = vrot.slane %v2860_v59, 5  ;;  %v5225_v59 = vld [vmem:[#allocation2 + $0x28] sm:$0xf] }
 0x116   : > { %2580 = vmatpush.bf16.msra.mxu1 %v4209_v26  ;;  %v2207_v60 = vrot.slane %v2205_v33, 4 }
 0x117   : > { %v5162_v49 = vpop.f32.mrf.mxu1 }
 0x119   : > { %1787 = vmatmul.bf16.gmra.mxu2 %v1695_v27  ;;  %v1696_v27 = vpack.c.b16 %v1687_v3, %v1686_v37  ;;  %v5168_v16 = vpop.f32.mrf.mxu2 }
 0x11a   : > { %2352 = vmatmul.bf16.gmra.mxu0 %v2264_v10  ;;  %v2187_v10 = vor.u32 %v2186_v2, %v2183_v63  ;;  %v2210_v63 = vrot.slane %v2208_v39, 5  ;;  %v2389_v2 = vld [vmem:[#allocation2 + $0xc] sm:$0xe]  ;;  %v5215_v39 = vld [vmem:[#allocation2 + $0x20] sm:$0x1] }
 0x11b   : > { %v3973_v3 = vrot.slane %v2389_v2, 9 }
 0x11c   : > { %v2188_v20 = vrot.slane %v2187_v10, 4  ;;  %v2857_v10 = vshrl.u32 %v2832_v30, 16  ;;  %v2211_v18 = vor.u32 %v2210_v63, %v2207_v60 }
 0x11d   : > { %1980 = vmatmul.bf16.gmra.mxu3 %v4190_v52  ;;  %v5170_v52 = vld [vmem:[#allocation2 + $0x64] sm:$0xf] }
 0x11e   : > { %v2193_v0 = vsel %vm4705_vm1, %v2188_v20, %v2192_v46  ;;  %v2214_v41 = vshll.u32 %v5170_v52, 16  ;;  %v2218_v21 = vshrl.u32 %v5170_v52, 16  ;;  %v5198_v46 = vld [vmem:[#allocation2 + $0x1c] sm:$0xf]  ;;  %v2859_v23 = vrot.slane %v2857_v10, 4 }
 0x11f   : > { %v5183_v40 = vpop.f32.mrf.mxu3  ;;  %v2256_v38 = vunpack.c.l.b16 %v2193_v0  ;;  %v2390_v10 = vld [vmem:[#allocation2 + $0x18] sm:$0xe] }
 0x120   : > { %v2216_v8 = vrot.slane %v2214_v41, 5  ;;  %v2220_v37 = vrot.slane %v2218_v21, 4  ;;  %v2212_v41 = vrot.slane %v2211_v18, 4  ;;  %v2863_v54 = vor.u32 %v2862_v53, %v2859_v23 }
 0x121   : > { %1564 = vmatmul.bf16.gmra.mxu1 %v4159_v58  ;;  %v1654_v58 = vsel %vm4946_vm7, %v3844_v28, %v1653_v13  ;;  %v2870_v13 = vshrl.u32 %v5198_v46, 16  ;;  %v2266_v14 = vpack.c.b16 %v2257_v56, %v2256_v38  ;;  %v2427_v28 = vsel %vm4946_vm7, %v2425_v9, %v2426_v48 }
 0x122   : > { %v1688_v4 = vunpack.c.l.b16 %v1654_v58  ;;  %v2221_v20 = vor.u32 %v2220_v37, %v2216_v8  ;;  %v2494_v29 = vunpack.c.l.b16 %v2427_v28  ;;  %v2226_v58 = vrot.slane %v2224_v15, 5 }
 0x123   : > { %v2872_v33 = vrot.slane %v2870_v13, 4  ;;  %v2876_v48 = vshll.u32 %v5215_v39, 16  ;;  %v2217_v56 = vsel %vm4705_vm1, %v2212_v41, %v2216_v8  ;;  %v2864_v2 = vrot.slane %v2863_v54, 4  ;;  %v4217_v41 = vld [vmem:[#allocation2 + $0x18] sm:$0xff] }
 0x124   : > { %v1697_v1 = vpack.c.b16 %v1689_v6, %v1688_v4  ;;  %v2222_v21 = vrot.slane %v2221_v20, 4  ;;  %v2835_v4 = vld [vmem:[#allocation2 + $0x24] sm:$0xf]  ;;  %v2430_v9 = vrot.slane %v4990_v5, 5  ;;  %v3974_v18 = vrot.slane %v2390_v10, 9 }
 0x125   : > { %v2881_v8 = vshrl.u32 %v2835_v4, 16  ;;  %v2433_v15 = vrot.slane %v5005_v34, 5  ;;  %v2894_v28 = vshrl.u32 %v5225_v59, 16  ;;  %v3243_v23 = vrot.slane %v5198_v46, 5 }
 0x126   : > { %v2227_v60 = vsel %vm4705_vm1, %v2222_v21, %v2226_v58  ;;  %v2432_v20 = vrot.slane %v2430_v9, 4 }
 0x127   : > { %v5213_v32 = vpop.f32.mrf.mxu3  ;;  %v2259_v13 = vunpack.c.l.b16 %v2227_v60  ;;  %v3245_v60 = vrot.slane %v3243_v23, 4 }
 0x128   : > { %v2434_v54 = vsel %vm4946_vm7, %v2432_v20, %v2433_v15 }
 0x129   : > { %1792 = vmatmul.bf16.gmra.mxu2 %v1696_v27  ;;  %v2866_v27 = vshll.u32 %v5198_v46, 16  ;;  %v2896_v46 = vrot.slane %v2894_v28, 4 }
 0x12a   : > { %2357 = vmatmul.bf16.gmra.mxu0 %v2265_v11  ;;  %v5202_v11 = vpop.f32.mrf.mxu2 }
 0x12b   : > { %v2868_v26 = vrot.slane %v2866_v27, 5  ;;  %v2258_v27 = vunpack.c.l.b16 %v2217_v56 }
 0x12d   : > { %1985 = vmatmul.bf16.gmra.mxu3 %v4191_v44  ;;  %v2424_v44 = vsel %vm4946_vm7, %v3973_v3, %v2423_v50  ;;  %v2873_v22 = vor.u32 %v2872_v33, %v2868_v26  ;;  %v1392_v50 = vpop.f32.mrf.mxu0  ;;  %v2878_v3 = vrot.slane %v2876_v48, 5  ;;  %v2267_v53 = vpack.c.b16 %v2259_v13, %v2258_v27 }
 0x12e   : > { %v5187_v45 = vpop.f32.mrf.mxu1  ;;  %v2493_v0 = vunpack.c.l.b16 %v2424_v44  ;;  %v2890_v44 = vshll.u32 %v5225_v59, 16 }
 0x12f   : > { %v2874_v37 = vrot.slane %v2873_v22, 4 }
 0x130   : > { %v2509_v38 = vpack.c.b16 %v2494_v29, %v2493_v0  ;;  %v3209_v0 = vld [vmem:[#allocation2 + $0x18] sm:$0xe]  ;;  %v2883_v29 = vrot.slane %v2881_v8, 4 }
 0x131   : > { %1569 = vmatmul.bf16.gmra.mxu1 %v4160_v57  ;;  %v4192_v57 = vld [vmem:[#allocation2 + $0x60] sm:$0xff]  ;;  %v2879_v5 = vsel %vm4705_vm1, %v2874_v37, %v2878_v3  ;;  %v4109_v56 = vrot.slane %v3209_v0, 9  ;;  %v2496_v3 = vunpack.c.l.b16 %v2434_v54  ;;  %v2437_v0 = vrot.slane %v5010_v7, 5 }
 0x132   : > { %v3065_v21 = vunpack.c.l.b16 %v2879_v5 }
 0x136   : > { %v5207_v43 = vpop.f32.mrf.mxu1 }
 0x139   : > { %1797 = vmatmul.bf16.gmra.mxu2 %v1697_v1  ;;  %v2884_v1 = vshll.u32 %v2835_v4, 16  ;;  %v3246_v4 = vrot.slane %v5215_v39, 5 }
 0x13a   : > { %2362 = vmatmul.bf16.gmra.mxu0 %v2266_v14 }
 0x13b   : > { %v3247_v8 = vsel %vm4946_vm7, %v3245_v60, %v3246_v4 }
 0x13c   : > { %v5218_v30 = vpop.f32.mrf.mxu2 }
 0x13d   : > { %1990 = vmatmul.bf16.gmra.mxu3 %v4192_v57  ;;  %v2886_v57 = vrot.slane %v2884_v1, 5 }
 0x13e   : > { %v1535_v63 = vpop.f32.mrf.mxu1 }
 0x13f   : > { %v1536_v6 = vadd.f32 %v1535_v63, %v1390_v12  ;;  %v2869_v12 = vsel %vm4705_vm1, %v2864_v2, %v2868_v26  ;;  %v2431_v26 = vsel %vm4946_vm7, %v3974_v18, %v2430_v9  ;;  %v5243_v63 = vld [vmem:[#allocation2 + $0x2c] sm:$0x1]  ;;  %v2887_v10 = vor.u32 %v2886_v57, %v2883_v29 }
 0x140   : > { %v5227_v14 = vpop.f32.mrf.mxu3  ;;  %v3064_v34 = vunpack.c.l.b16 %v2869_v12  ;;  %v2495_v37 = vunpack.c.l.b16 %v2431_v26  ;;  %v2900_v13 = vshll.u32 %v5243_v63, 16  ;;  %v2838_v12 = vld [vmem:[#allocation2 + $0x30] sm:$0xf]  ;;  %v3314_v57 = vunpack.c.l.b16 %v3247_v8  ;;  %v3210_v8 = vld [vmem:[#allocation2 + $0x24] sm:$0xe] }
 0x141   : > { %2581 = vmatmul.bf16.vlgmr.msra.gmra.mxu1 %v2509_v38  ;;  %v2892_v38 = vrot.slane %v2890_v44, 5  ;;  %v2888_v20 = vrot.slane %v2887_v10, 4  ;;  %v3250_v10 = vrot.slane %v5225_v59, 5 }
 0x142   : > { %v3080_v9 = vpack.c.b16 %v3065_v21, %v3064_v34  ;;  %v2510_v18 = vpack.c.b16 %v2496_v3, %v2495_v37 }
 0x143   : > { %v2897_v27 = vor.u32 %v2896_v46, %v2892_v38  ;;  %v2893_v21 = vsel %vm4705_vm1, %v2888_v20, %v2892_v38  ;;  %v2439_v46 = vrot.slane %v2437_v0, 4 }
 0x144   : > { %v5237_v33 = vpop.f32.mrf.mxu2  ;;  %v3066_v3 = vunpack.c.l.b16 %v2893_v21  ;;  %v3252_v21 = vrot.slane %v3250_v10, 4 }
 0x145   : > { %v2898_v28 = vrot.slane %v2897_v27, 4 }
 0x146   : > { %v1537_v58 = vpop.f32.mrf.mxu1 }
 0x147   : > { %v1395_v22 = vpop.f32.mrf.mxu0  ;;  %v1538_v48 = vadd.f32 %v1537_v58, %v1392_v50  ;;  %v3244_v50 = vsel %vm4946_vm7, %v4109_v56, %v3243_v23  ;;  %v5254_v23 = vld [vmem:[#allocation2 + $0x34] sm:$0xf]  ;;  %v2905_v58 = vshrl.u32 %v2838_v12, 16 }
 0x148   : > { %v5245_v2 = vpop.f32.mrf.mxu3  ;;  %v3313_v29 = vunpack.c.l.b16 %v3244_v50  ;;  %v2914_v56 = vshll.u32 %v5254_v23, 16  ;;  %v2918_v60 = vshrl.u32 %v5254_v23, 16 }
 0x149   : > { %2775 = vmatmul.bf16.vlgmr.msra.gmra.mxu2 %v4217_v41  ;;  %v2391_v41 = vld [vmem:[#allocation2 + $0x24] sm:$0xe]  ;;  %v2907_v38 = vrot.slane %v2905_v58, 4  ;;  %v3253_v58 = vrot.slane %v5243_v63, 5  ;;  %v2444_v63 = vrot.slane %v5052_v51, 5 }
 0x14a   : > { %2367 = vmatmul.bf16.gmra.mxu0 %v2267_v53  ;;  %v2902_v53 = vrot.slane %v2900_v13, 5  ;;  %v3975_v54 = vrot.slane %v2391_v41, 9  ;;  %v3329_v4 = vpack.c.b16 %v3314_v57, %v3313_v29  ;;  %v4218_v13 = vld [vmem:[#allocation2 + $0x24] sm:$0xff] }
 0x14c   : > { %v1763_v1 = vpop.f32.mrf.mxu2  ;;  %v2903_v7 = vsel %vm4705_vm1, %v2898_v28, %v2902_v53  ;;  %v5268_v28 = vld [vmem:[#allocation2 + $0x38] sm:$0x1] }
 0x14d   : > { %3152 = vmatmul.bf16.vlgmr.msra.gmra.mxu3 %v3080_v9  ;;  %v1803_v39 = vadd.f32 %v1763_v1, %v1536_v6  ;;  %v2908_v6 = vshll.u32 %v2838_v12, 16  ;;  %v3067_v50 = vunpack.c.l.b16 %v2903_v7  ;;  %v2920_v12 = vrot.slane %v2918_v60, 4 }
 0x14e   : > { %v1540_v15 = vpop.f32.mrf.mxu1  ;;  %v3254_v7 = vsel %vm4946_vm7, %v3252_v21, %v3253_v58 }
 0x14f   : > { %v1397_v5 = vpop.f32.mrf.mxu0  ;;  %v1541_v44 = vadd.f32 %v1540_v15, %v1395_v22  ;;  %v2440_v22 = vrot.slane %v5040_v36, 5  ;;  %v2910_v9 = vrot.slane %v2908_v6, 5  ;;  %v2438_v36 = vsel %vm4946_vm7, %v3975_v54, %v2437_v0 }
 0x150   : > { %v1956_v34 = vpop.f32.mrf.mxu3  ;;  %v2916_v15 = vrot.slane %v2914_v56, 5  ;;  %v2497_v29 = vunpack.c.l.b16 %v2438_v36  ;;  %v3081_v0 = vpack.c.b16 %v3067_v50, %v3066_v3  ;;  %v3316_v50 = vunpack.c.l.b16 %v3254_v7 }
 0x151   : > { %2586 = vmatmul.bf16.gmra.mxu1 %v2510_v18  ;;  %v1996_v26 = vadd.f32 %v1956_v34, %v1803_v39  ;;  %v2441_v18 = vsel %vm4946_vm7, %v2439_v46, %v2440_v22  ;;  %v2911_v41 = vor.u32 %v2910_v9, %v2907_v38 }
 0x152   : > { %v2498_v57 = vunpack.c.l.b16 %v2441_v18  ;;  %v2921_v6 = vor.u32 %v2920_v12, %v2916_v15  ;;  %v2446_v12 = vrot.slane %v2444_v63, 4 }
 0x153   : > { %v2912_v22 = vrot.slane %v2911_v41, 4 }
 0x154   : > { %v1765_v37 = vpop.f32.mrf.mxu2  ;;  %v2511_v46 = vpack.c.b16 %v2498_v57, %v2497_v29  ;;  %v2922_v3 = vrot.slane %v2921_v6, 4  ;;  %v3257_v57 = vrot.slane %v5254_v23, 5 }
 0x155   : > { %v1804_v27 = vadd.f32 %v1765_v37, %v1538_v48  ;;  %v4110_v48 = vrot.slane %v3210_v8, 9 }
 0x156   : > { %v1542_v1 = vpop.f32.mrf.mxu1 }
 0x157   : > { %v2333_v20 = vpop.f32.mrf.mxu0  ;;  %v1543_v39 = vadd.f32 %v1542_v1, %v1397_v5  ;;  %v2924_v5 = vshll.u32 %v5268_v28, 16  ;;  %v3251_v54 = vsel %vm4946_vm7, %v4110_v48, %v3250_v10  ;;  %v2917_v1 = vsel %vm4705_vm1, %v2912_v22, %v2916_v15  ;;  %v3211_v15 = vld [vmem:[#allocation2 + $0x30] sm:$0xe] }
 0x158   : > { %v5270_v59 = vadd.f32 %v2333_v20, %v1996_v26  ;;  %v1958_v53 = vpop.f32.mrf.mxu3  ;;  %v3315_v9 = vunpack.c.l.b16 %v3251_v54 }
 0x159   : > { %v1997_v34 = vadd.f32 %v1958_v53, %v1804_v27  ;;  %2780 = vmatmul.bf16.gmra.mxu2 %v4218_v13  ;;  %v2926_v38 = vrot.slane %v2924_v5, 5  ;;  %v2392_v27 = vld [vmem:[#allocation2 + $0x30] sm:$0xe]  ;;  %v5279_v13 = vld [vmem:[#allocation2 + $0x40] sm:$0xf]  ;;  %v2447_v53 = vrot.slane %v5063_v42, 5 }
 0x15a   : > { %3401 = vmatmul.bf16.vlgmr.msra.gmra.mxu0 %v3329_v4  ;;  %v2841_v4 = vld [vmem:[#allocation2 + $0x3c] sm:$0xf]  ;;  %v3976_v20 = vrot.slane %v2392_v27, 9  ;;  %v2938_v48 = vshll.u32 %v5279_v13, 16  ;;  %v2942_v29 = vshrl.u32 %v5279_v13, 16  ;;  %v3330_v41 = vpack.c.b16 %v3316_v50, %v3315_v9  ;;  %v4219_v5 = vld [vmem:[#allocation2 + $0x30] sm:$0xff] }
 0x15b   : > { %v2932_v36 = vshll.u32 %v2841_v4, 16  ;;  %v2927_v51 = vsel %vm4705_vm1, %v2922_v3, %v2926_v38  ;;  %v5296_v3 = vld [vmem:[#allocation2 + $0x44] sm:$0x1]  ;;  %v3260_v9 = vrot.slane %v5268_v28, 5 }
 0x15c   : > { %v1768_v26 = vpop.f32.mrf.mxu2  ;;  %v3069_v54 = vunpack.c.l.b16 %v2927_v51  ;;  %v2445_v42 = vsel %vm4946_vm7, %v3976_v20, %v2444_v63  ;;  %v2940_v23 = vrot.slane %v2938_v48, 5 }
 0x15d   : > { %3157 = vmatmul.bf16.gmra.mxu3 %v3081_v0  ;;  %v1805_v56 = vadd.f32 %v1768_v26, %v1541_v44  ;;  %v2929_v44 = vshrl.u32 %v2841_v4, 16  ;;  %v3068_v0 = vunpack.c.l.b16 %v2917_v1  ;;  %v2934_v58 = vrot.slane %v2932_v36, 5 }
 0x15e   : > { %v1545_v60 = vpop.f32.mrf.mxu1  ;;  %v4111_v4 = vrot.slane %v3211_v15, 9  ;;  %v2499_v27 = vunpack.c.l.b16 %v2445_v42 }
 0x15f   : > { %v2335_v37 = vpop.f32.mrf.mxu0  ;;  %v2931_v21 = vrot.slane %v2929_v44, 4  ;;  %v3082_v1 = vpack.c.b16 %v3069_v54, %v3068_v0  ;;  %v1546_v36 = vadd.f32 %v1545_v60, %v5138_v19  ;;  %v2451_v19 = vrot.slane %v5067_v17, 5 }
 0x160   : > { %v5281_v10 = vadd.f32 %v2335_v37, %v1997_v34  ;;  %v1961_v8 = vpop.f32.mrf.mxu3  ;;  %v3259_v37 = vrot.slane %v3257_v57, 4  ;;  %v3258_v20 = vsel %vm4946_vm7, %v4111_v4, %v3257_v57  ;;  %v2393_v57 = vld [vmem:[#allocation2 + $0x3c] sm:$0xe] }
 0x161   : > { %2591 = vmatmul.bf16.gmra.mxu1 %v2511_v46  ;;  %v1998_v18 = vadd.f32 %v1961_v8, %v1805_v56  ;;  %v2448_v46 = vsel %vm4946_vm7, %v2446_v12, %v2447_v53  ;;  %v2944_v56 = vrot.slane %v2942_v29, 4  ;;  %v2935_v63 = vor.u32 %v2934_v58, %v2931_v21  ;;  %v2844_v29 = vld [vmem:[#allocation2 + $0x48] sm:$0xf]  ;;  %v5309_v58 = vld [vmem:[#allocation2 + $0x4c] sm:$0xf] }
 0x162   : > { %v2500_v50 = vunpack.c.l.b16 %v2448_v46  ;;  %v3317_v60 = vunpack.c.l.b16 %v3258_v20  ;;  %v2956_v42 = vshll.u32 %v2844_v29, 16  ;;  %v2962_v4 = vshll.u32 %v5309_v58, 16 }
 0x163   : > { %v2945_v44 = vor.u32 %v2944_v56, %v2940_v23  ;;  %v2936_v53 = vrot.slane %v2935_v63, 4  ;;  %v2454_v56 = vrot.slane %v5092_v55, 5 }
 0x164   : > { %v1770_v34 = vpop.f32.mrf.mxu2  ;;  %v2512_v28 = vpack.c.b16 %v2500_v50, %v2499_v27  ;;  %v3264_v50 = vrot.slane %v5279_v13, 5  ;;  %v2958_v63 = vrot.slane %v2956_v42, 5 }
 0x165   : > { %v1806_v6 = vadd.f32 %v1770_v34, %v1543_v39  ;;  %v2946_v0 = vrot.slane %v2945_v44, 4  ;;  %v2941_v54 = vsel %vm4705_vm1, %v2936_v53, %v2940_v23 }
 0x166   : > { %v1547_v26 = vpop.f32.mrf.mxu1  ;;  %v3070_v27 = vunpack.c.l.b16 %v2941_v54 }
 0x167   : > { %v2338_v22 = vpop.f32.mrf.mxu0  ;;  %v1548_v7 = vadd.f32 %v1547_v26, %v5162_v49  ;;  %v2948_v49 = vshll.u32 %v5296_v3, 16  ;;  %v2953_v26 = vshrl.u32 %v2844_v29, 16 }
 0x168   : > { %v5298_v38 = vadd.f32 %v2338_v22, %v1998_v18  ;;  %v1963_v39 = vpop.f32.mrf.mxu3  ;;  %v3261_v18 = vsel %vm4946_vm7, %v3259_v37, %v3260_v9  ;;  %v2453_v22 = vrot.slane %v2451_v19, 4  ;;  %v2966_v37 = vshrl.u32 %v5309_v58, 16 }
 0x169   : > { %v1999_v8 = vadd.f32 %v1963_v39, %v1806_v6  ;;  %2785 = vmatmul.bf16.gmra.mxu2 %v4219_v5  ;;  %v2950_v15 = vrot.slane %v2948_v49, 5  ;;  %v3318_v21 = vunpack.c.l.b16 %v3261_v18  ;;  %v2955_v23 = vrot.slane %v2953_v26, 4  ;;  %v3212_v49 = vld [vmem:[#allocation2 + $0x3c] sm:$0xe] }
 0x16a   : > { %3406 = vmatmul.bf16.gmra.mxu0 %v3330_v41  ;;  %v2455_v20 = vsel %vm4946_vm7, %v2453_v22, %v2454_v56  ;;  %v2968_v53 = vrot.slane %v2966_v37, 4  ;;  %v2847_v56 = vld [vmem:[#allocation2 + $0x54] sm:$0xf] }
 0x16b   : > { %v2951_v17 = vsel %vm4705_vm1, %v2946_v0, %v2950_v15  ;;  %v3331_v39 = vpack.c.b16 %v3318_v21, %v3317_v60  ;;  %v2959_v0 = vor.u32 %v2958_v63, %v2955_v23  ;;  %v3266_v60 = vrot.slane %v3264_v50, 4 }
 0x16c   : > { %v1773_v12 = vpop.f32.mrf.mxu2  ;;  %v3071_v44 = vunpack.c.l.b16 %v2951_v17  ;;  %v3267_v21 = vrot.slane %v5296_v3, 5  ;;  %v2458_v3 = vrot.slane %v5103_v24, 5 }
 0x16d   : > { %3162 = vmatmul.bf16.gmra.mxu3 %v3082_v1  ;;  %v1807_v51 = vadd.f32 %v1773_v12, %v1546_v36  ;;  %v4220_v1 = vld [vmem:[#allocation2 + $0x3c] sm:$0xff]  ;;  %v2960_v42 = vrot.slane %v2959_v0, 4 }
 0x16e   : > { %v1550_v48 = vpop.f32.mrf.mxu1 }
 0x16f   : > { %v2340_v41 = vpop.f32.mrf.mxu0  ;;  %v1551_v34 = vadd.f32 %v1550_v48, %v5187_v45  ;;  %v3977_v45 = vrot.slane %v2393_v57, 9  ;;  %v4112_v48 = vrot.slane %v3212_v49, 9 }
 0x170   : > { %v5311_v6 = vadd.f32 %v2340_v41, %v1999_v8  ;;  %v1966_v5 = vpop.f32.mrf.mxu3  ;;  %v2502_v41 = vunpack.c.l.b16 %v2455_v20 }
 0x171   : > { %2596 = vmatmul.bf16.gmra.mxu1 %v2512_v28  ;;  %v2000_v46 = vadd.f32 %v1966_v5, %v1807_v51  ;;  %v2452_v55 = vsel %vm4946_vm7, %v3977_v45, %v2451_v19  ;;  %v2964_v28 = vrot.slane %v2962_v4, 5  ;;  %v5326_v51 = vld [vmem:[#allocation2 + $0x50] sm:$0x1]  ;;  %v3083_v19 = vpack.c.b16 %v3071_v44, %v3070_v27  ;;  %v5337_v27 = vld [vmem:[#allocation2 + $0x58] sm:$0xf] }
 0x172   : > { %v2501_v29 = vunpack.c.l.b16 %v2452_v55  ;;  %v3265_v5 = vsel %vm4946_vm7, %v4112_v48, %v3264_v50  ;;  %v2461_v55 = vrot.slane %v5127_v62, 5  ;;  %v2986_v20 = vshll.u32 %v5337_v27, 16 }
 0x173   : > { %v2969_v57 = vor.u32 %v2968_v53, %v2964_v28  ;;  %v3271_v53 = vrot.slane %v5309_v58, 5 }
 0x174   : > { %v1775_v9 = vpop.f32.mrf.mxu2  ;;  %v2513_v26 = vpack.c.b16 %v2502_v41, %v2501_v29 }
 0x175   : > { %v1808_v8 = vadd.f32 %v1775_v9, %v1548_v7  ;;  %v2970_v4 = vrot.slane %v2969_v57, 4  ;;  %v2394_v9 = vld [vmem:[#allocation2 + $0x48] sm:$0xe] }
 0x176   : > { %v1552_v36 = vpop.f32.mrf.mxu1  ;;  %v3978_v49 = vrot.slane %v2394_v9, 9 }
 0x177   : > { %v2343_v18 = vpop.f32.mrf.mxu0  ;;  %v1553_v12 = vadd.f32 %v1552_v36, %v5207_v43  ;;  %v2972_v43 = vshll.u32 %v5326_v51, 16  ;;  %v2460_v36 = vrot.slane %v2458_v3, 4 }
 0x178   : > { %v5328_v13 = vadd.f32 %v2343_v18, %v2000_v46  ;;  %v1968_v7 = vpop.f32.mrf.mxu3  ;;  %v3268_v46 = vsel %vm4946_vm7, %v3266_v60, %v3267_v21  ;;  %v2990_v18 = vshrl.u32 %v5337_v27, 16  ;;  %v2459_v62 = vsel %vm4946_vm7, %v3978_v49, %v2458_v3 }
 0x179   : > { %v2001_v15 = vadd.f32 %v1968_v7, %v1808_v8  ;;  %2790 = vmatmul.bf16.gmra.mxu2 %v4220_v1  ;;  %v2974_v37 = vrot.slane %v2972_v43, 5  ;;  %v3320_v23 = vunpack.c.l.b16 %v3268_v46  ;;  %v2965_v8 = vsel %vm4705_vm1, %v2960_v42, %v2964_v28  ;;  %v3213_v28 = vld [vmem:[#allocation2 + $0x48] sm:$0xe]  ;;  %v5353_v42 = vld [vmem:[#allocation2 + $0x5c] sm:$0x1] }
 0x17a   : > { %3411 = vmatmul.bf16.gmra.mxu0 %v3331_v39  ;;  %v3319_v39 = vunpack.c.l.b16 %v3265_v5  ;;  %v2980_v1 = vshll.u32 %v2847_v56, 16  ;;  %v3072_v29 = vunpack.c.l.b16 %v2965_v8  ;;  %v2462_v57 = vsel %vm4946_vm7, %v2460_v36, %v2461_v55  ;;  %v5364_v55 = vld [vmem:[#allocation2 + $0x64] sm:$0xf] }
 0x17b   : > { %v2975_v24 = vsel %vm4705_vm1, %v2970_v4, %v2974_v37  ;;  %v2988_v5 = vrot.slane %v2986_v20, 5  ;;  %v4113_v58 = vrot.slane %v3213_v28, 9  ;;  %v2996_v9 = vshll.u32 %v5353_v42, 16 }
 0x17c   : > { %v1778_v54 = vpop.f32.mrf.mxu2  ;;  %v3332_v7 = vpack.c.b16 %v3320_v23, %v3319_v39  ;;  %v2982_v0 = vrot.slane %v2980_v1, 5  ;;  %v3073_v60 = vunpack.c.l.b16 %v2975_v24 }
 0x17d   : > { %3167 = vmatmul.bf16.gmra.mxu3 %v3083_v19  ;;  %v1809_v45 = vadd.f32 %v1778_v54, %v1551_v34  ;;  %v2977_v34 = vshrl.u32 %v2847_v56, 16  ;;  %v4221_v19 = vld [vmem:[#allocation2 + $0x48] sm:$0xff]  ;;  %v2992_v54 = vrot.slane %v2990_v18, 4  ;;  %v2503_v56 = vunpack.c.l.b16 %v2459_v62 }
 0x17e   : > { %v1555_v22 = vpop.f32.mrf.mxu1  ;;  %v3084_v3 = vpack.c.b16 %v3073_v60, %v3072_v29 }
 0x17f   : > { %v2345_v17 = vpop.f32.mrf.mxu0  ;;  %v2979_v41 = vrot.slane %v2977_v34, 4  ;;  %v2993_v39 = vor.u32 %v2992_v54, %v2988_v5  ;;  %v1556_v23 = vadd.f32 %v1555_v22, %v5168_v16  ;;  %v2465_v16 = vrot.slane %v5136_v35, 5 }
 0x180   : > { %v5339_v50 = vadd.f32 %v2345_v17, %v2001_v15  ;;  %v1971_v63 = vpop.f32.mrf.mxu3  ;;  %v2504_v17 = vunpack.c.l.b16 %v2462_v57  ;;  %v2468_v35 = vrot.slane %v5159_v61, 5 }
 0x181   : > { %2601 = vmatmul.bf16.gmra.mxu1 %v2513_v26  ;;  %v2002_v44 = vadd.f32 %v1971_v63, %v1809_v45  ;;  %v3273_v26 = vrot.slane %v3271_v53, 4  ;;  %v2983_v4 = vor.u32 %v2982_v0, %v2979_v41  ;;  %v3272_v63 = vsel %vm4946_vm7, %v4113_v58, %v3271_v53  ;;  %v2395_v53 = vld [vmem:[#allocation2 + $0x54] sm:$0xe] }
 0x182   : > { %v3321_v20 = vunpack.c.l.b16 %v3272_v63  ;;  %v2994_v18 = vrot.slane %v2993_v39, 4  ;;  %v3979_v62 = vrot.slane %v2395_v53, 9  ;;  %v2467_v57 = vrot.slane %v2465_v16, 4  ;;  %v4222_v39 = vld [vmem:[#allocation2 + $0x54] sm:$0xff] }
 0x183   : > { %v2984_v1 = vrot.slane %v2983_v4, 4 }
 0x184   : > { %v1780_v48 = vpop.f32.mrf.mxu2  ;;  %v2466_v61 = vsel %vm4946_vm7, %v3979_v62, %v2465_v16  ;;  %v2469_v63 = vsel %vm4946_vm7, %v2467_v57, %v2468_v35  ;;  %v3281_v16 = vrot.slane %v5353_v42, 5  ;;  %v2472_v35 = vrot.slane %v5170_v52, 5  ;;  %v2396_v42 = vld [vmem:[#allocation2 + $0x60] sm:$0xe] }
 0x185   : > { %v1810_v15 = vadd.f32 %v1780_v48, %v1553_v12  ;;  %v3274_v12 = vrot.slane %v5326_v51, 5  ;;  %v2514_v51 = vpack.c.b16 %v2504_v17, %v2503_v56  ;;  %v2989_v0 = vsel %vm4705_vm1, %v2984_v1, %v2988_v5  ;;  %v3214_v5 = vld [vmem:[#allocation2 + $0x54] sm:$0xe] }
 0x186   : > { %v1557_v21 = vpop.f32.mrf.mxu1  ;;  %v3074_v56 = vunpack.c.l.b16 %v2989_v0  ;;  %v3278_v17 = vrot.slane %v5337_v27, 5  ;;  %v2505_v1 = vunpack.c.l.b16 %v2466_v61  ;;  %v2475_v52 = vrot.slane %v5200_v31, 5 }
 0x187   : > { %v2348_v43 = vpop.f32.mrf.mxu0  ;;  %v3275_v8 = vsel %vm4946_vm7, %v3273_v26, %v3274_v12  ;;  %v1558_v58 = vadd.f32 %v1557_v21, %v5202_v11  ;;  %v5382_v11 = vld [vmem:[#allocation2 + $0x68] sm:$0x1] }
 0x188   : > { %v5355_v46 = vadd.f32 %v2348_v43, %v2002_v44  ;;  %v1973_v45 = vpop.f32.mrf.mxu3  ;;  %v2850_v44 = vld [vmem:[#allocation2 + $0x60] sm:$0xf]  ;;  %v3322_v22 = vunpack.c.l.b16 %v3275_v8  ;;  %v4114_v8 = vrot.slane %v3214_v5, 9  ;;  %v3980_v5 = vrot.slane %v2396_v42, 9 }
 0x189   : > { %v2003_v37 = vadd.f32 %v1973_v45, %v1810_v15  ;;  %2795 = vmatmul.bf16.gmra.mxu2 %v4221_v19  ;;  %v3001_v48 = vshrl.u32 %v2850_v44, 16  ;;  %v3004_v29 = vshll.u32 %v2850_v44, 16  ;;  %v3010_v15 = vshll.u32 %v5364_v55, 16 }
 0x18a   : > { %3416 = vmatmul.bf16.gmra.mxu0 %v3332_v7  ;;  %v2998_v7 = vrot.slane %v2996_v9, 5  ;;  %v3014_v19 = vshrl.u32 %v5364_v55, 16  ;;  %v3333_v54 = vpack.c.b16 %v3322_v22, %v3321_v20  ;;  %v2506_v44 = vunpack.c.l.b16 %v2469_v63 }
 0x18b   : > { %v3003_v26 = vrot.slane %v3001_v48, 4  ;;  %v3006_v45 = vrot.slane %v3004_v29, 5  ;;  %v3012_v4 = vrot.slane %v3010_v15, 5  ;;  %v3279_v15 = vsel %vm4946_vm7, %v4114_v8, %v3278_v17 }
 0x18c   : > { %v1783_v34 = vpop.f32.mrf.mxu2  ;;  %v2999_v43 = vsel %vm4705_vm1, %v2994_v18, %v2998_v7  ;;  %v3280_v7 = vrot.slane %v3278_v17, 4  ;;  %v2515_v48 = vpack.c.b16 %v2506_v44, %v2505_v1  ;;  %v2474_v17 = vrot.slane %v2472_v35, 4 }
 0x18d   : > { %3172 = vmatmul.bf16.gmra.mxu3 %v3084_v3  ;;  %v1811_v49 = vadd.f32 %v1783_v34, %v1556_v23  ;;  %v3075_v9 = vunpack.c.l.b16 %v2999_v43  ;;  %v3007_v34 = vor.u32 %v3006_v45, %v3003_v26  ;;  %v2853_v43 = vld [vmem:[#allocation2 + $0x6c] sm:$0xf]  ;;  %v2473_v31 = vsel %vm4946_vm7, %v3980_v5, %v2472_v35 }
 0x18e   : > { %v1560_v36 = vpop.f32.mrf.mxu1 }
 0x18f   : > { %v2350_v24 = vpop.f32.mrf.mxu0  ;;  %v3085_v18 = vpack.c.b16 %v3075_v9, %v3074_v56  ;;  %v1561_v22 = vadd.f32 %v1560_v36, %v5218_v30  ;;  %v3008_v29 = vrot.slane %v3007_v34, 4  ;;  %v5394_v30 = vld [vmem:[#allocation2 + $0x70] sm:$0xf] }
 0x190   : > { %v5367_v28 = vadd.f32 %v2350_v24, %v2003_v37  ;;  %v1976_v41 = vpop.f32.mrf.mxu3  ;;  %v3016_v37 = vrot.slane %v3014_v19, 4  ;;  %v3020_v24 = vshll.u32 %v5382_v11, 16  ;;  %v3282_v19 = vsel %vm4946_vm7, %v3280_v7, %v3281_v16  ;;  %v5411_v16 = vld [vmem:[#allocation2 + $0x74] sm:$0x1] }
 0x191   : > { %2606 = vmatmul.bf16.gmra.mxu1 %v2514_v51  ;;  %v2004_v60 = vadd.f32 %v1976_v41, %v1811_v49  ;;  %v3013_v45 = vsel %vm4705_vm1, %v3008_v29, %v3012_v4  ;;  %v3038_v9 = vshrl.u32 %v5394_v30, 16  ;;  %v3044_v35 = vshll.u32 %v5411_v16, 16 }
 0x192   : > { %v3017_v49 = vor.u32 %v3016_v37, %v3012_v4  ;;  %v3022_v0 = vrot.slane %v3020_v24, 5  ;;  %v3025_v37 = vshrl.u32 %v2853_v43, 16  ;;  %v3076_v8 = vunpack.c.l.b16 %v3013_v45 }
 0x193   : > { %v3285_v4 = vrot.slane %v5364_v55, 5 }
 0x194   : > { %v1785_v12 = vpop.f32.mrf.mxu2  ;;  %v3018_v41 = vrot.slane %v3017_v49, 4  ;;  %v2476_v49 = vsel %vm4946_vm7, %v2474_v17, %v2475_v52  ;;  %v3046_v17 = vrot.slane %v3044_v35, 5 }
 0x195   : > { %v1812_v3 = vadd.f32 %v1785_v12, %v1558_v58  ;;  %v3324_v58 = vunpack.c.l.b16 %v3282_v19  ;;  %v3288_v19 = vrot.slane %v5382_v11, 5 }
 0x196   : > { %v1562_v23 = vpop.f32.mrf.mxu1  ;;  %v3023_v12 = vsel %vm4705_vm1, %v3018_v41, %v3022_v0 }
 0x197   : > { %v2353_v21 = vpop.f32.mrf.mxu0  ;;  %v1563_v61 = vadd.f32 %v1562_v23, %v5237_v33  ;;  %v3077_v1 = vunpack.c.l.b16 %v3023_v12  ;;  %v3040_v23 = vrot.slane %v3038_v9, 4 }
 0x198   : > { %v5384_v51 = vadd.f32 %v2353_v21, %v2004_v60  ;;  %v1978_v27 = vpop.f32.mrf.mxu3 }
 0x199   : > { %v2005_v20 = vadd.f32 %v1978_v27, %v1812_v3  ;;  %2800 = vmatmul.bf16.gmra.mxu2 %v4222_v39  ;;  %v3028_v3 = vshll.u32 %v2853_v43, 16  ;;  %v3034_v39 = vshll.u32 %v5394_v30, 16  ;;  %v4223_v27 = vld [vmem:[#allocation2 + $0x60] sm:$0xff]  ;;  %v3086_v41 = vpack.c.b16 %v3077_v1, %v3076_v8 }
 0x19a   : > { %3421 = vmatmul.bf16.gmra.mxu0 %v3333_v54  ;;  %v3323_v54 = vunpack.c.l.b16 %v3279_v15  ;;  %v3287_v15 = vrot.slane %v3285_v4, 4 }
 0x19b   : > { %v3030_v7 = vrot.slane %v3028_v3, 5  ;;  %v3036_v33 = vrot.slane %v3034_v39, 5 }
 0x19c   : > { %v1788_v53 = vpop.f32.mrf.mxu2  ;;  %v3334_v63 = vpack.c.b16 %v3324_v58, %v3323_v54 }
 0x19d   : > { %3177 = vmatmul.bf16.gmra.mxu3 %v3085_v18  ;;  %v1813_v60 = vadd.f32 %v1788_v53, %v1561_v22  ;;  %v3027_v18 = vrot.slane %v3025_v37, 4  ;;  %v2507_v53 = vunpack.c.l.b16 %v2473_v31 }
 0x19e   : > { %v1565_v62 = vpop.f32.mrf.mxu1 }
 0x19f   : > { %v2355_v57 = vpop.f32.mrf.mxu0  ;;  %v1566_v42 = vadd.f32 %v1565_v62, %v5183_v40 }
 0x1a0   : > { %v5396_v36 = vadd.f32 %v2355_v57, %v2005_v20  ;;  %v1981_v26 = vpop.f32.mrf.mxu3  ;;  %v3215_v20 = vld [vmem:[#allocation2 + $0x60] sm:$0xe]  ;;  %v3041_v57 = vor.u32 %v3040_v23, %v3036_v33 }
 0x1a1   : > { %2611 = vmatmul.bf16.gmra.mxu1 %v2515_v48  ;;  %v2006_v56 = vadd.f32 %v1981_v26, %v1813_v60  ;;  %v2508_v48 = vunpack.c.l.b16 %v2476_v49  ;;  %v4115_v0 = vrot.slane %v3215_v20, 9  ;;  %v3031_v60 = vor.u32 %v3030_v7, %v3027_v18 }
 0x1a2   : > { %v3042_v11 = vrot.slane %v3041_v57, 4  ;;  %v3292_v49 = vrot.slane %v5394_v30, 5 }
 0x1a3   : > { %v2516_v54 = vpack.c.b16 %v2508_v48, %v2507_v53  ;;  %v3286_v58 = vsel %vm4946_vm7, %v4115_v0, %v3285_v4  ;;  %v3032_v5 = vrot.slane %v3031_v60, 4  ;;  %v4224_v4 = vld [vmem:[#allocation2 + $0x6c] sm:$0xff] }
 0x1a4   : > { %v1790_v21 = vpop.f32.mrf.mxu2  ;;  %v3325_v40 = vunpack.c.l.b16 %v3286_v58  ;;  %v3047_v9 = vsel %vm4705_vm1, %v3042_v11, %v3046_v17 }
 0x1a5   : > { %v1814_v34 = vadd.f32 %v1790_v21, %v1563_v61  ;;  %v3037_v39 = vsel %vm4705_vm1, %v3032_v5, %v3036_v33 }
 0x1a6   : > { %v1567_v44 = vpop.f32.mrf.mxu1 }
 0x1a7   : > { %v2358_v24 = vpop.f32.mrf.mxu0  ;;  %v1568_v61 = vadd.f32 %v1567_v44, %v5213_v32  ;;  %v3294_v32 = vrot.slane %v3292_v49, 4  ;;  %v3295_v44 = vrot.slane %v5411_v16, 5 }
 0x1a8   : > { %v5413_v22 = vadd.f32 %v2358_v24, %v2006_v56  ;;  %v1983_v55 = vpop.f32.mrf.mxu3  ;;  %v3289_v56 = vsel %vm4946_vm7, %v3287_v15, %v3288_v19  ;;  %v3216_v24 = vld [vmem:[#allocation2 + $0x6c] sm:$0xe] }
 0x1a9   : > { %v2007_v29 = vadd.f32 %v1983_v55, %v1814_v34  ;;  %2805 = vmatmul.bf16.gmra.mxu2 %v4223_v27  ;;  %v3326_v62 = vunpack.c.l.b16 %v3289_v56  ;;  %v3078_v34 = vunpack.c.l.b16 %v3037_v39  ;;  %v3079_v27 = vunpack.c.l.b16 %v3047_v9 }
 0x1aa   : > { %3426 = vmatmul.bf16.gmra.mxu0 %v3334_v63  ;;  %v4116_v33 = vrot.slane %v3216_v24, 9  ;;  %v5470_v24 = vld [vmem:[%s4523_s17 + $0x48] sm:$0xff] }
 0x1ab   : > { %v3335_v21 = vpack.c.b16 %v3326_v62, %v3325_v40  ;;  %v3087_v25 = vpack.c.b16 %v3079_v27, %v3078_v34  ;;  %v3481_v34 = vld [vmem:[%s4523_s17 + $0x18] sm:$0xff]  ;;  %v3482_v27 = vld [vmem:[%s4523_s17 + $0x20] sm:$0xff] }
 0x1ac   : > { %v1793_v43 = vpop.f32.mrf.mxu2  ;;  %v3293_v30 = vsel %vm4946_vm7, %v4116_v33, %v3292_v49  ;;  %v5467_v49 = vld [vmem:[%s4523_s17 + $0x40] sm:$0xff] }
 0x1ad   : > { %3182 = vmatmul.bf16.gmra.mxu3 %v3086_v41  ;;  %v1815_v26 = vadd.f32 %v1793_v43, %v1566_v42  ;;  %v3296_v41 = vsel %vm4946_vm7, %v3294_v32, %v3295_v44  ;;  %v3327_v19 = vunpack.c.l.b16 %v3293_v30  ;;  %v5480_v33 = vld [vmem:[%s4523_s17 + $0x60] sm:$0xff]  ;;  %v5483_v32 = vld [vmem:[%s4523_s17 + $0x68] sm:$0xff]  ;;  %v5486_v44 = vld [vmem:[%s4523_s17 + $0x70] sm:$0xff] }
 0x1ae   : > { %v1570_v45 = vpop.f32.mrf.mxu1  ;;  %v3328_v60 = vunpack.c.l.b16 %v3296_v41 }
 0x1af   : > { %v2360_v12 = vpop.f32.mrf.mxu0  ;;  %v1571_v23 = vadd.f32 %v1570_v45, %v5227_v14 }
 0x1b0   : > { %v5422_v52 = vadd.f32 %v2360_v12, %v2007_v29  ;;  %v1986_v37 = vpop.f32.mrf.mxu3  ;;  %v3336_v35 = vpack.c.b16 %v3328_v60, %v3327_v19 }
 0x1b1   : > { %2616 = vmatmul.bf16.gmra.mxu1 %v2516_v54  ;;  %v2008_v3 = vadd.f32 %v1986_v37, %v1815_v26 }
 0x1b4   : > { %v1795_v63 = vpop.f32.mrf.mxu2 }
 0x1b5   : > { %v1816_v8 = vadd.f32 %v1795_v63, %v1568_v61  ;;  %v3478_v61 = vld [vmem:[%s4523_s17] sm:$0xff] }
 0x1b6   : > { %v1572_v1 = vpop.f32.mrf.mxu1 }
 0x1b7   : > { %v2363_v31 = vpop.f32.mrf.mxu0  ;;  %v1573_v16 = vadd.f32 %v1572_v1, %v5245_v2  ;;  %v5458_v1 = vld [vmem:[%s4523_s17 + $0x28] sm:$0xff] }
 0x1b8   : > { %v5430_v20 = vadd.f32 %v2363_v31, %v2008_v3  ;;  %v1988_v18 = vpop.f32.mrf.mxu3  ;;  %v5461_v31 = vld [vmem:[%s4523_s17 + $0x30] sm:$0xff] }
 0x1b9   : > { %v2009_v7 = vadd.f32 %v1988_v18, %v1816_v8  ;;  %2810 = vmatmul.bf16.gmra.mxu2 %v4224_v4  ;;  %v3479_v8 = vld [vmem:[%s4523_s17 + $0x8] sm:$0xff]  ;;  %v3480_v4 = vld [vmem:[%s4523_s17 + $0x10] sm:$0xff] }
 0x1ba   : > { %3431 = vmatmul.bf16.gmra.mxu0 %v3335_v21 }
 0x1bc   : > { %v1798_v55 = vpop.f32.mrf.mxu2 }
 0x1bd   : > { %3187 = vmatmul.bf16.gmra.mxu3 %v3087_v25  ;;  %v1817_v53 = vadd.f32 %v1798_v55, %v1571_v23  ;;  %v5477_v25 = vld [vmem:[%s4523_s17 + $0x58] sm:$0xff] }
 0x1be   : > { %v2582_v48 = vpop.f32.mrf.mxu1  ;;  %v5489_v23 = vld [vmem:[%s4523_s17 + $0x78] sm:$0xff] }
 0x1bf   : > { %v2365_v29 = vpop.f32.mrf.mxu0  ;;  %v2622_v12 = vadd.f32 %v2582_v48, %v5270_v59  ;;  %v5449_v59 = vld [vmem:[%s5568_s6] ss:$0 sm:$0xff] }
 0x1c0   : > { %v5438_v0 = vadd.f32 %v2365_v29, %v2009_v7  ;;  %v1991_v15 = vpop.f32.mrf.mxu3  ;;  %v5474_v7 = vld [vmem:[%s4523_s17 + $0x50] sm:$0xff] }
 0x1c1   : > { %v2010_v57 = vadd.f32 %v1991_v15, %v1817_v53 }
 0x1c4   : > { %v1800_v14 = vpop.f32.mrf.mxu2 }
 0x1c5   : > { %v1818_v42 = vadd.f32 %v1800_v14, %v1573_v16 }
 0x1c6   : > { %v2584_v43 = vpop.f32.mrf.mxu1 }
 0x1c7   : > { %v2368_v54 = vpop.f32.mrf.mxu0  ;;  %v2623_v62 = vadd.f32 %v2584_v43, %v5281_v10  ;;  %v5464_v10 = vld [vmem:[%s4523_s17 + $0x38] sm:$0xff] }
 0x1c8   : > { %v5441_v58 = vadd.f32 %v2368_v54, %v2010_v57  ;;  %v1993_v26 = vpop.f32.mrf.mxu3 }
 0x1c9   : > { %v2011_v47 = vadd.f32 %v1993_v26, %v1818_v42 }
 0x1ca   : > { %3436 = vmatmul.bf16.gmra.mxu0 %v3336_v35 }
 0x1cc   : > { %v2776_v45 = vpop.f32.mrf.mxu2 }
 0x1cd   : > { %v2816_v2 = vadd.f32 %v2776_v45, %v2622_v12 }
 0x1ce   : > { %v2587_v56 = vpop.f32.mrf.mxu1 }
 0x1cf   : > { %v2370_v5 = vpop.f32.mrf.mxu0  ;;  %v2624_v29 = vadd.f32 %v2587_v56, %v5298_v38 }
 0x1d0   : > { %v5444_v11 = vadd.f32 %v2370_v5, %v2011_v47  ;;  %v3153_v17 = vpop.f32.mrf.mxu3 }
 0x1d1   : > { %v3193_v37 = vadd.f32 %v3153_v17, %v2816_v2 }
 0x1d4   : > { %v2778_v40 = vpop.f32.mrf.mxu2 }
 0x1d5   : > { %v2817_v63 = vadd.f32 %v2778_v40, %v2623_v62 }
 0x1d6   : > { %v2589_v3 = vpop.f32.mrf.mxu1 }
 0x1d7   : > { %v3402_v39 = vpop.f32.mrf.mxu0  ;;  %v2625_v42 = vadd.f32 %v2589_v3, %v5311_v6 }
 0x1d8   : > { %v3442_v9 = vadd.f32 %v3402_v39, %v3193_v37  ;;  %v3155_v21 = vpop.f32.mrf.mxu3 }
 0x1d9   : > { %v3194_v53 = vadd.f32 %v3155_v21, %v2817_v63 }
 0x1da   : > { %v3462_v18 = vadd.f32 %v5449_v59, %v3442_v9 }
 0x1dc   : > { %v3494_v55 = vadd.f32 %v3478_v61, %v3462_v18  ;;  %v2781_v48 = vpop.f32.mrf.mxu2 }
 0x1dd   : > { %v2818_v19 = vadd.f32 %v2781_v48, %v2624_v29 }
 0x1de   : > { %v2592_v30 = vpop.f32.mrf.mxu1  ;;  %3510 = vst [vmem:[%s4555_s29] sm:$0xff] %v3494_v55 }
 0x1df   : > { %v3404_v41 = vpop.f32.mrf.mxu0  ;;  %v2626_v2 = vadd.f32 %v2592_v30, %v5328_v13 }
 0x1e0   : > { %v3443_v15 = vadd.f32 %v3404_v41, %v3194_v53  ;;  %v3158_v60 = vpop.f32.mrf.mxu3 }
 0x1e1   : > { %v3195_v14 = vadd.f32 %v3158_v60, %v2818_v19 }
 0x1e2   : > { %v3463_v57 = vadd.f32 %v5449_v59, %v3443_v15 }
 0x1e4   : > { %v3495_v16 = vadd.f32 %v3479_v8, %v3463_v57  ;;  %v2783_v35 = vpop.f32.mrf.mxu2 }
 0x1e5   : > { %v2819_v47 = vadd.f32 %v2783_v35, %v2625_v42 }
 0x1e6   : > { %v2594_v43 = vpop.f32.mrf.mxu1  ;;  %3511 = vst [vmem:[%s4555_s29 + $0x8] sm:$0xff] %v3495_v16 }
 0x1e7   : > { %v3407_v54 = vpop.f32.mrf.mxu0  ;;  %v2627_v63 = vadd.f32 %v2594_v43, %v5339_v50 }
 0x1e8   : > { %v3444_v26 = vadd.f32 %v3407_v54, %v3195_v14  ;;  %v3160_v38 = vpop.f32.mrf.mxu3 }
 0x1e9   : > { %v3196_v56 = vadd.f32 %v3160_v38, %v2819_v47 }
 0x1ea   : > { %v3464_v45 = vadd.f32 %v5449_v59, %v3444_v26 }
 0x1ec   : > { %v3496_v12 = vadd.f32 %v3480_v4, %v3464_v45  ;;  %v2786_v5 = vpop.f32.mrf.mxu2 }
 0x1ed   : > { %v2820_v62 = vadd.f32 %v2786_v5, %v2626_v2 }
 0x1ee   : > { %v2597_v17 = vpop.f32.mrf.mxu1  ;;  %3512 = vst [vmem:[%s4555_s29 + $0x10] sm:$0xff] %v3496_v12 }
 0x1ef   : > { %v3409_v37 = vpop.f32.mrf.mxu0  ;;  %v2628_v30 = vadd.f32 %v2597_v17, %v5355_v46 }
 0x1f0   : > { %v3445_v40 = vadd.f32 %v3409_v37, %v3196_v56  ;;  %v3163_v6 = vpop.f32.mrf.mxu3 }
 0x1f1   : > { %v3197_v9 = vadd.f32 %v3163_v6, %v2820_v62 }
 0x1f2   : > { %v3465_v3 = vadd.f32 %v5449_v59, %v3445_v40 }
 0x1f4   : > { %v3497_v39 = vadd.f32 %v3481_v34, %v3465_v3  ;;  %v2788_v61 = vpop.f32.mrf.mxu2 }
 0x1f5   : > { %v2821_v18 = vadd.f32 %v2788_v61, %v2627_v63 }
 0x1f6   : > { %v2599_v21 = vpop.f32.mrf.mxu1  ;;  %3513 = vst [vmem:[%s4555_s29 + $0x18] sm:$0xff] %v3497_v39 }
 0x1f7   : > { %v3412_v8 = vpop.f32.mrf.mxu0  ;;  %v2629_v35 = vadd.f32 %v2599_v21, %v5367_v28 }
 0x1f8   : > { %v3446_v4 = vadd.f32 %v3412_v8, %v3197_v9  ;;  %v3165_v13 = vpop.f32.mrf.mxu3 }
 0x1f9   : > { %v3198_v48 = vadd.f32 %v3165_v13, %v2821_v18 }
 0x1fa   : > { %v3466_v55 = vadd.f32 %v5449_v59, %v3446_v4 }
 0x1fc   : > { %v3498_v53 = vadd.f32 %v3482_v27, %v3466_v55  ;;  %v2791_v29 = vpop.f32.mrf.mxu2 }
 0x1fd   : > { %v2822_v19 = vadd.f32 %v2791_v29, %v2628_v30 }
 0x1fe   : > { %v2602_v34 = vpop.f32.mrf.mxu1  ;;  %3514 = vst [vmem:[%s4555_s29 + $0x20] sm:$0xff] %v3498_v53 }
 0x1ff   : > { %v3414_v41 = vpop.f32.mrf.mxu0  ;;  %v2630_v12 = vadd.f32 %v2602_v34, %v5384_v51 }
 0x200   : > { %v3447_v15 = vadd.f32 %v3414_v41, %v3198_v48  ;;  %v3168_v50 = vpop.f32.mrf.mxu3 }
 0x201   : > { %v3199_v16 = vadd.f32 %v3168_v50, %v2822_v19 }
 0x202   : > { %v3467_v60 = vadd.f32 %v5449_v59, %v3447_v15 }
 0x204   : > { %v3499_v57 = vadd.f32 %v5458_v1, %v3467_v60  ;;  %v2793_v14 = vpop.f32.mrf.mxu2 }
 0x205   : > { %v2823_v46 = vadd.f32 %v2793_v14, %v2629_v35 }
 0x206   : > { %3515 = vst [vmem:[%s4555_s29 + $0x28] sm:$0xff] %v3499_v57  ;;  %v2604_v42 = vpop.f32.mrf.mxu1 }
 0x207   : > { %v3417_v27 = vpop.f32.mrf.mxu0  ;;  %v2631_v6 = vadd.f32 %v2604_v42, %v5396_v36 }
 0x208   : > { %v3448_v43 = vadd.f32 %v3417_v27, %v3199_v16  ;;  %v3170_v54 = vpop.f32.mrf.mxu3 }
 0x209   : > { %v3200_v38 = vadd.f32 %v3170_v54, %v2823_v46 }
 0x20a   : > { %v3468_v26 = vadd.f32 %v5449_v59, %v3448_v43 }
 0x20c   : > { %v3500_v47 = vadd.f32 %v5461_v31, %v3468_v26  ;;  %v2796_v45 = vpop.f32.mrf.mxu2 }
 0x20d   : > { %v2824_v5 = vadd.f32 %v2796_v45, %v2630_v12 }
 0x20e   : > { %3516 = vst [vmem:[%s4555_s29 + $0x30] sm:$0xff] %v3500_v47  ;;  %v2607_v2 = vpop.f32.mrf.mxu1 }
 0x20f   : > { %v3419_v1 = vpop.f32.mrf.mxu0  ;;  %v2632_v4 = vadd.f32 %v2607_v2, %v5413_v22 }
 0x210   : > { %v3449_v56 = vadd.f32 %v3419_v1, %v3200_v38  ;;  %v3173_v28 = vpop.f32.mrf.mxu3 }
 0x211   : > { %v3201_v40 = vadd.f32 %v3173_v28, %v2824_v5 }
 0x212   : > { %v3469_v17 = vadd.f32 %v5449_v59, %v3449_v56 }
 0x214   : > { %v3501_v37 = vadd.f32 %v5464_v10, %v3469_v17  ;;  %v2798_v62 = vpop.f32.mrf.mxu2 }
 0x215   : > { %v2825_v39 = vadd.f32 %v2798_v62, %v2631_v6 }
 0x216   : > { %3517 = vst [vmem:[%s4555_s29 + $0x38] sm:$0xff] %v3501_v37  ;;  %v2609_v61 = vpop.f32.mrf.mxu1 }
 0x217   : > { %v3422_v31 = vpop.f32.mrf.mxu0  ;;  %v2633_v34 = vadd.f32 %v2609_v61, %v5422_v52 }
 0x218   : > { %v3450_v3 = vadd.f32 %v3422_v31, %v3201_v40  ;;  %v3175_v51 = vpop.f32.mrf.mxu3 }
 0x219   : > { %v3202_v21 = vadd.f32 %v3175_v51, %v2825_v39 }
 0x21a   : > { %v3470_v9 = vadd.f32 %v5449_v59, %v3450_v3 }
 0x21c   : > { %v3502_v63 = vadd.f32 %v5467_v49, %v3470_v9  ;;  %v2801_v8 = vpop.f32.mrf.mxu2 }
 0x21d   : > { %v2826_v13 = vadd.f32 %v2801_v8, %v2632_v4 }
 0x21e   : > { %3518 = vst [vmem:[%s4555_s29 + $0x40] sm:$0xff] %v3502_v63  ;;  %v2612_v30 = vpop.f32.mrf.mxu1 }
 0x21f   : > { %v3424_v10 = vpop.f32.mrf.mxu0  ;;  %v2634_v16 = vadd.f32 %v2612_v30, %v5430_v20 }
 0x220   : > { %v3451_v18 = vadd.f32 %v3424_v10, %v3202_v21  ;;  %v3178_v36 = vpop.f32.mrf.mxu3 }
 0x221   : > { %v3203_v48 = vadd.f32 %v3178_v36, %v2826_v13 }
 0x222   : > { %v3471_v55 = vadd.f32 %v5449_v59, %v3451_v18 }
 0x224   : > { %v3503_v53 = vadd.f32 %v5470_v24, %v3471_v55  ;;  %v2803_v29 = vpop.f32.mrf.mxu2 }
 0x225   : > { %v2827_v15 = vadd.f32 %v2803_v29, %v2633_v34 }
 0x226   : > { %3519 = vst [vmem:[%s4555_s29 + $0x48] sm:$0xff] %v3503_v53  ;;  %v2614_v14 = vpop.f32.mrf.mxu1 }
 0x227   : > { %v3427_v49 = vpop.f32.mrf.mxu0  ;;  %v2635_v26 = vadd.f32 %v2614_v14, %v5438_v0 }
 0x228   : > { %v3452_v41 = vadd.f32 %v3427_v49, %v3203_v48  ;;  %v3180_v22 = vpop.f32.mrf.mxu3 }
 0x229   : > { %v3204_v60 = vadd.f32 %v3180_v22, %v2827_v15 }
 0x22a   : > { %v3472_v19 = vadd.f32 %v5449_v59, %v3452_v41 }
 0x22c   : > { %v3504_v50 = vadd.f32 %v5474_v7, %v3472_v19  ;;  %v2806_v57 = vpop.f32.mrf.mxu2 }
 0x22d   : > { %v2828_v27 = vadd.f32 %v2806_v57, %v2634_v16 }
 0x22e   : > { %3520 = vst [vmem:[%s4555_s29 + $0x50] sm:$0xff] %v3504_v50  ;;  %v2617_v45 = vpop.f32.mrf.mxu1 }
 0x22f   : > { %v3429_v24 = vpop.f32.mrf.mxu0  ;;  %v2636_v28 = vadd.f32 %v2617_v45, %v5441_v58 }
 0x230   : > { %v3453_v35 = vadd.f32 %v3429_v24, %v3204_v60  ;;  %v3183_v52 = vpop.f32.mrf.mxu3 }
 0x231   : > { %v3205_v46 = vadd.f32 %v3183_v52, %v2828_v27 }
 0x232   : > { %v3473_v42 = vadd.f32 %v5449_v59, %v3453_v35 }
 0x234   : > { %v3505_v43 = vadd.f32 %v5477_v25, %v3473_v42  ;;  %v2808_v54 = vpop.f32.mrf.mxu2 }
 0x235   : > { %v2829_v38 = vadd.f32 %v2808_v54, %v2635_v26 }
 0x236   : > { %3521 = vst [vmem:[%s4555_s29 + $0x58] sm:$0xff] %v3505_v43  ;;  %v2619_v40 = vpop.f32.mrf.mxu1 }
 0x237   : > { %v3432_v7 = vpop.f32.mrf.mxu0 }
 0x238   : > { %v3454_v47 = vadd.f32 %v3432_v7, %v3205_v46  ;;  %v3185_v20 = vpop.f32.mrf.mxu3 }
 0x239   : > { %v3206_v56 = vadd.f32 %v3185_v20, %v2829_v38 }
 0x23a   : > { %v3474_v12 = vadd.f32 %v5449_v59, %v3454_v47 }
 0x23c   : > { %v3506_v1 = vadd.f32 %v5480_v33, %v3474_v12  ;;  %v2811_v5 = vpop.f32.mrf.mxu2  ;;  %v2637_v33 = vadd.f32 %v2619_v40, %v5444_v11 }
 0x23d   : > { %v2830_v17 = vadd.f32 %v2811_v5, %v2636_v28 }
 0x23e   : > { %3522 = vst [vmem:[%s4555_s29 + $0x60] sm:$0xff] %v3506_v1 }
 0x23f   : > { %v3434_v25 = vpop.f32.mrf.mxu0 }
 0x240   : > { %v3455_v2 = vadd.f32 %v3434_v25, %v3206_v56  ;;  %v3188_v0 = vpop.f32.mrf.mxu3 }
 0x241   : > { %v3207_v6 = vadd.f32 %v3188_v0, %v2830_v17 }
 0x242   : > { %v3475_v37 = vadd.f32 %v5449_v59, %v3455_v2 }
 0x244   : > { %v3507_v62 = vadd.f32 %v5483_v32, %v3475_v37  ;;  %v2813_v31 = vpop.f32.mrf.mxu2 }
 0x245   : > { %v2831_v58 = vadd.f32 %v2813_v31, %v2637_v33 }
 0x246   : > { %3523 = vst [vmem:[%s4555_s29 + $0x68] sm:$0xff] %v3507_v62 }
 0x247   : > { %v3437_v3 = vpop.f32.mrf.mxu0 }
 0x248   : > { %v3456_v39 = vadd.f32 %v3437_v3, %v3207_v6  ;;  %v3190_v9 = vpop.f32.mrf.mxu3 }
 0x249   : > { %v3208_v63 = vadd.f32 %v3190_v9, %v2831_v58 }
 0x24a   : > { %v3476_v51 = vadd.f32 %v5449_v59, %v3456_v39 }
 0x24c   : > { %v3508_v61 = vadd.f32 %v5486_v44, %v3476_v51 }
 0x24e   : > { %3524 = vst [vmem:[%s4555_s29 + $0x70] sm:$0xff] %v3508_v61 }
 0x24f   : > { %v3439_v21 = vpop.f32.mrf.mxu0 }
 0x250   : > { %v3457_v8 = vadd.f32 %v3439_v21, %v3208_v63 }
 0x252   : > { %v3477_v32 = vadd.f32 %v5449_v59, %v3457_v8 }
 0x254   : > { %v3509_v4 = vadd.f32 %v5489_v23, %v3477_v32 }
 0x256   : > { %3525 = vst [vmem:[%s4555_s29 + $0x78] sm:$0xff] %v3509_v4 }
 0x257 PF: > { %s19_s13 = sadd.s32 1, %s4356_s13   ;;  %s5585_s30 = smov %s4348_s11 }
 0x258   : > { %p16_p0 = scmp.ge.s32.totalorder %s19_s13, 6   ;;  %s5586_s10 = smov %s4352_s12 }
 0x259   : > { %s5587_s11 = smov %s5590_s14  ;;  %s5588_s12 = smov %s5594_s15 }
 0x25a   :  { %18 = sbr.rel (!%p16_p0) target bundleno = 3 (0x3), region = 118 }

</bundles_post_ra>
